<compile_context>
chip_gen: v5e
topology: v5e:2x2
jax: 0.10.0
libtpu: 0.0.40
codegen_flags: <defaults>
</compile_context>

<pallas_src>
import functools

import jax
import jax.numpy as jnp
from jax import lax
from jax.experimental import pallas as pl
from jax.experimental.pallas import tpu as pltpu

_LANES = 128  # per-batch scalars are stored broadcast across a full lane row


# ----------------------------- fused kernel ---------------------------------

def _pcn_chamfer_kernel(bt, n_coarse, n_fine, m_total,
                        c_ref, f_ref, g_ref, out_ref,
                        rowmin_c, rowmin_f, g2p_acc):
    """Grid = (batch blocks, M tiles).  One step handles `bt` batch elements
    against one M-tile of the ground truth.

    c_ref:     (bt, Nc, 3)   VMEM   coarse points
    f_ref:     (bt, Nf, 3)   VMEM   fine points
    g_ref:     (bt, 3, Mt)   VMEM   gts, coordinate-major (no in-kernel transpose)
    out_ref:   (bt, 4, 128)  VMEM   rows: [coarse_p2g, coarse_g2p, fine_p2g, fine_g2p]
    rowmin_c:  (bt, Nc, 1)   VMEM scratch, running min_j ||c_i - g_j||^2
    rowmin_f:  (bt, Nf, 1)   VMEM scratch, running min_j ||f_i - g_j||^2
    g2p_acc:   (bt, 2, 128)  VMEM scratch, running sum over M of column mins
    """
    m_idx = pl.program_id(1)
    n_mt = pl.num_programs(1)

    @pl.when(m_idx == 0)
    def _():
        rowmin_c[...] = jnp.full(rowmin_c.shape, jnp.inf, dtype=jnp.float32)
        rowmin_f[...] = jnp.full(rowmin_f.shape, jnp.inf, dtype=jnp.float32)
        g2p_acc[...] = jnp.zeros(g2p_acc.shape, dtype=jnp.float32)

    # Hoisted one-hot row masks (avoid re-broadcast per loop iteration).
    row2 = lax.broadcasted_iota(jnp.int32, (2, _LANES), 0)
    row4 = lax.broadcasted_iota(jnp.int32, (4, _LANES), 0)

    def body(i, carry):
        g = g_ref[i].astype(jnp.float32)            # (3, Mt) coordinate-major
        g_sq = jnp.sum(g * g, axis=0)               # (Mt,)  lane-resident

        def tile_stats(p):
            # p: (N, 3) f32 -- standard MXU LHS layout.
            p_sq = jnp.sum(p * p, axis=-1)          # (N,)   sublane-resident
            # ||p-g||^2 = |p|^2 + |g|^2 - 2<p,g>; -2 folded into the tiny LHS.
            cross = lax.dot_general(
                p * (-2.0), g,
                dimension_numbers=(((1,), (0,)), ((), ())),
                preferred_element_type=jnp.float32)  # (N, Mt)
            d = jnp.maximum(p_sq[:, None] + g_sq[None, :] + cross, 0.0)
            # Consume d immediately: lane-min (p2g partial) + sublane-min sum
            # (g2p partial, final for this tile since N is untiled).
            return jnp.min(d, axis=1, keepdims=True), jnp.sum(jnp.min(d, axis=0))

        rm_c, cs_c = tile_stats(c_ref[i].astype(jnp.float32))
        rowmin_c[i] = jnp.minimum(rowmin_c[i], rm_c)

        rm_f, cs_f = tile_stats(f_ref[i].astype(jnp.float32))
        rowmin_f[i] = jnp.minimum(rowmin_f[i], rm_f)

        g2p_acc[i] = g2p_acc[i] + jnp.where(row2 == 0, cs_c, cs_f)

        @pl.when(m_idx == n_mt - 1)
        def _():
            p2g_c = jnp.sum(rowmin_c[i]) * (1.0 / n_coarse)
            p2g_f = jnp.sum(rowmin_f[i]) * (1.0 / n_fine)
            acc = g2p_acc[i]                         # (2, 128), lane-broadcast
            g2p_c = acc[0] * (1.0 / m_total)
            g2p_f = acc[1] * (1.0 / m_total)
            # Single lane-dense (4, 128) slab store per batch element.
            out_ref[i] = jnp.where(row4 == 0, p2g_c,
                         jnp.where(row4 == 1, g2p_c,
                         jnp.where(row4 == 2, p2g_f, g2p_f)))
        return carry

    lax.fori_loop(0, bt, body, 0, unroll=True)


# --------------------------- tiling / VMEM budget ---------------------------

def _round_up(x, m):
    return -(-x // m) * m


def _block_bytes(bt, nc, nf, mt):
    """Padded VMEM footprint estimate of one grid step (f32)."""
    f32 = 4
    nc_p, nf_p = _round_up(nc, 8), _round_up(nf, 8)
    mt_p = _round_up(mt, 128)
    # (N,3) blocks pad lanes 3->128; (3,Mt) block pads sublanes 3->8. x2 double buffer.
    inputs = 2 * bt * (nc_p * 128 + nf_p * 128 + 8 * mt_p) * f32
    # distance tiles (coarse + fine counted conservatively as co-live)
    dists = (nc_p + nf_p) * mt_p * f32
    # scratch accumulators (lane-padded 1 -> 128)
    scratch = bt * (nc_p * 128 + nf_p * 128 + 8 * 128) * f32
    # output block (4 -> 8 sublanes), double buffered
    outputs = 2 * bt * 8 * 128 * f32
    return inputs + dists + scratch + outputs


def _tpu_params():
    """(physical VMEM bytes, TensorCores per chip) with conservative fallbacks."""
    vmem_phys = 64 << 20          # v7x has the smallest VMEM; safe default
    num_cores = 1
    try:
        vmem_phys = int(pltpu.get_tpu_info().vmem_capacity_bytes)
    except Exception:
        pass
    try:
        if "v7" in jax.devices()[0].device_kind.lower():
            num_cores = 2
    except Exception:
        pass
    return vmem_phys, num_cores


def _pick_tiling(B, nc, nf, m, vmem_phys, num_cores, max_m_tile=None):
    """Pick (bt, m_tile): largest blocks fitting ~half of physical VMEM.

    Multi-TC chips (v7x) prefer grid_b >= num_cores so both cores get work;
    single-TC chips (v5e/v6e) just take the biggest bt that fits (capped at 8
    to keep the unrolled loop reasonable)."""
    budget = vmem_phys // 2

    m_tiles = [m]                                  # full M first (fewest steps)
    t = (m // 128) * 128
    while t >= 128:
        if t != m and m % t == 0:
            m_tiles.append(t)
        t -= 128
    if max_m_tile is not None:
        keep = [t for t in m_tiles if t <= max_m_tile]
        if keep:
            m_tiles = keep

    divisors = [bt for bt in range(min(B, 8), 0, -1) if B % bt == 0]
    if num_cores > 1:
        pref = [bt for bt in divisors if B // bt >= num_cores] + divisors
    else:
        pref = divisors

    for bt in pref:
        for mt in m_tiles:
            if _block_bytes(bt, nc, nf, mt) <= budget:
                return bt, mt
    return 1, m_tiles[-1]


# ------------------------------- wrappers -----------------------------------

def pcn_chamfer_terms(coarse, fine, gts, *, max_m_tile=None):
    """Fused per-batch chamfer terms for both clouds against gts.

    Returns (coarse_p2g, coarse_g2p, fine_p2g, fine_g2p), each (B,), where each
    value is mean-of-nearest-neighbor SQUARED distance (sqrt applied by caller).
    """
    B, Nc, _ = coarse.shape
    _, Nf, _ = fine.shape
    _, M, _ = gts.shape

    # Coordinate-major gts: kills the (M,3)->(3,M) transpose AND the g_sq
    # column->row relayout inside the kernel (one cheap XLA transpose here).
    gts_t = jnp.transpose(gts, (0, 2, 1))          # (B, 3, M)

    vmem_phys, num_cores = _tpu_params()
    bt, mt = _pick_tiling(B, Nc, Nf, M, vmem_phys, num_cores, max_m_tile)
    grid_b = B // bt
    n_mt = M // mt

    est = _block_bytes(bt, Nc, Nf, mt)
    vmem_limit = int(min(vmem_phys * 0.92, max(32 << 20, est * 1.5)))

    kernel = functools.partial(_pcn_chamfer_kernel, bt, Nc, Nf, M)

    out = pl.pallas_call(
        kernel,
        out_shape=jax.ShapeDtypeStruct((B, 4, _LANES), jnp.float32),
        grid_spec=pltpu.PrefetchScalarGridSpec(
            num_scalar_prefetch=0,
            grid=(grid_b, n_mt),
            in_specs=[
                pl.BlockSpec((bt, Nc, 3), lambda b, m: (b, 0, 0)),
                pl.BlockSpec((bt, Nf, 3), lambda b, m: (b, 0, 0)),
                pl.BlockSpec((bt, 3, mt), lambda b, m: (b, 0, m)),
            ],
            out_specs=pl.BlockSpec((bt, 4, _LANES), lambda b, m: (b, 0, 0)),
            scratch_shapes=[
                pltpu.VMEM((bt, Nc, 1), jnp.float32),   # running row-min (coarse)
                pltpu.VMEM((bt, Nf, 1), jnp.float32),   # running row-min (fine)
                pltpu.VMEM((bt, 2, _LANES), jnp.float32),  # running col-min sums
            ],
        ),
        compiler_params=pltpu.CompilerParams(
            dimension_semantics=("parallel", "arbitrary"),
            vmem_limit_bytes=vmem_limit),
    )(coarse, fine, gts_t)

    # lane 0 of each row holds the per-batch scalar
    return out[:, 0, 0], out[:, 1, 0], out[:, 2, 0], out[:, 3, 0]


def pcn_loss(coarse, fine, gts, alpha=1.0, *, max_m_tile=None):
    """PcnLoss.forward with ChamferLossSqrt criterion.

    Returns [total_loss, coarse_loss, fine_loss] scalars.
    """
    p2g_c, g2p_c, p2g_f, g2p_f = pcn_chamfer_terms(
        coarse, fine, gts, max_m_tile=max_m_tile)
    loss_coarse = (jnp.sqrt(p2g_c) + jnp.sqrt(g2p_c)) * 0.5
    loss_fine = (jnp.sqrt(p2g_f) + jnp.sqrt(g2p_f)) * 0.5
    loss_tot = loss_coarse + alpha * loss_fine
    return [jnp.mean(loss_tot), jnp.mean(loss_coarse), jnp.mean(loss_fine)]


# -------------------------- pure-JAX reference ------------------------------

def _chamfer_ref(points, gts):
    diff = points[:, :, None, :] - gts[:, None, :, :]      # (B, N, M, 3)
    d = jnp.sum(diff * diff, axis=-1)                       # (B, N, M)
    p2g = jnp.sqrt(jnp.mean(jnp.min(d, axis=2), axis=1))    # (B,)
    g2p = jnp.sqrt(jnp.mean(jnp.min(d, axis=1), axis=1))    # (B,)
    return (p2g + g2p) / 2.0


def _pcn_loss_ref(coarse, fine, gts, alpha=1.0):
    lc = _chamfer_ref(coarse, gts)
    lf = _chamfer_ref(fine, gts)
    lt = lc + alpha * lf
    return [jnp.mean(lt), jnp.mean(lc), jnp.mean(lf)]


def _check(out, ref):
    for o, r in zip(out, ref):
        assert jnp.allclose(o, r, rtol=1e-4, atol=1e-5), (o, r)


if __name__ == "__main__":
    key = jax.random.PRNGKey(0)
    kc, kf, kg = jax.random.split(key, 3)

    # Aligned shapes.
    B, Nc, Nf, M = 4, 64, 256, 256
    coarse = jax.random.normal(kc, (B, Nc, 3), dtype=jnp.float32)
    fine = jax.random.normal(kf, (B, Nf, 3), dtype=jnp.float32)
    gts = jax.random.normal(kg, (B, M, 3), dtype=jnp.float32)
    ref = _pcn_loss_ref(coarse, fine, gts, alpha=1.0)

    # 1) default tiling (single M tile at these sizes)
    out = pcn_loss(coarse, fine, gts, alpha=1.0)
    out = [jax.block_until_ready(o) for o in out]
    _check(out, ref)

    # 2) force the M-tiled running-min path (2 tiles of 128)
    out_t = pcn_loss(coarse, fine, gts, alpha=1.0, max_m_tile=128)
    out_t = [jax.block_until_ready(o) for o in out_t]
    _check(out_t, ref)

    # 3) unaligned shapes (N not multiple of 8, M not multiple of 128)
    k2c, k2f, k2g = jax.random.split(jax.random.PRNGKey(1), 3)
    B2, Nc2, Nf2, M2 = 3, 60, 180, 200
    coarse2 = jax.random.normal(k2c, (B2, Nc2, 3), dtype=jnp.float32)
    fine2 = jax.random.normal(k2f, (B2, Nf2, 3), dtype=jnp.float32)
    gts2 = jax.random.normal(k2g, (B2, M2, 3), dtype=jnp.float32)
    out2 = pcn_loss(coarse2, fine2, gts2, alpha=0.5)
    out2 = [jax.block_until_ready(o) for o in out2]
    _check(out2, _pcn_loss_ref(coarse2, fine2, gts2, alpha=0.5))

    print("KERNEL_OK")
</pallas_src>

<mosaic_0001>
module attributes {stable_mosaic.version = 11 : i64} {
  func.func @_pcn_chamfer_kernel(%arg0: i32, %arg1: i32, %arg2: memref<4x64x3xf32, #tpu.memory_space<vmem>>, %arg3: memref<4x256x3xf32, #tpu.memory_space<vmem>>, %arg4: memref<4x3x256xf32, #tpu.memory_space<vmem>>, %arg5: memref<4x4x128xf32, #tpu.memory_space<vmem>>, %arg6: memref<4x64x1xf32, #tpu.memory_space<vmem>>, %arg7: memref<4x256x1xf32, #tpu.memory_space<vmem>>, %arg8: memref<4x2x128xf32, #tpu.memory_space<vmem>>) attributes {dimension_semantics = [#tpu.dimension_semantics<parallel>, #tpu.dimension_semantics<arbitrary>], iteration_bounds = array<i64: 1, 1>, scalar_prefetch = 0 : i64, scratch_operands = 3 : i64, tpu.core_type = #tpu.core_type<tc>, window_params = [{transform_indices = @transform_0, window_bounds = array<i64: 4, 64, 3>}, {transform_indices = @transform_1, window_bounds = array<i64: 4, 256, 3>}, {transform_indices = @transform_2, window_bounds = array<i64: 4, 3, 256>}, {transform_indices = @transform_3, window_bounds = array<i64: 4, 4, 128>}]} {
    %c0_i32 = arith.constant 0 : i32
    %0 = arith.cmpi eq, %arg1, %c0_i32 : i32
    %1 = arith.extui %0 : i1 to i32
    %c0_i32_0 = arith.constant 0 : i32
    %2 = arith.cmpi ne, %1, %c0_i32_0 : i32
    scf.if %2 {
      %cst_144 = arith.constant 0x7F800000 : f32
      %337 = vector.broadcast %cst_144 : f32 to vector<4x64x1xf32>
      %c0_145 = arith.constant 0 : index
      %c0_146 = arith.constant 0 : index
      %c0_147 = arith.constant 0 : index
      %338 = vector.load %arg6[%c0_145, %c0_146, %c0_147] : memref<4x64x1xf32, #tpu.memory_space<vmem>>, vector<4x64x1xf32>
      tpu.vector_store %arg6[%c0_145, %c0_146, %c0_147], %337 {strides = array<i32>} : memref<4x64x1xf32, #tpu.memory_space<vmem>>, vector<4x64x1xf32>,
      %cst_148 = arith.constant 0x7F800000 : f32
      %339 = vector.broadcast %cst_148 : f32 to vector<4x256x1xf32>
      %c0_149 = arith.constant 0 : index
      %c0_150 = arith.constant 0 : index
      %c0_151 = arith.constant 0 : index
      %340 = vector.load %arg7[%c0_149, %c0_150, %c0_151] : memref<4x256x1xf32, #tpu.memory_space<vmem>>, vector<4x256x1xf32>
      tpu.vector_store %arg7[%c0_149, %c0_150, %c0_151], %339 {strides = array<i32>} : memref<4x256x1xf32, #tpu.memory_space<vmem>>, vector<4x256x1xf32>,
      %cst_152 = arith.constant 0.000000e+00 : f32
      %341 = vector.broadcast %cst_152 : f32 to vector<4x2x128xf32>
      %c0_153 = arith.constant 0 : index
      %c0_154 = arith.constant 0 : index
      %c0_155 = arith.constant 0 : index
      %342 = vector.load %arg8[%c0_153, %c0_154, %c0_155] : memref<4x2x128xf32, #tpu.memory_space<vmem>>, vector<4x2x128xf32>
      tpu.vector_store %arg8[%c0_153, %c0_154, %c0_155], %341 {strides = array<i32>} : memref<4x2x128xf32, #tpu.memory_space<vmem>>, vector<4x2x128xf32>,
    } else {
    }
    %3 = tpu.iota {dimensions = array<i32: 0>} : vector<2x128xi32>
    %4 = tpu.iota {dimensions = array<i32: 0>} : vector<4x128xi32>
    %c0_i32_1 = arith.constant 0 : i32
    %5 = arith.index_cast %c0_i32_1 : i32 to index
    %c0 = arith.constant 0 : index
    %c0_2 = arith.constant 0 : index
    %6 = vector.load %arg4[%5, %c0, %c0_2] : memref<4x3x256xf32, #tpu.memory_space<vmem>>, vector<1x3x256xf32>
    %7 = vector.shape_cast %6 : vector<1x3x256xf32> to vector<3x256xf32>
    %8 = arith.mulf %7, %7 : vector<3x256xf32>
    %cst = arith.constant dense<0.000000e+00> : vector<256xf32>
    %9 = vector.multi_reduction <add>, %8, %cst [0] : vector<3x256xf32> to vector<256xf32>
    %10 = arith.index_cast %c0_i32_1 : i32 to index
    %c0_3 = arith.constant 0 : index
    %c0_4 = arith.constant 0 : index
    %11 = vector.load %arg2[%10, %c0_3, %c0_4] : memref<4x64x3xf32, #tpu.memory_space<vmem>>, vector<1x64x3xf32>
    %12 = vector.shape_cast %11 : vector<1x64x3xf32> to vector<64x3xf32>
    %13 = arith.mulf %12, %12 : vector<64x3xf32>
    %cst_5 = arith.constant dense<0.000000e+00> : vector<64xf32>
    %14 = vector.multi_reduction <add>, %13, %cst_5 [1] : vector<64x3xf32> to vector<64xf32>
    %cst_6 = arith.constant -2.000000e+00 : f32
    %15 = vector.broadcast %cst_6 : f32 to vector<64x3xf32>
    %16 = arith.mulf %12, %15 : vector<64x3xf32>
    %cst_7 = arith.constant dense<0.000000e+00> : vector<64x256xf32>
    %17 = tpu.matmul %16, %7, %cst_7 {dimension_numbers = #tpu.dot_dimension_numbers<[1], [0], [0], [1], [0, 0, 1, 1], [], []>} : vector<64x3xf32>, vector<3x256xf32>, vector<64x256xf32> -> vector<64x256xf32>
    %18 = vector.shape_cast %14 : vector<64xf32> to vector<64x1xf32>
    %19 = vector.shape_cast %9 : vector<256xf32> to vector<1x256xf32>
    %20 = vector.broadcast %18 : vector<64x1xf32> to vector<64x256xf32>
    %21 = vector.broadcast %19 : vector<1x256xf32> to vector<64x256xf32>
    %22 = arith.addf %20, %21 : vector<64x256xf32>
    %23 = arith.addf %22, %17 : vector<64x256xf32>
    %cst_8 = arith.constant 0.000000e+00 : f32
    %24 = vector.broadcast %cst_8 : f32 to vector<64x256xf32>
    %25 = arith.maximumf %23, %24 : vector<64x256xf32>
    %cst_9 = arith.constant dense<0x7F800000> : vector<64xf32>
    %26 = vector.multi_reduction <minimumf>, %25, %cst_9 [1] : vector<64x256xf32> to vector<64xf32>
    %27 = vector.shape_cast %26 : vector<64xf32> to vector<64x1xf32>
    %cst_10 = arith.constant dense<0x7F800000> : vector<256xf32>
    %28 = vector.multi_reduction <minimumf>, %25, %cst_10 [0] : vector<64x256xf32> to vector<256xf32>
    %29 = vector.shape_cast %28 : vector<256xf32> to vector<1x256xf32>
    %cst_11 = arith.constant dense<0.000000e+00> : vector<1xf32>
    %30 = vector.multi_reduction <add>, %29, %cst_11 [1] : vector<1x256xf32> to vector<1xf32>
    %31 = vector.shape_cast %30 : vector<1xf32> to vector<1x1xf32>
    %32 = vector.extract %31[0, 0] : f32 from vector<1x1xf32>
    %33 = arith.index_cast %c0_i32_1 : i32 to index
    %c0_12 = arith.constant 0 : index
    %c0_13 = arith.constant 0 : index
    %34 = vector.load %arg6[%33, %c0_12, %c0_13] : memref<4x64x1xf32, #tpu.memory_space<vmem>>, vector<1x64x1xf32>
    %35 = vector.shape_cast %34 : vector<1x64x1xf32> to vector<64x1xf32>
    %36 = arith.minimumf %35, %27 : vector<64x1xf32>
    %37 = arith.index_cast %c0_i32_1 : i32 to index
    %c0_14 = arith.constant 0 : index
    %c0_15 = arith.constant 0 : index
    %38 = vector.load %arg6[%37, %c0_14, %c0_15] : memref<4x64x1xf32, #tpu.memory_space<vmem>>, vector<1x64x1xf32>
    %39 = vector.shape_cast %38 : vector<1x64x1xf32> to vector<64x1xf32>
    %40 = vector.shape_cast %36 : vector<64x1xf32> to vector<1x64x1xf32>
    tpu.vector_store %arg6[%37, %c0_14, %c0_15], %40 {strides = array<i32>} : memref<4x64x1xf32, #tpu.memory_space<vmem>>, vector<1x64x1xf32>,
    %41 = arith.index_cast %c0_i32_1 : i32 to index
    %c0_16 = arith.constant 0 : index
    %c0_17 = arith.constant 0 : index
    %42 = vector.load %arg3[%41, %c0_16, %c0_17] : memref<4x256x3xf32, #tpu.memory_space<vmem>>, vector<1x256x3xf32>
    %43 = vector.shape_cast %42 : vector<1x256x3xf32> to vector<256x3xf32>
    %44 = arith.mulf %43, %43 : vector<256x3xf32>
    %cst_18 = arith.constant dense<0.000000e+00> : vector<256xf32>
    %45 = vector.multi_reduction <add>, %44, %cst_18 [1] : vector<256x3xf32> to vector<256xf32>
    %cst_19 = arith.constant -2.000000e+00 : f32
    %46 = vector.broadcast %cst_19 : f32 to vector<256x3xf32>
    %47 = arith.mulf %43, %46 : vector<256x3xf32>
    %cst_20 = arith.constant dense<0.000000e+00> : vector<256x256xf32>
    %48 = tpu.matmul %47, %7, %cst_20 {dimension_numbers = #tpu.dot_dimension_numbers<[1], [0], [0], [1], [0, 0, 1, 1], [], []>} : vector<256x3xf32>, vector<3x256xf32>, vector<256x256xf32> -> vector<256x256xf32>
    %49 = vector.shape_cast %45 : vector<256xf32> to vector<256x1xf32>
    %50 = vector.shape_cast %9 : vector<256xf32> to vector<1x256xf32>
    %51 = vector.broadcast %49 : vector<256x1xf32> to vector<256x256xf32>
    %52 = vector.broadcast %50 : vector<1x256xf32> to vector<256x256xf32>
    %53 = arith.addf %51, %52 : vector<256x256xf32>
    %54 = arith.addf %53, %48 : vector<256x256xf32>
    %cst_21 = arith.constant 0.000000e+00 : f32
    %55 = vector.broadcast %cst_21 : f32 to vector<256x256xf32>
    %56 = arith.maximumf %54, %55 : vector<256x256xf32>
    %cst_22 = arith.constant dense<0x7F800000> : vector<256xf32>
    %57 = vector.multi_reduction <minimumf>, %56, %cst_22 [1] : vector<256x256xf32> to vector<256xf32>
    %58 = vector.shape_cast %57 : vector<256xf32> to vector<256x1xf32>
    %cst_23 = arith.constant dense<0x7F800000> : vector<256xf32>
    %59 = vector.multi_reduction <minimumf>, %56, %cst_23 [0] : vector<256x256xf32> to vector<256xf32>
    %60 = vector.shape_cast %59 : vector<256xf32> to vector<1x256xf32>
    %cst_24 = arith.constant dense<0.000000e+00> : vector<1xf32>
    %61 = vector.multi_reduction <add>, %60, %cst_24 [1] : vector<1x256xf32> to vector<1xf32>
    %62 = vector.shape_cast %61 : vector<1xf32> to vector<1x1xf32>
    %63 = vector.extract %62[0, 0] : f32 from vector<1x1xf32>
    %64 = arith.index_cast %c0_i32_1 : i32 to index
    %c0_25 = arith.constant 0 : index
    %c0_26 = arith.constant 0 : index
    %65 = vector.load %arg7[%64, %c0_25, %c0_26] : memref<4x256x1xf32, #tpu.memory_space<vmem>>, vector<1x256x1xf32>
    %66 = vector.shape_cast %65 : vector<1x256x1xf32> to vector<256x1xf32>
    %67 = arith.minimumf %66, %58 : vector<256x1xf32>
    %68 = arith.index_cast %c0_i32_1 : i32 to index
    %c0_27 = arith.constant 0 : index
    %c0_28 = arith.constant 0 : index
    %69 = vector.load %arg7[%68, %c0_27, %c0_28] : memref<4x256x1xf32, #tpu.memory_space<vmem>>, vector<1x256x1xf32>
    %70 = vector.shape_cast %69 : vector<1x256x1xf32> to vector<256x1xf32>
    %71 = vector.shape_cast %67 : vector<256x1xf32> to vector<1x256x1xf32>
    tpu.vector_store %arg7[%68, %c0_27, %c0_28], %71 {strides = array<i32>} : memref<4x256x1xf32, #tpu.memory_space<vmem>>, vector<1x256x1xf32>,
    %72 = arith.index_cast %c0_i32_1 : i32 to index
    %c0_29 = arith.constant 0 : index
    %c0_30 = arith.constant 0 : index
    %73 = vector.load %arg8[%72, %c0_29, %c0_30] : memref<4x2x128xf32, #tpu.memory_space<vmem>>, vector<1x2x128xf32>
    %74 = vector.shape_cast %73 : vector<1x2x128xf32> to vector<2x128xf32>
    %c0_i32_31 = arith.constant 0 : i32
    %75 = vector.broadcast %c0_i32_31 : i32 to vector<2x128xi32>
    %76 = arith.cmpi eq, %3, %75 : vector<2x128xi32>
    %77 = vector.broadcast %32 : f32 to vector<2x128xf32>
    %78 = vector.broadcast %63 : f32 to vector<2x128xf32>
    %79 = arith.select %76, %77, %78 : vector<2x128xi1>, vector<2x128xf32>
    %80 = arith.addf %74, %79 : vector<2x128xf32>
    %81 = arith.index_cast %c0_i32_1 : i32 to index
    %c0_32 = arith.constant 0 : index
    %c0_33 = arith.constant 0 : index
    %82 = vector.load %arg8[%81, %c0_32, %c0_33] : memref<4x2x128xf32, #tpu.memory_space<vmem>>, vector<1x2x128xf32>
    %83 = vector.shape_cast %82 : vector<1x2x128xf32> to vector<2x128xf32>
    %84 = vector.shape_cast %80 : vector<2x128xf32> to vector<1x2x128xf32>
    tpu.vector_store %arg8[%81, %c0_32, %c0_33], %84 {strides = array<i32>} : memref<4x2x128xf32, #tpu.memory_space<vmem>>, vector<1x2x128xf32>,
    %c0_i32_34 = arith.constant 0 : i32
    %85 = arith.cmpi eq, %arg1, %c0_i32_34 : i32
    %86 = arith.extui %85 : i1 to i32
    %c0_i32_35 = arith.constant 0 : i32
    %87 = arith.cmpi ne, %86, %c0_i32_35 : i32
    scf.if %87 {
      %337 = arith.index_cast %c0_i32_1 : i32 to index
      %c0_144 = arith.constant 0 : index
      %c0_145 = arith.constant 0 : index
      %338 = vector.load %arg6[%337, %c0_144, %c0_145] : memref<4x64x1xf32, #tpu.memory_space<vmem>>, vector<1x64x1xf32>
      %339 = vector.shape_cast %338 : vector<1x64x1xf32> to vector<64x1xf32>
      %340 = vector.shape_cast %339 : vector<64x1xf32> to vector<1x64x1xf32>
      %cst_146 = arith.constant dense<0.000000e+00> : vector<1xf32>
      %341 = vector.multi_reduction <add>, %340, %cst_146 [1, 2] : vector<1x64x1xf32> to vector<1xf32>
      %342 = vector.shape_cast %341 : vector<1xf32> to vector<1x1x1xf32>
      %343 = vector.extract %342[0, 0, 0] : f32 from vector<1x1x1xf32>
      %cst_147 = arith.constant 1.562500e-02 : f32
      %344 = arith.mulf %343, %cst_147 : f32
      %345 = arith.index_cast %c0_i32_1 : i32 to index
      %c0_148 = arith.constant 0 : index
      %c0_149 = arith.constant 0 : index
      %346 = vector.load %arg7[%345, %c0_148, %c0_149] : memref<4x256x1xf32, #tpu.memory_space<vmem>>, vector<1x256x1xf32>
      %347 = vector.shape_cast %346 : vector<1x256x1xf32> to vector<256x1xf32>
      %348 = vector.shape_cast %347 : vector<256x1xf32> to vector<1x256x1xf32>
      %cst_150 = arith.constant dense<0.000000e+00> : vector<1xf32>
      %349 = vector.multi_reduction <add>, %348, %cst_150 [1, 2] : vector<1x256x1xf32> to vector<1xf32>
      %350 = vector.shape_cast %349 : vector<1xf32> to vector<1x1x1xf32>
      %351 = vector.extract %350[0, 0, 0] : f32 from vector<1x1x1xf32>
      %cst_151 = arith.constant 3.906250e-03 : f32
      %352 = arith.mulf %351, %cst_151 : f32
      %353 = arith.index_cast %c0_i32_1 : i32 to index
      %c0_152 = arith.constant 0 : index
      %c0_153 = arith.constant 0 : index
      %354 = vector.load %arg8[%353, %c0_152, %c0_153] : memref<4x2x128xf32, #tpu.memory_space<vmem>>, vector<1x2x128xf32>
      %355 = vector.shape_cast %354 : vector<1x2x128xf32> to vector<2x128xf32>
      %356 = vector.extract_strided_slice %355 {offsets = [0, 0], sizes = [1, 128], strides = [1, 1]} : vector<2x128xf32> to vector<1x128xf32>
      %357 = vector.shape_cast %356 : vector<1x128xf32> to vector<128xf32>
      %cst_154 = arith.constant 3.906250e-03 : f32
      %358 = vector.broadcast %cst_154 : f32 to vector<128xf32>
      %359 = arith.mulf %357, %358 : vector<128xf32>
      %360 = vector.extract_strided_slice %355 {offsets = [1, 0], sizes = [1, 128], strides = [1, 1]} : vector<2x128xf32> to vector<1x128xf32>
      %361 = vector.shape_cast %360 : vector<1x128xf32> to vector<128xf32>
      %cst_155 = arith.constant 3.906250e-03 : f32
      %362 = vector.broadcast %cst_155 : f32 to vector<128xf32>
      %363 = arith.mulf %361, %362 : vector<128xf32>
      %c0_i32_156 = arith.constant 0 : i32
      %364 = vector.broadcast %c0_i32_156 : i32 to vector<4x128xi32>
      %365 = arith.cmpi eq, %4, %364 : vector<4x128xi32>
      %c1_i32_157 = arith.constant 1 : i32
      %366 = vector.broadcast %c1_i32_157 : i32 to vector<4x128xi32>
      %367 = arith.cmpi eq, %4, %366 : vector<4x128xi32>
      %c2_i32_158 = arith.constant 2 : i32
      %368 = vector.broadcast %c2_i32_158 : i32 to vector<4x128xi32>
      %369 = arith.cmpi eq, %4, %368 : vector<4x128xi32>
      %370 = vector.broadcast %352 : f32 to vector<4x128xf32>
      %371 = vector.shape_cast %363 : vector<128xf32> to vector<1x128xf32>
      %372 = vector.broadcast %371 : vector<1x128xf32> to vector<4x128xf32>
      %373 = arith.select %369, %370, %372 : vector<4x128xi1>, vector<4x128xf32>
      %374 = vector.shape_cast %359 : vector<128xf32> to vector<1x128xf32>
      %375 = vector.broadcast %374 : vector<1x128xf32> to vector<4x128xf32>
      %376 = arith.select %367, %375, %373 : vector<4x128xi1>, vector<4x128xf32>
      %377 = vector.broadcast %344 : f32 to vector<4x128xf32>
      %378 = arith.select %365, %377, %376 : vector<4x128xi1>, vector<4x128xf32>
      %379 = arith.index_cast %c0_i32_1 : i32 to index
      %c0_159 = arith.constant 0 : index
      %c0_160 = arith.constant 0 : index
      %380 = vector.load %arg5[%379, %c0_159, %c0_160] : memref<4x4x128xf32, #tpu.memory_space<vmem>>, vector<1x4x128xf32>
      %381 = vector.shape_cast %380 : vector<1x4x128xf32> to vector<4x128xf32>
      %382 = vector.shape_cast %378 : vector<4x128xf32> to vector<1x4x128xf32>
      tpu.vector_store %arg5[%379, %c0_159, %c0_160], %382 {strides = array<i32>} : memref<4x4x128xf32, #tpu.memory_space<vmem>>, vector<1x4x128xf32>,
    } else {
    }
    %c1_i32 = arith.constant 1 : i32
    %88 = arith.index_cast %c1_i32 : i32 to index
    %c0_36 = arith.constant 0 : index
    %c0_37 = arith.constant 0 : index
    %89 = vector.load %arg4[%88, %c0_36, %c0_37] : memref<4x3x256xf32, #tpu.memory_space<vmem>>, vector<1x3x256xf32>
    %90 = vector.shape_cast %89 : vector<1x3x256xf32> to vector<3x256xf32>
    %91 = arith.mulf %90, %90 : vector<3x256xf32>
    %cst_38 = arith.constant dense<0.000000e+00> : vector<256xf32>
    %92 = vector.multi_reduction <add>, %91, %cst_38 [0] : vector<3x256xf32> to vector<256xf32>
    %93 = arith.index_cast %c1_i32 : i32 to index
    %c0_39 = arith.constant 0 : index
    %c0_40 = arith.constant 0 : index
    %94 = vector.load %arg2[%93, %c0_39, %c0_40] : memref<4x64x3xf32, #tpu.memory_space<vmem>>, vector<1x64x3xf32>
    %95 = vector.shape_cast %94 : vector<1x64x3xf32> to vector<64x3xf32>
    %96 = arith.mulf %95, %95 : vector<64x3xf32>
    %cst_41 = arith.constant dense<0.000000e+00> : vector<64xf32>
    %97 = vector.multi_reduction <add>, %96, %cst_41 [1] : vector<64x3xf32> to vector<64xf32>
    %cst_42 = arith.constant -2.000000e+00 : f32
    %98 = vector.broadcast %cst_42 : f32 to vector<64x3xf32>
    %99 = arith.mulf %95, %98 : vector<64x3xf32>
    %cst_43 = arith.constant dense<0.000000e+00> : vector<64x256xf32>
    %100 = tpu.matmul %99, %90, %cst_43 {dimension_numbers = #tpu.dot_dimension_numbers<[1], [0], [0], [1], [0, 0, 1, 1], [], []>} : vector<64x3xf32>, vector<3x256xf32>, vector<64x256xf32> -> vector<64x256xf32>
    %101 = vector.shape_cast %97 : vector<64xf32> to vector<64x1xf32>
    %102 = vector.shape_cast %92 : vector<256xf32> to vector<1x256xf32>
    %103 = vector.broadcast %101 : vector<64x1xf32> to vector<64x256xf32>
    %104 = vector.broadcast %102 : vector<1x256xf32> to vector<64x256xf32>
    %105 = arith.addf %103, %104 : vector<64x256xf32>
    %106 = arith.addf %105, %100 : vector<64x256xf32>
    %cst_44 = arith.constant 0.000000e+00 : f32
    %107 = vector.broadcast %cst_44 : f32 to vector<64x256xf32>
    %108 = arith.maximumf %106, %107 : vector<64x256xf32>
    %cst_45 = arith.constant dense<0x7F800000> : vector<64xf32>
    %109 = vector.multi_reduction <minimumf>, %108, %cst_45 [1] : vector<64x256xf32> to vector<64xf32>
    %110 = vector.shape_cast %109 : vector<64xf32> to vector<64x1xf32>
    %cst_46 = arith.constant dense<0x7F800000> : vector<256xf32>
    %111 = vector.multi_reduction <minimumf>, %108, %cst_46 [0] : vector<64x256xf32> to vector<256xf32>
    %112 = vector.shape_cast %111 : vector<256xf32> to vector<1x256xf32>
    %cst_47 = arith.constant dense<0.000000e+00> : vector<1xf32>
    %113 = vector.multi_reduction <add>, %112, %cst_47 [1] : vector<1x256xf32> to vector<1xf32>
    %114 = vector.shape_cast %113 : vector<1xf32> to vector<1x1xf32>
    %115 = vector.extract %114[0, 0] : f32 from vector<1x1xf32>
    %116 = arith.index_cast %c1_i32 : i32 to index
    %c0_48 = arith.constant 0 : index
    %c0_49 = arith.constant 0 : index
    %117 = vector.load %arg6[%116, %c0_48, %c0_49] : memref<4x64x1xf32, #tpu.memory_space<vmem>>, vector<1x64x1xf32>
    %118 = vector.shape_cast %117 : vector<1x64x1xf32> to vector<64x1xf32>
    %119 = arith.minimumf %118, %110 : vector<64x1xf32>
    %120 = arith.index_cast %c1_i32 : i32 to index
    %c0_50 = arith.constant 0 : index
    %c0_51 = arith.constant 0 : index
    %121 = vector.load %arg6[%120, %c0_50, %c0_51] : memref<4x64x1xf32, #tpu.memory_space<vmem>>, vector<1x64x1xf32>
    %122 = vector.shape_cast %121 : vector<1x64x1xf32> to vector<64x1xf32>
    %123 = vector.shape_cast %119 : vector<64x1xf32> to vector<1x64x1xf32>
    tpu.vector_store %arg6[%120, %c0_50, %c0_51], %123 {strides = array<i32>} : memref<4x64x1xf32, #tpu.memory_space<vmem>>, vector<1x64x1xf32>,
    %124 = arith.index_cast %c1_i32 : i32 to index
    %c0_52 = arith.constant 0 : index
    %c0_53 = arith.constant 0 : index
    %125 = vector.load %arg3[%124, %c0_52, %c0_53] : memref<4x256x3xf32, #tpu.memory_space<vmem>>, vector<1x256x3xf32>
    %126 = vector.shape_cast %125 : vector<1x256x3xf32> to vector<256x3xf32>
    %127 = arith.mulf %126, %126 : vector<256x3xf32>
    %cst_54 = arith.constant dense<0.000000e+00> : vector<256xf32>
    %128 = vector.multi_reduction <add>, %127, %cst_54 [1] : vector<256x3xf32> to vector<256xf32>
    %cst_55 = arith.constant -2.000000e+00 : f32
    %129 = vector.broadcast %cst_55 : f32 to vector<256x3xf32>
    %130 = arith.mulf %126, %129 : vector<256x3xf32>
    %cst_56 = arith.constant dense<0.000000e+00> : vector<256x256xf32>
    %131 = tpu.matmul %130, %90, %cst_56 {dimension_numbers = #tpu.dot_dimension_numbers<[1], [0], [0], [1], [0, 0, 1, 1], [], []>} : vector<256x3xf32>, vector<3x256xf32>, vector<256x256xf32> -> vector<256x256xf32>
    %132 = vector.shape_cast %128 : vector<256xf32> to vector<256x1xf32>
    %133 = vector.shape_cast %92 : vector<256xf32> to vector<1x256xf32>
    %134 = vector.broadcast %132 : vector<256x1xf32> to vector<256x256xf32>
    %135 = vector.broadcast %133 : vector<1x256xf32> to vector<256x256xf32>
    %136 = arith.addf %134, %135 : vector<256x256xf32>
    %137 = arith.addf %136, %131 : vector<256x256xf32>
    %cst_57 = arith.constant 0.000000e+00 : f32
    %138 = vector.broadcast %cst_57 : f32 to vector<256x256xf32>
    %139 = arith.maximumf %137, %138 : vector<256x256xf32>
    %cst_58 = arith.constant dense<0x7F800000> : vector<256xf32>
    %140 = vector.multi_reduction <minimumf>, %139, %cst_58 [1] : vector<256x256xf32> to vector<256xf32>
    %141 = vector.shape_cast %140 : vector<256xf32> to vector<256x1xf32>
    %cst_59 = arith.constant dense<0x7F800000> : vector<256xf32>
    %142 = vector.multi_reduction <minimumf>, %139, %cst_59 [0] : vector<256x256xf32> to vector<256xf32>
    %143 = vector.shape_cast %142 : vector<256xf32> to vector<1x256xf32>
    %cst_60 = arith.constant dense<0.000000e+00> : vector<1xf32>
    %144 = vector.multi_reduction <add>, %143, %cst_60 [1] : vector<1x256xf32> to vector<1xf32>
    %145 = vector.shape_cast %144 : vector<1xf32> to vector<1x1xf32>
    %146 = vector.extract %145[0, 0] : f32 from vector<1x1xf32>
    %147 = arith.index_cast %c1_i32 : i32 to index
    %c0_61 = arith.constant 0 : index
    %c0_62 = arith.constant 0 : index
    %148 = vector.load %arg7[%147, %c0_61, %c0_62] : memref<4x256x1xf32, #tpu.memory_space<vmem>>, vector<1x256x1xf32>
    %149 = vector.shape_cast %148 : vector<1x256x1xf32> to vector<256x1xf32>
    %150 = arith.minimumf %149, %141 : vector<256x1xf32>
    %151 = arith.index_cast %c1_i32 : i32 to index
    %c0_63 = arith.constant 0 : index
    %c0_64 = arith.constant 0 : index
    %152 = vector.load %arg7[%151, %c0_63, %c0_64] : memref<4x256x1xf32, #tpu.memory_space<vmem>>, vector<1x256x1xf32>
    %153 = vector.shape_cast %152 : vector<1x256x1xf32> to vector<256x1xf32>
    %154 = vector.shape_cast %150 : vector<256x1xf32> to vector<1x256x1xf32>
    tpu.vector_store %arg7[%151, %c0_63, %c0_64], %154 {strides = array<i32>} : memref<4x256x1xf32, #tpu.memory_space<vmem>>, vector<1x256x1xf32>,
    %155 = arith.index_cast %c1_i32 : i32 to index
    %c0_65 = arith.constant 0 : index
    %c0_66 = arith.constant 0 : index
    %156 = vector.load %arg8[%155, %c0_65, %c0_66] : memref<4x2x128xf32, #tpu.memory_space<vmem>>, vector<1x2x128xf32>
    %157 = vector.shape_cast %156 : vector<1x2x128xf32> to vector<2x128xf32>
    %c0_i32_67 = arith.constant 0 : i32
    %158 = vector.broadcast %c0_i32_67 : i32 to vector<2x128xi32>
    %159 = arith.cmpi eq, %3, %158 : vector<2x128xi32>
    %160 = vector.broadcast %115 : f32 to vector<2x128xf32>
    %161 = vector.broadcast %146 : f32 to vector<2x128xf32>
    %162 = arith.select %159, %160, %161 : vector<2x128xi1>, vector<2x128xf32>
    %163 = arith.addf %157, %162 : vector<2x128xf32>
    %164 = arith.index_cast %c1_i32 : i32 to index
    %c0_68 = arith.constant 0 : index
    %c0_69 = arith.constant 0 : index
    %165 = vector.load %arg8[%164, %c0_68, %c0_69] : memref<4x2x128xf32, #tpu.memory_space<vmem>>, vector<1x2x128xf32>
    %166 = vector.shape_cast %165 : vector<1x2x128xf32> to vector<2x128xf32>
    %167 = vector.shape_cast %163 : vector<2x128xf32> to vector<1x2x128xf32>
    tpu.vector_store %arg8[%164, %c0_68, %c0_69], %167 {strides = array<i32>} : memref<4x2x128xf32, #tpu.memory_space<vmem>>, vector<1x2x128xf32>,
    %c0_i32_70 = arith.constant 0 : i32
    %168 = arith.cmpi eq, %arg1, %c0_i32_70 : i32
    %169 = arith.extui %168 : i1 to i32
    %c0_i32_71 = arith.constant 0 : i32
    %170 = arith.cmpi ne, %169, %c0_i32_71 : i32
    scf.if %170 {
      %337 = arith.index_cast %c1_i32 : i32 to index
      %c0_144 = arith.constant 0 : index
      %c0_145 = arith.constant 0 : index
      %338 = vector.load %arg6[%337, %c0_144, %c0_145] : memref<4x64x1xf32, #tpu.memory_space<vmem>>, vector<1x64x1xf32>
      %339 = vector.shape_cast %338 : vector<1x64x1xf32> to vector<64x1xf32>
      %340 = vector.shape_cast %339 : vector<64x1xf32> to vector<1x64x1xf32>
      %cst_146 = arith.constant dense<0.000000e+00> : vector<1xf32>
      %341 = vector.multi_reduction <add>, %340, %cst_146 [1, 2] : vector<1x64x1xf32> to vector<1xf32>
      %342 = vector.shape_cast %341 : vector<1xf32> to vector<1x1x1xf32>
      %343 = vector.extract %342[0, 0, 0] : f32 from vector<1x1x1xf32>
      %cst_147 = arith.constant 1.562500e-02 : f32
      %344 = arith.mulf %343, %cst_147 : f32
      %345 = arith.index_cast %c1_i32 : i32 to index
      %c0_148 = arith.constant 0 : index
      %c0_149 = arith.constant 0 : index
      %346 = vector.load %arg7[%345, %c0_148, %c0_149] : memref<4x256x1xf32, #tpu.memory_space<vmem>>, vector<1x256x1xf32>
      %347 = vector.shape_cast %346 : vector<1x256x1xf32> to vector<256x1xf32>
      %348 = vector.shape_cast %347 : vector<256x1xf32> to vector<1x256x1xf32>
      %cst_150 = arith.constant dense<0.000000e+00> : vector<1xf32>
      %349 = vector.multi_reduction <add>, %348, %cst_150 [1, 2] : vector<1x256x1xf32> to vector<1xf32>
      %350 = vector.shape_cast %349 : vector<1xf32> to vector<1x1x1xf32>
      %351 = vector.extract %350[0, 0, 0] : f32 from vector<1x1x1xf32>
      %cst_151 = arith.constant 3.906250e-03 : f32
      %352 = arith.mulf %351, %cst_151 : f32
      %353 = arith.index_cast %c1_i32 : i32 to index
      %c0_152 = arith.constant 0 : index
      %c0_153 = arith.constant 0 : index
      %354 = vector.load %arg8[%353, %c0_152, %c0_153] : memref<4x2x128xf32, #tpu.memory_space<vmem>>, vector<1x2x128xf32>
      %355 = vector.shape_cast %354 : vector<1x2x128xf32> to vector<2x128xf32>
      %356 = vector.extract_strided_slice %355 {offsets = [0, 0], sizes = [1, 128], strides = [1, 1]} : vector<2x128xf32> to vector<1x128xf32>
      %357 = vector.shape_cast %356 : vector<1x128xf32> to vector<128xf32>
      %cst_154 = arith.constant 3.906250e-03 : f32
      %358 = vector.broadcast %cst_154 : f32 to vector<128xf32>
      %359 = arith.mulf %357, %358 : vector<128xf32>
      %360 = vector.extract_strided_slice %355 {offsets = [1, 0], sizes = [1, 128], strides = [1, 1]} : vector<2x128xf32> to vector<1x128xf32>
      %361 = vector.shape_cast %360 : vector<1x128xf32> to vector<128xf32>
      %cst_155 = arith.constant 3.906250e-03 : f32
      %362 = vector.broadcast %cst_155 : f32 to vector<128xf32>
      %363 = arith.mulf %361, %362 : vector<128xf32>
      %c0_i32_156 = arith.constant 0 : i32
      %364 = vector.broadcast %c0_i32_156 : i32 to vector<4x128xi32>
      %365 = arith.cmpi eq, %4, %364 : vector<4x128xi32>
      %c1_i32_157 = arith.constant 1 : i32
      %366 = vector.broadcast %c1_i32_157 : i32 to vector<4x128xi32>
      %367 = arith.cmpi eq, %4, %366 : vector<4x128xi32>
      %c2_i32_158 = arith.constant 2 : i32
      %368 = vector.broadcast %c2_i32_158 : i32 to vector<4x128xi32>
      %369 = arith.cmpi eq, %4, %368 : vector<4x128xi32>
      %370 = vector.broadcast %352 : f32 to vector<4x128xf32>
      %371 = vector.shape_cast %363 : vector<128xf32> to vector<1x128xf32>
      %372 = vector.broadcast %371 : vector<1x128xf32> to vector<4x128xf32>
      %373 = arith.select %369, %370, %372 : vector<4x128xi1>, vector<4x128xf32>
      %374 = vector.shape_cast %359 : vector<128xf32> to vector<1x128xf32>
      %375 = vector.broadcast %374 : vector<1x128xf32> to vector<4x128xf32>
      %376 = arith.select %367, %375, %373 : vector<4x128xi1>, vector<4x128xf32>
      %377 = vector.broadcast %344 : f32 to vector<4x128xf32>
      %378 = arith.select %365, %377, %376 : vector<4x128xi1>, vector<4x128xf32>
      %379 = arith.index_cast %c1_i32 : i32 to index
      %c0_159 = arith.constant 0 : index
      %c0_160 = arith.constant 0 : index
      %380 = vector.load %arg5[%379, %c0_159, %c0_160] : memref<4x4x128xf32, #tpu.memory_space<vmem>>, vector<1x4x128xf32>
      %381 = vector.shape_cast %380 : vector<1x4x128xf32> to vector<4x128xf32>
      %382 = vector.shape_cast %378 : vector<4x128xf32> to vector<1x4x128xf32>
      tpu.vector_store %arg5[%379, %c0_159, %c0_160], %382 {strides = array<i32>} : memref<4x4x128xf32, #tpu.memory_space<vmem>>, vector<1x4x128xf32>,
    } else {
    }
    %c2_i32 = arith.constant 2 : i32
    %171 = arith.index_cast %c2_i32 : i32 to index
    %c0_72 = arith.constant 0 : index
    %c0_73 = arith.constant 0 : index
    %172 = vector.load %arg4[%171, %c0_72, %c0_73] : memref<4x3x256xf32, #tpu.memory_space<vmem>>, vector<1x3x256xf32>
    %173 = vector.shape_cast %172 : vector<1x3x256xf32> to vector<3x256xf32>
    %174 = arith.mulf %173, %173 : vector<3x256xf32>
    %cst_74 = arith.constant dense<0.000000e+00> : vector<256xf32>
    %175 = vector.multi_reduction <add>, %174, %cst_74 [0] : vector<3x256xf32> to vector<256xf32>
    %176 = arith.index_cast %c2_i32 : i32 to index
    %c0_75 = arith.constant 0 : index
    %c0_76 = arith.constant 0 : index
    %177 = vector.load %arg2[%176, %c0_75, %c0_76] : memref<4x64x3xf32, #tpu.memory_space<vmem>>, vector<1x64x3xf32>
    %178 = vector.shape_cast %177 : vector<1x64x3xf32> to vector<64x3xf32>
    %179 = arith.mulf %178, %178 : vector<64x3xf32>
    %cst_77 = arith.constant dense<0.000000e+00> : vector<64xf32>
    %180 = vector.multi_reduction <add>, %179, %cst_77 [1] : vector<64x3xf32> to vector<64xf32>
    %cst_78 = arith.constant -2.000000e+00 : f32
    %181 = vector.broadcast %cst_78 : f32 to vector<64x3xf32>
    %182 = arith.mulf %178, %181 : vector<64x3xf32>
    %cst_79 = arith.constant dense<0.000000e+00> : vector<64x256xf32>
    %183 = tpu.matmul %182, %173, %cst_79 {dimension_numbers = #tpu.dot_dimension_numbers<[1], [0], [0], [1], [0, 0, 1, 1], [], []>} : vector<64x3xf32>, vector<3x256xf32>, vector<64x256xf32> -> vector<64x256xf32>
    %184 = vector.shape_cast %180 : vector<64xf32> to vector<64x1xf32>
    %185 = vector.shape_cast %175 : vector<256xf32> to vector<1x256xf32>
    %186 = vector.broadcast %184 : vector<64x1xf32> to vector<64x256xf32>
    %187 = vector.broadcast %185 : vector<1x256xf32> to vector<64x256xf32>
    %188 = arith.addf %186, %187 : vector<64x256xf32>
    %189 = arith.addf %188, %183 : vector<64x256xf32>
    %cst_80 = arith.constant 0.000000e+00 : f32
    %190 = vector.broadcast %cst_80 : f32 to vector<64x256xf32>
    %191 = arith.maximumf %189, %190 : vector<64x256xf32>
    %cst_81 = arith.constant dense<0x7F800000> : vector<64xf32>
    %192 = vector.multi_reduction <minimumf>, %191, %cst_81 [1] : vector<64x256xf32> to vector<64xf32>
    %193 = vector.shape_cast %192 : vector<64xf32> to vector<64x1xf32>
    %cst_82 = arith.constant dense<0x7F800000> : vector<256xf32>
    %194 = vector.multi_reduction <minimumf>, %191, %cst_82 [0] : vector<64x256xf32> to vector<256xf32>
    %195 = vector.shape_cast %194 : vector<256xf32> to vector<1x256xf32>
    %cst_83 = arith.constant dense<0.000000e+00> : vector<1xf32>
    %196 = vector.multi_reduction <add>, %195, %cst_83 [1] : vector<1x256xf32> to vector<1xf32>
    %197 = vector.shape_cast %196 : vector<1xf32> to vector<1x1xf32>
    %198 = vector.extract %197[0, 0] : f32 from vector<1x1xf32>
    %199 = arith.index_cast %c2_i32 : i32 to index
    %c0_84 = arith.constant 0 : index
    %c0_85 = arith.constant 0 : index
    %200 = vector.load %arg6[%199, %c0_84, %c0_85] : memref<4x64x1xf32, #tpu.memory_space<vmem>>, vector<1x64x1xf32>
    %201 = vector.shape_cast %200 : vector<1x64x1xf32> to vector<64x1xf32>
    %202 = arith.minimumf %201, %193 : vector<64x1xf32>
    %203 = arith.index_cast %c2_i32 : i32 to index
    %c0_86 = arith.constant 0 : index
    %c0_87 = arith.constant 0 : index
    %204 = vector.load %arg6[%203, %c0_86, %c0_87] : memref<4x64x1xf32, #tpu.memory_space<vmem>>, vector<1x64x1xf32>
    %205 = vector.shape_cast %204 : vector<1x64x1xf32> to vector<64x1xf32>
    %206 = vector.shape_cast %202 : vector<64x1xf32> to vector<1x64x1xf32>
    tpu.vector_store %arg6[%203, %c0_86, %c0_87], %206 {strides = array<i32>} : memref<4x64x1xf32, #tpu.memory_space<vmem>>, vector<1x64x1xf32>,
    %207 = arith.index_cast %c2_i32 : i32 to index
    %c0_88 = arith.constant 0 : index
    %c0_89 = arith.constant 0 : index
    %208 = vector.load %arg3[%207, %c0_88, %c0_89] : memref<4x256x3xf32, #tpu.memory_space<vmem>>, vector<1x256x3xf32>
    %209 = vector.shape_cast %208 : vector<1x256x3xf32> to vector<256x3xf32>
    %210 = arith.mulf %209, %209 : vector<256x3xf32>
    %cst_90 = arith.constant dense<0.000000e+00> : vector<256xf32>
    %211 = vector.multi_reduction <add>, %210, %cst_90 [1] : vector<256x3xf32> to vector<256xf32>
    %cst_91 = arith.constant -2.000000e+00 : f32
    %212 = vector.broadcast %cst_91 : f32 to vector<256x3xf32>
    %213 = arith.mulf %209, %212 : vector<256x3xf32>
    %cst_92 = arith.constant dense<0.000000e+00> : vector<256x256xf32>
    %214 = tpu.matmul %213, %173, %cst_92 {dimension_numbers = #tpu.dot_dimension_numbers<[1], [0], [0], [1], [0, 0, 1, 1], [], []>} : vector<256x3xf32>, vector<3x256xf32>, vector<256x256xf32> -> vector<256x256xf32>
    %215 = vector.shape_cast %211 : vector<256xf32> to vector<256x1xf32>
    %216 = vector.shape_cast %175 : vector<256xf32> to vector<1x256xf32>
    %217 = vector.broadcast %215 : vector<256x1xf32> to vector<256x256xf32>
    %218 = vector.broadcast %216 : vector<1x256xf32> to vector<256x256xf32>
    %219 = arith.addf %217, %218 : vector<256x256xf32>
    %220 = arith.addf %219, %214 : vector<256x256xf32>
    %cst_93 = arith.constant 0.000000e+00 : f32
    %221 = vector.broadcast %cst_93 : f32 to vector<256x256xf32>
    %222 = arith.maximumf %220, %221 : vector<256x256xf32>
    %cst_94 = arith.constant dense<0x7F800000> : vector<256xf32>
    %223 = vector.multi_reduction <minimumf>, %222, %cst_94 [1] : vector<256x256xf32> to vector<256xf32>
    %224 = vector.shape_cast %223 : vector<256xf32> to vector<256x1xf32>
    %cst_95 = arith.constant dense<0x7F800000> : vector<256xf32>
    %225 = vector.multi_reduction <minimumf>, %222, %cst_95 [0] : vector<256x256xf32> to vector<256xf32>
    %226 = vector.shape_cast %225 : vector<256xf32> to vector<1x256xf32>
    %cst_96 = arith.constant dense<0.000000e+00> : vector<1xf32>
    %227 = vector.multi_reduction <add>, %226, %cst_96 [1] : vector<1x256xf32> to vector<1xf32>
    %228 = vector.shape_cast %227 : vector<1xf32> to vector<1x1xf32>
    %229 = vector.extract %228[0, 0] : f32 from vector<1x1xf32>
    %230 = arith.index_cast %c2_i32 : i32 to index
    %c0_97 = arith.constant 0 : index
    %c0_98 = arith.constant 0 : index
    %231 = vector.load %arg7[%230, %c0_97, %c0_98] : memref<4x256x1xf32, #tpu.memory_space<vmem>>, vector<1x256x1xf32>
    %232 = vector.shape_cast %231 : vector<1x256x1xf32> to vector<256x1xf32>
    %233 = arith.minimumf %232, %224 : vector<256x1xf32>
    %234 = arith.index_cast %c2_i32 : i32 to index
    %c0_99 = arith.constant 0 : index
    %c0_100 = arith.constant 0 : index
    %235 = vector.load %arg7[%234, %c0_99, %c0_100] : memref<4x256x1xf32, #tpu.memory_space<vmem>>, vector<1x256x1xf32>
    %236 = vector.shape_cast %235 : vector<1x256x1xf32> to vector<256x1xf32>
    %237 = vector.shape_cast %233 : vector<256x1xf32> to vector<1x256x1xf32>
    tpu.vector_store %arg7[%234, %c0_99, %c0_100], %237 {strides = array<i32>} : memref<4x256x1xf32, #tpu.memory_space<vmem>>, vector<1x256x1xf32>,
    %238 = arith.index_cast %c2_i32 : i32 to index
    %c0_101 = arith.constant 0 : index
    %c0_102 = arith.constant 0 : index
    %239 = vector.load %arg8[%238, %c0_101, %c0_102] : memref<4x2x128xf32, #tpu.memory_space<vmem>>, vector<1x2x128xf32>
    %240 = vector.shape_cast %239 : vector<1x2x128xf32> to vector<2x128xf32>
    %c0_i32_103 = arith.constant 0 : i32
    %241 = vector.broadcast %c0_i32_103 : i32 to vector<2x128xi32>
    %242 = arith.cmpi eq, %3, %241 : vector<2x128xi32>
    %243 = vector.broadcast %198 : f32 to vector<2x128xf32>
    %244 = vector.broadcast %229 : f32 to vector<2x128xf32>
    %245 = arith.select %242, %243, %244 : vector<2x128xi1>, vector<2x128xf32>
    %246 = arith.addf %240, %245 : vector<2x128xf32>
    %247 = arith.index_cast %c2_i32 : i32 to index
    %c0_104 = arith.constant 0 : index
    %c0_105 = arith.constant 0 : index
    %248 = vector.load %arg8[%247, %c0_104, %c0_105] : memref<4x2x128xf32, #tpu.memory_space<vmem>>, vector<1x2x128xf32>
    %249 = vector.shape_cast %248 : vector<1x2x128xf32> to vector<2x128xf32>
    %250 = vector.shape_cast %246 : vector<2x128xf32> to vector<1x2x128xf32>
    tpu.vector_store %arg8[%247, %c0_104, %c0_105], %250 {strides = array<i32>} : memref<4x2x128xf32, #tpu.memory_space<vmem>>, vector<1x2x128xf32>,
    %c0_i32_106 = arith.constant 0 : i32
    %251 = arith.cmpi eq, %arg1, %c0_i32_106 : i32
    %252 = arith.extui %251 : i1 to i32
    %c0_i32_107 = arith.constant 0 : i32
    %253 = arith.cmpi ne, %252, %c0_i32_107 : i32
    scf.if %253 {
      %337 = arith.index_cast %c2_i32 : i32 to index
      %c0_144 = arith.constant 0 : index
      %c0_145 = arith.constant 0 : index
      %338 = vector.load %arg6[%337, %c0_144, %c0_145] : memref<4x64x1xf32, #tpu.memory_space<vmem>>, vector<1x64x1xf32>
      %339 = vector.shape_cast %338 : vector<1x64x1xf32> to vector<64x1xf32>
      %340 = vector.shape_cast %339 : vector<64x1xf32> to vector<1x64x1xf32>
      %cst_146 = arith.constant dense<0.000000e+00> : vector<1xf32>
      %341 = vector.multi_reduction <add>, %340, %cst_146 [1, 2] : vector<1x64x1xf32> to vector<1xf32>
      %342 = vector.shape_cast %341 : vector<1xf32> to vector<1x1x1xf32>
      %343 = vector.extract %342[0, 0, 0] : f32 from vector<1x1x1xf32>
      %cst_147 = arith.constant 1.562500e-02 : f32
      %344 = arith.mulf %343, %cst_147 : f32
      %345 = arith.index_cast %c2_i32 : i32 to index
      %c0_148 = arith.constant 0 : index
      %c0_149 = arith.constant 0 : index
      %346 = vector.load %arg7[%345, %c0_148, %c0_149] : memref<4x256x1xf32, #tpu.memory_space<vmem>>, vector<1x256x1xf32>
      %347 = vector.shape_cast %346 : vector<1x256x1xf32> to vector<256x1xf32>
      %348 = vector.shape_cast %347 : vector<256x1xf32> to vector<1x256x1xf32>
      %cst_150 = arith.constant dense<0.000000e+00> : vector<1xf32>
      %349 = vector.multi_reduction <add>, %348, %cst_150 [1, 2] : vector<1x256x1xf32> to vector<1xf32>
      %350 = vector.shape_cast %349 : vector<1xf32> to vector<1x1x1xf32>
      %351 = vector.extract %350[0, 0, 0] : f32 from vector<1x1x1xf32>
      %cst_151 = arith.constant 3.906250e-03 : f32
      %352 = arith.mulf %351, %cst_151 : f32
      %353 = arith.index_cast %c2_i32 : i32 to index
      %c0_152 = arith.constant 0 : index
      %c0_153 = arith.constant 0 : index
      %354 = vector.load %arg8[%353, %c0_152, %c0_153] : memref<4x2x128xf32, #tpu.memory_space<vmem>>, vector<1x2x128xf32>
      %355 = vector.shape_cast %354 : vector<1x2x128xf32> to vector<2x128xf32>
      %356 = vector.extract_strided_slice %355 {offsets = [0, 0], sizes = [1, 128], strides = [1, 1]} : vector<2x128xf32> to vector<1x128xf32>
      %357 = vector.shape_cast %356 : vector<1x128xf32> to vector<128xf32>
      %cst_154 = arith.constant 3.906250e-03 : f32
      %358 = vector.broadcast %cst_154 : f32 to vector<128xf32>
      %359 = arith.mulf %357, %358 : vector<128xf32>
      %360 = vector.extract_strided_slice %355 {offsets = [1, 0], sizes = [1, 128], strides = [1, 1]} : vector<2x128xf32> to vector<1x128xf32>
      %361 = vector.shape_cast %360 : vector<1x128xf32> to vector<128xf32>
      %cst_155 = arith.constant 3.906250e-03 : f32
      %362 = vector.broadcast %cst_155 : f32 to vector<128xf32>
      %363 = arith.mulf %361, %362 : vector<128xf32>
      %c0_i32_156 = arith.constant 0 : i32
      %364 = vector.broadcast %c0_i32_156 : i32 to vector<4x128xi32>
      %365 = arith.cmpi eq, %4, %364 : vector<4x128xi32>
      %c1_i32_157 = arith.constant 1 : i32
      %366 = vector.broadcast %c1_i32_157 : i32 to vector<4x128xi32>
      %367 = arith.cmpi eq, %4, %366 : vector<4x128xi32>
      %c2_i32_158 = arith.constant 2 : i32
      %368 = vector.broadcast %c2_i32_158 : i32 to vector<4x128xi32>
      %369 = arith.cmpi eq, %4, %368 : vector<4x128xi32>
      %370 = vector.broadcast %352 : f32 to vector<4x128xf32>
      %371 = vector.shape_cast %363 : vector<128xf32> to vector<1x128xf32>
      %372 = vector.broadcast %371 : vector<1x128xf32> to vector<4x128xf32>
      %373 = arith.select %369, %370, %372 : vector<4x128xi1>, vector<4x128xf32>
      %374 = vector.shape_cast %359 : vector<128xf32> to vector<1x128xf32>
      %375 = vector.broadcast %374 : vector<1x128xf32> to vector<4x128xf32>
      %376 = arith.select %367, %375, %373 : vector<4x128xi1>, vector<4x128xf32>
      %377 = vector.broadcast %344 : f32 to vector<4x128xf32>
      %378 = arith.select %365, %377, %376 : vector<4x128xi1>, vector<4x128xf32>
      %379 = arith.index_cast %c2_i32 : i32 to index
      %c0_159 = arith.constant 0 : index
      %c0_160 = arith.constant 0 : index
      %380 = vector.load %arg5[%379, %c0_159, %c0_160] : memref<4x4x128xf32, #tpu.memory_space<vmem>>, vector<1x4x128xf32>
      %381 = vector.shape_cast %380 : vector<1x4x128xf32> to vector<4x128xf32>
      %382 = vector.shape_cast %378 : vector<4x128xf32> to vector<1x4x128xf32>
      tpu.vector_store %arg5[%379, %c0_159, %c0_160], %382 {strides = array<i32>} : memref<4x4x128xf32, #tpu.memory_space<vmem>>, vector<1x4x128xf32>,
    } else {
    }
    %c3_i32 = arith.constant 3 : i32
    %254 = arith.index_cast %c3_i32 : i32 to index
    %c0_108 = arith.constant 0 : index
    %c0_109 = arith.constant 0 : index
    %255 = vector.load %arg4[%254, %c0_108, %c0_109] : memref<4x3x256xf32, #tpu.memory_space<vmem>>, vector<1x3x256xf32>
    %256 = vector.shape_cast %255 : vector<1x3x256xf32> to vector<3x256xf32>
    %257 = arith.mulf %256, %256 : vector<3x256xf32>
    %cst_110 = arith.constant dense<0.000000e+00> : vector<256xf32>
    %258 = vector.multi_reduction <add>, %257, %cst_110 [0] : vector<3x256xf32> to vector<256xf32>
    %259 = arith.index_cast %c3_i32 : i32 to index
    %c0_111 = arith.constant 0 : index
    %c0_112 = arith.constant 0 : index
    %260 = vector.load %arg2[%259, %c0_111, %c0_112] : memref<4x64x3xf32, #tpu.memory_space<vmem>>, vector<1x64x3xf32>
    %261 = vector.shape_cast %260 : vector<1x64x3xf32> to vector<64x3xf32>
    %262 = arith.mulf %261, %261 : vector<64x3xf32>
    %cst_113 = arith.constant dense<0.000000e+00> : vector<64xf32>
    %263 = vector.multi_reduction <add>, %262, %cst_113 [1] : vector<64x3xf32> to vector<64xf32>
    %cst_114 = arith.constant -2.000000e+00 : f32
    %264 = vector.broadcast %cst_114 : f32 to vector<64x3xf32>
    %265 = arith.mulf %261, %264 : vector<64x3xf32>
    %cst_115 = arith.constant dense<0.000000e+00> : vector<64x256xf32>
    %266 = tpu.matmul %265, %256, %cst_115 {dimension_numbers = #tpu.dot_dimension_numbers<[1], [0], [0], [1], [0, 0, 1, 1], [], []>} : vector<64x3xf32>, vector<3x256xf32>, vector<64x256xf32> -> vector<64x256xf32>
    %267 = vector.shape_cast %263 : vector<64xf32> to vector<64x1xf32>
    %268 = vector.shape_cast %258 : vector<256xf32> to vector<1x256xf32>
    %269 = vector.broadcast %267 : vector<64x1xf32> to vector<64x256xf32>
    %270 = vector.broadcast %268 : vector<1x256xf32> to vector<64x256xf32>
    %271 = arith.addf %269, %270 : vector<64x256xf32>
    %272 = arith.addf %271, %266 : vector<64x256xf32>
    %cst_116 = arith.constant 0.000000e+00 : f32
    %273 = vector.broadcast %cst_116 : f32 to vector<64x256xf32>
    %274 = arith.maximumf %272, %273 : vector<64x256xf32>
    %cst_117 = arith.constant dense<0x7F800000> : vector<64xf32>
    %275 = vector.multi_reduction <minimumf>, %274, %cst_117 [1] : vector<64x256xf32> to vector<64xf32>
    %276 = vector.shape_cast %275 : vector<64xf32> to vector<64x1xf32>
    %cst_118 = arith.constant dense<0x7F800000> : vector<256xf32>
    %277 = vector.multi_reduction <minimumf>, %274, %cst_118 [0] : vector<64x256xf32> to vector<256xf32>
    %278 = vector.shape_cast %277 : vector<256xf32> to vector<1x256xf32>
    %cst_119 = arith.constant dense<0.000000e+00> : vector<1xf32>
    %279 = vector.multi_reduction <add>, %278, %cst_119 [1] : vector<1x256xf32> to vector<1xf32>
    %280 = vector.shape_cast %279 : vector<1xf32> to vector<1x1xf32>
    %281 = vector.extract %280[0, 0] : f32 from vector<1x1xf32>
    %282 = arith.index_cast %c3_i32 : i32 to index
    %c0_120 = arith.constant 0 : index
    %c0_121 = arith.constant 0 : index
    %283 = vector.load %arg6[%282, %c0_120, %c0_121] : memref<4x64x1xf32, #tpu.memory_space<vmem>>, vector<1x64x1xf32>
    %284 = vector.shape_cast %283 : vector<1x64x1xf32> to vector<64x1xf32>
    %285 = arith.minimumf %284, %276 : vector<64x1xf32>
    %286 = arith.index_cast %c3_i32 : i32 to index
    %c0_122 = arith.constant 0 : index
    %c0_123 = arith.constant 0 : index
    %287 = vector.load %arg6[%286, %c0_122, %c0_123] : memref<4x64x1xf32, #tpu.memory_space<vmem>>, vector<1x64x1xf32>
    %288 = vector.shape_cast %287 : vector<1x64x1xf32> to vector<64x1xf32>
    %289 = vector.shape_cast %285 : vector<64x1xf32> to vector<1x64x1xf32>
    tpu.vector_store %arg6[%286, %c0_122, %c0_123], %289 {strides = array<i32>} : memref<4x64x1xf32, #tpu.memory_space<vmem>>, vector<1x64x1xf32>,
    %290 = arith.index_cast %c3_i32 : i32 to index
    %c0_124 = arith.constant 0 : index
    %c0_125 = arith.constant 0 : index
    %291 = vector.load %arg3[%290, %c0_124, %c0_125] : memref<4x256x3xf32, #tpu.memory_space<vmem>>, vector<1x256x3xf32>
    %292 = vector.shape_cast %291 : vector<1x256x3xf32> to vector<256x3xf32>
    %293 = arith.mulf %292, %292 : vector<256x3xf32>
    %cst_126 = arith.constant dense<0.000000e+00> : vector<256xf32>
    %294 = vector.multi_reduction <add>, %293, %cst_126 [1] : vector<256x3xf32> to vector<256xf32>
    %cst_127 = arith.constant -2.000000e+00 : f32
    %295 = vector.broadcast %cst_127 : f32 to vector<256x3xf32>
    %296 = arith.mulf %292, %295 : vector<256x3xf32>
    %cst_128 = arith.constant dense<0.000000e+00> : vector<256x256xf32>
    %297 = tpu.matmul %296, %256, %cst_128 {dimension_numbers = #tpu.dot_dimension_numbers<[1], [0], [0], [1], [0, 0, 1, 1], [], []>} : vector<256x3xf32>, vector<3x256xf32>, vector<256x256xf32> -> vector<256x256xf32>
    %298 = vector.shape_cast %294 : vector<256xf32> to vector<256x1xf32>
    %299 = vector.shape_cast %258 : vector<256xf32> to vector<1x256xf32>
    %300 = vector.broadcast %298 : vector<256x1xf32> to vector<256x256xf32>
    %301 = vector.broadcast %299 : vector<1x256xf32> to vector<256x256xf32>
    %302 = arith.addf %300, %301 : vector<256x256xf32>
    %303 = arith.addf %302, %297 : vector<256x256xf32>
    %cst_129 = arith.constant 0.000000e+00 : f32
    %304 = vector.broadcast %cst_129 : f32 to vector<256x256xf32>
    %305 = arith.maximumf %303, %304 : vector<256x256xf32>
    %cst_130 = arith.constant dense<0x7F800000> : vector<256xf32>
    %306 = vector.multi_reduction <minimumf>, %305, %cst_130 [1] : vector<256x256xf32> to vector<256xf32>
    %307 = vector.shape_cast %306 : vector<256xf32> to vector<256x1xf32>
    %cst_131 = arith.constant dense<0x7F800000> : vector<256xf32>
    %308 = vector.multi_reduction <minimumf>, %305, %cst_131 [0] : vector<256x256xf32> to vector<256xf32>
    %309 = vector.shape_cast %308 : vector<256xf32> to vector<1x256xf32>
    %cst_132 = arith.constant dense<0.000000e+00> : vector<1xf32>
    %310 = vector.multi_reduction <add>, %309, %cst_132 [1] : vector<1x256xf32> to vector<1xf32>
    %311 = vector.shape_cast %310 : vector<1xf32> to vector<1x1xf32>
    %312 = vector.extract %311[0, 0] : f32 from vector<1x1xf32>
    %313 = arith.index_cast %c3_i32 : i32 to index
    %c0_133 = arith.constant 0 : index
    %c0_134 = arith.constant 0 : index
    %314 = vector.load %arg7[%313, %c0_133, %c0_134] : memref<4x256x1xf32, #tpu.memory_space<vmem>>, vector<1x256x1xf32>
    %315 = vector.shape_cast %314 : vector<1x256x1xf32> to vector<256x1xf32>
    %316 = arith.minimumf %315, %307 : vector<256x1xf32>
    %317 = arith.index_cast %c3_i32 : i32 to index
    %c0_135 = arith.constant 0 : index
    %c0_136 = arith.constant 0 : index
    %318 = vector.load %arg7[%317, %c0_135, %c0_136] : memref<4x256x1xf32, #tpu.memory_space<vmem>>, vector<1x256x1xf32>
    %319 = vector.shape_cast %318 : vector<1x256x1xf32> to vector<256x1xf32>
    %320 = vector.shape_cast %316 : vector<256x1xf32> to vector<1x256x1xf32>
    tpu.vector_store %arg7[%317, %c0_135, %c0_136], %320 {strides = array<i32>} : memref<4x256x1xf32, #tpu.memory_space<vmem>>, vector<1x256x1xf32>,
    %321 = arith.index_cast %c3_i32 : i32 to index
    %c0_137 = arith.constant 0 : index
    %c0_138 = arith.constant 0 : index
    %322 = vector.load %arg8[%321, %c0_137, %c0_138] : memref<4x2x128xf32, #tpu.memory_space<vmem>>, vector<1x2x128xf32>
    %323 = vector.shape_cast %322 : vector<1x2x128xf32> to vector<2x128xf32>
    %c0_i32_139 = arith.constant 0 : i32
    %324 = vector.broadcast %c0_i32_139 : i32 to vector<2x128xi32>
    %325 = arith.cmpi eq, %3, %324 : vector<2x128xi32>
    %326 = vector.broadcast %281 : f32 to vector<2x128xf32>
    %327 = vector.broadcast %312 : f32 to vector<2x128xf32>
    %328 = arith.select %325, %326, %327 : vector<2x128xi1>, vector<2x128xf32>
    %329 = arith.addf %323, %328 : vector<2x128xf32>
    %330 = arith.index_cast %c3_i32 : i32 to index
    %c0_140 = arith.constant 0 : index
    %c0_141 = arith.constant 0 : index
    %331 = vector.load %arg8[%330, %c0_140, %c0_141] : memref<4x2x128xf32, #tpu.memory_space<vmem>>, vector<1x2x128xf32>
    %332 = vector.shape_cast %331 : vector<1x2x128xf32> to vector<2x128xf32>
    %333 = vector.shape_cast %329 : vector<2x128xf32> to vector<1x2x128xf32>
    tpu.vector_store %arg8[%330, %c0_140, %c0_141], %333 {strides = array<i32>} : memref<4x2x128xf32, #tpu.memory_space<vmem>>, vector<1x2x128xf32>,
    %c0_i32_142 = arith.constant 0 : i32
    %334 = arith.cmpi eq, %arg1, %c0_i32_142 : i32
    %335 = arith.extui %334 : i1 to i32
    %c0_i32_143 = arith.constant 0 : i32
    %336 = arith.cmpi ne, %335, %c0_i32_143 : i32
    scf.if %336 {
      %337 = arith.index_cast %c3_i32 : i32 to index
      %c0_144 = arith.constant 0 : index
      %c0_145 = arith.constant 0 : index
      %338 = vector.load %arg6[%337, %c0_144, %c0_145] : memref<4x64x1xf32, #tpu.memory_space<vmem>>, vector<1x64x1xf32>
      %339 = vector.shape_cast %338 : vector<1x64x1xf32> to vector<64x1xf32>
      %340 = vector.shape_cast %339 : vector<64x1xf32> to vector<1x64x1xf32>
      %cst_146 = arith.constant dense<0.000000e+00> : vector<1xf32>
      %341 = vector.multi_reduction <add>, %340, %cst_146 [1, 2] : vector<1x64x1xf32> to vector<1xf32>
      %342 = vector.shape_cast %341 : vector<1xf32> to vector<1x1x1xf32>
      %343 = vector.extract %342[0, 0, 0] : f32 from vector<1x1x1xf32>
      %cst_147 = arith.constant 1.562500e-02 : f32
      %344 = arith.mulf %343, %cst_147 : f32
      %345 = arith.index_cast %c3_i32 : i32 to index
      %c0_148 = arith.constant 0 : index
      %c0_149 = arith.constant 0 : index
      %346 = vector.load %arg7[%345, %c0_148, %c0_149] : memref<4x256x1xf32, #tpu.memory_space<vmem>>, vector<1x256x1xf32>
      %347 = vector.shape_cast %346 : vector<1x256x1xf32> to vector<256x1xf32>
      %348 = vector.shape_cast %347 : vector<256x1xf32> to vector<1x256x1xf32>
      %cst_150 = arith.constant dense<0.000000e+00> : vector<1xf32>
      %349 = vector.multi_reduction <add>, %348, %cst_150 [1, 2] : vector<1x256x1xf32> to vector<1xf32>
      %350 = vector.shape_cast %349 : vector<1xf32> to vector<1x1x1xf32>
      %351 = vector.extract %350[0, 0, 0] : f32 from vector<1x1x1xf32>
      %cst_151 = arith.constant 3.906250e-03 : f32
      %352 = arith.mulf %351, %cst_151 : f32
      %353 = arith.index_cast %c3_i32 : i32 to index
      %c0_152 = arith.constant 0 : index
      %c0_153 = arith.constant 0 : index
      %354 = vector.load %arg8[%353, %c0_152, %c0_153] : memref<4x2x128xf32, #tpu.memory_space<vmem>>, vector<1x2x128xf32>
      %355 = vector.shape_cast %354 : vector<1x2x128xf32> to vector<2x128xf32>
      %356 = vector.extract_strided_slice %355 {offsets = [0, 0], sizes = [1, 128], strides = [1, 1]} : vector<2x128xf32> to vector<1x128xf32>
      %357 = vector.shape_cast %356 : vector<1x128xf32> to vector<128xf32>
      %cst_154 = arith.constant 3.906250e-03 : f32
      %358 = vector.broadcast %cst_154 : f32 to vector<128xf32>
      %359 = arith.mulf %357, %358 : vector<128xf32>
      %360 = vector.extract_strided_slice %355 {offsets = [1, 0], sizes = [1, 128], strides = [1, 1]} : vector<2x128xf32> to vector<1x128xf32>
      %361 = vector.shape_cast %360 : vector<1x128xf32> to vector<128xf32>
      %cst_155 = arith.constant 3.906250e-03 : f32
      %362 = vector.broadcast %cst_155 : f32 to vector<128xf32>
      %363 = arith.mulf %361, %362 : vector<128xf32>
      %c0_i32_156 = arith.constant 0 : i32
      %364 = vector.broadcast %c0_i32_156 : i32 to vector<4x128xi32>
      %365 = arith.cmpi eq, %4, %364 : vector<4x128xi32>
      %c1_i32_157 = arith.constant 1 : i32
      %366 = vector.broadcast %c1_i32_157 : i32 to vector<4x128xi32>
      %367 = arith.cmpi eq, %4, %366 : vector<4x128xi32>
      %c2_i32_158 = arith.constant 2 : i32
      %368 = vector.broadcast %c2_i32_158 : i32 to vector<4x128xi32>
      %369 = arith.cmpi eq, %4, %368 : vector<4x128xi32>
      %370 = vector.broadcast %352 : f32 to vector<4x128xf32>
      %371 = vector.shape_cast %363 : vector<128xf32> to vector<1x128xf32>
      %372 = vector.broadcast %371 : vector<1x128xf32> to vector<4x128xf32>
      %373 = arith.select %369, %370, %372 : vector<4x128xi1>, vector<4x128xf32>
      %374 = vector.shape_cast %359 : vector<128xf32> to vector<1x128xf32>
      %375 = vector.broadcast %374 : vector<1x128xf32> to vector<4x128xf32>
      %376 = arith.select %367, %375, %373 : vector<4x128xi1>, vector<4x128xf32>
      %377 = vector.broadcast %344 : f32 to vector<4x128xf32>
      %378 = arith.select %365, %377, %376 : vector<4x128xi1>, vector<4x128xf32>
      %379 = arith.index_cast %c3_i32 : i32 to index
      %c0_159 = arith.constant 0 : index
      %c0_160 = arith.constant 0 : index
      %380 = vector.load %arg5[%379, %c0_159, %c0_160] : memref<4x4x128xf32, #tpu.memory_space<vmem>>, vector<1x4x128xf32>
      %381 = vector.shape_cast %380 : vector<1x4x128xf32> to vector<4x128xf32>
      %382 = vector.shape_cast %378 : vector<4x128xf32> to vector<1x4x128xf32>
      tpu.vector_store %arg5[%379, %c0_159, %c0_160], %382 {strides = array<i32>} : memref<4x4x128xf32, #tpu.memory_space<vmem>>, vector<1x4x128xf32>,
    } else {
    }
    %c4_i32 = arith.constant 4 : i32
    return
  }
  func.func @transform_0(%arg0: i32, %arg1: i32) -> (i32, i32, i32) {
    %c0_i32 = arith.constant 0 : i32
    %c0_i32_0 = arith.constant 0 : i32
    %c0_i32_1 = arith.constant 0 : i32
    return %arg0, %c0_i32, %c0_i32_0 : i32, i32, i32
  }
  func.func @transform_1(%arg0: i32, %arg1: i32) -> (i32, i32, i32) {
    %c0_i32 = arith.constant 0 : i32
    %c0_i32_0 = arith.constant 0 : i32
    %c0_i32_1 = arith.constant 0 : i32
    return %arg0, %c0_i32, %c0_i32_0 : i32, i32, i32
  }
  func.func @transform_2(%arg0: i32, %arg1: i32) -> (i32, i32, i32) {
    %c0_i32 = arith.constant 0 : i32
    %c0_i32_0 = arith.constant 0 : i32
    return %arg0, %c0_i32, %arg1 : i32, i32, i32
  }
  func.func @transform_3(%arg0: i32, %arg1: i32) -> (i32, i32, i32) {
    %c0_i32 = arith.constant 0 : i32
    %c0_i32_0 = arith.constant 0 : i32
    %c0_i32_1 = arith.constant 0 : i32
    return %arg0, %c0_i32, %c0_i32_0 : i32, i32, i32
  }
}

</mosaic_0001>

<bundles_post_ra>
// kernel: tpu_custom_call.1
= control target key start
LH: loop header
LB: loop body
LE: loop exit
PB: predicated region body
PF: predicated region fallthrough
CT: control target
= control target key end

     0   :  { %vm225_vm0 = vcmask 23552   ;;  %s12231_s0 = inlined_call_operand.vmem [shape: f32[4,64,3], index: 0, kind: input, shape index: {}]   ;;  %s12232_s1 = inlined_call_operand.vmem [shape: f32[4,256,3], index: 1, kind: input, shape index: {}]   ;;  %s12233_s2 = inlined_call_operand.vmem [shape: f32[4,3,256], index: 2, kind: input, shape index: {}]   ;;  %s12234_s3 = inlined_call_operand.hbm [shape: f32[4,4,128], index: 3, kind: output, shape index: {}]  }
   0x1   :  { %v6620_v0 = vld [vmem:[%s12231_s0 + $0x20] sm:$0xff]  ;;  %v6625_v1 = vld [vmem:[%s12231_s0 + $0x10] sm:$0xff]  ;;  %v6637_v6 = vld [vmem:[%s12231_s0 + $0x28] sm:$0xff] }
   0x2   :  { %v209_v2 = vld [vmem:[%s12231_s0] sm:$0xff]  ;;  %v221_v3 = vmul.f32 %v6620_v0, %v6620_v0  ;;  %v219_v4 = vmul.f32 %v6625_v1, %v6625_v1  ;;  %v6642_v7 = vld [vmem:[%s12231_s0 + $0x18] sm:$0xff]  ;;  %v210_v11 = vld [vmem:[%s12231_s0 + $0x8] sm:$0xff]  ;;  %v222_v14 = vmul.f32 %v6637_v6, %v6637_v6 }
   0x3   :  { %v217_v5 = vmul.f32 %v209_v2, %v209_v2  ;;  %v186_v8 = vld [vmem:[%s12233_s2] sm:$0x77]  ;;  %v220_v15 = vmul.f32 %v6642_v7, %v6642_v7  ;;  %v218_v16 = vmul.f32 %v210_v11, %v210_v11 }
   0x4   :  { %v238_v9 = vsel %vm225_vm0, %v221_v3, 0.0  ;;  %v232_v10 = vsel %vm225_vm0, %v219_v4, 0.0  ;;  %v187_v12 = vmul.f32 %v186_v8, %v186_v8 }
   0x5   :  { %239 = vadd.xlane.f32.xlu2 %v238_v9  ;;  %233 = vadd.xlane.f32.xlu1 %v232_v10  ;;  %v226_v13 = vsel %vm225_vm0, %v217_v5, 0.0 }
   0x6   :  { %227 = vadd.xlane.f32.xlu0 %v226_v13  ;;  %189 = vst [vmem:[#allocation1] ss:$2 sm:$0xff] %v187_v12 }
   0x7   :  { %8 = vsyncpa [#allocation6], 0  ;;  %v241_v17 = vsel %vm225_vm0, %v222_v14, 0.0  ;;  %v235_v18 = vsel %vm225_vm0, %v220_v15, 0.0  ;;  %v229_v19 = vsel %vm225_vm0, %v218_v16, 0.0  ;;  %v6663_v20 = vld [vmem:[%s12232_s1] sm:$0xff] }
   0x8   :  { %v6668_v21 = vld [vmem:[%s12231_s0 + $0x38] sm:$0xff]  ;;  %v6673_v22 = vld [vmem:[%s12231_s0 + $0x30] sm:$0xff]  ;;  %v531_v25 = vmul.f32 %v6663_v20, %v6663_v20  ;;  %v250_v30 = vmul.f32 -2.0, %v209_v2  ;;  %vm194_vm1 = vcmask 1042432   ;;  %v6701_v34 = vld [vmem:[%s12232_s1 + $0x8] sm:$0xff]  ;;  %v251_v44 = vmul.f32 -2.0, %v210_v11 }
   0x9   :  { %v224_v26 = vmul.f32 %v6668_v21, %v6668_v21  ;;  %v223_v27 = vmul.f32 %v6673_v22, %v6673_v22  ;;  %v6690_v31 = vld [vmem:[%s12232_s1 + $0x18] sm:$0xff]  ;;  %v6695_v32 = vld [vmem:[%s12232_s1 + $0x10] sm:$0xff]  ;;  %v6121_v39 = vld [vmem:[%s12233_s2 + $0x8] sm:$0x77]  ;;  %v532_v40 = vmul.f32 %v6701_v34, %v6701_v34  ;;  %v252_v56 = vmul.f32 -2.0, %v6625_v1  ;;  %s6025_s11 = sshll.u32 %s12234_s3, 4  ;;  %s6026_s11 = int_to_ptr.hbm [resolvable:$true] %s6025_s11 }
   0xa   :  { %v563_v28 = vsel %vm225_vm0, %v531_v25, 0.0  ;;  %v534_v37 = vmul.f32 %v6690_v31, %v6690_v31  ;;  %v533_v38 = vmul.f32 %v6695_v32, %v6695_v32  ;;  %v1644_v41 = vmul.f32 %v6121_v39, %v6121_v39  ;;  %v6721_v45 = vld [vmem:[%s12232_s1 + $0x30] sm:$0xff]  ;;  %v6726_v46 = vld [vmem:[%s12232_s1 + $0x28] sm:$0xff]  ;;  %v6732_v48 = vld [vmem:[%s12232_s1 + $0x20] sm:$0xff]  ;;  %s6594_s15 = smov [#allocation5]   ;;  %s6595_s3 = smov 64  }
   0xb   :  { %v247_v29 = vsel %vm225_vm0, %v224_v26, 0.0  ;;  %v244_v33 = vsel %vm225_vm0, %v223_v27, 0.0  ;;  %v566_v47 = vsel %vm225_vm0, %v532_v40, 0.0  ;;  %v537_v51 = vmul.f32 %v6721_v45, %v6721_v45  ;;  %v6750_v57 = vld [vmem:[%s12232_s1 + $0x48] sm:$0xff]  ;;  %v6755_v58 = vld [vmem:[%s12232_s1 + $0x40] sm:$0xff]  ;;  %v6761_v60 = vld [vmem:[%s12232_s1 + $0x38] sm:$0xff] }
   0xc   :  { %v572_v42 = vsel %vm225_vm0, %v534_v37, 0.0  ;;  %v569_v43 = vsel %vm225_vm0, %v533_v38, 0.0  ;;  %v536_v52 = vmul.f32 %v6726_v46, %v6726_v46  ;;  %v535_v53 = vmul.f32 %v6732_v48, %v6732_v48  ;;  %v6778_v3 = vld [vmem:[%s12231_s0 + $0x40] sm:$0xff]  ;;  %v6791_v10 = vld [vmem:[%s12232_s1 + $0x58] sm:$0xff]  ;;  %v6798_v13 = vld [vmem:[%s12232_s1 + $0x50] sm:$0xff]  ;;  %s6023_s16 = sshll.u32 %s6594_s15, 4  ;;  %s6024_s16 = int_to_ptr.vmem [resolvable:$true] %s6023_s16 }
   0xd   :  { %242 = vadd.xlane.f32.xlu2 %v241_v17  ;;  %236 = vadd.xlane.f32.xlu1 %v235_v18  ;;  %v6675_v23 = vld.sshfl [vmem:[#allocation1] sm:$0xff pattern:$0x75316420]  ;;  %v6677_v24 = vld.sshfl [vmem:[#allocation1 + $0x8] sm:$0xff pattern:$0x75316420]  ;;  %v540_v63 = vmul.f32 %v6750_v57, %v6750_v57  ;;  %v539_v1 = vmul.f32 %v6755_v58, %v6755_v58  ;;  %v538_v2 = vmul.f32 %v6761_v60, %v6761_v60 }
   0xe   :  { %230 = vadd.xlane.f32.xlu0 %v229_v19  ;;  %259 = vst [vmem:[#allocation1] ss:$2 sm:$0xff] %v186_v8  ;;  %v581_v54 = vsel %vm225_vm0, %v537_v51, 0.0  ;;  %v578_v55 = vsel %vm225_vm0, %v536_v52, 0.0  ;;  %v575_v59 = vsel %vm225_vm0, %v535_v53, 0.0  ;;  %v6786_v9 = vld [vmem:[%s12232_s1 + $0x60] sm:$0xff]  ;;  %v542_v16 = vmul.f32 %v6791_v10, %v6791_v10 }
   0xf   :  { %v590_v4 = vsel %vm225_vm0, %v540_v63, 0.0  ;;  %v587_v5 = vsel %vm225_vm0, %v539_v1, 0.0  ;;  %v584_v11 = vsel %vm225_vm0, %v538_v2, 0.0  ;;  %v1706_v12 = vmul.f32 -2.0, %v6778_v3  ;;  %v6815_v18 = vld [vmem:[%s12231_s0 + $0x48] sm:$0xff]  ;;  %v6823_v27 = vld [vmem:[%s12232_s1 + $0x78] sm:$0xff] }
  0x10   :  { %v543_v15 = vmul.f32 %v6786_v9, %v6786_v9  ;;  %v541_v17 = vmul.f32 %v6798_v13, %v6798_v13  ;;  %v596_v25 = vsel %vm225_vm0, %v542_v16, 0.0  ;;  %v254_v26 = vmul.f32 -2.0, %v6620_v0  ;;  %v6835_v0 = vld [vmem:[%s12232_s1 + $0x68] sm:$0xff]  ;;  %v6850_v37 = vld [vmem:[%s12231_s0 + $0x50] sm:$0xff]  ;;  %v6885_v51 = vld [vmem:[%s12231_s0 + $0x58] sm:$0xff]  ;;  %s6596_s17 = smov 4  }
  0x11   :  { %v255_v40 = vmul.f32 -2.0, %v6637_v6  ;;  %v6870_v6 = vld [vmem:[%s12232_s1 + $0x80] sm:$0xff]  ;;  %v1709_v63 = vmul.f32 -2.0, %v6885_v51  ;;  %v6901_v1 = vld [vmem:[%s12232_s1 + $0x98] sm:$0xff]  ;;  %vm19_vm2 = vcmask 7168  }
  0x12   :  { %v599_v19 = vsel %vm225_vm0, %v543_v15, 0.0  ;;  %v257_v15 = vmul.f32 -2.0, %v6668_v21  ;;  %v523_v16 = vld [vmem:[%s12232_s1 + $0xc0] sm:$0xff] }
  0x13   :  { %v555_v21 = vmul.f32 %v523_v16, %v523_v16 }
  0x15   :  { %v260_v35 = vld.sshfl [vmem:[#allocation1] sm:$0xff pattern:$0x75316420]  ;;  %v261_v36 = vld.sshfl [vmem:[#allocation1 + $0x8] sm:$0xff pattern:$0x75316420]  ;;  %564 = vadd.xlane.f32.xlu2 %v563_v28  ;;  %248 = vadd.xlane.f32.xlu1 %v247_v29 }
  0x16   :  { %6037 = vmatpush.msk.msra.mxu2 %vm194_vm1, %v260_v35  ;;  %6046 = vmatpush.msk.msra.mxu3 %vm194_vm1, %v261_v36  ;;  %691 = vst [vmem:[#allocation1] ss:$2 sm:$0xff] %v186_v8  ;;  %v253_v8 = vmul.f32 -2.0, %v6642_v7  ;;  %v6828_v28 = vld [vmem:[%s12232_s1 + $0x70] sm:$0xff]  ;;  %v593_v29 = vsel %vm225_vm0, %v541_v17, 0.0  ;;  %v544_v36 = vmul.f32 %v6835_v0, %v6835_v0  ;;  %v522_v17 = vld [vmem:[%s12232_s1 + $0xb8] sm:$0xff] }
  0x17   :  { %245 = vadd.xlane.f32.xlu0 %v244_v33  ;;  %6038 = vmatmul.msk.f32.vlgmr.msra.gmra.mxu2 %vm225_vm0, %v250_v30  ;;  %v546_v33 = vmul.f32 %v6823_v27, %v6823_v27  ;;  %v545_v35 = vmul.f32 %v6828_v28, %v6828_v28 }
  0x18   :  { %6047 = vmatmul.msk.f32.vlgmr.msra.gmra.mxu3 %vm225_vm0, %v250_v30  ;;  %v1707_v30 = vmul.f32 -2.0, %v6815_v18 }
  0x19   :  { %v608_v38 = vsel %vm225_vm0, %v546_v33, 0.0 }
  0x1d   :  { %v692_v49 = vld.sshfl [vmem:[#allocation1] sm:$0xff pattern:$0x75316420]  ;;  %v693_v50 = vld.sshfl [vmem:[#allocation1 + $0x8] sm:$0xff pattern:$0x75316420]  ;;  %573 = vadd.xlane.f32.xlu2 %v572_v42  ;;  %570 = vadd.xlane.f32.xlu1 %v569_v43 }
  0x1e   :  { %1646 = vst [vmem:[#allocation1] ss:$2 sm:$0xff] %v1644_v41  ;;  %6055 = vmatpush.msk.msrb.mxu2 %vm194_vm1, %v692_v49  ;;  %6088 = vmatpush.msk.msrb.mxu3 %vm194_vm1, %v693_v50  ;;  %v6858_v41 = vld [vmem:[%s12232_s1 + $0x90] sm:$0xff]  ;;  %v6863_v42 = vld [vmem:[%s12232_s1 + $0x88] sm:$0xff]  ;;  %v602_v43 = vsel %vm225_vm0, %v544_v36, 0.0  ;;  %v547_v50 = vmul.f32 %v6870_v6, %v6870_v6  ;;  %v635_v36 = vsel %vm225_vm0, %v555_v21, 0.0  ;;  %v1676_v21 = vmul.f32 %v6850_v37, %v6850_v37 }
  0x1f   :  { %567 = vadd.xlane.f32.xlu0 %v566_v47  ;;  %6039 = vmatmul.msk.f32.gmra.mxu2 %vm225_vm0, %v251_v44  ;;  %v549_v47 = vmul.f32 %v6858_v41, %v6858_v41  ;;  %v548_v49 = vmul.f32 %v6863_v42, %v6863_v42 }
  0x20   :  { %6048 = vmatmul.msk.f32.gmra.mxu3 %vm225_vm0, %v251_v44  ;;  %v1708_v44 = vmul.f32 -2.0, %v6850_v37 }
  0x21   :  { %v617_v52 = vsel %vm225_vm0, %v549_v47, 0.0  ;;  %v614_v53 = vsel %vm225_vm0, %v548_v49, 0.0  ;;  %v525_v47 = vld [vmem:[%s12232_s1 + $0xd0] sm:$0xff] }
  0x25   :  { %582 = vadd.xlane.f32.xlu2 %v581_v54  ;;  %579 = vadd.xlane.f32.xlu1 %v578_v55  ;;  %v6763_v61 = vld.sshfl [vmem:[#allocation1] sm:$0xff pattern:$0x75316420]  ;;  %v6765_v62 = vld.sshfl [vmem:[#allocation1 + $0x8] sm:$0xff pattern:$0x75316420] }
  0x26   :  { %1715 = vst [vmem:[#allocation1] ss:$2 sm:$0xff] %v6121_v39  ;;  %v256_v54 = vmul.f32 -2.0, %v6673_v22  ;;  %v520_v55 = vld [vmem:[%s12232_s1 + $0xa8] sm:$0xff] }
  0x27   :  { %576 = vadd.xlane.f32.xlu0 %v575_v59  ;;  %6040 = vmatmul.msk.f32.gmra.mxu2 %vm225_vm0, %v252_v56  ;;  %v611_v59 = vsel %vm225_vm0, %v547_v50, 0.0  ;;  %v552_v22 = vmul.f32 %v520_v55, %v520_v55  ;;  %v6972_v55 = vld [vmem:[%s12231_s0 + $0x70] sm:$0xff] }
  0x28   :  { %6049 = vmatmul.msk.f32.gmra.mxu3 %vm225_vm0, %v252_v56  ;;  %v519_v56 = vld [vmem:[%s12232_s1 + $0xa0] sm:$0xff] }
  0x29   :  { %v551_v2 = vmul.f32 %v519_v56, %v519_v56 }
  0x2d   :  { %v1716_v7 = vld.sshfl [vmem:[#allocation1] sm:$0xff pattern:$0x75316420]  ;;  %v1717_v14 = vld.sshfl [vmem:[#allocation1 + $0x8] sm:$0xff pattern:$0x75316420]  ;;  %591 = vadd.xlane.f32.xlu2 %v590_v4  ;;  %588 = vadd.xlane.f32.xlu1 %v587_v5  ;;  %v550_v4 = vmul.f32 %v6901_v1, %v6901_v1 }
  0x2e   :  { %6130 = vmatpush.msk.msra.mxu0 %vm194_vm1, %v1716_v7  ;;  %6139 = vmatpush.msk.msra.mxu1 %vm194_vm1, %v1717_v14  ;;  %2148 = vst [vmem:[#allocation1] ss:$2 sm:$0xff] %v6121_v39  ;;  %v605_v39 = vsel %vm225_vm0, %v545_v35, 0.0  ;;  %v6911_v5 = vld [vmem:[%s12231_s0 + $0x60] sm:$0xff]  ;;  %v623_v7 = vsel %vm225_vm0, %v551_v2, 0.0  ;;  %v6943_v35 = vld [vmem:[%s12231_s0 + $0x68] sm:$0xff] }
  0x2f   :  { %585 = vadd.xlane.f32.xlu0 %v584_v11  ;;  %6041 = vmatmul.msk.f32.gmra.mxu2 %vm225_vm0, %v253_v8  ;;  %v6921_v14 = vld [vmem:[%s12233_s2 + $0x10] sm:$0x77]  ;;  %v528_v2 = vld [vmem:[%s12232_s1 + $0xe8] sm:$0xff] }
  0x30   :  { %6050 = vmatmul.msk.f32.gmra.mxu3 %vm225_vm0, %v253_v8  ;;  %6131 = vmatmul.msk.f32.vlgmr.msra.gmra.mxu0 %vm225_vm0, %v1706_v12 }
  0x31   :  { %6140 = vmatmul.msk.f32.vlgmr.msra.gmra.mxu1 %vm225_vm0, %v1706_v12  ;;  %v626_v12 = vsel %vm225_vm0, %v552_v22, 0.0  ;;  %v529_v22 = vld [vmem:[%s12232_s1 + $0xf0] sm:$0xff] }
  0x35   :  { %600 = vadd.xlane.f32.xlu2 %v599_v19  ;;  %597 = vadd.xlane.f32.xlu1 %v596_v25  ;;  %v2149_v8 = vld.sshfl [vmem:[#allocation1] sm:$0xff pattern:$0x75316420]  ;;  %v2150_v11 = vld.sshfl [vmem:[#allocation1 + $0x8] sm:$0xff pattern:$0x75316420]  ;;  %v3103_v19 = vmul.f32 %v6921_v14, %v6921_v14 }
  0x36   :  { %6180 = vmatpush.msk.msrb.mxu0 %vm194_vm1, %v2149_v8  ;;  %6213 = vmatpush.msk.msrb.mxu1 %vm194_vm1, %v2150_v11  ;;  %v620_v25 = vsel %vm225_vm0, %v550_v4, 0.0  ;;  %v1712_v8 = vmul.f32 -2.0, %v6972_v55  ;;  %v527_v11 = vld [vmem:[%s12232_s1 + $0xe0] sm:$0xff] }
  0x37   :  { %594 = vadd.xlane.f32.xlu0 %v593_v29  ;;  %6042 = vmatmul.msk.f32.gmra.mxu2 %vm225_vm0, %v254_v26  ;;  %v521_v29 = vld [vmem:[%s12232_s1 + $0xb0] sm:$0xff]  ;;  %3105 = vst [vmem:[#allocation1] ss:$2 sm:$0xff] %v3103_v19  ;;  %v661_v19 = vmul.f32 -2.0, %v6695_v32 }
  0x38   :  { %6051 = vmatmul.msk.f32.gmra.mxu3 %vm225_vm0, %v254_v26  ;;  %6132 = vmatmul.msk.f32.gmra.mxu0 %vm225_vm0, %v1707_v30  ;;  %v1710_v26 = vmul.f32 -2.0, %v6911_v5  ;;  %v553_v33 = vmul.f32 %v521_v29, %v521_v29  ;;  %v530_v29 = vld [vmem:[%s12232_s1 + $0xf8] sm:$0xff] }
  0x39   :  { %6141 = vmatmul.msk.f32.gmra.mxu1 %vm225_vm0, %v1707_v30  ;;  %v554_v30 = vmul.f32 %v522_v17, %v522_v17  ;;  %v562_v32 = vmul.f32 %v530_v29, %v530_v29  ;;  %v665_v29 = vmul.f32 -2.0, %v6721_v45 }
  0x3d   :  { %609 = vadd.xlane.f32.xlu2 %v608_v38  ;;  %606 = vadd.xlane.f32.xlu1 %v605_v39  ;;  %v632_v38 = vsel %vm225_vm0, %v554_v30, 0.0  ;;  %v659_v39 = vmul.f32 -2.0, %v6663_v20  ;;  %v524_v20 = vld [vmem:[%s12232_s1 + $0xc8] sm:$0xff]  ;;  %v1675_v30 = vmul.f32 %v6815_v18, %v6815_v18  ;;  %v662_v18 = vmul.f32 -2.0, %v6690_v31 }
  0x3e   :  { %v6957_v49 = vld.sshfl [vmem:[#allocation1] sm:$0xff pattern:$0x75316420]  ;;  %v6959_v50 = vld.sshfl [vmem:[#allocation1 + $0x8] sm:$0xff pattern:$0x75316420]  ;;  %v1674_v31 = vmul.f32 %v6778_v3, %v6778_v3 }
  0x3f   :  { %603 = vadd.xlane.f32.xlu0 %v602_v43  ;;  %6043 = vmatmul.msk.f32.gmra.mxu2 %vm225_vm0, %v255_v40  ;;  %v1711_v43 = vmul.f32 -2.0, %v6943_v35  ;;  %12452 = vst [vmem:[#allocation8_spill] sm:$0xff] %v6957_v49  ;;  %v1685_v37 = vsel %vm225_vm0, %v1675_v30, 0.0  ;;  %v1658_v49 = vsel %vm194_vm1, %v6765_v62, 0.0 }
  0x40   :  { %6052 = vmatmul.msk.f32.gmra.mxu3 %vm225_vm0, %v255_v40  ;;  %6133 = vmatmul.msk.f32.gmra.mxu0 %vm225_vm0, %v1708_v44  ;;  %v629_v40 = vsel %vm225_vm0, %v553_v33, 0.0  ;;  %12453 = vst [vmem:[#allocation9_spill] sm:$0xff] %v6959_v50  ;;  %v6148_v33 = vld [vmem:[%s12232_s1 + $0x100] sm:$0xff] }
  0x41   :  { %6142 = vmatmul.msk.f32.gmra.mxu1 %vm225_vm0, %v1708_v44  ;;  %v526_v44 = vld [vmem:[%s12232_s1 + $0xd8] sm:$0xff]  ;;  %3174 = vst [vmem:[#allocation1] ss:$2 sm:$0xff] %v6921_v14  ;;  %v1988_v3 = vmul.f32 %v6148_v33, %v6148_v33 }
  0x45   :  { %618 = vadd.xlane.f32.xlu2 %v617_v52  ;;  %615 = vadd.xlane.f32.xlu1 %v614_v53  ;;  %v558_v52 = vmul.f32 %v526_v44, %v526_v44  ;;  %v557_v53 = vmul.f32 %v525_v47, %v525_v47  ;;  %v7030_v44 = vld [vmem:[%s12232_s1 + $0x108] sm:$0xff]  ;;  %v663_v47 = vmul.f32 -2.0, %v6732_v48  ;;  %v1677_v48 = vmul.f32 %v6885_v51, %v6885_v51 }
  0x47   :  { %612 = vadd.xlane.f32.xlu0 %v611_v59  ;;  %6044 = vmatmul.msk.f32.gmra.mxu2 %vm225_vm0, %v256_v54  ;;  %v644_v56 = vsel %vm225_vm0, %v558_v52, 0.0  ;;  %v641_v59 = vsel %vm225_vm0, %v557_v53, 0.0  ;;  %v2117_v52 = vmul.f32 -2.0, %v7030_v44  ;;  %v1691_v51 = vsel %vm225_vm0, %v1677_v48, 0.0 }
  0x48   :  { %6053 = vmatmul.msk.f32.gmra.mxu3 %vm225_vm0, %v256_v54  ;;  %6134 = vmatmul.msk.f32.gmra.mxu0 %vm225_vm0, %v1709_v63  ;;  %v556_v54 = vmul.f32 %v524_v20, %v524_v20  ;;  %v1682_v20 = vsel %vm225_vm0, %v1674_v31, 0.0  ;;  %v7102_v31 = vld [vmem:[%s12233_s2 + $0x18] sm:$0x77] }
  0x49   :  { %6143 = vmatmul.msk.f32.gmra.mxu1 %vm225_vm0, %v1709_v63  ;;  %v660_v63 = vmul.f32 -2.0, %v6701_v34  ;;  %v560_v34 = vmul.f32 %v528_v2, %v528_v2  ;;  %12454 = vst [vmem:[#allocation10_spill] sm:$0xff] %v7102_v31  ;;  %v4562_v48 = vmul.f32 %v7102_v31, %v7102_v31 }
  0x4a   :  { %v638_v4 = vsel %vm225_vm0, %v556_v54, 0.0 }
  0x4b   :  { %v650_v17 = vsel %vm225_vm0, %v560_v34, 0.0 }
  0x4d   :  { %627 = vadd.xlane.f32.xlu2 %v626_v12  ;;  %624 = vadd.xlane.f32.xlu1 %v623_v7  ;;  %v561_v12 = vmul.f32 %v529_v22, %v529_v22  ;;  %v559_v7 = vmul.f32 %v527_v11, %v527_v11  ;;  %v2020_v22 = vsel %vm225_vm0, %v1988_v3, 0.0  ;;  %v7118_v3 = vld [vmem:[%s12232_s1 + $0x148] sm:$0xff] }
  0x4f   :  { %621 = vadd.xlane.f32.xlu0 %v620_v25  ;;  %6045 = vmatmul.msk.f32.gmra.mxu2 %vm225_vm0, %v257_v15  ;;  %v653_v16 = vsel %vm225_vm0, %v561_v12, 0.0  ;;  %v647_v25 = vsel %vm225_vm0, %v559_v7, 0.0  ;;  %v195_v12 = vsel %vm194_vm1, %v6675_v23, 0.0 }
  0x50   :  { %6054 = vmatmul.msk.f32.gmra.mxu3 %vm225_vm0, %v257_v15  ;;  %6135 = vmatmul.msk.f32.gmra.mxu0 %vm225_vm0, %v1710_v26  ;;  %v6129_v15 = vld [vmem:[%s12231_s0 + $0x78] sm:$0xff]  ;;  %v196_v23 = vrot.slane %v195_v12, 4 }
  0x51   :  { %6144 = vmatmul.msk.f32.gmra.mxu1 %vm225_vm0, %v1710_v26  ;;  %v1713_v26 = vmul.f32 -2.0, %v6129_v15  ;;  %v1681_v53 = vmul.f32 %v6129_v15, %v6129_v15  ;;  %v202_v15 = vsel %vm194_vm1, %v6677_v24, 0.0 }
  0x52   :  { %v203_v24 = vrot.slane %v202_v15, 4 }
  0x53   :  { %v1703_v2 = vsel %vm225_vm0, %v1681_v53, 0.0  ;;  %v7123_v53 = vld [vmem:[%s12232_s1 + $0x140] sm:$0xff] }
  0x55   :  { %636 = vadd.xlane.f32.xlu2 %v635_v36  ;;  %633 = vadd.xlane.f32.xlu1 %v632_v38  ;;  %v1688_v36 = vsel %vm225_vm0, %v1676_v21, 0.0  ;;  %v656_v38 = vsel %vm225_vm0, %v562_v32, 0.0  ;;  %v7081_v21 = vld [vmem:[%s12232_s1 + $0x130] sm:$0xff] }
  0x57   :  { %630 = vadd.xlane.f32.xlu0 %v629_v40  ;;  %6056 = vmatmul.msk.f32.vlgmr.msrb.gmra.mxu2 %vm225_vm0, %v659_v39  ;;  %v1679_v40 = vmul.f32 %v6943_v35, %v6943_v35 }
  0x58   :  { %6089 = vmatmul.msk.f32.vlgmr.msrb.gmra.mxu3 %vm225_vm0, %v659_v39  ;;  %6136 = vmatmul.msk.f32.gmra.mxu0 %vm225_vm0, %v1711_v43  ;;  %v2116_v39 = vmul.f32 -2.0, %v6148_v33  ;;  %v197_v33 = vadd.f32 %v196_v23, %v195_v12 }
  0x59   :  { %6145 = vmatmul.msk.f32.gmra.mxu1 %vm225_vm0, %v1711_v43  ;;  %v1678_v43 = vmul.f32 %v6911_v5, %v6911_v5  ;;  %v1697_v35 = vsel %vm225_vm0, %v1679_v40, 0.0 }
  0x5b   :  { %v1694_v5 = vsel %vm225_vm0, %v1678_v43, 0.0  ;;  %v1989_v43 = vmul.f32 %v7030_v44, %v7030_v44  ;;  %v666_v44 = vmul.f32 -2.0, %v6761_v60 }
  0x5d   :  { %645 = vadd.xlane.f32.xlu2 %v644_v56  ;;  %642 = vadd.xlane.f32.xlu1 %v641_v59 }
  0x5f   :  { %639 = vadd.xlane.f32.xlu0 %v638_v4  ;;  %6057 = vmatmul.msk.f32.gmra.mxu2 %vm225_vm0, %v660_v63  ;;  %v664_v4 = vmul.f32 -2.0, %v6726_v46 }
  0x60   :  { %6090 = vmatmul.msk.f32.gmra.mxu3 %vm225_vm0, %v660_v63  ;;  %6137 = vmatmul.msk.f32.gmra.mxu0 %vm225_vm0, %v1712_v8  ;;  %v6150_v63 = vld [vmem:[%s12232_s1 + $0x110] sm:$0xff] }
  0x61   :  { %6146 = vmatmul.msk.f32.gmra.mxu1 %vm225_vm0, %v1712_v8  ;;  %v6151_v8 = vld [vmem:[%s12232_s1 + $0x118] sm:$0xff]  ;;  %v2118_v11 = vmul.f32 -2.0, %v6150_v63  ;;  %v1990_v7 = vmul.f32 %v6150_v63, %v6150_v63 }
  0x62   :  { %v1991_v34 = vmul.f32 %v6151_v8, %v6151_v8  ;;  %v2119_v32 = vmul.f32 -2.0, %v6151_v8  ;;  %v1996_v8 = vmul.f32 %v7123_v53, %v7123_v53 }
  0x65   :  { %654 = vadd.xlane.f32.xlu2 %v653_v16  ;;  %651 = vadd.xlane.f32.xlu1 %v650_v17  ;;  %v1680_v17 = vmul.f32 %v6972_v55, %v6972_v55  ;;  %v6153_v55 = vld [vmem:[%s12232_s1 + $0x128] sm:$0xff] }
  0x66   :  { %v1993_v45 = vmul.f32 %v6153_v55, %v6153_v55 }
  0x67   :  { %648 = vadd.xlane.f32.xlu0 %v647_v25  ;;  %6058 = vmatmul.msk.f32.gmra.mxu2 %vm225_vm0, %v661_v19  ;;  %v2029_v25 = vsel %vm225_vm0, %v1991_v34, 0.0  ;;  %v1700_v30 = vsel %vm225_vm0, %v1680_v17, 0.0 }
  0x68   :  { %6091 = vmatmul.msk.f32.gmra.mxu3 %vm225_vm0, %v661_v19  ;;  %6138 = vmatmul.msk.f32.gmra.mxu0 %vm225_vm0, %v1713_v26 }
  0x69   :  { %6147 = vmatmul.msk.f32.gmra.mxu1 %vm225_vm0, %v1713_v26  ;;  %v2026_v26 = vsel %vm225_vm0, %v1990_v7, 0.0 }
  0x6d   :  { %1689 = vadd.xlane.f32.xlu2 %v1688_v36  ;;  %1686 = vadd.xlane.f32.xlu1 %v1685_v37  ;;  %v204_v36 = vadd.f32 %v203_v24, %v202_v15  ;;  %v1994_v37 = vmul.f32 %v7081_v21, %v7081_v21 }
  0x6f   :  { %657 = vadd.xlane.f32.xlu0 %v656_v38  ;;  %6059 = vmatmul.msk.f32.gmra.mxu2 %vm225_vm0, %v662_v18  ;;  %v3176_v38 = vld.sshfl [vmem:[#allocation1 + $0x8] sm:$0xff pattern:$0x75316420] }
  0x70   :  { %6092 = vmatmul.msk.f32.gmra.mxu3 %vm225_vm0, %v662_v18  ;;  %6181 = vmatmul.msk.f32.vlgmr.msrb.gmra.mxu0 %vm225_vm0, %v2116_v39  ;;  %v3175_v18 = vld.sshfl [vmem:[#allocation1] sm:$0xff pattern:$0x75316420] }
  0x71   :  { %6214 = vmatmul.msk.f32.vlgmr.msrb.gmra.mxu1 %vm225_vm0, %v2116_v39  ;;  %3607 = vst [vmem:[#allocation1] ss:$2 sm:$0xff] %v6921_v14  ;;  %v6152_v14 = vld [vmem:[%s12232_s1 + $0x120] sm:$0xff]  ;;  %6255 = vmatpush.msk.msra.mxu2 %vm194_vm1, %v3175_v18 }
  0x72   :  { %6264 = vmatpush.msk.msra.mxu3 %vm194_vm1, %v3176_v38  ;;  %v2120_v63 = vmul.f32 -2.0, %v6152_v14  ;;  %v1992_v7 = vmul.f32 %v6152_v14, %v6152_v14 }
  0x75   :  { %1698 = vadd.xlane.f32.xlu2 %v1697_v35  ;;  %1695 = vadd.xlane.f32.xlu1 %v1694_v5  ;;  %v198_v35 = vrot.slane %v197_v33, 2  ;;  %v205_v5 = vrot.slane %v204_v36, 2 }
  0x77   :  { %1683 = vadd.xlane.f32.xlu0 %v1682_v20  ;;  %6060 = vmatmul.msk.f32.gmra.mxu2 %vm225_vm0, %v663_v47  ;;  %v2038_v20 = vsel %vm225_vm0, %v1994_v37, 0.0  ;;  %v206_v60 = vadd.f32 %v205_v5, %v204_v36  ;;  %v6155_v36 = vld [vmem:[%s12232_s1 + $0x138] sm:$0xff] }
  0x78   :  { %6093 = vmatmul.msk.f32.gmra.mxu3 %vm225_vm0, %v663_v47  ;;  %6182 = vmatmul.msk.f32.gmra.mxu0 %vm225_vm0, %v2117_v52  ;;  %v7040_v54 = vpop.xlane.xlu2 %239  ;;  %v7042_v56 = vpop.xlane.xlu1 %233 }
  0x79   :  { %6215 = vmatmul.msk.f32.gmra.mxu1 %vm225_vm0, %v2117_v52  ;;  %v7047_v59 = vpop.xlane.xlu0 %227  ;;  %v2035_v52 = vsel %vm225_vm0, %v1993_v45, 0.0  ;;  %v207_v17 = vrot.slane %v206_v60, 1 }
  0x7b   :  { %v7158_v37 = vadd.f32 %v207_v17, %v206_v60 }
  0x7d   :  { %2021 = vadd.xlane.f32.xlu2 %v2020_v22  ;;  %1704 = vadd.xlane.f32.xlu1 %v1703_v2  ;;  %v2023_v22 = vsel %vm225_vm0, %v1989_v43, 0.0  ;;  %v199_v2 = vadd.f32 %v198_v35, %v197_v33  ;;  %v1995_v43 = vmul.f32 %v6155_v36, %v6155_v36  ;;  %v373_v14 = vadd.f32 %v7047_v59, %v7158_v37 }
  0x7f   :  { %1692 = vadd.xlane.f32.xlu0 %v1691_v51  ;;  %6061 = vmatmul.msk.f32.gmra.mxu2 %vm225_vm0, %v664_v4  ;;  %v3608_v51 = vld.sshfl [vmem:[#allocation1] sm:$0xff pattern:$0x75316420]  ;;  %v200_v15 = vrot.slane %v199_v2, 1  ;;  %v2041_v60 = vsel %vm225_vm0, %v1995_v43, 0.0 }
  0x80   :  { %6094 = vmatmul.msk.f32.gmra.mxu3 %vm225_vm0, %v664_v4  ;;  %6183 = vmatmul.msk.f32.gmra.mxu0 %vm225_vm0, %v2118_v11  ;;  %v7066_v46 = vpop.xlane.xlu2 %242  ;;  %v7068_v16 = vpop.xlane.xlu1 %236  ;;  %v1997_v4 = vmul.f32 %v7118_v3, %v7118_v3 }
  0x81   :  { %6216 = vmatmul.msk.f32.gmra.mxu1 %vm225_vm0, %v2118_v11  ;;  %v7073_v19 = vpop.xlane.xlu0 %230  ;;  %v3609_v11 = vld.sshfl [vmem:[#allocation1 + $0x8] sm:$0xff pattern:$0x75316420]  ;;  %6305 = vmatpush.msk.msrb.mxu2 %vm194_vm1, %v3608_v51  ;;  %v7153_v33 = vadd.f32 %v200_v15, %v199_v2  ;;  %v2122_v2 = vmul.f32 -2.0, %v7081_v21  ;;  %v379_v62 = vadd.f32 %v7068_v16, %v7158_v37 }
  0x82   :  { %4564 = vst [vmem:[#allocation1] ss:$2 sm:$0xff] %v4562_v48  ;;  %v2047_v24 = vsel %vm225_vm0, %v1997_v4, 0.0  ;;  %6338 = vmatpush.msk.msrb.mxu3 %vm194_vm1, %v3609_v11  ;;  %v375_v21 = vadd.f32 %v7073_v19, %v7158_v37 }
  0x83   :  { %12455 = vst [vmem:[#allocation11_spill] sm:$0xff] %v7153_v33  ;;  %v372_v35 = vadd.f32 %v7047_v59, %v7153_v33 }
  0x85   :  { %2030 = vadd.xlane.f32.xlu2 %v2029_v25  ;;  %2027 = vadd.xlane.f32.xlu1 %v2026_v26  ;;  %v2044_v25 = vsel %vm225_vm0, %v1996_v8, 0.0  ;;  %v667_v26 = vmul.f32 -2.0, %v6755_v58 }
  0x87   :  { %1701 = vadd.xlane.f32.xlu0 %v1700_v30  ;;  %6062 = vmatmul.msk.f32.gmra.mxu2 %vm225_vm0, %v665_v29  ;;  %v2121_v30 = vmul.f32 -2.0, %v6153_v55 }
  0x88   :  { %6095 = vmatmul.msk.f32.gmra.mxu3 %vm225_vm0, %v665_v29  ;;  %6184 = vmatmul.msk.f32.gmra.mxu0 %vm225_vm0, %v2119_v32  ;;  %v7093_v39 = vpop.xlane.xlu2 %564  ;;  %v7095_v40 = vpop.xlane.xlu1 %248  ;;  %v7150_v29 = vld [vmem:[%s12232_s1 + $0x158] sm:$0xff] }
  0x89   :  { %6217 = vmatmul.msk.f32.gmra.mxu1 %vm225_vm0, %v2119_v32  ;;  %v2032_v32 = vsel %vm225_vm0, %v1992_v7, 0.0  ;;  %v7160_v45 = vld.sshfl [vmem:[#allocation1] sm:$0xff pattern:$0x75316420]  ;;  %v1999_v18 = vmul.f32 %v7150_v29, %v7150_v29 }
  0x8a   :  { %v7108_v47 = vpop.xlane.xlu0 %245  ;;  %12456 = vst [vmem:[#allocation12_spill] sm:$0xff] %v7160_v45  ;;  %v7162_v58 = vld.sshfl [vmem:[#allocation1 + $0x8] sm:$0xff pattern:$0x75316420] }
  0x8b   :  { %12457 = vst [vmem:[#allocation13_spill] sm:$0xff] %v7162_v58  ;;  %v673_v58 = vmul.f32 -2.0, %v6828_v28  ;;  %v1659_v28 = vrot.slane %v1658_v49, 4 }
  0x8c   :  { %4633 = vst [vmem:[#allocation1] ss:$2 sm:$0xff] %v7102_v31 }
  0x8d   :  { %2039 = vadd.xlane.f32.xlu2 %v2038_v20  ;;  %2036 = vadd.xlane.f32.xlu1 %v2035_v52  ;;  %v2053_v52 = vsel %vm225_vm0, %v1999_v18, 0.0 }
  0x8f   :  { %6063 = vmatmul.msk.f32.gmra.mxu2 %vm225_vm0, %v666_v44  ;;  %2024 = vadd.xlane.f32.xlu0 %v2023_v22 }
  0x90   :  { %6096 = vmatmul.msk.f32.gmra.mxu3 %vm225_vm0, %v666_v44  ;;  %6185 = vmatmul.msk.f32.gmra.mxu0 %vm225_vm0, %v2120_v63  ;;  %v7135_v12 = vpop.xlane.xlu2 %573  ;;  %v7137_v34 = vpop.xlane.xlu1 %570 }
  0x91   :  { %6218 = vmatmul.msk.f32.gmra.mxu1 %vm225_vm0, %v2120_v63  ;;  %v668_v63 = vmul.f32 -2.0, %v6750_v57  ;;  %v374_v57 = vadd.f32 %v7073_v19, %v7153_v33 }
  0x92   :  { %v7140_v23 = vpop.xlane.xlu0 %567 }
  0x95   :  { %2048 = vadd.xlane.f32.xlu2 %v2047_v24  ;;  %2045 = vadd.xlane.f32.xlu1 %v2044_v25  ;;  %v669_v25 = vmul.f32 -2.0, %v6798_v13 }
  0x97   :  { %6064 = vmatmul.msk.f32.gmra.mxu2 %vm225_vm0, %v667_v26  ;;  %2033 = vadd.xlane.f32.xlu0 %v2032_v32 }
  0x98   :  { %6097 = vmatmul.msk.f32.gmra.mxu3 %vm225_vm0, %v667_v26  ;;  %6186 = vmatmul.msk.f32.gmra.mxu0 %vm225_vm0, %v2121_v30  ;;  %v7170_v55 = vpop.xlane.xlu2 %582  ;;  %v7172_v38 = vpop.xlane.xlu1 %579 }
  0x99   :  { %6219 = vmatmul.msk.f32.gmra.mxu1 %vm225_vm0, %v2121_v30  ;;  %v2123_v30 = vmul.f32 -2.0, %v6155_v36  ;;  %v376_v36 = vadd.f32 %v7042_v56, %v7153_v33 }
  0x9a   :  { %v7179_v5 = vpop.xlane.xlu0 %576  ;;  %v307_v20 = vpop.f32.mrf.mxu2 }
  0x9b   :  { %v388_v44 = vadd.f32 %v372_v35, %v307_v20  ;;  %v348_v48 = vpop.f32.mrf.mxu3  ;;  %v377_v35 = vadd.f32 %v7042_v56, %v7158_v37 }
  0x9c   :  { %v389_v22 = vadd.f32 %v373_v14, %v348_v48 }
  0x9d   :  { %v404_v4 = vmax.f32 %v388_v44, 0.0  ;;  %2054 = vadd.xlane.f32.xlu1 %v2053_v52  ;;  %v6158_v52 = vld [vmem:[%s12232_s1 + $0x150] sm:$0xff] }
  0x9e   :  { %v405_v8 = vmax.f32 %v389_v22, 0.0  ;;  %v1998_v22 = vmul.f32 %v6158_v52, %v6158_v52 }
  0x9f   :  { %6065 = vmatmul.msk.f32.gmra.mxu2 %vm225_vm0, %v668_v63  ;;  %2042 = vadd.xlane.f32.xlu0 %v2041_v60  ;;  %v2124_v60 = vmul.f32 -2.0, %v7123_v53 }
  0xa0   :  { %6098 = vmatmul.msk.f32.gmra.mxu3 %vm225_vm0, %v668_v63  ;;  %6187 = vmatmul.msk.f32.gmra.mxu0 %vm225_vm0, %v2122_v2  ;;  %v420_v59 = vmin.f32 %v404_v4, %v405_v8  ;;  %v7188_v51 = vpop.xlane.xlu2 %591  ;;  %v7190_v11 = vpop.xlane.xlu1 %588  ;;  %v670_v63 = vmul.f32 -2.0, %v6791_v10 }
  0xa1   :  { %6220 = vmatmul.msk.f32.gmra.mxu1 %vm225_vm0, %v2122_v2 }
  0xa2   :  { %421 = vmin.xlane.f32.xlu2 %v420_v59  ;;  %v7197_v7 = vpop.xlane.xlu0 %585  ;;  %v310_v15 = vpop.f32.mrf.mxu2 }
  0xa3   :  { %v7199_v17 = vadd.f32 %v374_v57, %v310_v15  ;;  %v351_v24 = vpop.f32.mrf.mxu3 }
  0xa4   :  { %v7202_v26 = vadd.f32 %v375_v21, %v351_v24  ;;  %v2050_v24 = vsel %vm225_vm0, %v1998_v22, 0.0 }
  0xa5   :  { %v12236_v32 = vmax.f32 %v7199_v17, 0.0 }
  0xa6   :  { %v12235_v18 = vmax.f32 %v7202_v26, 0.0 }
  0xa7   :  { %6066 = vmatmul.msk.f32.gmra.mxu2 %vm225_vm0, %v669_v25 }
  0xa8   :  { %6099 = vmatmul.msk.f32.gmra.mxu3 %vm225_vm0, %v669_v25  ;;  %6188 = vmatmul.msk.f32.gmra.mxu0 %vm225_vm0, %v2123_v30  ;;  %v423_v19 = vmin.f32 %v12236_v32, %v12235_v18  ;;  %v7213_v43 = vpop.xlane.xlu2 %600  ;;  %v7215_v13 = vpop.xlane.xlu1 %597 }
  0xa9   :  { %12458 = vst [vmem:[#allocation14_spill] sm:$0xff] %v7213_v43  ;;  %6221 = vmatmul.msk.f32.gmra.mxu1 %vm225_vm0, %v2123_v30 }
  0xaa   :  { %12459 = vst [vmem:[#allocation15_spill] sm:$0xff] %v7215_v13  ;;  %424 = vmin.xlane.f32.xlu0 %v423_v19  ;;  %v7222_v14 = vpop.xlane.xlu0 %594  ;;  %v313_v20 = vpop.f32.mrf.mxu2 }
  0xab   :  { %v392_v44 = vadd.f32 %v376_v36, %v313_v20  ;;  %v354_v48 = vpop.f32.mrf.mxu3 }
  0xac   :  { %v393_v2 = vadd.f32 %v377_v35, %v354_v48  ;;  %v2125_v35 = vmul.f32 -2.0, %v7118_v3 }
  0xad   :  { %v408_v59 = vmax.f32 %v392_v44, 0.0  ;;  %v7229_v57 = vpop.f32.mrf.mxu0 }
  0xae   :  { %v409_v56 = vmax.f32 %v393_v2, 0.0  ;;  %v7233_v15 = vpop.f32.mrf.mxu1 }
  0xaf   :  { %v7231_v21 = vmin.f32 %v404_v4, %v408_v59  ;;  %6067 = vmatmul.msk.f32.gmra.mxu2 %vm225_vm0, %v670_v63 }
  0xb0   :  { %v7237_v25 = vmin.f32 %v405_v8, %v409_v56  ;;  %6100 = vmatmul.msk.f32.gmra.mxu3 %vm225_vm0, %v670_v63  ;;  %6189 = vmatmul.msk.f32.gmra.mxu0 %vm225_vm0, %v2124_v60  ;;  %v426_v10 = vmin.f32 %v408_v59, %v409_v56  ;;  %v7241_v53 = vpop.xlane.xlu2 %609  ;;  %v7243_v30 = vpop.xlane.xlu1 %606  ;;  %v671_v8 = vmul.f32 -2.0, %v6786_v9  ;;  %v6160_v9 = vld [vmem:[%s12232_s1 + $0x160] sm:$0xff]  ;;  %v672_v59 = vmul.f32 -2.0, %v6835_v0  ;;  %v7282_v0 = vld [vmem:[%s12232_s1 + $0x170] sm:$0xff] }
  0xb1   :  { %12460 = vst [vmem:[#allocation16_spill] sm:$0xff] %v7241_v53  ;;  %6222 = vmatmul.msk.f32.gmra.mxu1 %vm225_vm0, %v2124_v60  ;;  %v2000_v2 = vmul.f32 %v6160_v9, %v6160_v9  ;;  %v2126_v56 = vmul.f32 -2.0, %v6158_v52 }
  0xb2   :  { %12461 = vst [vmem:[#allocation17_spill] sm:$0xff] %v7243_v30  ;;  %427 = vmin.xlane.f32.xlu1 %v426_v10  ;;  %v7246_v4 = vpop.xlane.xlu0 %603  ;;  %v316_v19 = vpop.f32.mrf.mxu2  ;;  %2051 = vadd.xlane.f32.xlu0 %v2050_v24 }
  0xb3   :  { %12462 = vst [vmem:[#allocation18_spill] sm:$0xff] %v7246_v4  ;;  %v357_v36 = vpop.f32.mrf.mxu3  ;;  %v2056_v24 = vsel %vm225_vm0, %v2000_v2, 0.0 }
  0xb4   :  { %2057 = vadd.xlane.f32.xlu2 %v2056_v24  ;;  %v1651_v24 = vsel %vm194_vm1, %v6763_v61, 0.0 }
  0xb5   :  { %v7250_v20 = vpop.f32.mrf.mxu0  ;;  %v1652_v50 = vrot.slane %v1651_v24, 4 }
  0xb6   :  { %v7259_v63 = vpop.f32.mrf.mxu1 }
  0xb7   :  { %6068 = vmatmul.msk.f32.gmra.mxu2 %vm225_vm0, %v671_v8 }
  0xb8   :  { %6101 = vmatmul.msk.f32.gmra.mxu3 %vm225_vm0, %v671_v8  ;;  %6190 = vmatmul.msk.f32.gmra.mxu0 %vm225_vm0, %v2125_v35  ;;  %v7255_v44 = vpop.xlane.xlu2 %618  ;;  %v7257_v48 = vpop.xlane.xlu1 %615 }
  0xb9   :  { %12463 = vst [vmem:[#allocation19_spill] sm:$0xff] %v7255_v44  ;;  %6223 = vmatmul.msk.f32.gmra.mxu1 %vm225_vm0, %v2125_v35 }
  0xba   :  { %12464 = vst [vmem:[#allocation20_spill] sm:$0xff] %v7257_v48  ;;  %v7265_v3 = vpop.xlane.xlu0 %612  ;;  %v319_v22 = vpop.f32.mrf.mxu2  ;;  %v1660_v48 = vadd.f32 %v1659_v28, %v1658_v49  ;;  %v387_v28 = vadd.f32 %v7095_v40, %v7158_v37 }
  0xbb   :  { %12465 = vst [vmem:[#allocation21_spill] sm:$0xff] %v7265_v3  ;;  %v360_v60 = vpop.f32.mrf.mxu3  ;;  %v384_v3 = vadd.f32 %v7108_v47, %v7153_v33 }
  0xbd   :  { %v7276_v35 = vpop.f32.mrf.mxu0 }
  0xbe   :  { %v7290_v18 = vpop.f32.mrf.mxu1 }
  0xbf   :  { %6069 = vmatmul.msk.f32.gmra.mxu2 %vm225_vm0, %v672_v59 }
  0xc0   :  { %6102 = vmatmul.msk.f32.gmra.mxu3 %vm225_vm0, %v672_v59  ;;  %6191 = vmatmul.msk.f32.gmra.mxu0 %vm225_vm0, %v2126_v56  ;;  %v7272_v10 = vpop.xlane.xlu2 %627  ;;  %v7274_v8 = vpop.xlane.xlu1 %624  ;;  %v2002_v59 = vmul.f32 %v7282_v0, %v7282_v0 }
  0xc1   :  { %12466 = vst [vmem:[#allocation22_spill] sm:$0xff] %v7272_v10  ;;  %6224 = vmatmul.msk.f32.gmra.mxu1 %vm225_vm0, %v2126_v56  ;;  %v2127_v56 = vmul.f32 -2.0, %v7150_v29  ;;  %v378_v29 = vadd.f32 %v7068_v16, %v7153_v33  ;;  %v383_v16 = vadd.f32 %v7066_v46, %v7158_v37 }
  0xc2   :  { %12467 = vst [vmem:[#allocation23_spill] sm:$0xff] %v7274_v8  ;;  %v7284_v52 = vpop.xlane.xlu0 %621  ;;  %v322_v2 = vpop.f32.mrf.mxu2  ;;  %v2062_v45 = vsel %vm225_vm0, %v2002_v59, 0.0 }
  0xc3   :  { %12468 = vst [vmem:[#allocation24_spill] sm:$0xff] %v7284_v52  ;;  %v363_v32 = vpop.f32.mrf.mxu3  ;;  %2063 = vadd.xlane.f32.xlu1 %v2062_v45  ;;  %v1653_v45 = vadd.f32 %v1652_v50, %v1651_v24  ;;  %v381_v50 = vadd.f32 %v7040_v54, %v7158_v37  ;;  %v7324_v24 = vadd.f32 %v379_v62, %v357_v36 }
  0xc4   :  { %v7338_v30 = vadd.f32 %v383_v16, %v363_v32  ;;  %v1661_v32 = vrot.slane %v1660_v48, 2 }
  0xc5   :  { %v7317_v52 = vpop.f32.mrf.mxu0 }
  0xc6   :  { %v7332_v53 = vpop.f32.mrf.mxu1 }
  0xc7   :  { %6070 = vmatmul.msk.f32.gmra.mxu2 %vm225_vm0, %v673_v58 }
  0xc8   :  { %6103 = vmatmul.msk.f32.gmra.mxu3 %vm225_vm0, %v673_v58  ;;  %6192 = vmatmul.msk.f32.gmra.mxu0 %vm225_vm0, %v2127_v56  ;;  %v7300_v61 = vpop.xlane.xlu2 %636  ;;  %v7302_v8 = vpop.xlane.xlu1 %633  ;;  %v380_v58 = vadd.f32 %v7040_v54, %v7153_v33  ;;  %v7336_v54 = vadd.f32 %v381_v50, %v360_v60 }
  0xc9   :  { %12469 = vst [vmem:[#allocation25_spill] sm:$0xff] %v7300_v61  ;;  %6225 = vmatmul.msk.f32.gmra.mxu1 %vm225_vm0, %v2127_v56  ;;  %v382_v61 = vadd.f32 %v7066_v46, %v7153_v33  ;;  %v674_v56 = vmul.f32 -2.0, %v6823_v27  ;;  %v385_v27 = vadd.f32 %v7108_v47, %v7158_v37  ;;  %v1654_v46 = vrot.slane %v1653_v45, 2 }
  0xca   :  { %12470 = vst [vmem:[#allocation26_spill] sm:$0xff] %v7302_v8  ;;  %v7309_v59 = vpop.xlane.xlu0 %630  ;;  %v325_v10 = vpop.f32.mrf.mxu2  ;;  %v7315_v8 = vadd.f32 %v378_v29, %v316_v19  ;;  %v7328_v19 = vadd.f32 %v380_v58, %v319_v22 }
  0xcb   :  { %12471 = vst [vmem:[#allocation27_spill] sm:$0xff] %v7309_v59  ;;  %v366_v44 = vpop.f32.mrf.mxu3  ;;  %v2128_v59 = vmul.f32 -2.0, %v6160_v9  ;;  %v7330_v29 = vadd.f32 %v382_v61, %v322_v2  ;;  %v7341_v49 = vadd.f32 %v384_v3, %v325_v10  ;;  %v12250_v9 = vmax.f32 %v7324_v24, 0.0 }
  0xcc   :  { %v12249_v36 = vmax.f32 %v7315_v8, 0.0  ;;  %v7345_v22 = vadd.f32 %v385_v27, %v366_v44  ;;  %v386_v2 = vadd.f32 %v7095_v40, %v7153_v33  ;;  %v7361_v44 = vld [vmem:[%s12232_s1 + $0x168] sm:$0xff]  ;;  %v675_v61 = vmul.f32 -2.0, %v6870_v6 }
  0xcd   :  { %v1655_v16 = vadd.f32 %v1654_v46, %v1653_v45  ;;  %v12476_v40 = vmax.f32 %v7202_v26, 0.0  ;;  %v2129_v45 = vmul.f32 -2.0, %v7361_v44  ;;  %v1662_v46 = vadd.f32 %v1661_v32, %v1660_v48 }
  0xce   :  { %v12251_v58 = vmax.f32 %v7345_v22, 0.0  ;;  %v12479_v26 = vmax.f32 %v7336_v54, 0.0  ;;  %v12481_v32 = vmax.f32 %v7341_v49, 0.0  ;;  %v12489_v4 = vmax.f32 %v7328_v19, 0.0 }
  0xcf   :  { %6071 = vmatmul.msk.f32.gmra.mxu2 %vm225_vm0, %v674_v56  ;;  %v458_v62 = vmin.f32 %v12476_v40, %v12250_v9 }
  0xd0   :  { %6104 = vmatmul.msk.f32.gmra.mxu3 %vm225_vm0, %v674_v56  ;;  %6193 = vmatmul.msk.f32.gmra.mxu0 %vm225_vm0, %v2128_v59  ;;  %v7349_v47 = vpop.xlane.xlu2 %645  ;;  %v7351_v60 = vpop.xlane.xlu1 %642  ;;  %v459_v40 = vmin.f32 %v7237_v25, %v12479_v26  ;;  %v1663_v26 = vrot.slane %v1662_v46, 1 }
  0xd1   :  { %12472 = vst [vmem:[#allocation28_spill] sm:$0xff] %v7349_v47  ;;  %6226 = vmatmul.msk.f32.gmra.mxu1 %vm225_vm0, %v2128_v59  ;;  %v12475_v59 = vmax.f32 %v7199_v17, 0.0  ;;  %v12477_v17 = vmax.f32 %v7328_v19, 0.0  ;;  %v12487_v47 = vmax.f32 %v7330_v29, 0.0 }
  0xd2   :  { %12473 = vst [vmem:[#allocation29_spill] sm:$0xff] %v7351_v60  ;;  %v7368_v56 = vpop.xlane.xlu0 %639  ;;  %v328_v50 = vpop.f32.mrf.mxu2 }
  0xd3   :  { %12474 = vst [vmem:[#allocation30_spill] sm:$0xff] %v7368_v56  ;;  %v445_v27 = vmin.f32 %v12475_v59, %v12249_v36  ;;  %v7375_v3 = vadd.f32 %v386_v2, %v328_v50  ;;  %v369_v6 = vpop.f32.mrf.mxu3  ;;  %v446_v59 = vmin.f32 %v7231_v21, %v12477_v17  ;;  %v12478_v2 = vmax.f32 %v7330_v29, 0.0  ;;  %v7390_v36 = vpop.f32.mrf.mxu0 }
  0xd4   :  { %v7382_v56 = vadd.f32 %v387_v28, %v369_v6  ;;  %v12480_v28 = vmax.f32 %v7338_v30, 0.0  ;;  %v7401_v21 = vpop.f32.mrf.mxu1  ;;  %v461_v17 = vmin.f32 %v459_v40, %v12251_v58  ;;  %v676_v40 = vmul.f32 -2.0, %v6863_v42  ;;  %v7433_v42 = vld [vmem:[%s12232_s1 + $0x178] sm:$0xff] }
  0xd5   :  { %v447_v50 = vmin.f32 %v445_v27, %v12478_v2  ;;  %v12252_v10 = vmax.f32 %v7375_v3, 0.0  ;;  %v448_v9 = vmin.f32 %v446_v59, %v12481_v32  ;;  %v1656_v2 = vrot.slane %v1655_v16, 1 }
  0xd6   :  { %v460_v6 = vmin.f32 %v458_v62, %v12480_v28  ;;  %v12253_v48 = vmax.f32 %v7382_v56, 0.0 }
  0xd7   :  { %v449_v27 = vmin.f32 %v447_v50, %v12252_v10  ;;  %6072 = vmatmul.msk.f32.gmra.mxu2 %vm225_vm0, %v675_v61  ;;  %v7421_v10 = vadd.f32 %v1656_v2, %v1655_v16 }
  0xd8   :  { %v462_v25 = vmin.f32 %v460_v6, %v12253_v48  ;;  %6105 = vmatmul.msk.f32.gmra.mxu3 %vm225_vm0, %v675_v61  ;;  %6194 = vmatmul.msk.f32.gmra.mxu0 %vm225_vm0, %v2129_v45  ;;  %v7412_v62 = vpop.xlane.xlu2 %654  ;;  %v7414_v59 = vpop.xlane.xlu1 %651  ;;  %v2130_v61 = vmul.f32 -2.0, %v7282_v0  ;;  %v7423_v48 = vadd.f32 %v1663_v26, %v1662_v46  ;;  %v677_v26 = vmul.f32 -2.0, %v6858_v41 }
  0xd9   :  { %12482 = vst [vmem:[#allocation31_spill] sm:$0xff] %v7412_v62  ;;  %v450_v28 = vmin.f32 %v448_v9, %v449_v27  ;;  %6227 = vmatmul.msk.f32.gmra.mxu1 %vm225_vm0, %v2129_v45 }
  0xda   :  { %12483 = vst [vmem:[#allocation32_spill] sm:$0xff] %v7414_v59  ;;  %v463_v50 = vmin.f32 %v461_v17, %v462_v25  ;;  %v7417_v32 = vpop.xlane.xlu0 %648 }
  0xdb   :  { %12484 = vst [vmem:[#allocation33_spill] sm:$0xff] %v7417_v32  ;;  %v451_v58 = vrot.slane %v450_v28, 4  ;;  %v7425_v62 = vpop.f32.mrf.mxu0 }
  0xdc   :  { %v464_v6 = vrot.slane %v463_v50, 4  ;;  %v7435_v16 = vpop.f32.mrf.mxu1 }
  0xdd   :  { %v452_v9 = vmin.f32 %v450_v28, %v451_v58  ;;  %v2131_v28 = vmul.f32 -2.0, %v7433_v42 }
  0xde   :  { %v465_v0 = vmin.f32 %v463_v50, %v464_v6 }
  0xdf   :  { %6073 = vmatmul.msk.f32.gmra.mxu2 %vm225_vm0, %v676_v40 }
  0xe0   :  { %6106 = vmatmul.msk.f32.gmra.mxu3 %vm225_vm0, %v676_v40  ;;  %6195 = vmatmul.msk.f32.gmra.mxu0 %vm225_vm0, %v2130_v61  ;;  %v1690_v45 = vpop.xlane.xlu2 %1689  ;;  %v1687_v27 = vpop.xlane.xlu1 %1686  ;;  %v453_v40 = vrot.slane %v452_v9, 2  ;;  %v466_v32 = vrot.slane %v465_v0, 2 }
  0xe1   :  { %6228 = vmatmul.msk.f32.gmra.mxu1 %vm225_vm0, %v2130_v61  ;;  %v1832_v46 = vadd.f32 %v1690_v45, %v7421_v10  ;;  %v1833_v58 = vadd.f32 %v1690_v45, %v7423_v48  ;;  %v1830_v17 = vadd.f32 %v1687_v27, %v7421_v10  ;;  %v1831_v25 = vadd.f32 %v1687_v27, %v7423_v48 }
  0xe2   :  { %v7442_v2 = vpop.xlane.xlu0 %657  ;;  %v454_v60 = vmin.f32 %v452_v9, %v453_v40  ;;  %v7469_v9 = vld [vmem:[%s12232_s1 + $0x180] sm:$0xff] }
  0xe3   :  { %12485 = vst [vmem:[#allocation34_spill] sm:$0xff] %v7442_v2  ;;  %v1848_v50 = vadd.f32 %v1832_v46, %v7276_v35  ;;  %v1849_v6 = vadd.f32 %v1833_v58, %v7290_v18  ;;  %v7449_v61 = vadd.f32 %v1830_v17, %v7250_v20  ;;  %v7452_v45 = vadd.f32 %v1831_v25, %v7259_v63  ;;  %v7471_v25 = vpop.f32.mrf.mxu0 }
  0xe4   :  { %v467_v46 = vmin.f32 %v465_v0, %v466_v32  ;;  %v7474_v40 = vpop.f32.mrf.mxu1 }
  0xe5   :  { %v1864_v59 = vmax.f32 %v1848_v50, 0.0  ;;  %v1865_v27 = vmax.f32 %v1849_v6, 0.0  ;;  %v12260_v2 = vmax.f32 %v7449_v61, 0.0  ;;  %v12259_v41 = vmax.f32 %v7452_v45, 0.0 }
  0xe6   :  { %v678_v50 = vmul.f32 -2.0, %v6901_v1  ;;  %v2132_v6 = vmul.f32 -2.0, %v7469_v9 }
  0xe7   :  { %6074 = vmatmul.msk.f32.gmra.mxu2 %vm225_vm0, %v677_v26  ;;  %v1882_v18 = vmin.f32 %v1864_v59, %v1865_v27  ;;  %v1879_v20 = vmin.f32 %v12260_v2, %v12259_v41  ;;  %v468_v2 = vrot.slane %v467_v46, 1 }
  0xe8   :  { %6107 = vmatmul.msk.f32.gmra.mxu3 %vm225_vm0, %v677_v26  ;;  %6196 = vmatmul.msk.f32.gmra.mxu0 %vm225_vm0, %v2131_v28  ;;  %v1699_v63 = vpop.xlane.xlu2 %1698  ;;  %v1696_v35 = vpop.xlane.xlu1 %1695 }
  0xe9   :  { %6229 = vmatmul.msk.f32.gmra.mxu1 %vm225_vm0, %v2131_v28  ;;  %v1836_v58 = vadd.f32 %v1696_v35, %v7421_v10  ;;  %v1837_v17 = vadd.f32 %v1696_v35, %v7423_v48  ;;  %1883 = vmin.xlane.f32.xlu1 %v1882_v18  ;;  %v455_v28 = vrot.slane %v454_v60, 1  ;;  %v1839_v29 = vadd.f32 %v1699_v63, %v7423_v48 }
  0xea   :  { %v1684_v26 = vpop.xlane.xlu0 %1683  ;;  %1880 = vmin.xlane.f32.xlu0 %v1879_v20  ;;  %v12486_v20 = vmax.f32 %v7338_v30, 0.0  ;;  %v1838_v30 = vadd.f32 %v1699_v63, %v7421_v10 }
  0xeb   :  { %v1828_v32 = vadd.f32 %v1684_v26, %v7421_v10  ;;  %v1829_v0 = vadd.f32 %v1684_v26, %v7423_v48  ;;  %v7480_v35 = vadd.f32 %v1836_v58, %v7390_v36  ;;  %v7483_v41 = vadd.f32 %v1837_v17, %v7401_v21  ;;  %v6533_v17 = vld [vmem:[%s12232_s1 + $0xa0] sm:$0xff] }
  0xec   :  { %v435_v31 = vmin.f32 %v12487_v47, %v12486_v20  ;;  %v12488_v26 = vmax.f32 %v7336_v54, 0.0  ;;  %v456_v58 = vmin.f32 %v454_v60, %v455_v28  ;;  %v469_v47 = vmin.f32 %v467_v46, %v468_v2 }
  0xed   :  { %v1844_v18 = vadd.f32 %v1828_v32, %v7229_v57  ;;  %v1845_v1 = vadd.f32 %v1829_v0, %v7233_v15  ;;  %v6165_v57 = vld [vmem:[%s12232_s1 + $0x188] sm:$0xff]  ;;  %v1868_v15 = vmax.f32 %v7480_v35, 0.0  ;;  %v1869_v54 = vmax.f32 %v7483_v41, 0.0 }
  0xee   :  { %v432_v43 = vmin.f32 %v12489_v4, %v12488_v26  ;;  %v679_v32 = vmul.f32 -2.0, %v6533_v17  ;;  %v2005_v20 = vmul.f32 %v6165_v57, %v6165_v57 }
  0xef   :  { %6075 = vmatmul.msk.f32.gmra.mxu2 %vm225_vm0, %v678_v50  ;;  %v1860_v36 = vmax.f32 %v1844_v18, 0.0  ;;  %v1861_v21 = vmax.f32 %v1845_v1, 0.0  ;;  %v2133_v1 = vmul.f32 -2.0, %v6165_v57 }
  0xf0   :  { %6108 = vmatmul.msk.f32.gmra.mxu3 %vm225_vm0, %v678_v50  ;;  %6197 = vmatmul.msk.f32.gmra.mxu0 %vm225_vm0, %v2132_v6  ;;  %v7504_v4 = vpop.xlane.xlu2 %2021  ;;  %v1705_v19 = vpop.xlane.xlu1 %1704 }
  0xf1   :  { %6230 = vmatmul.msk.f32.gmra.mxu1 %vm225_vm0, %v2132_v6  ;;  %v1876_v60 = vmin.f32 %v1860_v36, %v1861_v21  ;;  %v1900_v0 = vmin.f32 %v1860_v36, %v1864_v59  ;;  %v1913_v63 = vmin.f32 %v1861_v21, %v1865_v27  ;;  %436 = vmin.xlane.f32.xlu1 %v435_v31  ;;  %v1784_v31 = vpop.f32.mrf.mxu0  ;;  %v1825_v21 = vpop.f32.mrf.mxu1 }
  0xf2   :  { %v1693_v28 = vpop.xlane.xlu0 %1692  ;;  %433 = vmin.xlane.f32.xlu0 %v432_v43  ;;  %v1842_v50 = vadd.f32 %v1705_v19, %v7421_v10  ;;  %v1843_v18 = vadd.f32 %v1705_v19, %v7423_v48  ;;  %v2001_v6 = vmul.f32 %v7361_v44, %v7361_v44  ;;  %v1854_v43 = vadd.f32 %v1838_v30, %v7425_v62 }
  0xf3   :  { %v1834_v2 = vadd.f32 %v1693_v28, %v7421_v10  ;;  %v1835_v46 = vadd.f32 %v1693_v28, %v7423_v48  ;;  %1877 = vmin.xlane.f32.xlu2 %v1876_v60  ;;  %v7519_v59 = vmin.f32 %v1900_v0, %v1868_v15  ;;  %v1855_v27 = vadd.f32 %v1839_v29, %v7435_v16 }
  0xf4   :  { %v7525_v26 = vmin.f32 %v1913_v63, %v1869_v54  ;;  %v7527_v36 = vadd.f32 %v469_v47, %v456_v58  ;;  %v7535_v19 = vadd.f32 %v1842_v50, %v1784_v31  ;;  %v7537_v17 = vadd.f32 %v1843_v18, %v1825_v21  ;;  %v7556_v63 = vld [vmem:[%s12232_s1 + $0x190] sm:$0xff]  ;;  %v924_v21 = vpop.f32.mrf.mxu3 }
  0xf5   :  { %v7530_v57 = vadd.f32 %v1834_v2, %v7317_v52  ;;  %v7533_v44 = vadd.f32 %v1835_v46, %v7332_v53  ;;  %v2071_v62 = vsel %vm225_vm0, %v2005_v20, 0.0  ;;  %v2059_v16 = vsel %vm225_vm0, %v2001_v6, 0.0 }
  0xf6   :  { %v1870_v52 = vmax.f32 %v1854_v43, 0.0  ;;  %v1871_v29 = vmax.f32 %v1855_v27, 0.0  ;;  %v12490_v47 = vmax.f32 %v7324_v24, 0.0  ;;  %v12491_v60 = vmax.f32 %v7315_v8, 0.0  ;;  %v811_v27 = vpop.f32.mrf.mxu2 }
  0xf7   :  { %6076 = vmatmul.msk.f32.gmra.mxu2 %vm225_vm0, %v679_v32  ;;  %v1866_v58 = vmax.f32 %v7530_v57, 0.0  ;;  %v1867_v30 = vmax.f32 %v7533_v44, 0.0  ;;  %v12492_v28 = vmax.f32 %v7449_v61, 0.0  ;;  %v12493_v24 = vmax.f32 %v7452_v45, 0.0 }
  0xf8   :  { %6109 = vmatmul.msk.f32.gmra.mxu3 %vm225_vm0, %v679_v32  ;;  %6198 = vmatmul.msk.f32.gmra.mxu0 %vm225_vm0, %v2133_v1  ;;  %v7546_v53 = vpop.xlane.xlu2 %2030  ;;  %v429_v0 = vmin.f32 %v12491_v60, %v12490_v47  ;;  %v1874_v32 = vmax.f32 %v7535_v19, 0.0  ;;  %v1875_v18 = vmax.f32 %v7537_v17, 0.0  ;;  %v2134_v2 = vmul.f32 -2.0, %v7556_v63  ;;  %v6538_v19 = vld [vmem:[%s12232_s1 + $0xc8] sm:$0xff] }
  0xf9   :  { %6231 = vmatmul.msk.f32.gmra.mxu1 %vm225_vm0, %v2133_v1  ;;  %2072 = vadd.xlane.f32.xlu1 %v2071_v62  ;;  %v1901_v50 = vmin.f32 %v12492_v28, %v1866_v58  ;;  %v1914_v8 = vmin.f32 %v12493_v24, %v1867_v30  ;;  %v6534_v1 = vld [vmem:[%s12232_s1 + $0xa8] sm:$0xff]  ;;  %v2003_v61 = vmul.f32 %v7433_v42, %v7433_v42  ;;  %v12310_v46 = vmov inf  }
  0xfa   :  { %2060 = vadd.xlane.f32.xlu0 %v2059_v16  ;;  %v680_v20 = vmul.f32 -2.0, %v6534_v1  ;;  %20 = vst.msk [vmem:[#allocation2] sm:$0xff] %vm19_vm2, %v12310_v46  ;;  %v1020_v31 = vadd.f32 %v7093_v39, %v7153_v33  ;;  %v1021_v43 = vadd.f32 %v7093_v39, %v7158_v37  ;;  %v1891_v62 = vmin.f32 %v1870_v52, %v1871_v29 }
  0xfb   :  { %430 = vmin.xlane.f32.xlu2 %v429_v0  ;;  %v1903_v45 = vmin.f32 %v1901_v50, %v1870_v52  ;;  %v1916_v6 = vmin.f32 %v1914_v8, %v1871_v29  ;;  %21 = vst.msk [vmem:[#allocation2 + $0x8] sm:$0xff] %vm19_vm2, %v12310_v46  ;;  %v1888_v42 = vmin.f32 %v1868_v15, %v1869_v54  ;;  %v2065_v15 = vsel %vm225_vm0, %v2003_v61, 0.0  ;;  %v7614_v52 = vld [vmem:[%s12232_s1 + $0x198] sm:$0xff]  ;;  %v6535_v29 = vld [vmem:[%s12232_s1 + $0xb0] sm:$0xff] }
  0xfc   :  { %22 = vst.msk [vmem:[#allocation2 + $0x10] sm:$0xff] %vm19_vm2, %v12310_v46  ;;  %v7599_v41 = vadd.f32 %v1020_v31, %v811_v27  ;;  %v7601_v35 = vadd.f32 %v1021_v43, %v924_v21  ;;  %v681_v47 = vmul.f32 -2.0, %v6535_v29  ;;  %v2135_v28 = vmul.f32 -2.0, %v7614_v52  ;;  %v7702_v21 = vpop.f32.mrf.mxu3 }
  0xfd   :  { %v7590_v16 = vmin.f32 %v1903_v45, %v1874_v32  ;;  %v7594_v39 = vmin.f32 %v1916_v6, %v1875_v18  ;;  %23 = vst.msk [vmem:[#allocation2 + $0x18] sm:$0xff] %vm19_vm2, %v12310_v46  ;;  %v12494_v24 = vmax.f32 %v7382_v56, 0.0  ;;  %v12495_v8 = vmax.f32 %v7375_v3, 0.0  ;;  %v6536_v3 = vld [vmem:[%s12232_s1 + $0xb8] sm:$0xff]  ;;  %v7692_v6 = vld [vmem:[%s12232_s1 + $0x1a8] sm:$0xff] }
  0xfe   :  { %24 = vst.msk [vmem:[#allocation2 + $0x20] sm:$0xff] %vm19_vm2, %v12310_v46  ;;  %v12269_v60 = vmax.f32 %v7599_v41, 0.0  ;;  %v12267_v0 = vmax.f32 %v7601_v35, 0.0  ;;  %v682_v56 = vmul.f32 -2.0, %v6536_v3  ;;  %v2004_v44 = vmul.f32 %v7469_v9, %v7469_v9  ;;  %v7700_v31 = vpop.f32.mrf.mxu2 }
  0xff   :  { %6077 = vmatmul.msk.f32.gmra.mxu2 %vm225_vm0, %v680_v20  ;;  %25 = vst.msk [vmem:[#allocation2 + $0x28] sm:$0xff] %vm19_vm2, %v12310_v46  ;;  %v441_v1 = vmin.f32 %v12495_v8, %v12494_v24  ;;  %v12497_v9 = vmax.f32 %v7345_v22, 0.0  ;;  %v12498_v61 = vmax.f32 %v7341_v49, 0.0  ;;  %v6537_v22 = vld [vmem:[%s12232_s1 + $0xc0] sm:$0xff]  ;;  %v1897_v29 = vmin.f32 %v1874_v32, %v1875_v18 }
 0x100   :  { %6110 = vmatmul.msk.f32.gmra.mxu3 %vm225_vm0, %v680_v20  ;;  %6199 = vmatmul.msk.f32.gmra.mxu0 %vm225_vm0, %v2134_v2  ;;  %v7609_v54 = vpop.xlane.xlu2 %2039  ;;  %26 = vst.msk [vmem:[#allocation2 + $0x30] sm:$0xff] %vm19_vm2, %v12310_v46  ;;  %v1212_v50 = vmin.f32 %v12269_v60, %v12267_v0  ;;  %v1885_v20 = vmin.f32 %v1866_v58, %v1867_v30  ;;  %v2068_v30 = vsel %vm225_vm0, %v2004_v44, 0.0  ;;  %v683_v49 = vmul.f32 -2.0, %v6537_v22 }
 0x101   :  { %6232 = vmatmul.msk.f32.gmra.mxu1 %vm225_vm0, %v2134_v2  ;;  %1892 = vmin.xlane.f32.xlu1 %v1891_v62  ;;  %27 = vst.msk [vmem:[#allocation2 + $0x38] sm:$0xff] %vm19_vm2, %v12310_v46  ;;  %v6168_v2 = vld [vmem:[%s12232_s1 + $0x1a0] sm:$0xff]  ;;  %v438_v45 = vmin.f32 %v12498_v61, %v12497_v9  ;;  %v474_v43 = vld [vmem:[#allocation2] sm:$0xff]  ;;  %v2006_v62 = vmul.f32 %v7556_v63, %v7556_v63  ;;  %v684_v17 = vmul.f32 -2.0, %v6538_v19 }
 0x102   :  { %1889 = vmin.xlane.f32.xlu0 %v1888_v42  ;;  %28 = vst.msk [vmem:[#allocation2 + $0x40] sm:$0xff] %vm19_vm2, %v12310_v46  ;;  %v2136_v58 = vmul.f32 -2.0, %v6168_v2  ;;  %v2008_v27 = vmul.f32 %v6168_v2, %v6168_v2  ;;  %v6542_v9 = vld [vmem:[%s12232_s1 + $0xe8] sm:$0xff]  ;;  %v1027_v0 = vadd.f32 %v7135_v12, %v7158_v37  ;;  %v1030_v60 = vadd.f32 %v7172_v38, %v7153_v33 }
 0x103   :  { %2066 = vadd.xlane.f32.xlu2 %v2065_v15  ;;  %29 = vst.msk [vmem:[#allocation2 + $0x48] sm:$0xff] %vm19_vm2, %v12310_v46  ;;  %v688_v61 = vmul.f32 -2.0, %v6542_v9 }
 0x104   :  { %30 = vst.msk [vmem:[#allocation2 + $0x50] sm:$0xff] %vm19_vm2, %v12310_v46  ;;  %v2080_v63 = vsel %vm225_vm0, %v2008_v27, 0.0  ;;  %v7741_v18 = vpop.f32.mrf.mxu3 }
 0x105   :  { %31 = vst.msk [vmem:[#allocation2 + $0x58] sm:$0xff] %vm19_vm2, %v12310_v46 }
 0x106   :  { %32 = vst.msk [vmem:[#allocation2 + $0x60] sm:$0xff] %vm19_vm2, %v12310_v46  ;;  %v7737_v32 = vpop.f32.mrf.mxu2 }
 0x107   :  { %6078 = vmatmul.msk.f32.gmra.mxu2 %vm225_vm0, %v681_v47  ;;  %33 = vst.msk [vmem:[#allocation2 + $0x68] sm:$0xff] %vm19_vm2, %v12310_v46 }
 0x108   :  { %6111 = vmatmul.msk.f32.gmra.mxu3 %vm225_vm0, %v681_v47  ;;  %6200 = vmatmul.msk.f32.gmra.mxu0 %vm225_vm0, %v2135_v28  ;;  %v7662_v57 = vpop.xlane.xlu2 %2048  ;;  %34 = vst.msk [vmem:[#allocation2 + $0x70] sm:$0xff] %vm19_vm2, %v12310_v46  ;;  %v2074_v47 = vsel %vm225_vm0, %v2006_v62, 0.0  ;;  %v1024_v62 = vadd.f32 %v7137_v34, %v7153_v33 }
 0x109   :  { %6233 = vmatmul.msk.f32.gmra.mxu1 %vm225_vm0, %v2135_v28  ;;  %1213 = vmin.xlane.f32.xlu1 %v1212_v50  ;;  %12496 = vst [vmem:[#allocation35_spill] sm:$0xff] %v7662_v57  ;;  %v6539_v28 = vld [vmem:[%s12232_s1 + $0xd0] sm:$0xff] }
 0x10a   :  { %442 = vmin.xlane.f32.xlu0 %v441_v1  ;;  %35 = vst.msk [vmem:[#allocation2 + $0x78] sm:$0xff] %vm19_vm2, %v12310_v46  ;;  %v685_v50 = vmul.f32 -2.0, %v6539_v28  ;;  %v6540_v1 = vld [vmem:[%s12232_s1 + $0xd8] sm:$0xff] }
 0x10b   :  { %1886 = vmin.xlane.f32.xlu2 %v1885_v20  ;;  %36 = vst.msk [vmem:[#allocation2 + $0x80] sm:$0xff] %vm19_vm2, %v12310_v46  ;;  %v686_v20 = vmul.f32 -2.0, %v6540_v1 }
 0x10c   :  { %37 = vst.msk [vmem:[#allocation2 + $0x88] sm:$0xff] %vm19_vm2, %v12310_v46  ;;  %v7771_v8 = vpop.f32.mrf.mxu3 }
 0x10d   :  { %38 = vst.msk [vmem:[#allocation2 + $0x90] sm:$0xff] %vm19_vm2, %v12310_v46 }
 0x10e   :  { %39 = vst.msk [vmem:[#allocation2 + $0x98] sm:$0xff] %vm19_vm2, %v12310_v46  ;;  %v7766_v24 = vpop.f32.mrf.mxu2 }
 0x10f   :  { %6079 = vmatmul.msk.f32.gmra.mxu2 %vm225_vm0, %v682_v56  ;;  %40 = vst.msk [vmem:[#allocation2 + $0xa0] sm:$0xff] %vm19_vm2, %v12310_v46 }
 0x110   :  { %6112 = vmatmul.msk.f32.gmra.mxu3 %vm225_vm0, %v682_v56  ;;  %6201 = vmatmul.msk.f32.gmra.mxu0 %vm225_vm0, %v2136_v58  ;;  %41 = vst.msk [vmem:[#allocation2 + $0xa8] sm:$0xff] %vm19_vm2, %v12310_v46  ;;  %v6541_v56 = vld [vmem:[%s12232_s1 + $0xe0] sm:$0xff] }
 0x111   :  { %6234 = vmatmul.msk.f32.gmra.mxu1 %vm225_vm0, %v2136_v58  ;;  %471 = vadd.xlane.f32.xlu1 %v7527_v36  ;;  %42 = vst.msk [vmem:[#allocation2 + $0xb0] sm:$0xff] %vm19_vm2, %v12310_v46  ;;  %v2137_v36 = vmul.f32 -2.0, %v7692_v6  ;;  %v687_v44 = vmul.f32 -2.0, %v6541_v56  ;;  %v7824_v58 = vpop.f32.mrf.mxu0  ;;  %v1702_v56 = vpop.xlane.xlu0 %1701 }
 0x112   :  { %2069 = vadd.xlane.f32.xlu0 %v2068_v30  ;;  %43 = vst.msk [vmem:[#allocation2 + $0xb8] sm:$0xff] %vm19_vm2, %v12310_v46  ;;  %v7826_v30 = vpop.f32.mrf.mxu1 }
 0x113   :  { %439 = vmin.xlane.f32.xlu2 %v438_v45  ;;  %44 = vst.msk [vmem:[#allocation2 + $0xc0] sm:$0xff] %vm19_vm2, %v12310_v46 }
 0x114   :  { %45 = vst.msk [vmem:[#allocation2 + $0xc8] sm:$0xff] %vm19_vm2, %v12310_v46  ;;  %v7801_v3 = vpop.f32.mrf.mxu3 }
 0x115   :  { %v422_v42 = vpop.xlane.xlu2 %421  ;;  %46 = vst.msk [vmem:[#allocation2 + $0xd0] sm:$0xff] %vm19_vm2, %v12310_v46 }
 0x116   :  { %v482_v15 = vmin.f32 %v474_v43, %v422_v42  ;;  %47 = vst.msk [vmem:[#allocation2 + $0xd8] sm:$0xff] %vm19_vm2, %v12310_v46  ;;  %v7797_v2 = vpop.f32.mrf.mxu2  ;;  %v1025_v42 = vadd.f32 %v7137_v34, %v7158_v37  ;;  %v6544_v34 = vld [vmem:[%s12232_s1 + $0xf8] sm:$0xff] }
 0x117   :  { %6080 = vmatmul.msk.f32.gmra.mxu2 %vm225_vm0, %v683_v49  ;;  %48 = vst.msk [vmem:[#allocation2 + $0xe0] sm:$0xff] %vm19_vm2, %v12310_v46  ;;  %v690_v19 = vmul.f32 -2.0, %v6544_v34 }
 0x118   :  { %491 = vst.msk [vmem:[#allocation2] sm:$0xff] %vm19_vm2, %v482_v15  ;;  %6113 = vmatmul.msk.f32.gmra.mxu3 %vm225_vm0, %v683_v49  ;;  %6202 = vmatmul.msk.f32.gmra.mxu0 %vm225_vm0, %v2137_v36  ;;  %v6543_v49 = vld [vmem:[%s12232_s1 + $0xf0] sm:$0xff] }
 0x119   :  { %6235 = vmatmul.msk.f32.gmra.mxu1 %vm225_vm0, %v2137_v36  ;;  %2081 = vadd.xlane.f32.xlu1 %v2080_v63  ;;  %49 = vst.msk [vmem:[#allocation2 + $0xe8] sm:$0xff] %vm19_vm2, %v12310_v46  ;;  %v689_v43 = vmul.f32 -2.0, %v6543_v49  ;;  %v7860_v27 = vpop.f32.mrf.mxu0  ;;  %v7879_v63 = vadd.f32 %v1024_v62, %v7737_v32  ;;  %v1841_v49 = vadd.f32 %v1702_v56, %v7423_v48 }
 0x11a   :  { %1898 = vmin.xlane.f32.xlu0 %v1897_v29  ;;  %50 = vst.msk [vmem:[#allocation2 + $0xf0] sm:$0xff] %vm19_vm2, %v12310_v46  ;;  %v7862_v36 = vpop.f32.mrf.mxu1 }
 0x11b   :  { %2075 = vadd.xlane.f32.xlu2 %v2074_v47  ;;  %51 = vst.msk [vmem:[#allocation2 + $0xf8] sm:$0xff] %vm19_vm2, %v12310_v46  ;;  %v7882_v47 = vadd.f32 %v1025_v42, %v7741_v18  ;;  %v7961_v62 = vadd.f32 %v1841_v49, %v7474_v40  ;;  %v7991_v49 = vpop.xlane.xlu1 %2027 }
 0x11c   :  { %52 = vst.msk [vmem:[#allocation3] sm:$0xff] %vm19_vm2, %v12310_v46  ;;  %v7837_v22 = vpop.f32.mrf.mxu3 }
 0x11d   :  { %53 = vst.msk [vmem:[#allocation3 + $0x8] sm:$0xff] %vm19_vm2, %v12310_v46  ;;  %v12268_v32 = vmax.f32 %v7882_v47, 0.0  ;;  %v12266_v34 = vmax.f32 %v7961_v62, 0.0 }
 0x11e   :  { %54 = vst.msk [vmem:[#allocation3 + $0x10] sm:$0xff] %vm19_vm2, %v12310_v46  ;;  %v7833_v45 = vpop.f32.mrf.mxu2 }
 0x11f   :  { %6081 = vmatmul.msk.f32.gmra.mxu2 %vm225_vm0, %v684_v17  ;;  %55 = vst.msk [vmem:[#allocation3 + $0x18] sm:$0xff] %vm19_vm2, %v12310_v46  ;;  %v1917_v40 = vmin.f32 %v7525_v26, %v12266_v34  ;;  %v1026_v34 = vadd.f32 %v7135_v12, %v7153_v33 }
 0x120   :  { %6114 = vmatmul.msk.f32.gmra.mxu3 %vm225_vm0, %v684_v17  ;;  %56 = vst.msk [vmem:[#allocation3 + $0x20] sm:$0xff] %vm19_vm2, %v12310_v46  ;;  %v12270_v17 = vmax.f32 %v7879_v63, 0.0 }
 0x121   :  { %57 = vst.msk [vmem:[#allocation3 + $0x28] sm:$0xff] %vm19_vm2, %v12310_v46  ;;  %v7905_v18 = vpop.f32.mrf.mxu0 }
 0x122   :  { %58 = vst.msk [vmem:[#allocation3 + $0x30] sm:$0xff] %vm19_vm2, %v12310_v46  ;;  %v7907_v28 = vpop.f32.mrf.mxu1  ;;  %v1218_v1 = vmin.f32 %v12270_v17, %v12268_v32  ;;  %v1028_v17 = vadd.f32 %v7179_v5, %v7153_v33 }
 0x123   :  { %59 = vst.msk [vmem:[#allocation3 + $0x38] sm:$0xff] %vm19_vm2, %v12310_v46 }
 0x124   :  { %60 = vst.msk [vmem:[#allocation3 + $0x40] sm:$0xff] %vm19_vm2, %v12310_v46  ;;  %v7874_v29 = vpop.f32.mrf.mxu3  ;;  %1219 = vmin.xlane.f32.xlu0 %v1218_v1 }
 0x125   :  { %61 = vst.msk [vmem:[#allocation3 + $0x48] sm:$0xff] %vm19_vm2, %v12310_v46 }
 0x126   :  { %62 = vst.msk [vmem:[#allocation3 + $0x50] sm:$0xff] %vm19_vm2, %v12310_v46  ;;  %v7870_v15 = vpop.f32.mrf.mxu2 }
 0x127   :  { %6082 = vmatmul.msk.f32.gmra.mxu2 %vm225_vm0, %v685_v50  ;;  %63 = vst.msk [vmem:[#allocation3 + $0x58] sm:$0xff] %vm19_vm2, %v12310_v46 }
 0x128   :  { %6115 = vmatmul.msk.f32.gmra.mxu3 %vm225_vm0, %v685_v50  ;;  %64 = vst.msk [vmem:[#allocation3 + $0x60] sm:$0xff] %vm19_vm2, %v12310_v46 }
 0x129   :  { %65 = vst.msk [vmem:[#allocation3 + $0x68] sm:$0xff] %vm19_vm2, %v12310_v46 }
 0x12a   :  { %66 = vst.msk [vmem:[#allocation3 + $0x70] sm:$0xff] %vm19_vm2, %v12310_v46  ;;  %v7941_v9 = vpop.f32.mrf.mxu1 }
 0x12b   :  { %67 = vst.msk [vmem:[#allocation3 + $0x78] sm:$0xff] %vm19_vm2, %v12310_v46 }
 0x12c   :  { %68 = vst.msk [vmem:[#allocation3 + $0x80] sm:$0xff] %vm19_vm2, %v12310_v46 }
 0x12d   :  { %69 = vst.msk [vmem:[#allocation3 + $0x88] sm:$0xff] %vm19_vm2, %v12310_v46 }
 0x12e   :  { %70 = vst.msk [vmem:[#allocation3 + $0x90] sm:$0xff] %vm19_vm2, %v12310_v46  ;;  %v7911_v50 = vpop.f32.mrf.mxu2 }
 0x12f   :  { %6083 = vmatmul.msk.f32.gmra.mxu2 %vm225_vm0, %v686_v20  ;;  %71 = vst.msk [vmem:[#allocation3 + $0x98] sm:$0xff] %vm19_vm2, %v12310_v46 }
 0x130   :  { %6116 = vmatmul.msk.f32.gmra.mxu3 %vm225_vm0, %v686_v20  ;;  %72 = vst.msk [vmem:[#allocation3 + $0xa0] sm:$0xff] %vm19_vm2, %v12310_v46  ;;  %v7920_v20 = vpop.f32.mrf.mxu3 }
 0x131   :  { %73 = vst.msk [vmem:[#allocation3 + $0xa8] sm:$0xff] %vm19_vm2, %v12310_v46 }
 0x132   :  { %74 = vst.msk [vmem:[#allocation3 + $0xb0] sm:$0xff] %vm19_vm2, %v12310_v46  ;;  %v7981_v1 = vpop.f32.mrf.mxu1 }
 0x133   :  { %75 = vst.msk [vmem:[#allocation3 + $0xb8] sm:$0xff] %vm19_vm2, %v12310_v46 }
 0x134   :  { %76 = vst.msk [vmem:[#allocation3 + $0xc0] sm:$0xff] %vm19_vm2, %v12310_v46 }
 0x135   :  { %77 = vst.msk [vmem:[#allocation3 + $0xc8] sm:$0xff] %vm19_vm2, %v12310_v46 }
 0x136   :  { %78 = vst.msk [vmem:[#allocation3 + $0xd0] sm:$0xff] %vm19_vm2, %v12310_v46 }
 0x137   :  { %6084 = vmatmul.msk.f32.gmra.mxu2 %vm225_vm0, %v687_v44  ;;  %79 = vst.msk [vmem:[#allocation3 + $0xd8] sm:$0xff] %vm19_vm2, %v12310_v46 }
 0x138   :  { %6117 = vmatmul.msk.f32.gmra.mxu3 %vm225_vm0, %v687_v44  ;;  %80 = vst.msk [vmem:[#allocation3 + $0xe0] sm:$0xff] %vm19_vm2, %v12310_v46  ;;  %v7939_v44 = vpop.f32.mrf.mxu0 }
 0x139   :  { %81 = vst.msk [vmem:[#allocation3 + $0xe8] sm:$0xff] %vm19_vm2, %v12310_v46 }
 0x13a   :  { %82 = vst.msk [vmem:[#allocation3 + $0xf0] sm:$0xff] %vm19_vm2, %v12310_v46  ;;  %v2396_v13 = vpop.f32.mrf.mxu1 }
 0x13b   :  { %83 = vst.msk [vmem:[#allocation3 + $0xf8] sm:$0xff] %vm19_vm2, %v12310_v46 }
 0x13c   :  { %84 = vst.msk [vmem:[#allocation3 + $0x100] sm:$0xff] %vm19_vm2, %v12310_v46 }
 0x13d   :  { %85 = vst.msk [vmem:[#allocation3 + $0x108] sm:$0xff] %vm19_vm2, %v12310_v46 }
 0x13e   :  { %86 = vst.msk [vmem:[#allocation3 + $0x110] sm:$0xff] %vm19_vm2, %v12310_v46 }
 0x13f   :  { %6085 = vmatmul.msk.f32.gmra.mxu2 %vm225_vm0, %v688_v61  ;;  %87 = vst.msk [vmem:[#allocation3 + $0x118] sm:$0xff] %vm19_vm2, %v12310_v46 }
 0x140   :  { %6118 = vmatmul.msk.f32.gmra.mxu3 %vm225_vm0, %v688_v61  ;;  %88 = vst.msk [vmem:[#allocation3 + $0x120] sm:$0xff] %vm19_vm2, %v12310_v46  ;;  %v1840_v61 = vadd.f32 %v1702_v56, %v7421_v10  ;;  %v7985_v56 = vpop.xlane.xlu0 %2024 }
 0x141   :  { %12499 = vst [vmem:[#allocation36_spill] sm:$0xff] %v7860_v27  ;;  %v8058_v27 = vadd.f32 %v7197_v7, %v7158_v37 }
 0x142   :  { %12500 = vst [vmem:[#allocation37_spill] sm:$0xff] %v7862_v36 }
 0x143   :  { %89 = vst.msk [vmem:[#allocation3 + $0x128] sm:$0xff] %vm19_vm2, %v12310_v46 }
 0x144   :  { %90 = vst.msk [vmem:[#allocation3 + $0x130] sm:$0xff] %vm19_vm2, %v12310_v46 }
 0x145   :  { %91 = vst.msk [vmem:[#allocation3 + $0x138] sm:$0xff] %vm19_vm2, %v12310_v46 }
 0x146   :  { %92 = vst.msk [vmem:[#allocation3 + $0x140] sm:$0xff] %vm19_vm2, %v12310_v46 }
 0x147   :  { %6086 = vmatmul.msk.f32.gmra.mxu2 %vm225_vm0, %v689_v43  ;;  %93 = vst.msk [vmem:[#allocation3 + $0x148] sm:$0xff] %vm19_vm2, %v12310_v46 }
 0x148   :  { %6119 = vmatmul.msk.f32.gmra.mxu3 %vm225_vm0, %v689_v43  ;;  %94 = vst.msk [vmem:[#allocation3 + $0x150] sm:$0xff] %vm19_vm2, %v12310_v46  ;;  %v7958_v43 = vadd.f32 %v1840_v61, %v7471_v25 }
 0x149   :  { %95 = vst.msk [vmem:[#allocation3 + $0x158] sm:$0xff] %vm19_vm2, %v12310_v46 }
 0x14a   :  { %96 = vst.msk [vmem:[#allocation3 + $0x160] sm:$0xff] %vm19_vm2, %v12310_v46  ;;  %v12265_v42 = vmax.f32 %v7958_v43, 0.0 }
 0x14b   :  { %97 = vst.msk [vmem:[#allocation3 + $0x168] sm:$0xff] %vm19_vm2, %v12310_v46 }
 0x14c   :  { %98 = vst.msk [vmem:[#allocation3 + $0x170] sm:$0xff] %vm19_vm2, %v12310_v46  ;;  %v1904_v25 = vmin.f32 %v7519_v59, %v12265_v42  ;;  %v1919_v59 = vmin.f32 %v1917_v40, %v7594_v39  ;;  %v1023_v39 = vadd.f32 %v7140_v23, %v7158_v37  ;;  %v8013_v40 = vadd.f32 %v7170_v55, %v7158_v37 }
 0x14d   :  { %12501 = vst [vmem:[#allocation38_spill] sm:$0xff] %v7905_v18 }
 0x14e   :  { %12502 = vst [vmem:[#allocation39_spill] sm:$0xff] %v7907_v28  ;;  %v1906_v61 = vmin.f32 %v1904_v25, %v7590_v16  ;;  %v1920_v42 = vrot.slane %v1919_v59, 4  ;;  %v1022_v16 = vadd.f32 %v7140_v23, %v7153_v33  ;;  %v8009_v25 = vadd.f32 %v7170_v55, %v7153_v33 }
 0x14f   :  { %99 = vst.msk [vmem:[#allocation3 + $0x178] sm:$0xff] %vm19_vm2, %v12310_v46  ;;  %6087 = vmatmul.msk.f32.gmra.mxu2 %vm225_vm0, %v690_v19  ;;  %v1031_v23 = vadd.f32 %v7172_v38, %v7158_v37  ;;  %v1029_v55 = vadd.f32 %v7179_v5, %v7158_v37  ;;  %v8048_v5 = vadd.f32 %v1027_v0, %v7771_v8 }
 0x150   :  { %100 = vst.msk [vmem:[#allocation3 + $0x180] sm:$0xff] %vm19_vm2, %v12310_v46  ;;  %6120 = vmatmul.msk.f32.gmra.mxu3 %vm225_vm0, %v690_v19  ;;  %v7979_v19 = vpop.f32.mrf.mxu0  ;;  %v1907_v26 = vrot.slane %v1906_v61, 4  ;;  %v1921_v32 = vmin.f32 %v1919_v59, %v1920_v42  ;;  %v8024_v36 = vadd.f32 %v1022_v16, %v7700_v31  ;;  %v8032_v42 = vadd.f32 %v7188_v51, %v7153_v33 }
 0x151   :  { %101 = vst.msk [vmem:[#allocation3 + $0x188] sm:$0xff] %vm19_vm2, %v12310_v46  ;;  %v8038_v59 = vadd.f32 %v7190_v11, %v7153_v33  ;;  %v8042_v31 = vadd.f32 %v7190_v11, %v7158_v37  ;;  %v8054_v16 = vadd.f32 %v7197_v7, %v7153_v33  ;;  %v8064_v0 = vadd.f32 %v1023_v39, %v7702_v21 }
 0x152   :  { %102 = vst.msk [vmem:[#allocation3 + $0x190] sm:$0xff] %vm19_vm2, %v12310_v46  ;;  %v1908_v12 = vmin.f32 %v1906_v61, %v1907_v26  ;;  %v1922_v61 = vrot.slane %v1921_v32, 2  ;;  %v8045_v26 = vadd.f32 %v1026_v34, %v7766_v24  ;;  %v8067_v8 = vadd.f32 %v1028_v17, %v7797_v2 }
 0x153   :  { %103 = vst.msk [vmem:[#allocation3 + $0x198] sm:$0xff] %vm19_vm2, %v12310_v46  ;;  %v8075_v7 = vadd.f32 %v1030_v60, %v7833_v45  ;;  %v2483_v39 = vadd.f32 %v7546_v53, %v7421_v10  ;;  %v2484_v45 = vadd.f32 %v7546_v53, %v7423_v48  ;;  %v12504_v17 = vmax.f32 %v7879_v63, 0.0 }
 0x154   :  { %104 = vst.msk [vmem:[#allocation3 + $0x1a0] sm:$0xff] %vm19_vm2, %v12310_v46  ;;  %v1909_v38 = vrot.slane %v1908_v12, 2  ;;  %v1923_v24 = vmin.f32 %v1921_v32, %v1922_v61  ;;  %v8078_v32 = vadd.f32 %v1031_v23, %v7837_v22  ;;  %v1151_v61 = vmax.f32 %v8064_v0, 0.0 }
 0x155   :  { %105 = vst.msk [vmem:[#allocation3 + $0x1a8] sm:$0xff] %vm19_vm2, %v12310_v46  ;;  %v12505_v34 = vmax.f32 %v7599_v41, 0.0  ;;  %v12274_v57 = vmax.f32 %v8067_v8, 0.0  ;;  %v12506_v53 = vmax.f32 %v7882_v47, 0.0  ;;  %v12508_v63 = vmax.f32 %v8045_v26, 0.0 }
 0x156   :  { %106 = vst.msk [vmem:[#allocation3 + $0x1b0] sm:$0xff] %vm19_vm2, %v12310_v46  ;;  %v1910_v11 = vmin.f32 %v1908_v12, %v1909_v38  ;;  %v2034_v12 = vpop.xlane.xlu0 %2033  ;;  %v1924_v2 = vrot.slane %v1923_v24, 1  ;;  %v2478_v0 = vadd.f32 %v7504_v4, %v7423_v48 }
 0x157   :  { %107 = vst.msk [vmem:[#allocation3 + $0x1b8] sm:$0xff] %vm19_vm2, %v12310_v46  ;;  %v2485_v60 = vadd.f32 %v2034_v12, %v7421_v10  ;;  %v2486_v22 = vadd.f32 %v2034_v12, %v7423_v48  ;;  %v12507_v12 = vmax.f32 %v7601_v35, 0.0 }
 0x158   :  { %108 = vst.msk [vmem:[#allocation3 + $0x1c0] sm:$0xff] %vm19_vm2, %v12310_v46  ;;  %v2283_v28 = vpop.f32.mrf.mxu0  ;;  %v1911_v21 = vrot.slane %v1910_v11, 1  ;;  %v1925_v38 = vmin.f32 %v1923_v24, %v1924_v2  ;;  %v12286_v24 = vmax.f32 %v8075_v7, 0.0 }
 0x159   :  { %109 = vst.msk [vmem:[#allocation3 + $0x1c8] sm:$0xff] %vm19_vm2, %v12310_v46  ;;  %v8122_v47 = vadd.f32 %v2485_v60, %v7979_v19  ;;  %v8145_v60 = vadd.f32 %v8009_v25, %v7870_v15  ;;  %v2490_v15 = vadd.f32 %v7609_v54, %v7423_v48  ;;  %v948_v25 = vpop.f32.mrf.mxu3 }
 0x15a   :  { %110 = vst.msk [vmem:[#allocation3 + $0x1d0] sm:$0xff] %vm19_vm2, %v12310_v46  ;;  %v1912_v23 = vmin.f32 %v1910_v11, %v1911_v21  ;;  %v1345_v11 = vmin.f32 %v12507_v12, %v12506_v53  ;;  %v1159_v21 = vmax.f32 %v8078_v32, 0.0  ;;  %v12510_v53 = vmax.f32 %v8048_v5, 0.0 }
 0x15b   :  { %111 = vst.msk [vmem:[#allocation3 + $0x1d8] sm:$0xff] %vm19_vm2, %v12310_v46 }
 0x15c   :  { %112 = vst.msk [vmem:[#allocation3 + $0x1e0] sm:$0xff] %vm19_vm2, %v12310_v46  ;;  %v8111_v41 = vadd.f32 %v1925_v38, %v1912_v23  ;;  %v1346_v23 = vmin.f32 %v1151_v61, %v12510_v53  ;;  %v8131_v38 = vadd.f32 %v2484_v45, %v7941_v9  ;;  %v8149_v9 = vadd.f32 %v8013_v40, %v7874_v29  ;;  %v835_v29 = vpop.f32.mrf.mxu2 }
 0x15d   :  { %113 = vst.msk [vmem:[#allocation3 + $0x1e8] sm:$0xff] %vm19_vm2, %v12310_v46  ;;  %v12275_v45 = vmax.f32 %v8122_v47, 0.0  ;;  %v8177_v53 = vadd.f32 %v8058_v27, %v7920_v20  ;;  %v8192_v27 = vadd.f32 %v8038_v59, %v835_v29 }
 0x15e   :  { %114 = vst.msk [vmem:[#allocation3 + $0x1f0] sm:$0xff] %vm19_vm2, %v12310_v46 }
 0x15f   :  { %115 = vst.msk [vmem:[#allocation3 + $0x1f8] sm:$0xff] %vm19_vm2, %v12310_v46 }
 0x160   :  { %116 = vst.msk [vmem:[#allocation3 + $0x200] sm:$0xff] %vm19_vm2, %v12310_v46 }
 0x161   :  { %117 = vst.msk [vmem:[#allocation3 + $0x208] sm:$0xff] %vm19_vm2, %v12310_v46 }
 0x162   :  { %118 = vst.msk [vmem:[#allocation3 + $0x210] sm:$0xff] %vm19_vm2, %v12310_v46 }
 0x163   :  { %119 = vst.msk [vmem:[#allocation3 + $0x218] sm:$0xff] %vm19_vm2, %v12310_v46 }
 0x164   :  { %12503 = vst [vmem:[#allocation40_spill] sm:$0xff] %v7985_v56  ;;  %v8070_v56 = vadd.f32 %v1029_v55, %v7801_v3  ;;  %v2037_v55 = vpop.xlane.xlu1 %2036  ;;  %v1308_v3 = vmin.f32 %v12505_v34, %v12504_v17  ;;  %v12509_v34 = vmax.f32 %v8024_v36, 0.0  ;;  %v8118_v17 = vadd.f32 %v2483_v39, %v7939_v44 }
 0x165   :  { %120 = vst.msk [vmem:[#allocation3 + $0x220] sm:$0xff] %vm19_vm2, %v12310_v46  ;;  %v2487_v35 = vadd.f32 %v2037_v55, %v7421_v10  ;;  %v2488_v12 = vadd.f32 %v2037_v55, %v7423_v48  ;;  %v8135_v44 = vadd.f32 %v2486_v22, %v7981_v1  ;;  %v2489_v55 = vadd.f32 %v7609_v54, %v7421_v10  ;;  %v2399_v54 = vpop.f32.mrf.mxu1 }
 0x166   :  { %121 = vst.msk [vmem:[#allocation3 + $0x228] sm:$0xff] %vm19_vm2, %v12310_v46  ;;  %v12285_v18 = vmax.f32 %v8070_v56, 0.0  ;;  %v1309_v2 = vmin.f32 %v12509_v34, %v12508_v63  ;;  %v1310_v19 = vmin.f32 %v1308_v3, %v12274_v57  ;;  %v1348_v3 = vmin.f32 %v1346_v23, %v1159_v21  ;;  %v2286_v63 = vpop.f32.mrf.mxu0 }
 0x167   :  { %122 = vst.msk [vmem:[#allocation3 + $0x230] sm:$0xff] %vm19_vm2, %v12310_v46  ;;  %v12277_v40 = vmax.f32 %v8118_v17, 0.0  ;;  %v8167_v22 = vadd.f32 %v8054_v16, %v7911_v50  ;;  %v12278_v34 = vmax.f32 %v8131_v38, 0.0  ;;  %v8179_v23 = vadd.f32 %v2488_v12, %v2396_v13 }
 0x168   :  { %123 = vst.msk [vmem:[#allocation3 + $0x238] sm:$0xff] %vm19_vm2, %v12310_v46  ;;  %v1347_v39 = vmin.f32 %v1345_v11, %v12285_v18  ;;  %v1311_v1 = vmin.f32 %v1309_v2, %v12286_v24  ;;  %v8169_v11 = vadd.f32 %v2487_v35, %v2283_v28  ;;  %v12276_v2 = vmax.f32 %v8135_v44, 0.0 }
 0x169   :  { %124 = vst.msk [vmem:[#allocation3 + $0x240] sm:$0xff] %vm19_vm2, %v12310_v46  ;;  %v1039_v28 = vadd.f32 %v7188_v51, %v7158_v37  ;;  %v12279_v50 = vmax.f32 %v8145_v60, 0.0  ;;  %v12280_v16 = vmax.f32 %v8149_v9, 0.0  ;;  %v8196_v13 = vadd.f32 %v7222_v14, %v7153_v33 }
 0x16a   :  { %125 = vst.msk [vmem:[#allocation3 + $0x248] sm:$0xff] %vm19_vm2, %v12310_v46  ;;  %v1312_v20 = vmin.f32 %v1310_v19, %v1311_v1  ;;  %v1349_v12 = vmin.f32 %v1347_v39, %v1348_v3  ;;  %v8201_v51 = vadd.f32 %v8042_v31, %v948_v25  ;;  %v2767_v57 = vmin.f32 %v12277_v40, %v12275_v45 }
 0x16b   :  { %126 = vst.msk [vmem:[#allocation3 + $0x250] sm:$0xff] %vm19_vm2, %v12310_v46  ;;  %v12283_v59 = vmax.f32 %v8167_v22, 0.0  ;;  %v12281_v29 = vmax.f32 %v8169_v11, 0.0  ;;  %v8211_v19 = vadd.f32 %v2489_v55, %v2286_v63  ;;  %v2804_v31 = vmin.f32 %v12278_v34, %v12276_v2  ;;  %v2043_v63 = vpop.xlane.xlu0 %2042  ;;  %v6170_v2 = vld [vmem:[%s12232_s1 + $0x1b0] sm:$0xff] }
 0x16c   :  { %127 = vst.msk [vmem:[#allocation3 + $0x258] sm:$0xff] %vm19_vm2, %v12310_v46  ;;  %v8187_v35 = vpop.xlane.xlu1 %2045  ;;  %v12284_v39 = vmax.f32 %v8177_v53, 0.0  ;;  %v12282_v1 = vmax.f32 %v8179_v23, 0.0  ;;  %v8221_v3 = vadd.f32 %v2490_v15, %v2399_v54  ;;  %v1313_v25 = vmin.f32 %v12279_v50, %v1312_v20 }
 0x16d   :  { %128 = vst.msk [vmem:[#allocation3 + $0x260] sm:$0xff] %vm19_vm2, %v12310_v46  ;;  %v1350_v55 = vmin.f32 %v12280_v16, %v1349_v12  ;;  %v12297_v45 = vmax.f32 %v8192_v27, 0.0  ;;  %v12511_v40 = vmax.f32 %v7961_v62, 0.0  ;;  %v12512_v15 = vmax.f32 %v7958_v43, 0.0 }
 0x16e   :  { %129 = vst.msk [vmem:[#allocation3 + $0x268] sm:$0xff] %vm19_vm2, %v12310_v46  ;;  %v2491_v20 = vadd.f32 %v2043_v63, %v7421_v10  ;;  %v2492_v34 = vadd.f32 %v2043_v63, %v7423_v48  ;;  %v12298_v12 = vmax.f32 %v8201_v51, 0.0  ;;  %v2138_v50 = vmul.f32 -2.0, %v6170_v2 }
 0x16f   :  { %130 = vst.msk [vmem:[#allocation3 + $0x270] sm:$0xff] %vm19_vm2, %v12310_v46  ;;  %v1894_v54 = vmin.f32 %v12512_v15, %v12511_v40  ;;  %v8244_v16 = vadd.f32 %v7222_v14, %v7158_v37  ;;  %v1314_v62 = vmin.f32 %v12283_v59, %v1313_v25  ;;  %v2769_v43 = vmin.f32 %v2767_v57, %v12281_v29  ;;  %v838_v57 = vpop.f32.mrf.mxu2  ;;  %v951_v25 = vpop.f32.mrf.mxu3 }
 0x170   :  { %131 = vst.msk [vmem:[#allocation3 + $0x278] sm:$0xff] %vm19_vm2, %v12310_v46  ;;  %v12287_v40 = vmax.f32 %v8211_v19, 0.0  ;;  %v1351_v63 = vmin.f32 %v12284_v39, %v1350_v55  ;;  %v2806_v15 = vmin.f32 %v2804_v31, %v12282_v1  ;;  %v12288_v14 = vmax.f32 %v8221_v3, 0.0  ;;  %6203 = vmatmul.msk.f32.gmra.mxu0 %vm225_vm0, %v2138_v50  ;;  %6236 = vmatmul.msk.f32.gmra.mxu1 %vm225_vm0, %v2138_v50  ;;  %v2289_v59 = vpop.f32.mrf.mxu0  ;;  %v2402_v50 = vpop.f32.mrf.mxu1 }
 0x171   :  { %132 = vst.msk [vmem:[#allocation3 + $0x280] sm:$0xff] %vm19_vm2, %v12310_v46  ;;  %1895 = vmin.xlane.f32.xlu2 %v1894_v54  ;;  %v6171_v54 = vld [vmem:[%s12232_s1 + $0x1b8] sm:$0xff]  ;;  %v1315_v31 = vmin.f32 %v12297_v45, %v1314_v62  ;;  %v8270_v55 = vadd.f32 %v8032_v42, %v838_v57  ;;  %v8272_v29 = vadd.f32 %v1039_v28, %v951_v25 }
 0x172   :  { %133 = vst.msk [vmem:[#allocation3 + $0x288] sm:$0xff] %vm19_vm2, %v12310_v46  ;;  %v2011_v1 = vmul.f32 %v6171_v54, %v6171_v54  ;;  %v1352_v39 = vmin.f32 %v12298_v12, %v1351_v63  ;;  %v8278_v18 = vadd.f32 %v2491_v20, %v2289_v59  ;;  %v8280_v24 = vadd.f32 %v2492_v34, %v2402_v50 }
 0x173   :  { %134 = vst.msk [vmem:[#allocation3 + $0x290] sm:$0xff] %vm19_vm2, %v12310_v46  ;;  %v2007_v62 = vmul.f32 %v7614_v52, %v7614_v52  ;;  %v2771_v28 = vmin.f32 %v2769_v43, %v12287_v40  ;;  %v12290_v57 = vmax.f32 %v8270_v55, 0.0  ;;  %v12296_v25 = vmax.f32 %v8272_v29, 0.0  ;;  %v4634_v40 = vld.sshfl [vmem:[#allocation1] sm:$0xff pattern:$0x75316420] }
 0x174   :  { %135 = vst.msk [vmem:[#allocation3 + $0x298] sm:$0xff] %vm19_vm2, %v12310_v46  ;;  %v8286_v42 = vpop.xlane.xlu1 %2054  ;;  %v2089_v59 = vsel %vm225_vm0, %v2011_v1, 0.0  ;;  %v2808_v52 = vmin.f32 %v2806_v15, %v12288_v14  ;;  %v2139_v34 = vmul.f32 -2.0, %v6171_v54  ;;  %v12289_v20 = vmax.f32 %v8278_v18, 0.0  ;;  %6380 = vmatpush.msk.msra.mxu0 %vm194_vm1, %v4634_v40 }
 0x175   :  { %136 = vst.msk [vmem:[#allocation3 + $0x2a0] sm:$0xff] %vm19_vm2, %v12310_v46  ;;  %2090 = vadd.xlane.f32.xlu1 %v2089_v59  ;;  %v2077_v63 = vsel %vm225_vm0, %v2007_v62, 0.0  ;;  %v1316_v43 = vmin.f32 %v12290_v57, %v1315_v31  ;;  %v1353_v1 = vmin.f32 %v12296_v25, %v1352_v39  ;;  %v12291_v50 = vmax.f32 %v8280_v24, 0.0 }
 0x176   :  { %137 = vst.msk [vmem:[#allocation3 + $0x2a8] sm:$0xff] %vm19_vm2, %v12310_v46  ;;  %2078 = vadd.xlane.f32.xlu0 %v2077_v63  ;;  %v12515_v15 = vmax.f32 %v8024_v36, 0.0  ;;  %v2477_v62 = vadd.f32 %v7504_v4, %v7421_v10  ;;  %v2493_v59 = vadd.f32 %v8187_v35, %v7421_v10  ;;  %v2494_v31 = vadd.f32 %v8187_v35, %v7423_v48  ;;  %v4635_v63 = vld.sshfl [vmem:[#allocation1 + $0x8] sm:$0xff pattern:$0x75316420] }
 0x177   :  { %138 = vst.msk [vmem:[#allocation3 + $0x2b0] sm:$0xff] %vm19_vm2, %v12310_v46  ;;  %v2010_v39 = vmul.f32 %v6170_v2, %v6170_v2  ;;  %v2481_v36 = vadd.f32 %v7991_v49, %v7421_v10  ;;  %v2009_v35 = vmul.f32 %v7692_v6, %v7692_v6  ;;  %v2482_v2 = vadd.f32 %v7991_v49, %v7423_v48  ;;  %v6172_v49 = vld [vmem:[%s12232_s1 + $0x1c0] sm:$0xff] }
 0x178   :  { %139 = vst.msk [vmem:[#allocation3 + $0x2b8] sm:$0xff] %vm19_vm2, %v12310_v46  ;;  %v1215_v54 = vmin.f32 %v12515_v15, %v1151_v61  ;;  %v8324_v61 = vpop.xlane.xlu0 %424  ;;  %v2773_v4 = vmin.f32 %v2771_v28, %v12289_v20  ;;  %6204 = vmatmul.msk.f32.gmra.mxu0 %vm225_vm0, %v2139_v34  ;;  %6237 = vmatmul.msk.f32.gmra.mxu1 %vm225_vm0, %v2139_v34  ;;  %v841_v15 = vpop.f32.mrf.mxu2  ;;  %v12516_v6 = vmax.f32 %v8048_v5, 0.0  ;;  %v12517_v40 = vmax.f32 %v8045_v26, 0.0 }
 0x179   :  { %140 = vst.msk [vmem:[#allocation3 + $0x2c0] sm:$0xff] %vm19_vm2, %v12310_v46  ;;  %v2810_v28 = vmin.f32 %v2808_v52, %v12291_v50  ;;  %v8349_v20 = vadd.f32 %v8196_v13, %v841_v15  ;;  %v2292_v5 = vpop.f32.mrf.mxu0  ;;  %v2405_v57 = vpop.f32.mrf.mxu1  ;;  %6389 = vmatpush.msk.msra.mxu1 %vm194_vm1, %v4635_v63  ;;  %v8363_v52 = vadd.f32 %v2477_v62, %v7824_v58  ;;  %v2140_v63 = vmul.f32 -2.0, %v6172_v49  ;;  %v12520_v62 = vld [vmem:[#allocation38_spill] sm:$0xff] }
 0x17a   :  { %141 = vst.msk [vmem:[#allocation3 + $0x2c8] sm:$0xff] %vm19_vm2, %v12310_v46  ;;  %1216 = vmin.xlane.f32.xlu2 %v1215_v54  ;;  %v954_v54 = vpop.f32.mrf.mxu3  ;;  %v1221_v14 = vmin.f32 %v12517_v40, %v12516_v6  ;;  %v8357_v26 = vadd.f32 %v2493_v59, %v2292_v5  ;;  %v8359_v6 = vadd.f32 %v2494_v31, %v2405_v57  ;;  %v2086_v40 = vsel %vm225_vm0, %v2010_v39, 0.0  ;;  %v12521_v39 = vld [vmem:[#allocation35_spill] sm:$0xff] }
 0x17b   :  { %142 = vst.msk [vmem:[#allocation3 + $0x2d0] sm:$0xff] %vm19_vm2, %v12310_v46  ;;  %v8352_v34 = vadd.f32 %v8244_v16, %v954_v54  ;;  %v12294_v16 = vmax.f32 %v8349_v20, 0.0  ;;  %v2083_v15 = vsel %vm225_vm0, %v2009_v35, 0.0  ;;  %v8375_v58 = vadd.f32 %v2478_v0, %v7826_v30 }
 0x17c   :  { %143 = vst.msk [vmem:[#allocation3 + $0x2d8] sm:$0xff] %vm19_vm2, %v12310_v46  ;;  %v12292_v57 = vmax.f32 %v8357_v26, 0.0  ;;  %v12293_v59 = vmax.f32 %v8359_v6, 0.0  ;;  %v8378_v31 = vadd.f32 %v2481_v36, %v12520_v62  ;;  %v2495_v54 = vadd.f32 %v12521_v39, %v7421_v10  ;;  %v8384_v35 = vpop.xlane.xlu1 %427 }
 0x17d   :  { %144 = vst.msk [vmem:[#allocation3 + $0x2e0] sm:$0xff] %vm19_vm2, %v12310_v46  ;;  %v12295_v13 = vmax.f32 %v8352_v34, 0.0  ;;  %1222 = vmin.xlane.f32.xlu1 %v1221_v14  ;;  %v1317_v14 = vmin.f32 %v12294_v16, %v1316_v43  ;;  %v2496_v30 = vadd.f32 %v12521_v39, %v7423_v48  ;;  %v12300_v62 = vmax.f32 %v8363_v52, 0.0  ;;  %v12522_v43 = vld [vmem:[#allocation15_spill] sm:$0xff]  ;;  %v6173_v39 = vld [vmem:[%s12232_s1 + $0x1c8] sm:$0xff] }
 0x17e   :  { %145 = vst.msk [vmem:[#allocation3 + $0x2e8] sm:$0xff] %vm19_vm2, %v12310_v46  ;;  %2087 = vadd.xlane.f32.xlu0 %v2086_v40  ;;  %v2775_v0 = vmin.f32 %v2773_v4, %v12292_v57  ;;  %v2812_v36 = vmin.f32 %v2810_v28, %v12293_v59  ;;  %v1042_v50 = vadd.f32 %v12522_v43, %v7153_v33  ;;  %v12523_v59 = vld [vmem:[#allocation39_spill] sm:$0xff] }
 0x17f   :  { %146 = vst.msk [vmem:[#allocation3 + $0x2f0] sm:$0xff] %vm19_vm2, %v12310_v46  ;;  %v1354_v5 = vmin.f32 %v12295_v13, %v1353_v1  ;;  %v1043_v1 = vadd.f32 %v12522_v43, %v7158_v37  ;;  %v2012_v57 = vmul.f32 %v6172_v49, %v6172_v49  ;;  %v12302_v43 = vmax.f32 %v8375_v58, 0.0 }
 0x180   :  { %147 = vst.msk [vmem:[#allocation3 + $0x2f8] sm:$0xff] %vm19_vm2, %v12310_v46  ;;  %v2052_v40 = vpop.xlane.xlu0 %2051  ;;  %6205 = vmatmul.msk.f32.gmra.mxu0 %vm225_vm0, %v2140_v63  ;;  %6238 = vmatmul.msk.f32.gmra.mxu1 %vm225_vm0, %v2140_v63  ;;  %v844_v4 = vpop.f32.mrf.mxu2  ;;  %v8414_v16 = vadd.f32 %v2482_v2, %v12523_v59  ;;  %v12524_v49 = vmax.f32 %v8075_v7, 0.0 }
 0x181   :  { %148 = vst.msk [vmem:[#allocation3 + $0x300] sm:$0xff] %vm19_vm2, %v12310_v46  ;;  %v8419_v13 = vadd.f32 %v1042_v50, %v844_v4  ;;  %v2295_v25 = vpop.f32.mrf.mxu0  ;;  %v2408_v45 = vpop.f32.mrf.mxu1  ;;  %v6174_v50 = vld [vmem:[%s12232_s1 + $0x1d0] sm:$0xff]  ;;  %v2092_v4 = vsel %vm225_vm0, %v2012_v57, 0.0 }
 0x182   :  { %149 = vst.msk [vmem:[#allocation3 + $0x308] sm:$0xff] %vm19_vm2, %v12310_v46  ;;  %2084 = vadd.xlane.f32.xlu2 %v2083_v15  ;;  %v957_v28 = vpop.f32.mrf.mxu3  ;;  %v12299_v15 = vmax.f32 %v8378_v31, 0.0  ;;  %v1227_v12 = vmin.f32 %v12524_v49, %v1159_v21  ;;  %v8429_v2 = vadd.f32 %v2495_v54, %v2295_v25  ;;  %v8431_v59 = vadd.f32 %v2496_v30, %v2408_v45 }
 0x183   :  { %150 = vst.msk [vmem:[#allocation3 + $0x310] sm:$0xff] %vm19_vm2, %v12310_v46  ;;  %v8421_v63 = vadd.f32 %v1043_v1, %v957_v28  ;;  %v12301_v1 = vmax.f32 %v8414_v16, 0.0  ;;  %v12304_v7 = vmax.f32 %v8419_v13, 0.0  ;;  %v2141_v45 = vmul.f32 -2.0, %v6173_v39 }
 0x184   :  { %12513 = vst [vmem:[#allocation41_spill] sm:$0xff] %v8278_v18  ;;  %v8441_v32 = vmin.f32 %v12300_v62, %v12299_v15  ;;  %v2497_v25 = vadd.f32 %v2052_v40, %v7421_v10  ;;  %v12305_v54 = vmax.f32 %v8429_v2, 0.0  ;;  %v12306_v30 = vmax.f32 %v8431_v59, 0.0  ;;  %v8466_v62 = vpop.xlane.xlu1 %2063 }
 0x185   :  { %12514 = vst [vmem:[#allocation42_spill] sm:$0xff] %v8280_v24  ;;  %v12307_v21 = vmax.f32 %v8421_v63, 0.0  ;;  %1927 = vadd.xlane.f32.xlu1 %v8111_v41  ;;  %v8458_v28 = vmin.f32 %v12302_v43, %v12301_v1  ;;  %v1318_v49 = vmin.f32 %v12304_v7, %v1317_v14  ;;  %v2014_v15 = vmul.f32 %v6174_v50, %v6174_v50  ;;  %v12527_v14 = vld [vmem:[#allocation14_spill] sm:$0xff] }
 0x186   :  { %151 = vst.msk [vmem:[#allocation3 + $0x318] sm:$0xff] %vm19_vm2, %v12310_v46  ;;  %1228 = vmin.xlane.f32.xlu0 %v1227_v12  ;;  %v2777_v57 = vmin.f32 %v2775_v0, %v12305_v54  ;;  %v2814_v1 = vmin.f32 %v2812_v36, %v12306_v30  ;;  %v2498_v43 = vadd.f32 %v2052_v40, %v7423_v48  ;;  %v476_v30 = vld [vmem:[#allocation2 + $0x10] sm:$0xff] }
 0x187   :  { %152 = vst.msk [vmem:[#allocation3 + $0x320] sm:$0xff] %vm19_vm2, %v12310_v46  ;;  %v1355_v41 = vmin.f32 %v12307_v21, %v1354_v5  ;;  %v2013_v18 = vmul.f32 %v6173_v39, %v6173_v39  ;;  %v1044_v7 = vadd.f32 %v12527_v14, %v7153_v33  ;;  %v1045_v12 = vadd.f32 %v12527_v14, %v7158_v37  ;;  %v475_v5 = vld [vmem:[#allocation2 + $0x8] sm:$0xff] }
 0x188   :  { %153 = vst.msk [vmem:[#allocation3 + $0x328] sm:$0xff] %vm19_vm2, %v12310_v46  ;;  %6206 = vmatmul.msk.f32.gmra.mxu0 %vm225_vm0, %v2141_v45  ;;  %6239 = vmatmul.msk.f32.gmra.mxu1 %vm225_vm0, %v2141_v45  ;;  %v847_v0 = vpop.f32.mrf.mxu2  ;;  %v2098_v14 = vsel %vm225_vm0, %v2014_v15, 0.0  ;;  %v483_v15 = vmin.f32 %v475_v5, %v8324_v61  ;;  %v12530_v61 = vmax.f32 %v8070_v56, 0.0  ;;  %v12531_v5 = vmax.f32 %v8067_v8, 0.0 }
 0x189   :  { %154 = vst.msk [vmem:[#allocation3 + $0x330] sm:$0xff] %vm19_vm2, %v12310_v46  ;;  %v8487_v40 = vadd.f32 %v1044_v7, %v847_v0  ;;  %v2411_v54 = vpop.f32.mrf.mxu1  ;;  %v2499_v7 = vadd.f32 %v8286_v42, %v7421_v10  ;;  %v2500_v56 = vadd.f32 %v8286_v42, %v7423_v48  ;;  %v12535_v42 = vmov inf  }
 0x18a   :  { %155 = vst.msk [vmem:[#allocation3 + $0x338] sm:$0xff] %vm19_vm2, %v12310_v46  ;;  %2093 = vadd.xlane.f32.xlu2 %v2092_v4  ;;  %v960_v36 = vpop.f32.mrf.mxu3  ;;  %v2298_v4 = vpop.f32.mrf.mxu0  ;;  %v8496_v45 = vadd.f32 %v2498_v43, %v2411_v54 }
 0x18b   :  { %156 = vst.msk [vmem:[#allocation3 + $0x340] sm:$0xff] %vm19_vm2, %v12310_v46  ;;  %v8489_v39 = vadd.f32 %v1045_v12, %v960_v36  ;;  %v8494_v21 = vadd.f32 %v2497_v25, %v2298_v4  ;;  %v12309_v12 = vmax.f32 %v8487_v40, 0.0  ;;  %v8509_v25 = vld [vmem:[%s12232_s1 + $0x1e0] sm:$0xff]  ;;  %v1224_v36 = vmin.f32 %v12531_v5, %v12530_v61  ;;  %v2058_v43 = vpop.xlane.xlu2 %2057  ;;  %v1933_v5 = vld [vmem:[#allocation2 + $0x50] sm:$0xff] }
 0x18c   :  { %157 = vst.msk [vmem:[#allocation3 + $0x348] sm:$0xff] %vm19_vm2, %v12310_v46  ;;  %v12311_v54 = vmax.f32 %v8496_v45, 0.0  ;;  %v484_v4 = vmin.f32 %v476_v30, %v8384_v35  ;;  %v2016_v30 = vmul.f32 %v8509_v25, %v8509_v25 }
 0x18d   :  { %158 = vst.msk [vmem:[#allocation3 + $0x350] sm:$0xff] %vm19_vm2, %v12310_v46  ;;  %2099 = vadd.xlane.f32.xlu1 %v2098_v14  ;;  %v1319_v0 = vmin.f32 %v12309_v12, %v1318_v49  ;;  %v12533_v8 = vmax.f32 %v8494_v21, 0.0  ;;  %v1884_v49 = vpop.xlane.xlu1 %1883 }
 0x18e   :  { %12518 = vst [vmem:[#allocation43_spill] sm:$0xff] %v8357_v26  ;;  %v2803_v35 = vmin.f32 %v12311_v54, %v2814_v1  ;;  %v6175_v1 = vld [vmem:[%s12232_s1 + $0x1d8] sm:$0xff]  ;;  %v12540_v26 = vld [vmem:[#allocation10_spill] sm:$0xff] }
 0x18f   :  { %12519 = vst [vmem:[#allocation44_spill] sm:$0xff] %v8359_v6  ;;  %v2766_v61 = vmin.f32 %v12533_v8, %v2777_v57  ;;  %v1941_v57 = vmin.f32 %v1933_v5, %v1884_v49  ;;  %v12538_v49 = vmax.f32 %v8149_v9, 0.0 }
 0x190   :  { %159 = vst.msk [vmem:[#allocation3 + $0x358] sm:$0xff] %vm19_vm2, %v12310_v46  ;;  %v850_v8 = vpop.f32.mrf.mxu2 }
 0x191   :  { %160 = vst.msk [vmem:[#allocation3 + $0x360] sm:$0xff] %vm19_vm2, %v12310_v46 }
 0x192   :  { %161 = vst.msk [vmem:[#allocation3 + $0x368] sm:$0xff] %vm19_vm2, %v12310_v46  ;;  %1225 = vmin.xlane.f32.xlu2 %v1224_v36  ;;  %v963_v54 = vpop.f32.mrf.mxu3 }
 0x193   :  { %162 = vst.msk [vmem:[#allocation3 + $0x370] sm:$0xff] %vm19_vm2, %v12310_v46 }
 0x194   :  { %163 = vst.msk [vmem:[#allocation3 + $0x378] sm:$0xff] %vm19_vm2, %v12310_v46 }
 0x195   :  { %164 = vst.msk [vmem:[#allocation3 + $0x380] sm:$0xff] %vm19_vm2, %v12310_v46 }
 0x196   :  { %165 = vst.msk [vmem:[#allocation3 + $0x388] sm:$0xff] %vm19_vm2, %v12310_v46 }
 0x197   :  { %166 = vst.msk [vmem:[#allocation3 + $0x390] sm:$0xff] %vm19_vm2, %v12310_v46 }
 0x198   :  { %12525 = vst [vmem:[#allocation38_spill] sm:$0xff] %v8429_v2  ;;  %v2095_v2 = vsel %vm225_vm0, %v2013_v18, 0.0  ;;  %v2142_v18 = vmul.f32 -2.0, %v6174_v50  ;;  %v12532_v50 = vmax.f32 %v8489_v39, 0.0 }
 0x199   :  { %12526 = vst [vmem:[#allocation35_spill] sm:$0xff] %v8431_v59  ;;  %2096 = vadd.xlane.f32.xlu0 %v2095_v2  ;;  %v1932_v2 = vld [vmem:[#allocation2 + $0x48] sm:$0xff]  ;;  %v2414_v59 = vpop.f32.mrf.mxu1 }
 0x19a   :  { %167 = vst.msk [vmem:[#allocation3 + $0x398] sm:$0xff] %vm19_vm2, %v12310_v46  ;;  %v1356_v14 = vmin.f32 %v12532_v50, %v1355_v41  ;;  %v1881_v41 = vpop.xlane.xlu0 %1880  ;;  %v12534_v50 = vld [vmem:[#allocation18_spill] sm:$0xff]  ;;  %6207 = vmatmul.msk.f32.gmra.mxu0 %vm225_vm0, %v2142_v18  ;;  %6240 = vmatmul.msk.f32.gmra.mxu1 %vm225_vm0, %v2142_v18  ;;  %v8559_v18 = vadd.f32 %v2500_v56, %v2414_v59 }
 0x19b   :  { %168 = vst.msk [vmem:[#allocation3 + $0x3a0] sm:$0xff] %vm19_vm2, %v12310_v46  ;;  %v1046_v12 = vadd.f32 %v12534_v50, %v7153_v33  ;;  %v8579_v56 = vld [vmem:[%s12232_s1 + $0x1f0] sm:$0xff] }
 0x19c   :  { %169 = vst.msk [vmem:[#allocation3 + $0x3a8] sm:$0xff] %vm19_vm2, %v12310_v46 }
 0x19d   :  { %170 = vst.msk [vmem:[#allocation3 + $0x3b0] sm:$0xff] %vm19_vm2, %v12310_v46 }
 0x19e   :  { %171 = vst.msk [vmem:[#allocation3 + $0x3b8] sm:$0xff] %vm19_vm2, %v12310_v46 }
 0x19f   :  { %172 = vst.msk [vmem:[#allocation3 + $0x3c0] sm:$0xff] %vm19_vm2, %v12310_v46 }
 0x1a0   :  { %173 = vst.msk [vmem:[#allocation3 + $0x3c8] sm:$0xff] %vm19_vm2, %v12310_v46 }
 0x1a1   :  { %174 = vst.msk [vmem:[#allocation3 + $0x3d0] sm:$0xff] %vm19_vm2, %v12310_v46 }
 0x1a2   :  { %12528 = vst [vmem:[#allocation15_spill] sm:$0xff] %v8494_v21  ;;  %v2015_v21 = vmul.f32 %v6175_v1, %v6175_v1 }
 0x1a3   :  { %12529 = vst [vmem:[#allocation39_spill] sm:$0xff] %v8496_v45  ;;  %v1940_v45 = vmin.f32 %v1932_v2, %v1881_v41  ;;  %v2104_v41 = vsel %vm225_vm0, %v2016_v30, 0.0 }
 0x1a4   :  { %175 = vst.msk [vmem:[#allocation3 + $0x3d8] sm:$0xff] %vm19_vm2, %v12310_v46  ;;  %2105 = vadd.xlane.f32.xlu0 %v2104_v41  ;;  %v434_v41 = vpop.xlane.xlu0 %433 }
 0x1a5   :  { %176 = vst.msk [vmem:[#allocation3 + $0x3e0] sm:$0xff] %vm19_vm2, %v12310_v46 }
 0x1a6   :  { %177 = vst.msk [vmem:[#allocation3 + $0x3e8] sm:$0xff] %vm19_vm2, %v12310_v46 }
 0x1a7   :  { %178 = vst.msk [vmem:[#allocation3 + $0x3f0] sm:$0xff] %vm19_vm2, %v12310_v46  ;;  %v1047_v46 = vadd.f32 %v12534_v50, %v7158_v37  ;;  %v8549_v50 = vadd.f32 %v1046_v12, %v850_v8  ;;  %v12541_v12 = vld [vmem:[#allocation17_spill] sm:$0xff]  ;;  %v479_v8 = vld [vmem:[#allocation2 + $0x28] sm:$0xff] }
 0x1a8   :  { %179 = vst.msk [vmem:[#allocation3 + $0x3f8] sm:$0xff] %vm19_vm2, %v12535_v42  ;;  %v2301_v42 = vpop.f32.mrf.mxu0 }
 0x1a9   :  { %492 = vst.msk [vmem:[#allocation2 + $0x8] sm:$0xff] %vm19_vm2, %v483_v15  ;;  %v8551_v36 = vadd.f32 %v1047_v46, %v963_v54  ;;  %v12539_v15 = vmax.f32 %v8145_v60, 0.0  ;;  %v8557_v24 = vadd.f32 %v2499_v7, %v2301_v42  ;;  %v8566_v46 = vld [vmem:[%s12232_s1 + $0x1e8] sm:$0xff]  ;;  %v1048_v54 = vadd.f32 %v12541_v12, %v7153_v33 }
 0x1aa   :  { %493 = vst.msk [vmem:[#allocation2 + $0x10] sm:$0xff] %vm19_vm2, %v484_v4  ;;  %v12317_v9 = vmax.f32 %v8549_v50, 0.0  ;;  %v2143_v7 = vmul.f32 -2.0, %v6175_v1  ;;  %v2101_v4 = vsel %vm225_vm0, %v2015_v21, 0.0  ;;  %v2017_v1 = vmul.f32 %v8566_v46, %v8566_v46  ;;  %v8592_v21 = vld [vmem:[%s12231_s0 + $0x80] sm:$0xff]  ;;  %v478_v42 = vld [vmem:[#allocation2 + $0x20] sm:$0xff] }
 0x1ab   :  { %12536 = vst [vmem:[#allocation14_spill] sm:$0xff] %v8549_v50  ;;  %v1230_v5 = vmin.f32 %v12539_v15, %v12538_v49  ;;  %v12318_v60 = vmax.f32 %v8551_v36, 0.0  ;;  %v12322_v59 = vmax.f32 %v8557_v24, 0.0  ;;  %v2502_v49 = vadd.f32 %v2058_v43, %v7423_v48  ;;  %2102 = vadd.xlane.f32.xlu2 %v2101_v4  ;;  %v2417_v4 = vpop.f32.mrf.mxu1 }
 0x1ac   :  { %12537 = vst [vmem:[#allocation18_spill] sm:$0xff] %v8551_v36  ;;  %v1320_v30 = vmin.f32 %v12317_v9, %v1319_v0  ;;  %v3165_v15 = vmul.f32 -2.0, %v8592_v21  ;;  %v1931_v9 = vld [vmem:[#allocation2 + $0x40] sm:$0xff]  ;;  %v486_v36 = vmin.f32 %v478_v42, %v434_v41  ;;  %6208 = vmatmul.msk.f32.gmra.mxu0 %vm225_vm0, %v2143_v7  ;;  %6241 = vmatmul.msk.f32.gmra.mxu1 %vm225_vm0, %v2143_v7  ;;  %v12546_v42 = vmax.f32 %v8192_v27, 0.0 }
 0x1ad   :  { %5066 = vst [vmem:[#allocation1] ss:$2 sm:$0xff] %v12540_v26  ;;  %1231 = vmin.xlane.f32.xlu1 %v1230_v5  ;;  %v12323_v26 = vmax.f32 %v8559_v18, 0.0  ;;  %v1357_v2 = vmin.f32 %v12318_v60, %v1356_v14  ;;  %v2768_v0 = vmin.f32 %v2766_v61, %v12322_v59  ;;  %v437_v5 = vpop.xlane.xlu1 %436  ;;  %v1049_v60 = vadd.f32 %v12541_v12, %v7158_v37  ;;  %v853_v61 = vpop.f32.mrf.mxu2 }
 0x1ae   :  { %1949 = vst.msk [vmem:[#allocation2 + $0x50] sm:$0xff] %vm19_vm2, %v1941_v57  ;;  %v2501_v57 = vadd.f32 %v2058_v43, %v7421_v10  ;;  %v487_v50 = vmin.f32 %v479_v8, %v437_v5  ;;  %v2018_v43 = vmul.f32 %v8579_v56, %v8579_v56  ;;  %v8606_v59 = vadd.f32 %v1048_v54, %v853_v61  ;;  %v8621_v54 = vld [vmem:[%s12232_s1 + $0x1f8] sm:$0xff]  ;;  %v8654_v61 = vpop.xlane.xlu0 %2060 }
 0x1af   :  { %1948 = vst.msk [vmem:[#allocation2 + $0x48] sm:$0xff] %vm19_vm2, %v1940_v45  ;;  %v1878_v45 = vpop.xlane.xlu2 %1877  ;;  %v2805_v14 = vmin.f32 %v2803_v35, %v12323_v26  ;;  %v966_v35 = vpop.f32.mrf.mxu3  ;;  %6256 = vmatmul.msk.f32.vlgmr.msra.gmra.mxu2 %vm225_vm0, %v3165_v15  ;;  %6265 = vmatmul.msk.f32.vlgmr.msra.gmra.mxu3 %vm225_vm0, %v3165_v15  ;;  %v8616_v7 = vadd.f32 %v2502_v49, %v2417_v4  ;;  %v12545_v8 = vmax.f32 %v8201_v51, 0.0 }
 0x1b0   :  { %12542 = vst [vmem:[#allocation10_spill] sm:$0xff] %v8592_v21  ;;  %v1939_v6 = vmin.f32 %v1931_v9, %v1878_v45  ;;  %v8608_v26 = vadd.f32 %v1049_v60, %v966_v35  ;;  %v2107_v21 = vsel %vm225_vm0, %v2017_v1, 0.0  ;;  %v2304_v12 = vpop.f32.mrf.mxu0  ;;  %v12329_v60 = vmax.f32 %v8606_v59, 0.0 }
 0x1b1   :  { %496 = vst.msk [vmem:[#allocation2 + $0x28] sm:$0xff] %vm19_vm2, %v487_v50  ;;  %v8614_v9 = vadd.f32 %v2501_v57, %v2304_v12  ;;  %v1236_v50 = vmin.f32 %v12546_v42, %v12545_v8  ;;  %v2144_v57 = vmul.f32 -2.0, %v8509_v25  ;;  %v12326_v49 = vmax.f32 %v8616_v7, 0.0 }
 0x1b2   :  { %12544 = vst [vmem:[#allocation45_spill] sm:$0xff] %v8616_v7  ;;  %v12330_v1 = vmax.f32 %v8608_v26, 0.0  ;;  %v1321_v15 = vmin.f32 %v12329_v60, %v1320_v30  ;;  %v2019_v27 = vmul.f32 %v8621_v54, %v8621_v54 }
 0x1b3   :  { %12543 = vst [vmem:[#allocation17_spill] sm:$0xff] %v8614_v9  ;;  %v12325_v45 = vmax.f32 %v8614_v9, 0.0  ;;  %1237 = vmin.xlane.f32.xlu0 %v1236_v50  ;;  %v8650_v30 = vmin.f32 %v2805_v14, %v12326_v49 }
 0x1b4   :  { %495 = vst.msk [vmem:[#allocation2 + $0x20] sm:$0xff] %vm19_vm2, %v486_v36  ;;  %v2110_v36 = vsel %vm225_vm0, %v2018_v43, 0.0  ;;  %v1358_v51 = vmin.f32 %v12330_v1, %v1357_v2  ;;  %v12547_v43 = vld [vmem:[#allocation16_spill] sm:$0xff]  ;;  %6209 = vmatmul.msk.f32.gmra.mxu0 %vm225_vm0, %v2144_v57  ;;  %6242 = vmatmul.msk.f32.gmra.mxu1 %vm225_vm0, %v2144_v57  ;;  %v12549_v57 = vmax.f32 %v8375_v58, 0.0 }
 0x1b5   :  { %1947 = vst.msk [vmem:[#allocation2 + $0x40] sm:$0xff] %vm19_vm2, %v1939_v6  ;;  %2108 = vadd.xlane.f32.xlu1 %v2107_v21  ;;  %v6248_v6 = vld [vmem:[%s12231_s0 + $0x88] sm:$0xff]  ;;  %v477_v21 = vld [vmem:[#allocation2 + $0x18] sm:$0xff]  ;;  %v8646_v5 = vmin.f32 %v2768_v0, %v12325_v45  ;;  %v8652_v2 = vpop.xlane.xlu1 %2072  ;;  %v1050_v12 = vadd.f32 %v12547_v43, %v7153_v33  ;;  %v1051_v4 = vadd.f32 %v12547_v43, %v7158_v37  ;;  %v856_v14 = vpop.f32.mrf.mxu2  ;;  %v12550_v43 = vmax.f32 %v8363_v52, 0.0 }
 0x1b6   :  { %v3166_v41 = vmul.f32 -2.0, %v6248_v6  ;;  %2111 = vadd.xlane.f32.xlu2 %v2110_v36  ;;  %v12548_v0 = vld [vmem:[#allocation40_spill] sm:$0xff]  ;;  %v8673_v36 = vpop.f32.mrf.mxu1  ;;  %v2113_v45 = vsel %vm225_vm0, %v2019_v27, 0.0 }
 0x1b7   :  { %v431_v25 = vpop.xlane.xlu2 %430  ;;  %v2479_v8 = vadd.f32 %v12548_v0, %v7421_v10  ;;  %v969_v42 = vpop.f32.mrf.mxu3  ;;  %v2480_v50 = vadd.f32 %v12548_v0, %v7423_v48  ;;  %v8667_v6 = vadd.f32 %v1050_v12, %v856_v14  ;;  %v2145_v0 = vmul.f32 -2.0, %v8566_v46  ;;  %v12553_v27 = vld [vmem:[#allocation36_spill] sm:$0xff]  ;;  %v12555_v46 = vld [vmem:[#allocation21_spill] sm:$0xff] }
 0x1b8   :  { %v485_v35 = vmin.f32 %v477_v21, %v431_v25  ;;  %v8669_v25 = vadd.f32 %v1051_v4, %v969_v42  ;;  %v8671_v21 = vpop.f32.mrf.mxu0  ;;  %6257 = vmatmul.msk.f32.gmra.mxu2 %vm225_vm0, %v3166_v41  ;;  %6266 = vmatmul.msk.f32.gmra.mxu3 %vm225_vm0, %v3166_v41  ;;  %v12551_v14 = vmax.f32 %v8177_v53, 0.0  ;;  %v12552_v42 = vmax.f32 %v8167_v22, 0.0 }
 0x1b9   :  { %v12327_v12 = vmax.f32 %v8667_v6, 0.0  ;;  %v8694_v41 = vadd.f32 %v2479_v8, %v12553_v27  ;;  %v2505_v22 = vadd.f32 %v8466_v62, %v7421_v10  ;;  %v2506_v53 = vadd.f32 %v8466_v62, %v7423_v48  ;;  %v1890_v8 = vpop.xlane.xlu0 %1889 }
 0x1ba   :  { %494 = vst.msk [vmem:[#allocation2 + $0x18] sm:$0xff] %vm19_vm2, %v485_v35  ;;  %v2669_v35 = vmin.f32 %v12550_v43, %v12549_v57  ;;  %v12328_v4 = vmax.f32 %v8669_v25, 0.0  ;;  %v1233_v49 = vmin.f32 %v12552_v42, %v12551_v14  ;;  %v12554_v57 = vld [vmem:[#allocation37_spill] sm:$0xff] }
 0x1bb   :  { %v1322_v58 = vmin.f32 %v12327_v12, %v1321_v15  ;;  %2114 = vadd.xlane.f32.xlu0 %v2113_v45  ;;  %v8697_v43 = vadd.f32 %v2480_v50, %v12554_v57  ;;  %v8708_v15 = vld [vmem:[%s12231_s0 + $0x90] sm:$0xff]  ;;  %v1935_v14 = vld [vmem:[#allocation2 + $0x60] sm:$0xff]  ;;  %v1053_v50 = vadd.f32 %v12555_v46, %v7158_v37 }
 0x1bc   :  { %v1359_v52 = vmin.f32 %v12328_v4, %v1358_v51  ;;  %v1936_v51 = vld [vmem:[#allocation2 + $0x68] sm:$0xff]  ;;  %v3167_v42 = vmul.f32 -2.0, %v8708_v15  ;;  %v1943_v57 = vmin.f32 %v1935_v14, %v1890_v8  ;;  %6210 = vmatmul.msk.f32.gmra.mxu0 %vm225_vm0, %v2145_v0  ;;  %6243 = vmatmul.msk.f32.gmra.mxu1 %vm225_vm0, %v2145_v0  ;;  %v12556_v0 = vmax.f32 %v8272_v29, 0.0 }
 0x1bd   :  { %2670 = vmin.xlane.f32.xlu1 %v2669_v35  ;;  %v1052_v35 = vadd.f32 %v12555_v46, %v7153_v33  ;;  %v1893_v45 = vpop.xlane.xlu1 %1892  ;;  %v859_v62 = vpop.f32.mrf.mxu2  ;;  %v2608_v46 = vmax.f32 %v8697_v43, 0.0  ;;  %v12558_v8 = vmax.f32 %v8414_v16, 0.0  ;;  %v12559_v14 = vmax.f32 %v8378_v31, 0.0  ;;  %v8751_v16 = vld [vmem:[%s12231_s0 + $0x98] sm:$0xff]  ;;  %v1386_v31 = vld [vmem:[#allocation3] sm:$0xff] }
 0x1be   :  { %1234 = vmin.xlane.f32.xlu2 %v1233_v49  ;;  %v1944_v27 = vmin.f32 %v1936_v51, %v1893_v45  ;;  %v2423_v7 = vpop.f32.mrf.mxu1  ;;  %v2607_v49 = vmax.f32 %v8694_v41, 0.0  ;;  %v12557_v45 = vmax.f32 %v8270_v55, 0.0  ;;  %1951 = vst.msk [vmem:[#allocation2 + $0x60] sm:$0xff] %vm19_vm2, %v1943_v57  ;;  %v2146_v29 = vmul.f32 -2.0, %v8579_v56  ;;  %v481_v56 = vld [vmem:[#allocation2 + $0x38] sm:$0xff] }
 0x1bf   :  { %v8713_v12 = vpop.xlane.xlu2 %2066  ;;  %v972_v4 = vpop.f32.mrf.mxu3  ;;  %v8717_v60 = vadd.f32 %v1052_v35, %v859_v62  ;;  %12560 = vst [vmem:[#allocation16_spill] sm:$0xff] %v8751_v16  ;;  %v1934_v62 = vld [vmem:[#allocation2 + $0x58] sm:$0xff] }
 0x1c0   :  { %v8719_v1 = vadd.f32 %v1053_v50, %v972_v4  ;;  %v2310_v9 = vpop.f32.mrf.mxu0  ;;  %6258 = vmatmul.msk.f32.gmra.mxu2 %vm225_vm0, %v3167_v42  ;;  %6267 = vmatmul.msk.f32.gmra.mxu3 %vm225_vm0, %v3167_v42  ;;  %1952 = vst.msk [vmem:[#allocation2 + $0x68] sm:$0xff] %vm19_vm2, %v1944_v27  ;;  %v1239_v35 = vmin.f32 %v12557_v45, %v12556_v0  ;;  %v3168_v27 = vmul.f32 -2.0, %v8751_v16  ;;  %v12561_v0 = vld [vmem:[#allocation20_spill] sm:$0xff] }
 0x1c1   :  { %v8730_v51 = vadd.f32 %v2505_v22, %v2310_v9  ;;  %v8732_v4 = vadd.f32 %v2506_v53, %v2423_v7  ;;  %v12333_v41 = vmax.f32 %v8717_v60, 0.0  ;;  %v2675_v50 = vmin.f32 %v12559_v14, %v12558_v8  ;;  %v443_v57 = vpop.xlane.xlu0 %442 }
 0x1c2   :  { %v12334_v43 = vmax.f32 %v8719_v1, 0.0  ;;  %v2672_v53 = vmin.f32 %v2607_v49, %v2608_v46  ;;  %v1054_v45 = vadd.f32 %v12561_v0, %v7153_v33  ;;  %v489_v14 = vmin.f32 %v481_v56, %v443_v57 }
 0x1c3   :  { %v12335_v55 = vmax.f32 %v8730_v51, 0.0  ;;  %v12336_v9 = vmax.f32 %v8732_v4, 0.0  ;;  %v1323_v7 = vmin.f32 %v12333_v41, %v1322_v58  ;;  %2676 = vmin.xlane.f32.xlu0 %v2675_v50 }
 0x1c4   :  { %v1360_v22 = vmin.f32 %v12334_v43, %v1359_v52  ;;  %6211 = vmatmul.msk.f32.gmra.mxu0 %vm225_vm0, %v2146_v29  ;;  %6244 = vmatmul.msk.f32.gmra.mxu1 %vm225_vm0, %v2146_v29  ;;  %v12562_v29 = vmax.f32 %v8131_v38, 0.0  ;;  %498 = vst.msk [vmem:[#allocation2 + $0x38] sm:$0xff] %vm19_vm2, %v489_v14 }
 0x1c5   :  { %1240 = vmin.xlane.f32.xlu1 %v1239_v35  ;;  %v2772_v42 = vmin.f32 %v8646_v5, %v12335_v55  ;;  %v2809_v58 = vmin.f32 %v8650_v30, %v12336_v9  ;;  %v1214_v52 = vpop.xlane.xlu1 %1213  ;;  %v1055_v35 = vadd.f32 %v12561_v0, %v7158_v37  ;;  %v862_v5 = vpop.f32.mrf.mxu2 }
 0x1c6   :  { %2673 = vmin.xlane.f32.xlu2 %v2672_v53  ;;  %v1418_v8 = vmin.f32 %v1386_v31, %v1214_v52  ;;  %v8768_v9 = vadd.f32 %v1054_v45, %v862_v5  ;;  %v8774_v53 = vpop.f32.mrf.mxu1  ;;  %v12564_v52 = vmax.f32 %v8421_v63, 0.0 }
 0x1c7   :  { %v1887_v50 = vpop.xlane.xlu2 %1886  ;;  %v975_v30 = vpop.f32.mrf.mxu3  ;;  %v2774_v41 = vmin.f32 %v2772_v42, %v8441_v32  ;;  %v2811_v43 = vmin.f32 %v2809_v58, %v8458_v28  ;;  %v12563_v32 = vmax.f32 %v8118_v17, 0.0  ;;  %v2147_v17 = vmul.f32 -2.0, %v8621_v54 }
 0x1c8   :  { %v1942_v55 = vmin.f32 %v1934_v62, %v1887_v50  ;;  %v8770_v16 = vadd.f32 %v1055_v35, %v975_v30  ;;  %v8772_v0 = vpop.f32.mrf.mxu0  ;;  %6259 = vmatmul.msk.f32.gmra.mxu2 %vm225_vm0, %v3168_v27  ;;  %6268 = vmatmul.msk.f32.gmra.mxu3 %vm225_vm0, %v3168_v27  ;;  %1450 = vst.msk [vmem:[#allocation3] sm:$0xff] %vm19_vm2, %v1418_v8  ;;  %v1182_v42 = vmax.f32 %v8768_v9, 0.0  ;;  %v12565_v27 = vmax.f32 %v8419_v13, 0.0  ;;  %v6251_v13 = vld [vmem:[%s12231_s0 + $0xa0] sm:$0xff] }
 0x1c9   :  { %v2678_v28 = vmin.f32 %v12563_v32, %v12562_v29  ;;  %v8783_v31 = vmin.f32 %v2774_v41, %v2607_v49  ;;  %v8785_v56 = vmin.f32 %v2811_v43, %v2608_v46  ;;  %v12566_v46 = vmax.f32 %v8135_v44, 0.0  ;;  %v480_v43 = vld [vmem:[#allocation2 + $0x30] sm:$0xff]  ;;  %v8807_v54 = vpop.xlane.xlu0 %2069 }
 0x1ca   :  { %v1183_v58 = vmax.f32 %v8770_v16, 0.0  ;;  %v1245_v57 = vmin.f32 %v12565_v27, %v12564_v52  ;;  %1950 = vst.msk [vmem:[#allocation2 + $0x58] sm:$0xff] %vm19_vm2, %v1942_v55  ;;  %v1324_v38 = vmin.f32 %v1182_v42, %v1323_v7  ;;  %v12567_v41 = vmax.f32 %v8122_v47, 0.0  ;;  %v12568_v7 = vld [vmem:[#allocation19_spill] sm:$0xff] }
 0x1cb   :  { %v3169_v55 = vmul.f32 -2.0, %v6251_v13  ;;  %v1056_v45 = vadd.f32 %v12568_v7, %v7153_v33  ;;  %v12569_v29 = vmax.f32 %v8221_v3, 0.0  ;;  %v12570_v32 = vmax.f32 %v8211_v19, 0.0 }
 0x1cc   :  { %v1361_v49 = vmin.f32 %v1183_v58, %v1360_v22  ;;  %1246 = vmin.xlane.f32.xlu0 %v1245_v57  ;;  %v2681_v63 = vmin.f32 %v12567_v41, %v12566_v46  ;;  %v1057_v22 = vadd.f32 %v12568_v7, %v7158_v37  ;;  %6212 = vmatmul.msk.f32.gmra.mxu0 %vm225_vm0, %v2147_v17  ;;  %v12571_v57 = vmax.f32 %v8179_v23, 0.0  ;;  %v8847_v23 = vld [vmem:[%s12231_s0 + $0xa8] sm:$0xff] }
 0x1cd   :  { %2679 = vmin.xlane.f32.xlu1 %v2678_v28  ;;  %v472_v62 = vpop.xlane.xlu1 %471  ;;  %6245 = vmatmul.msk.f32.gmra.mxu1 %vm225_vm0, %v2147_v17  ;;  %v865_v47 = vpop.f32.mrf.mxu2  ;;  %v2687_v28 = vmin.f32 %v12570_v32, %v12569_v29  ;;  %v12572_v17 = vmax.f32 %v8169_v11, 0.0  ;;  %v12573_v19 = vmax.f32 %v8352_v34, 0.0  ;;  %12575 = vst [vmem:[#allocation40_spill] sm:$0xff] %v8847_v23  ;;  %v1938_v11 = vld [vmem:[#allocation2 + $0x78] sm:$0xff] }
 0x1ce   :  { %2682 = vmin.xlane.f32.xlu2 %v2681_v63  ;;  %6496 = vpush %v472_v62  ;;  %v8815_v14 = vadd.f32 %v1056_v45, %v865_v47  ;;  %v8821_v30 = vpop.f32.mrf.mxu1  ;;  %v12574_v63 = vmax.f32 %v8349_v20, 0.0  ;;  %v12576_v34 = vld [vmem:[#allocation24_spill] sm:$0xff]  ;;  %v2503_v45 = vadd.f32 %v8654_v61, %v7421_v10  ;;  %v1492_v47 = vld [vmem:[#allocation2] sm:$0xff] }
 0x1cf   :  { %v440_v44 = vpop.xlane.xlu2 %439  ;;  %v978_v35 = vpop.f32.mrf.mxu3  ;;  %v2684_v46 = vmin.f32 %v12572_v17, %v12571_v57  ;;  %v1058_v62 = vadd.f32 %v12576_v34, %v7153_v33  ;;  %v1059_v20 = vadd.f32 %v12576_v34, %v7158_v37  ;;  %v12577_v57 = vmax.f32 %v8489_v39, 0.0  ;;  %v12581_v34 = vld [vmem:[#allocation43_spill] sm:$0xff] }
 0x1d0   :  { %v488_v8 = vmin.f32 %v480_v43, %v440_v44  ;;  %v8817_v50 = vadd.f32 %v1057_v22, %v978_v35  ;;  %v8819_v5 = vpop.f32.mrf.mxu0  ;;  %6260 = vmatmul.msk.f32.gmra.mxu2 %vm225_vm0, %v3169_v55  ;;  %6269 = vmatmul.msk.f32.gmra.mxu3 %vm225_vm0, %v3169_v55  ;;  %v12342_v52 = vmax.f32 %v8815_v14, 0.0  ;;  %v1242_v13 = vmin.f32 %v12574_v63, %v12573_v19 }
 0x1d1   :  { %v2511_v43 = vadd.f32 %v8652_v2, %v7421_v10  ;;  %v1899_v55 = vpop.xlane.xlu0 %1898  ;;  %v12578_v17 = vmax.f32 %v8487_v40, 0.0 }
 0x1d2   :  { %497 = vst.msk [vmem:[#allocation2 + $0x30] sm:$0xff] %vm19_vm2, %v488_v8  ;;  %v12343_v27 = vmax.f32 %v8817_v50, 0.0  ;;  %v1325_v41 = vmin.f32 %v12342_v52, %v1324_v38  ;;  %v2512_v38 = vadd.f32 %v8652_v2, %v7423_v48  ;;  %v1946_v7 = vmin.f32 %v1938_v11, %v1899_v55  ;;  %v12579_v11 = vld [vmem:[#allocation44_spill] sm:$0xff] }
 0x1d3   :  { %v2504_v2 = vadd.f32 %v8654_v61, %v7423_v48  ;;  %v12580_v55 = vmax.f32 %v12579_v11, 0.0  ;;  %v8908_v11 = vld [vmem:[%s12231_s0 + $0xb0] sm:$0xff] }
 0x1d4   :  { %v1362_v3 = vmin.f32 %v12343_v27, %v1361_v49  ;;  %2685 = vmin.xlane.f32.xlu0 %v2684_v46  ;;  %v3170_v49 = vmul.f32 -2.0, %v8847_v23  ;;  %1954 = vst.msk [vmem:[#allocation2 + $0x78] sm:$0xff] %vm19_vm2, %v1946_v7  ;;  %v1248_v46 = vmin.f32 %v12578_v17, %v12577_v57  ;;  %v1500_v7 = vsel %vm19_vm2, %v1492_v47, 0.0  ;;  %v12623_v23 = vld [vmem:[#allocation26_spill] sm:$0xff] }
 0x1d5   :  { %2688 = vmin.xlane.f32.xlu1 %v2687_v28  ;;  %v868_v22 = vpop.f32.mrf.mxu2  ;;  %v1493_v28 = vld [vmem:[#allocation2 + $0x8] sm:$0xff]  ;;  %v8900_v47 = vadd.f32 %v2503_v45, %v8671_v21  ;;  %12587 = vst [vmem:[#allocation36_spill] sm:$0xff] %v8908_v11  ;;  %v3171_v21 = vmul.f32 -2.0, %v8908_v11 }
 0x1d6   :  { %1243 = vmin.xlane.f32.xlu2 %v1242_v13  ;;  %v8862_v35 = vadd.f32 %v1058_v62, %v868_v22  ;;  %v2432_v32 = vpop.f32.mrf.mxu1  ;;  %v12585_v22 = vld [vmem:[#allocation41_spill] sm:$0xff] }
 0x1d7   :  { %v981_v44 = vpop.f32.mrf.mxu3  ;;  %v8875_v61 = vadd.f32 %v2512_v38, %v2432_v32  ;;  %v1501_v32 = vsel %vm19_vm2, %v1493_v28, 0.0  ;;  %v1388_v28 = vld [vmem:[#allocation3 + $0x10] sm:$0xff] }
 0x1d8   :  { %v8864_v8 = vadd.f32 %v1059_v20, %v981_v44  ;;  %v2319_v29 = vpop.f32.mrf.mxu0  ;;  %6261 = vmatmul.msk.f32.gmra.mxu2 %vm225_vm0, %v3170_v49  ;;  %6270 = vmatmul.msk.f32.gmra.mxu3 %vm225_vm0, %v3170_v49  ;;  %v12338_v63 = vmax.f32 %v8862_v35, 0.0  ;;  %v12582_v49 = vmax.f32 %v12581_v34, 0.0  ;;  %v1494_v20 = vld [vmem:[#allocation2 + $0x10] sm:$0xff]  ;;  %v12586_v44 = vmax.f32 %v12585_v22, 0.0 }
 0x1d9   :  { %v8873_v19 = vadd.f32 %v2511_v43, %v2319_v29  ;;  %v12341_v39 = vmax.f32 %v8875_v61, 0.0  ;;  %v12583_v43 = vld [vmem:[#allocation42_spill] sm:$0xff]  ;;  %v1220_v45 = vpop.xlane.xlu0 %1219 }
 0x1da   :  { %v12339_v13 = vmax.f32 %v8864_v8, 0.0  ;;  %v2693_v62 = vmin.f32 %v12582_v49, %v12580_v55  ;;  %v12584_v38 = vmax.f32 %v12583_v43, 0.0  ;;  %v8893_v57 = vmin.f32 %v12338_v63, %v1325_v41  ;;  %v1496_v63 = vld [vmem:[#allocation2 + $0x20] sm:$0xff] }
 0x1db   :  { %v12340_v40 = vmax.f32 %v8873_v19, 0.0  ;;  %v1420_v34 = vmin.f32 %v1388_v28, %v1220_v45  ;;  %v1502_v49 = vadd.f32 %v1501_v32, %v1500_v7  ;;  %v12588_v7 = vld [vmem:[#allocation35_spill] sm:$0xff]  ;;  %v12590_v32 = vld [vmem:[#allocation38_spill] sm:$0xff] }
 0x1dc   :  { %v2690_v29 = vmin.f32 %v12586_v44, %v12584_v38  ;;  %v8897_v17 = vmin.f32 %v12339_v13, %v1362_v3  ;;  %2694 = vmin.xlane.f32.xlu0 %v2693_v62  ;;  %v2816_v3 = vmin.f32 %v12341_v39, %v8785_v56  ;;  %v12591_v28 = vmax.f32 %v12590_v32, 0.0 }
 0x1dd   :  { %1249 = vmin.xlane.f32.xlu1 %v1248_v46  ;;  %v8903_v46 = vadd.f32 %v2504_v2, %v8673_v36  ;;  %v2779_v41 = vmin.f32 %v12340_v40, %v8783_v31  ;;  %v1503_v36 = vsel %vm19_vm2, %v1494_v20, 0.0  ;;  %v2631_v2 = vmax.f32 %v8900_v47, 0.0  ;;  %v8920_v62 = vpop.f32.mrf.mxu2  ;;  %v1495_v31 = vld [vmem:[#allocation2 + $0x18] sm:$0xff]  ;;  %1452 = vst.msk [vmem:[#allocation3 + $0x10] sm:$0xff] %vm19_vm2, %v1420_v34  ;;  %v6254_v34 = vld [vmem:[%s12231_s0 + $0xb8] sm:$0xff] }
 0x1de   :  { %2691 = vmin.xlane.f32.xlu2 %v2690_v29  ;;  %v8926_v56 = vpop.f32.mrf.mxu1  ;;  %v1504_v44 = vadd.f32 %v1503_v36, %v1502_v49  ;;  %v12589_v29 = vmax.f32 %v12588_v7, 0.0  ;;  %v1505_v13 = vsel %vm19_vm2, %v1495_v31, 0.0  ;;  %v12594_v36 = vld [vmem:[#allocation39_spill] sm:$0xff]  ;;  %v1497_v31 = vld [vmem:[#allocation2 + $0x28] sm:$0xff]  ;;  %v3172_v52 = vmul.f32 -2.0, %v6254_v34 }
 0x1df   :  { %v2632_v55 = vmax.f32 %v8903_v46, 0.0  ;;  %v8922_v43 = vpop.f32.mrf.mxu3  ;;  %v2778_v22 = vmin.f32 %v2631_v2, %v2779_v41  ;;  %v12592_v41 = vmax.f32 %v8608_v26, 0.0  ;;  %v12595_v49 = vmax.f32 %v12594_v36, 0.0  ;;  %v12596_v7 = vld [vmem:[#allocation15_spill] sm:$0xff]  ;;  %v12602_v34 = vld [vmem:[#allocation18_spill] sm:$0xff] }
 0x1e0   :  { %v8924_v38 = vpop.f32.mrf.mxu0  ;;  %6262 = vmatmul.msk.f32.gmra.mxu2 %vm225_vm0, %v3171_v21  ;;  %v2696_v45 = vmin.f32 %v12591_v28, %v12589_v29  ;;  %6271 = vmatmul.msk.f32.gmra.mxu3 %vm225_vm0, %v3171_v21  ;;  %v1506_v39 = vadd.f32 %v1505_v13, %v1504_v44  ;;  %v12597_v32 = vmax.f32 %v12596_v7, 0.0  ;;  %v1507_v21 = vsel %vm19_vm2, %v1496_v63, 0.0  ;;  %v1498_v28 = vld [vmem:[#allocation2 + $0x30] sm:$0xff] }
 0x1e1   :  { %v8932_v20 = vmin.f32 %v2632_v55, %v2816_v3  ;;  %v12593_v3 = vmax.f32 %v8606_v59, 0.0  ;;  %v1511_v63 = vsel %vm19_vm2, %v1498_v28, 0.0  ;;  %v12601_v7 = vmax.f32 %v8557_v24, 0.0  ;;  %v12604_v28 = vld [vmem:[#allocation14_spill] sm:$0xff] }
 0x1e2   :  { %v2699_v29 = vmin.f32 %v12597_v32, %v12595_v49  ;;  %v1508_v26 = vadd.f32 %v1507_v21, %v1506_v39  ;;  %v12599_v39 = vmax.f32 %v8667_v6, 0.0  ;;  %v12600_v49 = vmax.f32 %v8559_v18, 0.0  ;;  %v8982_v18 = vpop.xlane.xlu2 %2075 }
 0x1e3   :  { %v1254_v40 = vmin.f32 %v12593_v3, %v12592_v41  ;;  %v12598_v41 = vmax.f32 %v8669_v25, 0.0  ;;  %v12605_v27 = vmax.f32 %v12604_v28, 0.0  ;;  %v2509_v6 = vadd.f32 %v8807_v54, %v7421_v10 }
 0x1e4   :  { %v2702_v32 = vmin.f32 %v12601_v7, %v12600_v49 }
 0x1e5   :  { %2697 = vmin.xlane.f32.xlu1 %v2696_v45  ;;  %1255 = vmin.xlane.f32.xlu0 %v1254_v40  ;;  %v8954_v59 = vpop.f32.mrf.mxu2  ;;  %v1509_v45 = vsel %vm19_vm2, %v1497_v31, 0.0  ;;  %v1257_v3 = vmin.f32 %v12599_v39, %v12598_v41  ;;  %v12603_v31 = vmax.f32 %v12602_v34, 0.0 }
 0x1e6   :  { %2700 = vmin.xlane.f32.xlu2 %v2699_v29  ;;  %v8960_v44 = vpop.f32.mrf.mxu1  ;;  %v1510_v36 = vadd.f32 %v1509_v45, %v1508_v26  ;;  %v1499_v29 = vld [vmem:[#allocation2 + $0x38] sm:$0xff] }
 0x1e7   :  { %v8956_v13 = vpop.f32.mrf.mxu3  ;;  %v1251_v25 = vmin.f32 %v12605_v27, %v12603_v31  ;;  %v1513_v24 = vsel %vm19_vm2, %v1499_v29, 0.0  ;;  %v8994_v27 = vadd.f32 %v2509_v6, %v8819_v5  ;;  %v9010_v5 = vpop.xlane.xlu1 %2081  ;;  %v9035_v31 = vld [vmem:[%s12232_s1 + $0x208] sm:$0xff] }
 0x1e8   :  { %v8958_v40 = vpop.f32.mrf.mxu0  ;;  %6263 = vmatmul.msk.f32.gmra.mxu2 %vm225_vm0, %v3172_v52  ;;  %6272 = vmatmul.msk.f32.gmra.mxu3 %vm225_vm0, %v3172_v52  ;;  %v1512_v21 = vadd.f32 %v1511_v63, %v1510_v36  ;;  %v2510_v52 = vadd.f32 %v8807_v54, %v7423_v48  ;;  %v8999_v54 = vld [vmem:[%s12232_s1 + $0x200] sm:$0xff]  ;;  %v12608_v36 = vmax.f32 %v8730_v51, 0.0  ;;  %v2507_v51 = vadd.f32 %v8713_v12, %v7421_v10 }
 0x1e9   :  { %12606 = vst [vmem:[#allocation37_spill] sm:$0xff] %v8999_v54  ;;  %v2637_v29 = vmax.f32 %v8994_v27, 0.0 }
 0x1ea   :  { %v1514_v63 = vadd.f32 %v1513_v24, %v1512_v21  ;;  %v9006_v7 = vadd.f32 %v2510_v52, %v8821_v30  ;;  %v2708_v21 = vmin.f32 %v2631_v2, %v2632_v55  ;;  %v2508_v30 = vadd.f32 %v8713_v12, %v7423_v48  ;;  %v1937_v55 = vld [vmem:[#allocation2 + $0x70] sm:$0xff]  ;;  %12609 = vst [vmem:[#allocation21_spill] sm:$0xff] %v9035_v31  ;;  %v1896_v28 = vpop.xlane.xlu2 %1895  ;;  %v12612_v52 = vld [vmem:[#allocation17_spill] sm:$0xff] }
 0x1eb   :  { %v9022_v34 = vmin.f32 %v2778_v22, %v2637_v29  ;;  %v3576_v12 = vmul.f32 -2.0, %v9035_v31  ;;  %v2950_v22 = vld [vmem:[#allocation2 + $0x40] sm:$0xff]  ;;  %v12613_v24 = vmax.f32 %v12612_v52, 0.0  ;;  %v1387_v52 = vld [vmem:[#allocation3 + $0x8] sm:$0xff] }
 0x1ec   :  { %v9046_v27 = vadd.f32 %v2508_v30, %v8774_v53  ;;  %v12615_v53 = vmax.f32 %v8717_v60, 0.0  ;;  %v2952_v30 = vld [vmem:[#allocation2 + $0x50] sm:$0xff] }
 0x1ed   :  { %1258 = vmin.xlane.f32.xlu1 %v1257_v3  ;;  %2703 = vmin.xlane.f32.xlu0 %v2702_v32  ;;  %v8985_v26 = vpop.f32.mrf.mxu2  ;;  %v12607_v3 = vmax.f32 %v8732_v4, 0.0  ;;  %v3575_v32 = vmul.f32 -2.0, %v8999_v54  ;;  %v2638_v4 = vmax.f32 %v9006_v7, 0.0  ;;  %v1263_v7 = vmin.f32 %v1182_v42, %v1183_v58  ;;  %v6275_v58 = vld [vmem:[%s12232_s1 + $0x210] sm:$0xff] }
 0x1ee   :  { %1252 = vmin.xlane.f32.xlu2 %v1251_v25  ;;  %v8991_v39 = vpop.f32.mrf.mxu1  ;;  %v12610_v25 = vld [vmem:[#allocation45_spill] sm:$0xff]  ;;  %v12348_v42 = vmax.f32 %v9046_v27, 0.0 }
 0x1ef   :  { %v8987_v45 = vpop.f32.mrf.mxu3  ;;  %v2711_v49 = vmin.f32 %v12608_v36, %v12607_v3  ;;  %v9026_v46 = vmin.f32 %v8932_v20, %v2638_v4  ;;  %v12611_v6 = vmax.f32 %v12610_v25, 0.0  ;;  %v2091_v60 = vpop.xlane.xlu1 %2090  ;;  %v2717_v31 = vmin.f32 %v2637_v29, %v2638_v4  ;;  %v12624_v29 = vld [vmem:[#allocation27_spill] sm:$0xff] }
 0x1f0   :  { %v8989_v41 = vpop.f32.mrf.mxu0  ;;  %6306 = vmatmul.msk.f32.vlgmr.msrb.gmra.mxu2 %vm225_vm0, %v3575_v32  ;;  %6339 = vmatmul.msk.f32.vlgmr.msrb.gmra.mxu3 %vm225_vm0, %v3575_v32  ;;  %v2951_v32 = vld [vmem:[#allocation2 + $0x48] sm:$0xff]  ;;  %v9115_v4 = vadd.f32 %v12624_v29, %v7153_v33 }
 0x1f1   :  { %v2705_v20 = vmin.f32 %v12613_v24, %v12611_v6  ;;  %v2961_v24 = vsel %vm19_vm2, %v2952_v30, 0.0 }
 0x1f5   :  { %1515 = vadd.xlane.f32.xlu1 %v1514_v63  ;;  %2712 = vmin.xlane.f32.xlu0 %v2711_v49  ;;  %v9028_v47 = vpop.f32.mrf.mxu2  ;;  %v9043_v63 = vadd.f32 %v2507_v51, %v8772_v0  ;;  %v1945_v49 = vmin.f32 %v1937_v55, %v1896_v28  ;;  %v12614_v0 = vmax.f32 %v8719_v1, 0.0  ;;  %v12616_v55 = vld [vmem:[#allocation10_spill] sm:$0xff]  ;;  %v2959_v1 = vsel %vm19_vm2, %v2951_v32, 0.0 }
 0x1f6   :  { %2709 = vmin.xlane.f32.xlu2 %v2708_v21  ;;  %v9050_v36 = vpop.f32.mrf.mxu1  ;;  %v2958_v21 = vsel %vm19_vm2, %v2950_v22, 0.0  ;;  %v3133_v16 = vmul.f32 %v12616_v55, %v12616_v55  ;;  %v2953_v22 = vld [vmem:[#allocation2 + $0x58] sm:$0xff]  ;;  %v3577_v32 = vmul.f32 -2.0, %v6275_v58  ;;  %v12620_v58 = vld [vmem:[#allocation25_spill] sm:$0xff] }
 0x1f7   :  { %v9030_v2 = vpop.f32.mrf.mxu3  ;;  %1953 = vst.msk [vmem:[#allocation2 + $0x70] sm:$0xff] %vm19_vm2, %v1945_v49  ;;  %v1260_v51 = vmin.f32 %v12615_v53, %v12614_v0  ;;  %v12349_v9 = vmax.f32 %v9043_v63, 0.0  ;;  %v2960_v28 = vadd.f32 %v2959_v1, %v2958_v21  ;;  %v12619_v21 = vld [vmem:[#allocation23_spill] sm:$0xff]  ;;  %v1217_v53 = vpop.xlane.xlu2 %1216  ;;  %v2963_v55 = vsel %vm19_vm2, %v2953_v22, 0.0 }
 0x1f8   :  { %v9048_v3 = vpop.f32.mrf.mxu0  ;;  %6307 = vmatmul.msk.f32.gmra.mxu2 %vm225_vm0, %v3576_v12  ;;  %6340 = vmatmul.msk.f32.gmra.mxu3 %vm225_vm0, %v3576_v12  ;;  %v1060_v0 = vadd.f32 %v12619_v21, %v7153_v33  ;;  %v1061_v1 = vadd.f32 %v12619_v21, %v7158_v37  ;;  %v9099_v11 = vadd.f32 %v12620_v58, %v7153_v33  ;;  %v1389_v21 = vld [vmem:[#allocation3 + $0x18] sm:$0xff] }
 0x1f9   :  { %v2714_v30 = vmin.f32 %v12349_v9, %v12348_v42  ;;  %v2962_v54 = vadd.f32 %v2961_v24, %v2960_v28  ;;  %v9111_v22 = vadd.f32 %v12623_v23, %v7158_v37  ;;  %v9119_v28 = vadd.f32 %v12624_v29, %v7158_v37  ;;  %v12628_v29 = vld [vmem:[#allocation29_spill] sm:$0xff] }
 0x1fa   :  { %12621 = vst [vmem:[#allocation19_spill] sm:$0xff] %v9099_v11  ;;  %v9133_v9 = vadd.f32 %v12628_v29, %v7153_v33 }
 0x1fc   :  { %12629 = vst [vmem:[#allocation42_spill] sm:$0xff] %v9133_v9  ;;  %v12636_v9 = vld [vmem:[#allocation32_spill] sm:$0xff] }
 0x1fd   :  { %2706 = vmin.xlane.f32.xlu1 %v2705_v20  ;;  %1264 = vmin.xlane.f32.xlu0 %v1263_v7  ;;  %v9072_v25 = vpop.f32.mrf.mxu2  ;;  %v12618_v20 = vld [vmem:[#allocation22_spill] sm:$0xff]  ;;  %v9085_v7 = vpop.xlane.xlu0 %2078 }
 0x1fe   :  { %1261 = vmin.xlane.f32.xlu2 %v1260_v51  ;;  %v9079_v12 = vadd.f32 %v12618_v20, %v7153_v33  ;;  %v9083_v49 = vadd.f32 %v12618_v20, %v7158_v37  ;;  %v3141_v51 = vsel %vm225_vm0, %v3133_v16, 0.0  ;;  %v1419_v20 = vmin.f32 %v1387_v52, %v1217_v53  ;;  %v2447_v24 = vpop.f32.mrf.mxu1  ;;  %v2954_v53 = vld [vmem:[#allocation2 + $0x60] sm:$0xff] }
 0x1ff   :  { %v9074_v6 = vpop.f32.mrf.mxu3  ;;  %v9103_v16 = vadd.f32 %v12620_v58, %v7158_v37  ;;  %s6497_s6 = spop %6496 }
 0x200   :  { %12617 = vst [vmem:[#allocation20_spill] sm:$0xff] %v9074_v6  ;;  %v9107_v6 = vadd.f32 %v12623_v23, %v7153_v33  ;;  %v2334_v52 = vpop.f32.mrf.mxu0  ;;  %6308 = vmatmul.msk.f32.gmra.mxu2 %vm225_vm0, %v3577_v32  ;;  %v2964_v23 = vadd.f32 %v2963_v55, %v2962_v54  ;;  %6341 = vmatmul.msk.f32.gmra.mxu3 %vm225_vm0, %v3577_v32  ;;  %v12631_v54 = vld [vmem:[#allocation30_spill] sm:$0xff] }
 0x201   :  { %12622 = vst [vmem:[#allocation24_spill] sm:$0xff] %v9103_v16  ;;  %v9142_v55 = vadd.f32 %v12631_v54, %v7153_v33  ;;  %v9154_v16 = vadd.f32 %v12636_v9, %v7153_v33  ;;  %v9158_v32 = vadd.f32 %v12636_v9, %v7158_v37 }
 0x202   :  { %1451 = vst.msk [vmem:[#allocation3 + $0x8] sm:$0xff] %vm19_vm2, %v1419_v20  ;;  %v9137_v20 = vadd.f32 %v12628_v29, %v7158_v37  ;;  %v1223_v29 = vpop.xlane.xlu1 %1222 }
 0x203   :  { %12632 = vst [vmem:[#allocation35_spill] sm:$0xff] %v9142_v55 }
 0x204   :  { %12630 = vst [vmem:[#allocation41_spill] sm:$0xff] %v9137_v20  ;;  %v1421_v20 = vmin.f32 %v1389_v21, %v1223_v29  ;;  %v2523_v29 = vadd.f32 %v2091_v60, %v7421_v10 }
 0x205   :  { %2715 = vmin.xlane.f32.xlu1 %v2714_v30  ;;  %3142 = vadd.xlane.f32.xlu0 %v3141_v51  ;;  %v12625_v30 = vld [vmem:[#allocation28_spill] sm:$0xff]  ;;  %v2955_v51 = vld [vmem:[#allocation2 + $0x68] sm:$0xff]  ;;  %12637 = vst [vmem:[#allocation15_spill] sm:$0xff] %v9154_v16  ;;  %v9160_v55 = vpop.f32.mrf.mxu2  ;;  %v9170_v16 = vadd.f32 %v1060_v0, %v8920_v62  ;;  %v2088_v9 = vpop.xlane.xlu0 %2087  ;;  %v2956_v62 = vld [vmem:[#allocation2 + $0x70] sm:$0xff] }
 0x206   :  { %v9125_v58 = vadd.f32 %v12625_v30, %v7153_v33  ;;  %v9129_v42 = vadd.f32 %v12625_v30, %v7158_v37  ;;  %v12634_v30 = vld [vmem:[#allocation31_spill] sm:$0xff]  ;;  %2718 = vmin.xlane.f32.xlu2 %v2717_v31  ;;  %12638 = vst [vmem:[#allocation18_spill] sm:$0xff] %v9158_v32  ;;  %v9173_v31 = vadd.f32 %v1061_v1, %v8922_v43  ;;  %v2967_v21 = vsel %vm19_vm2, %v2955_v51, 0.0  ;;  %v12643_v0 = vld [vmem:[#allocation33_spill] sm:$0xff] }
 0x207   :  { %12639 = vst [vmem:[#allocation14_spill] sm:$0xff] %v9160_v55  ;;  %v9162_v11 = vpop.f32.mrf.mxu3  ;;  %v9183_v43 = vadd.f32 %v12643_v0, %v7153_v33 }
 0x208   :  { %12626 = vst [vmem:[#allocation44_spill] sm:$0xff] %v9125_v58  ;;  %v9146_v58 = vadd.f32 %v12631_v54, %v7158_v37  ;;  %v12641_v54 = vmax.f32 %v8817_v50, 0.0  ;;  %v2522_v50 = vadd.f32 %v2088_v9, %v7423_v48 }
 0x209   :  { %12627 = vst [vmem:[#allocation43_spill] sm:$0xff] %v9129_v42  ;;  %v9150_v42 = vadd.f32 %v12634_v30, %v7153_v33  ;;  %v12642_v30 = vmax.f32 %v8815_v14, 0.0  ;;  %v2521_v14 = vadd.f32 %v2088_v9, %v7421_v10  ;;  %v2957_v9 = vld [vmem:[#allocation2 + $0x78] sm:$0xff]  ;;  %v2969_v33 = vsel %vm19_vm2, %v2956_v62, 0.0 }
 0x20a   :  { %12633 = vst [vmem:[#allocation38_spill] sm:$0xff] %v9146_v58  ;;  %v2965_v58 = vsel %vm19_vm2, %v2954_v53, 0.0  ;;  %v2085_v53 = vpop.xlane.xlu2 %2084  ;;  %v9217_v55 = vpop.xlane.xlu1 %1927 }
 0x20b   :  { %12635 = vst [vmem:[#allocation39_spill] sm:$0xff] %v9150_v42  ;;  %v1266_v42 = vmin.f32 %v12642_v30, %v12641_v54  ;;  %v2966_v32 = vadd.f32 %v2965_v58, %v2964_v23  ;;  %v2519_v1 = vadd.f32 %v2085_v53, %v7421_v10  ;;  %v2520_v23 = vadd.f32 %v2085_v53, %v7423_v48 }
 0x20c   :  { %12640 = vst [vmem:[#allocation45_spill] sm:$0xff] %v9162_v11  ;;  %v2524_v11 = vadd.f32 %v2091_v60, %v7423_v48  ;;  %v12645_v58 = vmax.f32 %v8875_v61, 0.0  ;;  %v12646_v60 = vmax.f32 %v8873_v19, 0.0  ;;  %v9195_v30 = vadd.f32 %v2521_v14, %v2334_v52  ;;  %v2337_v61 = vpop.f32.mrf.mxu0 }
 0x20d   :  { %1453 = vst.msk [vmem:[#allocation3 + $0x18] sm:$0xff] %vm19_vm2, %v1421_v20  ;;  %v9193_v20 = vadd.f32 %v9010_v5, %v7421_v10  ;;  %v9197_v54 = vadd.f32 %v2522_v50, %v2447_v24  ;;  %1267 = vmin.xlane.f32.xlu1 %v1266_v42  ;;  %v9202_v53 = vadd.f32 %v8982_v18, %v7421_v10  ;;  %v12648_v52 = vmax.f32 %v8862_v35, 0.0 }
 0x20e   :  { %12644 = vst [vmem:[#allocation17_spill] sm:$0xff] %v9183_v43  ;;  %v2720_v51 = vmin.f32 %v12646_v60, %v12645_v58  ;;  %v2450_v43 = vpop.f32.mrf.mxu1  ;;  %v9205_v19 = vadd.f32 %v2519_v1, %v9048_v3  ;;  %v12647_v58 = vmax.f32 %v8864_v8, 0.0  ;;  %v2968_v14 = vadd.f32 %v2967_v21, %v2966_v32  ;;  %v1391_v1 = vld [vmem:[#allocation3 + $0x28] sm:$0xff] }
 0x20f   :  { %v1188_v42 = vmax.f32 %v9170_v16, 0.0  ;;  %v1189_v50 = vmax.f32 %v9173_v31, 0.0  ;;  %v9213_v62 = vadd.f32 %v2523_v29, %v2337_v61  ;;  %v9215_v60 = vadd.f32 %v2524_v11, %v2450_v43  ;;  %12649 = vst [vmem:[#allocation10_spill] sm:$0xff] %v9217_v55  ;;  %v1229_v61 = vpop.xlane.xlu0 %1228 }
 0x210   :  { %2721 = vmin.xlane.f32.xlu0 %v2720_v51  ;;  %v1269_v24 = vmin.f32 %v12648_v52, %v12647_v58  ;;  %v9220_v3 = vadd.f32 %v2520_v23, %v9050_v36  ;;  %v3135_v35 = vmul.f32 %v8708_v15, %v8708_v15  ;;  %v2970_v8 = vadd.f32 %v2969_v33, %v2968_v14  ;;  %v9229_v51 = vpop.f32.mrf.mxu2  ;;  %v9231_v36 = vpop.f32.mrf.mxu3  ;;  %v9242_v58 = vld [vmem:[%s12232_s1 + $0x218] sm:$0xff] }
 0x211   :  { %v2971_v32 = vsel %vm19_vm2, %v2957_v9, 0.0  ;;  %v12351_v21 = vmax.f32 %v9213_v62, 0.0  ;;  %v12352_v29 = vmax.f32 %v9215_v60, 0.0  ;;  %v2515_v23 = vadd.f32 %v9085_v7, %v7421_v10 }
 0x212   :  { %1270 = vmin.xlane.f32.xlu2 %v1269_v24  ;;  %v2516_v33 = vadd.f32 %v9085_v7, %v7423_v48  ;;  %v1423_v14 = vmin.f32 %v1391_v1, %v1229_v61  ;;  %v2094_v7 = vpop.xlane.xlu2 %2093  ;;  %v2972_v43 = vadd.f32 %v2971_v32, %v2970_v8  ;;  %v2514_v9 = vadd.f32 %v8982_v18, %v7423_v48 }
 0x213   :  { %v2782_v52 = vmin.f32 %v9022_v34, %v12351_v21  ;;  %v2819_v24 = vmin.f32 %v9026_v46, %v12352_v29  ;;  %v2525_v15 = vadd.f32 %v2094_v7, %v7421_v10  ;;  %v2526_v11 = vadd.f32 %v2094_v7, %v7423_v48  ;;  %v12652_v29 = vld [vmem:[#allocation16_spill] sm:$0xff] }
 0x214   :  { %v1272_v55 = vmin.f32 %v1188_v42, %v1189_v50  ;;  %v12650_v34 = vmax.f32 %v9195_v30, 0.0  ;;  %v12651_v46 = vmax.f32 %v9197_v54, 0.0  ;;  %1455 = vst.msk [vmem:[#allocation3 + $0x28] sm:$0xff] %vm19_vm2, %v1423_v14  ;;  %v3147_v8 = vsel %vm225_vm0, %v3135_v35, 0.0  ;;  %v2340_v61 = vpop.f32.mrf.mxu0 }
 0x215   :  { %2973 = vadd.xlane.f32.xlu1 %v2972_v43  ;;  %v3578_v18 = vmul.f32 -2.0, %v9242_v58  ;;  %v9267_v32 = vadd.f32 %v9079_v12, %v8954_v59  ;;  %v12653_v35 = vmax.f32 %v9205_v19, 0.0  ;;  %v12654_v14 = vmax.f32 %v9220_v3, 0.0 }
 0x216   :  { %v2784_v21 = vmin.f32 %v2782_v52, %v12650_v34  ;;  %v2821_v1 = vmin.f32 %v2819_v24, %v12651_v46  ;;  %v2453_v7 = vpop.f32.mrf.mxu1  ;;  %v3136_v52 = vmul.f32 %v12652_v29, %v12652_v29  ;;  %v9272_v34 = vadd.f32 %v2515_v23, %v8958_v40  ;;  %v9288_v40 = vpop.xlane.xlu1 %2099 }
 0x217   :  { %v9275_v24 = vadd.f32 %v2516_v33, %v8960_v44  ;;  %v9281_v59 = vadd.f32 %v2525_v15, %v2340_v61  ;;  %v9283_v12 = vadd.f32 %v2526_v11, %v2453_v7  ;;  %6309 = vmatmul.msk.f32.gmra.mxu2 %vm225_vm0, %v3578_v18  ;;  %6342 = vmatmul.msk.f32.gmra.mxu3 %vm225_vm0, %v3578_v18  ;;  %v12655_v23 = vmax.f32 %v9043_v63, 0.0 }
 0x218   :  { %1273 = vmin.xlane.f32.xlu0 %v1272_v55  ;;  %v2781_v43 = vmin.f32 %v12653_v35, %v2784_v21  ;;  %v2818_v46 = vmin.f32 %v12654_v14, %v2821_v1  ;;  %v2518_v55 = vadd.f32 %v9010_v5, %v7423_v48  ;;  %v2643_v44 = vmax.f32 %v9272_v34, 0.0  ;;  %v9305_v1 = vpop.f32.mrf.mxu2 }
 0x219   :  { %v2644_v29 = vmax.f32 %v9275_v24, 0.0  ;;  %v9295_v21 = vadd.f32 %v9202_v53, %v8924_v38  ;;  %v9299_v11 = vadd.f32 %v9083_v49, %v8956_v13  ;;  %v12656_v33 = vmax.f32 %v9046_v27, 0.0  ;;  %v2097_v49 = vpop.xlane.xlu0 %2096  ;;  %v1390_v27 = vld [vmem:[#allocation3 + $0x20] sm:$0xff]  ;;  %v12660_v24 = vld [vmem:[#allocation14_spill] sm:$0xff] }
 0x21a   :  { %3148 = vadd.xlane.f32.xlu2 %v3147_v8  ;;  %v2783_v5 = vmin.f32 %v2781_v43, %v12655_v23  ;;  %v9307_v8 = vpop.f32.mrf.mxu3  ;;  %v9310_v18 = vadd.f32 %v2514_v9, %v8926_v56  ;;  %v1190_v38 = vmax.f32 %v9267_v32, 0.0  ;;  %v9315_v53 = vadd.f32 %v9193_v20, %v8989_v41  ;;  %v1226_v35 = vpop.xlane.xlu2 %1225  ;;  %v9326_v41 = vld [vmem:[%s12232_s1 + $0x220] sm:$0xff]  ;;  %v1394_v32 = vld [vmem:[#allocation3 + $0x40] sm:$0xff] }
 0x21b   :  { %v2820_v15 = vmin.f32 %v2818_v46, %v12656_v33  ;;  %v12353_v13 = vmax.f32 %v9281_v59, 0.0  ;;  %v12354_v63 = vmax.f32 %v9283_v12, 0.0  ;;  %v2527_v61 = vadd.f32 %v2097_v49, %v7421_v10 }
 0x21c   :  { %v2528_v7 = vadd.f32 %v2097_v49, %v7423_v48  ;;  %v3150_v56 = vsel %vm225_vm0, %v3136_v52, 0.0  ;;  %v2641_v9 = vmax.f32 %v9295_v21, 0.0  ;;  %v9329_v20 = vadd.f32 %v2518_v55, %v8991_v39  ;;  %v2343_v49 = vpop.f32.mrf.mxu0  ;;  %v2844_v21 = vld [vmem:[#allocation3 + $0x100] sm:$0xff] }
 0x21d   :  { %v2785_v43 = vmin.f32 %v2783_v5, %v12353_v13  ;;  %v2822_v14 = vmin.f32 %v2820_v15, %v12354_v63  ;;  %v2726_v52 = vmin.f32 %v2643_v44, %v2644_v29  ;;  %v1327_v46 = vmin.f32 %v1188_v42, %v8893_v57  ;;  %v1392_v57 = vld [vmem:[#allocation3 + $0x30] sm:$0xff] }
 0x21e   :  { %v1128_v23 = vadd.f32 %v9115_v4, %v8985_v26  ;;  %v1422_v39 = vmin.f32 %v1390_v27, %v1226_v35  ;;  %v2642_v55 = vmax.f32 %v9310_v18, 0.0  ;;  %v1364_v5 = vmin.f32 %v1189_v50, %v8897_v17  ;;  %v2456_v16 = vpop.f32.mrf.mxu1 }
 0x21f   :  { %v1129_v33 = vadd.f32 %v9119_v28, %v8987_v45  ;;  %v9352_v15 = vadd.f32 %v9107_v6, %v9028_v47  ;;  %v3579_v26 = vmul.f32 -2.0, %v9326_v41  ;;  %v1191_v4 = vmax.f32 %v9299_v11, 0.0 }
 0x220   :  { %3151 = vadd.xlane.f32.xlu0 %v3150_v56  ;;  %v9356_v42 = vadd.f32 %v2527_v61, %v2343_v49  ;;  %v9358_v27 = vadd.f32 %v2528_v7, %v2456_v16  ;;  %1454 = vst.msk [vmem:[#allocation3 + $0x20] sm:$0xff] %vm19_vm2, %v1422_v39  ;;  %v2723_v17 = vmin.f32 %v2641_v9, %v2642_v55  ;;  %v1232_v6 = vpop.xlane.xlu1 %1231  ;;  %v12358_v28 = vmax.f32 %v9315_v53, 0.0  ;;  %v9374_v35 = vpop.f32.mrf.mxu2  ;;  %v12658_v39 = vld [vmem:[#allocation20_spill] sm:$0xff] }
 0x221   :  { %v1328_v45 = vmin.f32 %v1190_v38, %v1327_v46  ;;  %v1131_v47 = vadd.f32 %v9111_v22, %v9030_v2  ;;  %v12357_v31 = vmax.f32 %v9329_v20, 0.0  ;;  %6310 = vmatmul.msk.f32.gmra.mxu2 %vm225_vm0, %v3579_v26  ;;  %v1192_v50 = vmax.f32 %v1128_v23, 0.0  ;;  %6343 = vmatmul.msk.f32.gmra.mxu3 %vm225_vm0, %v3579_v26  ;;  %v9382_v2 = vld [vmem:[%s12232_s1 + $0x228] sm:$0xff]  ;;  %v12657_v46 = vld [vmem:[#allocation19_spill] sm:$0xff]  ;;  %v12659_v49 = vld [vmem:[#allocation24_spill] sm:$0xff] }
 0x222   :  { %2727 = vmin.xlane.f32.xlu2 %v2726_v52  ;;  %v12355_v11 = vmax.f32 %v9356_v42, 0.0  ;;  %v12356_v61 = vmax.f32 %v9358_v27, 0.0  ;;  %v1424_v7 = vmin.f32 %v1392_v57, %v1232_v6  ;;  %v9376_v56 = vpop.f32.mrf.mxu3  ;;  %2724 = vmin.xlane.f32.xlu1 %v2723_v17  ;;  %v1193_v22 = vmax.f32 %v1129_v33, 0.0  ;;  %v9393_v57 = vpop.xlane.xlu0 %2105 }
 0x223   :  { %v1194_v52 = vmax.f32 %v9352_v15, 0.0  ;;  %v9387_v23 = vadd.f32 %v12657_v46, %v9072_v25  ;;  %v9391_v16 = vadd.f32 %v12659_v49, %v12658_v39  ;;  %v2529_v26 = vadd.f32 %v9288_v40, %v7421_v10  ;;  %v9404_v25 = vpop.xlane.xlu2 %2102 }
 0x224   :  { %v2530_v17 = vadd.f32 %v9288_v40, %v7423_v48  ;;  %v2786_v33 = vmin.f32 %v12355_v11, %v2785_v43  ;;  %v2823_v15 = vmin.f32 %v12356_v61, %v2822_v14  ;;  %1456 = vst.msk [vmem:[#allocation3 + $0x30] sm:$0xff] %vm19_vm2, %v1424_v7  ;;  %v1365_v6 = vmin.f32 %v1191_v4, %v1364_v5 }
 0x225   :  { %v1195_v46 = vmax.f32 %v1131_v47, 0.0  ;;  %v2729_v39 = vmin.f32 %v12358_v28, %v12357_v31  ;;  %v3580_v49 = vmul.f32 -2.0, %v9382_v2  ;;  %v1077_v40 = vadd.f32 %v12643_v0, %v7158_v37  ;;  %v2346_v47 = vpop.f32.mrf.mxu0 }
 0x226   :  { %v1329_v43 = vmin.f32 %v1192_v50, %v1328_v45  ;;  %v2788_v14 = vmin.f32 %v2786_v33, %v2643_v44  ;;  %v2825_v7 = vmin.f32 %v2823_v15, %v2644_v29  ;;  %v1366_v13 = vmin.f32 %v1193_v22, %v1365_v6  ;;  %v2459_v63 = vpop.f32.mrf.mxu1  ;;  %v12661_v29 = vld [vmem:[#allocation35_spill] sm:$0xff]  ;;  %v12662_v15 = vld [vmem:[#allocation45_spill] sm:$0xff]  ;;  %v12663_v6 = vld [vmem:[#allocation38_spill] sm:$0xff] }
 0x227   :  { %v12359_v5 = vmax.f32 %v9387_v23, 0.0  ;;  %v1278_v11 = vmin.f32 %v1192_v50, %v1193_v22  ;;  %v1275_v61 = vmin.f32 %v1190_v38, %v1191_v4  ;;  %v12362_v0 = vmax.f32 %v9391_v16, 0.0 }
 0x228   :  { %2730 = vmin.xlane.f32.xlu0 %v2729_v39  ;;  %v1330_v31 = vmin.f32 %v1194_v52, %v1329_v43  ;;  %v9421_v45 = vadd.f32 %v2529_v26, %v2346_v47  ;;  %v9423_v34 = vadd.f32 %v2530_v17, %v2459_v63  ;;  %v1367_v44 = vmin.f32 %v1195_v46, %v1366_v13  ;;  %v9433_v50 = vpop.xlane.xlu1 %2108  ;;  %v898_v4 = vpop.f32.mrf.mxu2  ;;  %v12664_v26 = vld [vmem:[#allocation40_spill] sm:$0xff]  ;;  %v12665_v43 = vld [vmem:[#allocation42_spill] sm:$0xff] }
 0x229   :  { %v9427_v33 = vadd.f32 %v12661_v29, %v12660_v24  ;;  %v9431_v28 = vadd.f32 %v12663_v6, %v12662_v15  ;;  %6311 = vmatmul.msk.f32.gmra.mxu2 %vm225_vm0, %v3580_v49  ;;  %v1281_v22 = vmin.f32 %v1194_v52, %v1195_v46  ;;  %v3138_v17 = vmul.f32 %v12664_v26, %v12664_v26 }
 0x22a   :  { %1279 = vmin.xlane.f32.xlu2 %v1278_v11  ;;  %v12360_v38 = vmax.f32 %v9421_v45, 0.0  ;;  %v12361_v63 = vmax.f32 %v9423_v34, 0.0  ;;  %v1011_v13 = vpop.f32.mrf.mxu3  ;;  %1276 = vmin.xlane.f32.xlu1 %v1275_v61  ;;  %v9444_v11 = vld [vmem:[%s12232_s1 + $0x230] sm:$0xff]  ;;  %v1331_v39 = vmin.f32 %v12359_v5, %v1330_v31  ;;  %v9450_v47 = vadd.f32 %v12665_v43, %v9229_v51  ;;  %v12666_v61 = vld [vmem:[#allocation41_spill] sm:$0xff]  ;;  %v1238_v46 = vpop.xlane.xlu0 %1237  ;;  %v12667_v43 = vld [vmem:[#allocation44_spill] sm:$0xff] }
 0x22b   :  { %6344 = vmatmul.msk.f32.gmra.mxu3 %vm225_vm0, %v3580_v49  ;;  %v9454_v52 = vadd.f32 %v12666_v61, %v9231_v36  ;;  %v6545_v49 = vld [vmem:[%s12231_s0 + $0x88] sm:$0xff]  ;;  %v1368_v29 = vmin.f32 %v12362_v0, %v1367_v44  ;;  %v1426_v15 = vmin.f32 %v1394_v32, %v1238_v46  ;;  %v9465_v6 = vpop.xlane.xlu2 %2111  ;;  %v12365_v36 = vmax.f32 %v9427_v33, 0.0  ;;  %v12668_v44 = vld [vmem:[#allocation43_spill] sm:$0xff] }
 0x22c   :  { %v3134_v24 = vmul.f32 %v6545_v49, %v6545_v49  ;;  %v2790_v31 = vmin.f32 %v2788_v14, %v12360_v38  ;;  %v2827_v51 = vmin.f32 %v2825_v7, %v12361_v63  ;;  %v12366_v26 = vmax.f32 %v9431_v28, 0.0 }
 0x22d   :  { %v9471_v61 = vadd.f32 %v12667_v43, %v9305_v1  ;;  %v3581_v49 = vmul.f32 -2.0, %v9444_v11  ;;  %v9476_v5 = vadd.f32 %v12668_v44, %v9307_v8  ;;  %1458 = vst.msk [vmem:[#allocation3 + $0x40] sm:$0xff] %vm19_vm2, %v1426_v15  ;;  %v3156_v32 = vsel %vm225_vm0, %v3138_v17, 0.0  ;;  %v12669_v43 = vld [vmem:[#allocation17_spill] sm:$0xff]  ;;  %v9490_v8 = vpop.f32.mrf.mxu0 }
 0x22e   :  { %v2787_v14 = vmin.f32 %v2641_v9, %v2790_v31  ;;  %v2824_v7 = vmin.f32 %v2642_v55, %v2827_v51  ;;  %v12363_v46 = vmax.f32 %v9450_v47, 0.0  ;;  %v12364_v1 = vmax.f32 %v9454_v52, 0.0  ;;  %v9492_v44 = vpop.f32.mrf.mxu1 }
 0x22f   :  { %v9488_v38 = vadd.f32 %v12669_v43, %v9374_v35  ;;  %v3144_v18 = vsel %vm225_vm0, %v3134_v24, 0.0  ;;  %v9496_v9 = vadd.f32 %v1077_v40, %v9376_v56  ;;  %v12670_v55 = vmax.f32 %v9315_v53, 0.0  ;;  %v12672_v35 = vld [vmem:[#allocation36_spill] sm:$0xff]  ;;  %v12673_v43 = vld [vmem:[#allocation31_spill] sm:$0xff] }
 0x230   :  { %1282 = vmin.xlane.f32.xlu0 %v1281_v22  ;;  %v12671_v31 = vmax.f32 %v9329_v20, 0.0  ;;  %v3139_v15 = vmul.f32 %v12672_v35, %v12672_v35  ;;  %v1081_v63 = vadd.f32 %v12673_v43, %v7158_v37  ;;  %v1332_v22 = vmin.f32 %v12365_v36, %v1331_v39  ;;  %v2671_v40 = vpop.xlane.xlu1 %2670  ;;  %v12674_v24 = vld [vmem:[#allocation15_spill] sm:$0xff]  ;;  %v901_v35 = vpop.f32.mrf.mxu2  ;;  %v1393_v43 = vld [vmem:[#allocation3 + $0x38] sm:$0xff] }
 0x231   :  { %v9500_v17 = vmin.f32 %v2787_v14, %v12670_v55  ;;  %v1369_v56 = vmin.f32 %v12366_v26, %v1368_v29  ;;  %v12367_v53 = vmax.f32 %v9471_v61, 0.0  ;;  %6312 = vmatmul.msk.f32.gmra.mxu2 %vm225_vm0, %v3581_v49  ;;  %v12368_v20 = vmax.f32 %v9476_v5, 0.0  ;;  %v6280_v29 = vld [vmem:[%s12232_s1 + $0x238] sm:$0xff] }
 0x232   :  { %v9504_v51 = vmin.f32 %v2824_v7, %v12671_v31  ;;  %3157 = vadd.xlane.f32.xlu2 %v3156_v32  ;;  %v9518_v14 = vadd.f32 %v12674_v24, %v898_v4  ;;  %v12675_v7 = vld [vmem:[#allocation18_spill] sm:$0xff]  ;;  %v2876_v31 = vmin.f32 %v2844_v21, %v2671_v40  ;;  %v1014_v39 = vpop.f32.mrf.mxu3  ;;  %3145 = vadd.xlane.f32.xlu1 %v3144_v18  ;;  %v9532_v24 = vpop.xlane.xlu0 %2114  ;;  %v1205_v21 = vmax.f32 %v9496_v9, 0.0  ;;  %v12676_v18 = vld [vmem:[#allocation39_spill] sm:$0xff] }
 0x233   :  { %v9521_v55 = vadd.f32 %v12675_v7, %v1011_v13  ;;  %6345 = vmatmul.msk.f32.gmra.mxu3 %vm225_vm0, %v3581_v49  ;;  %v1333_v32 = vmin.f32 %v12363_v46, %v1332_v22  ;;  %v1370_v4 = vmin.f32 %v12364_v1, %v1369_v56  ;;  %v1204_v13 = vmax.f32 %v9488_v38, 0.0  ;;  %v1235_v7 = vpop.xlane.xlu2 %1234 }
 0x234   :  { %2908 = vst.msk [vmem:[#allocation3 + $0x100] sm:$0xff] %vm19_vm2, %v2876_v31  ;;  %v9537_v49 = vadd.f32 %v12676_v18, %v901_v35  ;;  %v9539_v40 = vadd.f32 %v1081_v63, %v1014_v39  ;;  %v3159_v0 = vsel %vm225_vm0, %v3139_v15, 0.0  ;;  %v1425_v56 = vmin.f32 %v1393_v43, %v1235_v7  ;;  %v12682_v7 = vld [vmem:[#allocation34_spill] sm:$0xff] }
 0x235   :  { %v1334_v22 = vmin.f32 %v12367_v53, %v1333_v32  ;;  %v12677_v46 = vmax.f32 %v9197_v54, 0.0  ;;  %v12678_v1 = vmax.f32 %v9195_v30, 0.0  ;;  %v3582_v26 = vmul.f32 -2.0, %v6280_v29  ;;  %v2352_v39 = vpop.f32.mrf.mxu0  ;;  %v1395_v32 = vld [vmem:[#allocation3 + $0x48] sm:$0xff] }
 0x236   :  { %v1371_v31 = vmin.f32 %v12368_v20, %v1370_v4  ;;  %v12369_v35 = vmax.f32 %v9518_v14, 0.0  ;;  %v12374_v63 = vmax.f32 %v9521_v55, 0.0  ;;  %v2465_v18 = vpop.f32.mrf.mxu1  ;;  %1457 = vst.msk [vmem:[#allocation3 + $0x38] sm:$0xff] %vm19_vm2, %v1425_v56  ;;  %v12370_v54 = vmax.f32 %v9537_v49, 0.0  ;;  %v12681_v4 = vld [vmem:[#allocation11_spill] sm:$0xff] }
 0x237   :  { %v2735_v36 = vmin.f32 %v12678_v1, %v12677_v46  ;;  %v1335_v15 = vmin.f32 %v1204_v13, %v1334_v22  ;;  %v12373_v46 = vmax.f32 %v9539_v40, 0.0  ;;  %v12679_v1 = vmax.f32 %v9220_v3, 0.0 }
 0x238   :  { %3160 = vadd.xlane.f32.xlu0 %v3159_v0  ;;  %v1372_v30 = vmin.f32 %v1205_v21, %v1371_v31  ;;  %v12680_v43 = vmax.f32 %v9205_v19, 0.0  ;;  %v1082_v22 = vadd.f32 %v12682_v7, %v12681_v4  ;;  %v1083_v53 = vadd.f32 %v12682_v7, %v7158_v37  ;;  %v1241_v56 = vpop.xlane.xlu1 %1240  ;;  %v2846_v0 = vld [vmem:[#allocation3 + $0x110] sm:$0xff]  ;;  %v904_v19 = vpop.f32.mrf.mxu2  ;;  %v9576_v37 = vld [vmem:[%s12232_s1 + $0x240] sm:$0xff] }
 0x239   :  { %6313 = vmatmul.msk.f32.gmra.mxu2 %vm225_vm0, %v3582_v26  ;;  %v1336_v31 = vmin.f32 %v12369_v35, %v1335_v15  ;;  %v1427_v20 = vmin.f32 %v1395_v32, %v1241_v56  ;;  %v12683_v32 = vmax.f32 %v9215_v60, 0.0  ;;  %v12684_v7 = vmax.f32 %v9213_v62, 0.0 }
 0x23a   :  { %v2732_v29 = vmin.f32 %v12680_v43, %v12679_v1  ;;  %2736 = vmin.xlane.f32.xlu2 %v2735_v36  ;;  %v1373_v3 = vmin.f32 %v12374_v63, %v1372_v30  ;;  %v1017_v1 = vpop.f32.mrf.mxu3  ;;  %v2845_v43 = vld [vmem:[#allocation3 + $0x108] sm:$0xff]  ;;  %v2531_v36 = vadd.f32 %v9404_v25, %v7421_v10  ;;  %v9580_v4 = vadd.f32 %v1082_v22, %v904_v19  ;;  %v2677_v30 = vpop.xlane.xlu0 %2676 }
 0x23b   :  { %6346 = vmatmul.msk.f32.gmra.mxu3 %vm225_vm0, %v3582_v26  ;;  %v9582_v15 = vadd.f32 %v1083_v53, %v1017_v1  ;;  %v2532_v26 = vadd.f32 %v9404_v25, %v7423_v48  ;;  %v1337_v56 = vmin.f32 %v12370_v54, %v1336_v31  ;;  %1459 = vst.msk [vmem:[#allocation3 + $0x48] sm:$0xff] %vm19_vm2, %v1427_v20  ;;  %v2674_v53 = vpop.xlane.xlu2 %2673  ;;  %v3583_v62 = vmul.f32 -2.0, %v9576_v37  ;;  %v2847_v54 = vld [vmem:[#allocation3 + $0x118] sm:$0xff] }
 0x23c   :  { %2733 = vmin.xlane.f32.xlu1 %v2732_v29  ;;  %v2738_v29 = vmin.f32 %v12684_v7, %v12683_v32  ;;  %v1374_v35 = vmin.f32 %v12373_v46, %v1373_v3  ;;  %v2878_v22 = vmin.f32 %v2846_v0, %v2677_v30  ;;  %v12371_v19 = vmax.f32 %v9580_v4, 0.0 }
 0x23d   :  { %v12372_v60 = vmax.f32 %v9582_v15, 0.0  ;;  %v2877_v1 = vmin.f32 %v2845_v43, %v2674_v53  ;;  %v2533_v25 = vadd.f32 %v9393_v57, %v7421_v10  ;;  %v2534_v31 = vadd.f32 %v9393_v57, %v7423_v48  ;;  %v2355_v7 = vpop.f32.mrf.mxu0 }
 0x23e   :  { %2910 = vst.msk [vmem:[#allocation3 + $0x110] sm:$0xff] %vm19_vm2, %v2878_v22  ;;  %v12685_v3 = vmax.f32 %v9431_v28, 0.0  ;;  %v12686_v20 = vmax.f32 %v9427_v33, 0.0  ;;  %v9608_v30 = vadd.f32 %v2531_v36, %v9490_v8  ;;  %v1338_v43 = vmin.f32 %v12371_v19, %v1337_v56  ;;  %v2468_v53 = vpop.f32.mrf.mxu1 }
 0x23f   :  { %v1375_v32 = vmin.f32 %v12372_v60, %v1374_v35  ;;  %2909 = vst.msk [vmem:[#allocation3 + $0x108] sm:$0xff] %vm19_vm2, %v2877_v1  ;;  %v9616_v28 = vadd.f32 %v2532_v26, %v9492_v44  ;;  %v12687_v57 = vmax.f32 %v9391_v16, 0.0  ;;  %v12688_v33 = vmax.f32 %v9387_v23, 0.0  ;;  %v12689_v35 = vld [vmem:[#allocation37_spill] sm:$0xff] }
 0x240   :  { %v1287_v0 = vmin.f32 %v12686_v20, %v12685_v3  ;;  %2739 = vmin.xlane.f32.xlu0 %v2738_v29  ;;  %v1339_v36 = vrot.slane %v1338_v43, 4  ;;  %v2680_v56 = vpop.xlane.xlu1 %2679  ;;  %v1397_v3 = vld [vmem:[#allocation3 + $0x58] sm:$0xff]  ;;  %v3447_v20 = vmul.f32 %v12689_v35, %v12689_v35  ;;  %v9625_v1 = vadd.f32 %v2533_v25, %v2352_v39  ;;  %v2848_v26 = vld [vmem:[#allocation3 + $0x120] sm:$0xff]  ;;  %v9630_v23 = vpop.f32.mrf.mxu2 }
 0x241   :  { %v1284_v8 = vmin.f32 %v12688_v33, %v12687_v57  ;;  %v1376_v22 = vrot.slane %v1375_v32, 4  ;;  %6314 = vmatmul.msk.f32.gmra.mxu2 %vm225_vm0, %v3583_v62  ;;  %v9627_v29 = vadd.f32 %v2534_v31, %v2465_v18  ;;  %v2879_v44 = vmin.f32 %v2847_v54, %v2680_v56  ;;  %v6546_v57 = vld [vmem:[%s12231_s0 + $0xa0] sm:$0xff] }
 0x242   :  { %1288 = vmin.xlane.f32.xlu2 %v1287_v0  ;;  %v9632_v16 = vpop.f32.mrf.mxu3  ;;  %v9637_v0 = vld [vmem:[%s12232_s1 + $0x248] sm:$0xff]  ;;  %v2535_v39 = vadd.f32 %v9433_v50, %v7421_v10  ;;  %v12377_v18 = vmax.f32 %v9608_v30, 0.0  ;;  %v1247_v25 = vpop.xlane.xlu0 %1246  ;;  %v12690_v54 = vmax.f32 %v9454_v52, 0.0  ;;  %v12691_v31 = vmax.f32 %v9450_v47, 0.0 }
 0x243   :  { %6347 = vmatmul.msk.f32.gmra.mxu3 %vm225_vm0, %v3583_v62  ;;  %v3137_v33 = vmul.f32 %v6546_v57, %v6546_v57  ;;  %v12378_v56 = vmax.f32 %v9616_v28, 0.0  ;;  %v2537_v35 = vadd.f32 %v9465_v6, %v7421_v10  ;;  %2911 = vst.msk [vmem:[#allocation3 + $0x118] sm:$0xff] %vm19_vm2, %v2879_v44  ;;  %v1429_v19 = vmin.f32 %v1397_v3, %v1247_v25  ;;  %v2683_v52 = vpop.xlane.xlu2 %2682  ;;  %v2850_v44 = vld [vmem:[#allocation3 + $0x130] sm:$0xff] }
 0x244   :  { %1285 = vmin.xlane.f32.xlu1 %v1284_v8  ;;  %v1290_v62 = vmin.f32 %v12691_v31, %v12690_v54  ;;  %v2536_v8 = vadd.f32 %v9433_v50, %v7423_v48  ;;  %v1340_v60 = vmin.f32 %v1338_v43, %v1339_v36  ;;  %v1377_v47 = vmin.f32 %v1375_v32, %v1376_v22 }
 0x245   :  { %v2880_v54 = vmin.f32 %v2848_v26, %v2683_v52  ;;  %v3584_v31 = vmul.f32 -2.0, %v9637_v0  ;;  %v2538_v57 = vadd.f32 %v9465_v6, %v7423_v48  ;;  %v12375_v46 = vmax.f32 %v9625_v1, 0.0  ;;  %1461 = vst.msk [vmem:[#allocation3 + $0x58] sm:$0xff] %vm19_vm2, %v1429_v19  ;;  %v2358_v36 = vpop.f32.mrf.mxu0 }
 0x246   :  { %v12376_v50 = vmax.f32 %v9627_v29, 0.0  ;;  %v3479_v63 = vsel %vm225_vm0, %v3447_v20, 0.0  ;;  %v2791_v3 = vmin.f32 %v9500_v17, %v12377_v18  ;;  %v9665_v43 = vadd.f32 %v2535_v39, %v2355_v7  ;;  %v2471_v22 = vpop.f32.mrf.mxu1  ;;  %v12692_v7 = vld [vmem:[#allocation21_spill] sm:$0xff] }
 0x247   :  { %v9667_v32 = vadd.f32 %v2536_v8, %v2468_v53  ;;  %2912 = vst.msk [vmem:[#allocation3 + $0x120] sm:$0xff] %vm19_vm2, %v2880_v54  ;;  %v3153_v6 = vsel %vm225_vm0, %v3137_v33, 0.0  ;;  %v2828_v19 = vmin.f32 %v9504_v51, %v12378_v56  ;;  %v2539_v20 = vadd.f32 %v9532_v24, %v7421_v10  ;;  %v9688_v51 = vld [vmem:[%s12232_s1 + $0x250] sm:$0xff] }
 0x248   :  { %1291 = vmin.xlane.f32.xlu0 %v1290_v62  ;;  %v2540_v17 = vadd.f32 %v9532_v24, %v7423_v48  ;;  %v3448_v53 = vmul.f32 %v12692_v7, %v12692_v7  ;;  %v9680_v26 = vadd.f32 %v2537_v35, %v2358_v36  ;;  %v9682_v39 = vadd.f32 %v2538_v57, %v2471_v22  ;;  %v2689_v25 = vpop.xlane.xlu1 %2688  ;;  %v2849_v62 = vld [vmem:[#allocation3 + $0x128] sm:$0xff]  ;;  %v1396_v35 = vld [vmem:[#allocation3 + $0x50] sm:$0xff] }
 0x249   :  { %6315 = vmatmul.msk.f32.gmra.mxu2 %vm225_vm0, %v3584_v31  ;;  %v1341_v10 = vrot.slane %v1340_v60, 2  ;;  %v1378_v33 = vrot.slane %v1377_v47, 2  ;;  %v2792_v48 = vmin.f32 %v12375_v46, %v2791_v3  ;;  %v2829_v24 = vmin.f32 %v12376_v50, %v2828_v19 }
 0x24a   :  { %3480 = vadd.xlane.f32.xlu2 %v3479_v63  ;;  %v2882_v8 = vmin.f32 %v2850_v44, %v2689_v25  ;;  %v9695_v63 = vpop.f32.mrf.mxu2  ;;  %v9697_v52 = vpop.f32.mrf.mxu3  ;;  %v2663_v54 = vmax.f32 %v9665_v43, 0.0  ;;  %v2664_v57 = vmax.f32 %v9667_v32, 0.0  ;;  %v3482_v44 = vsel %vm225_vm0, %v3448_v53, 0.0  ;;  %v6372_v32 = vld [vmem:[%s12231_s0 + $0xc0] sm:$0xff] }
 0x24b   :  { %6348 = vmatmul.msk.f32.gmra.mxu3 %vm225_vm0, %v3584_v31  ;;  %v2686_v36 = vpop.xlane.xlu0 %2685  ;;  %v1342_v22 = vmin.f32 %v1340_v60, %v1341_v10  ;;  %v1379_v7 = vmin.f32 %v1377_v47, %v1378_v33  ;;  %v1244_v19 = vpop.xlane.xlu2 %1243  ;;  %v12694_v31 = vmax.f32 %v9356_v42, 0.0  ;;  %v3585_v46 = vmul.f32 -2.0, %v9688_v51  ;;  %v1398_v10 = vld [vmem:[#allocation3 + $0x60] sm:$0xff] }
 0x24c   :  { %3154 = vadd.xlane.f32.xlu1 %v3153_v6  ;;  %2914 = vst.msk [vmem:[#allocation3 + $0x130] sm:$0xff] %vm19_vm2, %v2882_v8  ;;  %v2881_v3 = vmin.f32 %v2849_v62, %v2686_v36  ;;  %v12693_v6 = vmax.f32 %v9358_v27, 0.0  ;;  %v2665_v50 = vmax.f32 %v9680_v26, 0.0  ;;  %v2666_v18 = vmax.f32 %v9682_v39, 0.0 }
 0x24d   :  { %v1428_v56 = vmin.f32 %v1396_v35, %v1244_v19  ;;  %v1343_v60 = vrot.slane %v1342_v22, 1  ;;  %v1380_v47 = vrot.slane %v1379_v7, 1  ;;  %v2793_v62 = vmin.f32 %v2663_v54, %v2792_v48  ;;  %v2361_v53 = vpop.f32.mrf.mxu0 }
 0x24e   :  { %v2744_v25 = vmin.f32 %v12694_v31, %v12693_v6  ;;  %2913 = vst.msk [vmem:[#allocation3 + $0x128] sm:$0xff] %vm19_vm2, %v2881_v3  ;;  %v2830_v27 = vmin.f32 %v2664_v57, %v2829_v24  ;;  %v2474_v42 = vpop.f32.mrf.mxu1  ;;  %v9716_v33 = vadd.f32 %v2539_v20, %v2361_v53  ;;  %v12695_v35 = vmax.f32 %v9283_v12, 0.0  ;;  %v2852_v6 = vld [vmem:[#allocation3 + $0x140] sm:$0xff] }
 0x24f   :  { %1460 = vst.msk [vmem:[#allocation3 + $0x50] sm:$0xff] %vm19_vm2, %v1428_v56  ;;  %v9718_v8 = vadd.f32 %v2540_v17, %v2474_v42  ;;  %v12696_v36 = vmax.f32 %v9281_v59, 0.0  ;;  %v2794_v48 = vmin.f32 %v2665_v50, %v2793_v62  ;;  %v1344_v56 = vmin.f32 %v1342_v22, %v1343_v60 }
 0x250   :  { %3483 = vadd.xlane.f32.xlu0 %v3482_v44  ;;  %v2831_v24 = vmin.f32 %v2666_v18, %v2830_v27  ;;  %v1250_v19 = vpop.xlane.xlu1 %1249  ;;  %v2667_v20 = vmax.f32 %v9716_v33, 0.0  ;;  %v2851_v44 = vld [vmem:[#allocation3 + $0x138] sm:$0xff]  ;;  %v1381_v62 = vmin.f32 %v1379_v7, %v1380_v47  ;;  %v3450_v9 = vmul.f32 %v9242_v58, %v9242_v58 }
 0x251   :  { %v2741_v3 = vmin.f32 %v12696_v36, %v12695_v35  ;;  %6316 = vmatmul.msk.f32.gmra.mxu2 %vm225_vm0, %v3585_v46  ;;  %v2668_v17 = vmax.f32 %v9718_v8, 0.0  ;;  %v1430_v12 = vmin.f32 %v1398_v10, %v1250_v19  ;;  %v12697_v10 = vmax.f32 %v9423_v34, 0.0 }
 0x252   :  { %2745 = vmin.xlane.f32.xlu2 %v2744_v25  ;;  %v9732_v59 = vpop.f32.mrf.mxu2  ;;  %v9734_v31 = vpop.f32.mrf.mxu3  ;;  %v9739_v25 = vld [vmem:[%s12232_s1 + $0x258] sm:$0xff]  ;;  %v2795_v60 = vmin.f32 %v2667_v20, %v2794_v48  ;;  %v12698_v35 = vmax.f32 %v9421_v45, 0.0  ;;  %v9751_v7 = vadd.f32 %v1381_v62, %v1344_v56  ;;  %v2853_v48 = vld [vmem:[#allocation3 + $0x148] sm:$0xff]  ;;  %v1296_v34 = vmin.f32 %v1204_v13, %v1205_v21 }
 0x253   :  { %6349 = vmatmul.msk.f32.gmra.mxu3 %vm225_vm0, %v3585_v46  ;;  %v2695_v22 = vpop.xlane.xlu0 %2694  ;;  %v2832_v27 = vmin.f32 %v2668_v17, %v2831_v24  ;;  %1462 = vst.msk [vmem:[#allocation3 + $0x60] sm:$0xff] %vm19_vm2, %v1430_v12  ;;  %v2692_v53 = vpop.xlane.xlu2 %2691  ;;  %v12700_v56 = vmax.f32 %v9471_v61, 0.0  ;;  %v1400_v62 = vld [vmem:[#allocation3 + $0x70] sm:$0xff] }
 0x254   :  { %2742 = vmin.xlane.f32.xlu1 %v2741_v3  ;;  %v2884_v46 = vmin.f32 %v2852_v6, %v2695_v22  ;;  %v2883_v42 = vmin.f32 %v2851_v44, %v2692_v53  ;;  %v2747_v36 = vmin.f32 %v12698_v35, %v12697_v10  ;;  %v3586_v3 = vmul.f32 -2.0, %v9739_v25  ;;  %v6547_v21 = vld [vmem:[%s12231_s0 + $0xb8] sm:$0xff] }
 0x255   :  { %v2796_v47 = vrot.slane %v2795_v60, 4  ;;  %v2833_v19 = vrot.slane %v2832_v27, 4  ;;  %v12699_v6 = vmax.f32 %v9476_v5, 0.0  ;;  %v9774_v5 = vld [vmem:[%s12232_s1 + $0x260] sm:$0xff]  ;;  %v12701_v10 = vmax.f32 %v9521_v55, 0.0 }
 0x256   :  { %2916 = vst.msk [vmem:[#allocation3 + $0x140] sm:$0xff] %vm19_vm2, %v2884_v46  ;;  %v2854_v46 = vld [vmem:[#allocation3 + $0x150] sm:$0xff]  ;;  %v12702_v35 = vmax.f32 %v9518_v14, 0.0  ;;  %v3451_v14 = vmul.f32 %v9326_v41, %v9326_v41 }
 0x257   :  { %2915 = vst.msk [vmem:[#allocation3 + $0x138] sm:$0xff] %vm19_vm2, %v2883_v42  ;;  %v2797_v24 = vmin.f32 %v2795_v60, %v2796_v47  ;;  %v2834_v45 = vmin.f32 %v2832_v27, %v2833_v19  ;;  %v1293_v12 = vmin.f32 %v12700_v56, %v12699_v6  ;;  %v3140_v60 = vmul.f32 %v6547_v21, %v6547_v21  ;;  %v1401_v6 = vld [vmem:[#allocation3 + $0x78] sm:$0xff] }
 0x258   :  { %2748 = vmin.xlane.f32.xlu0 %v2747_v36  ;;  %v2698_v44 = vpop.xlane.xlu1 %2697  ;;  %v1299_v36 = vmin.f32 %v12702_v35, %v12701_v10  ;;  %v3587_v47 = vmul.f32 -2.0, %v9774_v5 }
 0x259   :  { %6317 = vmatmul.msk.f32.gmra.mxu2 %vm225_vm0, %v3586_v3  ;;  %v2885_v22 = vmin.f32 %v2853_v48, %v2698_v44  ;;  %v2798_v27 = vrot.slane %v2797_v24, 2  ;;  %v2835_v53 = vrot.slane %v2834_v45, 2  ;;  %v3162_v56 = vsel %vm225_vm0, %v3140_v60, 0.0  ;;  %v12703_v44 = vld [vmem:[#allocation8_spill] sm:$0xff]  ;;  %v1399_v60 = vld [vmem:[#allocation3 + $0x68] sm:$0xff] }
 0x25a   :  { %1297 = vmin.xlane.f32.xlu2 %v1296_v34  ;;  %v9767_v38 = vpop.f32.mrf.mxu2  ;;  %v9769_v13 = vpop.f32.mrf.mxu3  ;;  %v3488_v34 = vsel %vm225_vm0, %v3450_v9, 0.0 }
 0x25b   :  { %6350 = vmatmul.msk.f32.gmra.mxu3 %vm225_vm0, %v3586_v3  ;;  %v1256_v61 = vpop.xlane.xlu0 %1255  ;;  %2917 = vst.msk [vmem:[#allocation3 + $0x148] sm:$0xff] %vm19_vm2, %v2885_v22  ;;  %v2701_v42 = vpop.xlane.xlu2 %2700  ;;  %v2799_v19 = vmin.f32 %v2797_v24, %v2798_v27  ;;  %v2836_v48 = vmin.f32 %v2834_v45, %v2835_v53  ;;  %v12704_v24 = vld [vmem:[#allocation9_spill] sm:$0xff]  ;;  %v3453_v27 = vmul.f32 %v9444_v11, %v9444_v11 }
 0x25c   :  { %1294 = vmin.xlane.f32.xlu1 %v1293_v12  ;;  %v1432_v58 = vmin.f32 %v1400_v62, %v1256_v61  ;;  %v2886_v3 = vmin.f32 %v2854_v46, %v2701_v42  ;;  %v3110_v62 = vsel %vm194_vm1, %v12703_v44, 0.0  ;;  %v3117_v45 = vsel %vm194_vm1, %v12704_v24, 0.0  ;;  %v2855_v46 = vld [vmem:[#allocation3 + $0x158] sm:$0xff]  ;;  %v2858_v24 = vld [vmem:[#allocation3 + $0x170] sm:$0xff] }
 0x25d   :  { %v2800_v12 = vrot.slane %v2799_v19, 1  ;;  %v2837_v55 = vrot.slane %v2836_v48, 1  ;;  %v3111_v35 = vrot.slane %v3110_v62, 4 }
 0x25e   :  { %1464 = vst.msk [vmem:[#allocation3 + $0x70] sm:$0xff] %vm19_vm2, %v1432_v58  ;;  %v9806_v58 = vld [vmem:[%s12232_s1 + $0x268] sm:$0xff] }
 0x25f   :  { %2918 = vst.msk [vmem:[#allocation3 + $0x150] sm:$0xff] %vm19_vm2, %v2886_v3  ;;  %v2801_v9 = vmin.f32 %v2799_v19, %v2800_v12  ;;  %v2838_v61 = vmin.f32 %v2836_v48, %v2837_v55  ;;  %v3588_v48 = vmul.f32 -2.0, %v9806_v58  ;;  %v12705_v12 = vmax.f32 %v9616_v28, 0.0  ;;  %v9831_v28 = vld [vmem:[%s12232_s1 + $0x270] sm:$0xff] }
 0x260   :  { %1300 = vmin.xlane.f32.xlu0 %v1299_v36  ;;  %v1259_v22 = vpop.xlane.xlu1 %1258  ;;  %v3118_v36 = vrot.slane %v3117_v45, 4  ;;  %v12706_v55 = vmax.f32 %v9608_v30, 0.0 }
 0x261   :  { %6318 = vmatmul.msk.f32.gmra.mxu2 %vm225_vm0, %v3587_v47  ;;  %v1433_v21 = vmin.f32 %v1401_v6, %v1259_v22  ;;  %v9808_v10 = vadd.f32 %v2838_v61, %v2801_v9  ;;  %v3112_v6 = vadd.f32 %v3111_v35, %v3110_v62  ;;  %v2857_v22 = vld [vmem:[#allocation3 + $0x168] sm:$0xff]  ;;  %v12707_v35 = vmax.f32 %v9627_v29, 0.0 }
 0x262   :  { %3489 = vadd.xlane.f32.xlu2 %v3488_v34  ;;  %v9799_v41 = vpop.f32.mrf.mxu2  ;;  %v9801_v53 = vpop.f32.mrf.mxu3  ;;  %v3497_v34 = vsel %vm225_vm0, %v3453_v27, 0.0  ;;  %v2750_v44 = vmin.f32 %v12706_v55, %v12705_v12  ;;  %v2756_v27 = vmin.f32 %v2663_v54, %v2664_v57  ;;  %v12709_v54 = vmax.f32 %v9539_v40, 0.0 }
 0x263   :  { %6351 = vmatmul.msk.f32.gmra.mxu3 %vm225_vm0, %v3587_v47  ;;  %v2704_v42 = vpop.xlane.xlu0 %2703  ;;  %1465 = vst.msk [vmem:[#allocation3 + $0x78] sm:$0xff] %vm19_vm2, %v1433_v21  ;;  %v1253_v11 = vpop.xlane.xlu2 %1252  ;;  %v3491_v47 = vsel %vm225_vm0, %v3451_v14, 0.0  ;;  %v3113_v62 = vrot.slane %v3112_v6, 2  ;;  %v12710_v57 = vmax.f32 %v9537_v49, 0.0  ;;  %v9860_v49 = vld [vmem:[%s12232_s1 + $0x278] sm:$0xff] }
 0x264   :  { %3163 = vadd.xlane.f32.xlu1 %v3162_v56  ;;  %v2887_v3 = vmin.f32 %v2855_v46, %v2704_v42  ;;  %v1431_v19 = vmin.f32 %v1399_v60, %v1253_v11  ;;  %v3119_v56 = vadd.f32 %v3118_v36, %v3117_v45  ;;  %v3589_v42 = vmul.f32 -2.0, %v9831_v28  ;;  %v2856_v11 = vld [vmem:[#allocation3 + $0x160] sm:$0xff] }
 0x265   :  { %v12708_v36 = vmax.f32 %v9625_v1, 0.0  ;;  %v1402_v1 = vld [vmem:[#allocation3 + $0x80] sm:$0xff] }
 0x266   :  { %2919 = vst.msk [vmem:[#allocation3 + $0x158] sm:$0xff] %vm19_vm2, %v2887_v3  ;;  %v3120_v45 = vrot.slane %v3119_v56, 2 }
 0x267   :  { %1463 = vst.msk [vmem:[#allocation3 + $0x68] sm:$0xff] %vm19_vm2, %v1431_v19  ;;  %v2753_v3 = vmin.f32 %v12708_v36, %v12707_v35  ;;  %v1302_v19 = vmin.f32 %v12710_v57, %v12709_v54  ;;  %v2859_v35 = vld [vmem:[#allocation3 + $0x178] sm:$0xff]  ;;  %v6373_v36 = vld [vmem:[%s12231_s0 + $0xc8] sm:$0xff] }
 0x268   :  { %3492 = vadd.xlane.f32.xlu0 %v3491_v47  ;;  %v9820_v14 = vpop.xlane.xlu1 %1515  ;;  %v3114_v47 = vadd.f32 %v3113_v62, %v3112_v6  ;;  %v3121_v43 = vadd.f32 %v3120_v45, %v3119_v56  ;;  %v6548_v56 = vld [vmem:[%s12232_s1 + $0x210] sm:$0xff] }
 0x269   :  { %6319 = vmatmul.msk.f32.gmra.mxu2 %vm225_vm0, %v3588_v48 }
 0x26a   :  { %3498 = vadd.xlane.f32.xlu2 %v3497_v34  ;;  %v9824_v46 = vpop.f32.mrf.mxu2  ;;  %v9826_v9 = vpop.f32.mrf.mxu3  ;;  %v1403_v34 = vld [vmem:[#allocation3 + $0x88] sm:$0xff] }
 0x26b   :  { %6352 = vmatmul.msk.f32.gmra.mxu3 %vm225_vm0, %v3588_v48  ;;  %v2713_v30 = vpop.xlane.xlu0 %2712  ;;  %v2710_v21 = vpop.xlane.xlu2 %2709  ;;  %v4624_v48 = vmul.f32 -2.0, %v6372_v32  ;;  %v4625_v32 = vmul.f32 -2.0, %v6373_v36 }
 0x26c   :  { %2751 = vmin.xlane.f32.xlu1 %v2750_v44  ;;  %v2890_v61 = vmin.f32 %v2858_v24, %v2713_v30  ;;  %v2889_v60 = vmin.f32 %v2857_v22, %v2710_v21  ;;  %v3449_v44 = vmul.f32 %v6548_v56, %v6548_v56  ;;  %v3115_v24 = vrot.slane %v3114_v47, 1 }
 0x26d   :  { %6381 = vmatmul.msk.f32.vlgmr.msra.gmra.mxu0 %vm225_vm0, %v4624_v48  ;;  %6390 = vmatmul.msk.f32.vlgmr.msra.gmra.mxu1 %vm225_vm0, %v4624_v48  ;;  %v3122_v22 = vrot.slane %v3121_v43, 1  ;;  %v12711_v21 = vmax.f32 %v9582_v15, 0.0  ;;  %v2860_v15 = vld [vmem:[#allocation3 + $0x180] sm:$0xff] }
 0x26e   :  { %2922 = vst.msk [vmem:[#allocation3 + $0x170] sm:$0xff] %vm19_vm2, %v2890_v61  ;;  %v3590_v61 = vmul.f32 -2.0, %v9860_v49 }
 0x26f   :  { %2921 = vst.msk [vmem:[#allocation3 + $0x168] sm:$0xff] %vm19_vm2, %v2889_v60  ;;  %v12712_v60 = vmax.f32 %v9580_v4, 0.0 }
 0x270   :  { %2757 = vmin.xlane.f32.xlu0 %v2756_v27  ;;  %v2707_v12 = vpop.xlane.xlu1 %2706 }
 0x271   :  { %6320 = vmatmul.msk.f32.gmra.mxu2 %vm225_vm0, %v3589_v42  ;;  %v2888_v29 = vmin.f32 %v2856_v11, %v2707_v12  ;;  %v1305_v27 = vmin.f32 %v12712_v60, %v12711_v21  ;;  %v9882_v11 = vadd.f32 %v3122_v22, %v3121_v43 }
 0x272   :  { %2754 = vmin.xlane.f32.xlu2 %v2753_v3  ;;  %v9853_v55 = vpop.f32.mrf.mxu2  ;;  %v9855_v6 = vpop.f32.mrf.mxu3  ;;  %v9880_v3 = vadd.f32 %v3115_v24, %v3114_v47  ;;  %v9893_v47 = vld [vmem:[%s12232_s1 + $0x280] sm:$0xff]  ;;  %v6374_v24 = vld [vmem:[%s12231_s0 + $0xd0] sm:$0xff] }
 0x273   :  { %6353 = vmatmul.msk.f32.gmra.mxu3 %vm225_vm0, %v3589_v42  ;;  %v1265_v40 = vpop.xlane.xlu0 %1264  ;;  %v1262_v62 = vpop.xlane.xlu2 %1261  ;;  %2920 = vst.msk [vmem:[#allocation3 + $0x160] sm:$0xff] %vm19_vm2, %v2888_v29  ;;  %v3485_v42 = vsel %vm225_vm0, %v3449_v44, 0.0  ;;  %v3591_v29 = vmul.f32 -2.0, %v9893_v47  ;;  %v1404_v44 = vld [vmem:[#allocation3 + $0x90] sm:$0xff] }
 0x274   :  { %1303 = vmin.xlane.f32.xlu1 %v1302_v19  ;;  %v1435_v30 = vmin.f32 %v1403_v34, %v1265_v40  ;;  %v1434_v45 = vmin.f32 %v1402_v1, %v1262_v62  ;;  %v3452_v19 = vmul.f32 %v9382_v2, %v9382_v2  ;;  %v4626_v62 = vmul.f32 -2.0, %v6374_v24 }
 0x275   :  { %6382 = vmatmul.msk.f32.gmra.mxu0 %vm225_vm0, %v4625_v32  ;;  %6391 = vmatmul.msk.f32.gmra.mxu1 %vm225_vm0, %v4625_v32 }
 0x276   :  { %1467 = vst.msk [vmem:[#allocation3 + $0x88] sm:$0xff] %vm19_vm2, %v1435_v30  ;;  %v3494_v2 = vsel %vm225_vm0, %v3452_v19, 0.0 }
 0x277   :  { %1466 = vst.msk [vmem:[#allocation3 + $0x80] sm:$0xff] %vm19_vm2, %v1434_v45  ;;  %v2861_v45 = vld [vmem:[#allocation3 + $0x188] sm:$0xff] }
 0x278   :  { %1383 = vadd.xlane.f32.xlu0 %v9751_v7  ;;  %v2716_v54 = vpop.xlane.xlu1 %2715 }
 0x279   :  { %6321 = vmatmul.msk.f32.gmra.mxu2 %vm225_vm0, %v3590_v61  ;;  %v2891_v4 = vmin.f32 %v2859_v35, %v2716_v54 }
 0x27a   :  { %1306 = vmin.xlane.f32.xlu2 %v1305_v27  ;;  %v9886_v7 = vpop.f32.mrf.mxu2  ;;  %v9888_v57 = vpop.f32.mrf.mxu3 }
 0x27b   :  { %6354 = vmatmul.msk.f32.gmra.mxu3 %vm225_vm0, %v3590_v61  ;;  %v3143_v43 = vpop.xlane.xlu0 %3142  ;;  %v2719_v12 = vpop.xlane.xlu2 %2718  ;;  %2923 = vst.msk [vmem:[#allocation3 + $0x178] sm:$0xff] %vm19_vm2, %v2891_v4  ;;  %v6375_v4 = vld [vmem:[%s12231_s0 + $0xd8] sm:$0xff] }
 0x27c   :  { %3486 = vadd.xlane.f32.xlu1 %v3485_v42  ;;  %v3287_v48 = vadd.f32 %v3143_v43, %v9880_v3  ;;  %v3288_v34 = vadd.f32 %v3143_v43, %v9882_v11  ;;  %v2892_v1 = vmin.f32 %v2860_v15, %v2719_v12  ;;  %v9929_v42 = vld [vmem:[%s12232_s1 + $0x288] sm:$0xff]  ;;  %v2759_v43 = vmin.f32 %v2665_v50, %v2666_v18  ;;  %v9958_v18 = vld [vmem:[%s12232_s1 + $0x290] sm:$0xff] }
 0x27d   :  { %6383 = vmatmul.msk.f32.gmra.mxu0 %vm225_vm0, %v4626_v62  ;;  %6392 = vmatmul.msk.f32.gmra.mxu1 %vm225_vm0, %v4626_v62  ;;  %v3592_v15 = vmul.f32 -2.0, %v9929_v42  ;;  %v4627_v19 = vmul.f32 -2.0, %v6375_v4  ;;  %v5068_v12 = vld.sshfl [vmem:[#allocation1 + $0x8] sm:$0xff pattern:$0x75316420]  ;;  %v2862_v4 = vld [vmem:[#allocation3 + $0x190] sm:$0xff] }
 0x27e   :  { %v9904_v40 = vadd.f32 %v3287_v48, %v9630_v23  ;;  %v9907_v56 = vadd.f32 %v3288_v34, %v9632_v16  ;;  %2924 = vst.msk [vmem:[#allocation3 + $0x180] sm:$0xff] %vm19_vm2, %v2892_v1  ;;  %v1405_v16 = vld [vmem:[#allocation3 + $0x98] sm:$0xff]  ;;  %v1406_v34 = vld [vmem:[#allocation3 + $0xa0] sm:$0xff]  ;;  %v2762_v1 = vmin.f32 %v2667_v20, %v2668_v17  ;;  %6463 = vmatpush.msk.msrb.mxu1 %vm194_vm1, %v5068_v12 }
 0x27f   :  { %v5067_v48 = vld.sshfl [vmem:[#allocation1] sm:$0xff pattern:$0x75316420] }
 0x280   :  { %v3319_v22 = vmax.f32 %v9904_v40, 0.0  ;;  %v3320_v30 = vmax.f32 %v9907_v56, 0.0  ;;  %v1268_v23 = vpop.xlane.xlu1 %1267  ;;  %6430 = vmatpush.msk.msrb.mxu0 %vm194_vm1, %v5067_v48 }
 0x281   :  { %6322 = vmatmul.msk.f32.gmra.mxu2 %vm225_vm0, %v3591_v29  ;;  %v1436_v21 = vmin.f32 %v1404_v44, %v1268_v23  ;;  %v3456_v44 = vmul.f32 %v9637_v0, %v9637_v0 }
 0x282   :  { %v3335_v61 = vmin.f32 %v3319_v22, %v3320_v30  ;;  %v9922_v60 = vpop.f32.mrf.mxu2  ;;  %v9924_v27 = vpop.f32.mrf.mxu3 }
 0x283   :  { %6355 = vmatmul.msk.f32.gmra.mxu3 %vm225_vm0, %v3591_v29  ;;  %v2722_v35 = vpop.xlane.xlu0 %2721  ;;  %1468 = vst.msk [vmem:[#allocation3 + $0x90] sm:$0xff] %vm19_vm2, %v1436_v21  ;;  %v3506_v21 = vsel %vm225_vm0, %v3456_v44, 0.0 }
 0x284   :  { %3495 = vadd.xlane.f32.xlu1 %v3494_v2  ;;  %v2893_v36 = vmin.f32 %v2861_v45, %v2722_v35  ;;  %3336 = vmin.xlane.f32.xlu2 %v3335_v61  ;;  %v3593_v2 = vmul.f32 -2.0, %v9958_v18  ;;  %v6376_v45 = vld [vmem:[%s12231_s0 + $0xe0] sm:$0xff] }
 0x285   :  { %v1271_v32 = vpop.xlane.xlu2 %1270  ;;  %6384 = vmatmul.msk.f32.gmra.mxu0 %vm225_vm0, %v4627_v19  ;;  %6393 = vmatmul.msk.f32.gmra.mxu1 %vm225_vm0, %v4627_v19  ;;  %v4628_v23 = vmul.f32 -2.0, %v6376_v45  ;;  %v2863_v35 = vld [vmem:[#allocation3 + $0x198] sm:$0xff] }
 0x286   :  { %v1437_v54 = vmin.f32 %v1405_v16, %v1271_v32  ;;  %2925 = vst.msk [vmem:[#allocation3 + $0x188] sm:$0xff] %vm19_vm2, %v2893_v36 }
 0x288   :  { %1469 = vst.msk [vmem:[#allocation3 + $0x98] sm:$0xff] %vm19_vm2, %v1437_v54  ;;  %v9960_v29 = vpop.xlane.xlu1 %2973 }
 0x289   :  { %6323 = vmatmul.msk.f32.gmra.mxu2 %vm225_vm0, %v3592_v15  ;;  %12713 = vst [vmem:[#allocation22_spill] sm:$0xff] %v9960_v29  ;;  %v1529_v29 = vld [vmem:[#allocation3 + $0x20] sm:$0xff] }
 0x28a   :  { %v9951_v39 = vpop.f32.mrf.mxu2  ;;  %v9953_v26 = vpop.f32.mrf.mxu3 }
 0x28b   :  { %6356 = vmatmul.msk.f32.gmra.mxu3 %vm225_vm0, %v3592_v15  ;;  %v1274_v50 = vpop.xlane.xlu0 %1273 }
 0x28c   :  { %2760 = vmin.xlane.f32.xlu1 %v2759_v43  ;;  %v1438_v33 = vmin.f32 %v1406_v34, %v1274_v50  ;;  %2763 = vmin.xlane.f32.xlu2 %v2762_v1  ;;  %v3455_v1 = vmul.f32 %v9576_v37, %v9576_v37  ;;  %v6377_v50 = vld [vmem:[%s12231_s0 + $0xe8] sm:$0xff] }
 0x28d   :  { %v3149_v8 = vpop.xlane.xlu2 %3148  ;;  %6385 = vmatmul.msk.f32.gmra.mxu0 %vm225_vm0, %v4628_v23  ;;  %6394 = vmatmul.msk.f32.gmra.mxu1 %vm225_vm0, %v4628_v23 }
 0x28e   :  { %v3291_v20 = vadd.f32 %v3149_v8, %v9880_v3  ;;  %v3292_v17 = vadd.f32 %v3149_v8, %v9882_v11  ;;  %1470 = vst.msk [vmem:[#allocation3 + $0xa0] sm:$0xff] %vm19_vm2, %v1438_v33  ;;  %v4629_v8 = vmul.f32 -2.0, %v6377_v50 }
 0x290   :  { %v3307_v24 = vadd.f32 %v3291_v20, %v9732_v59  ;;  %v3308_v62 = vadd.f32 %v3292_v17, %v9734_v31  ;;  %v9986_v59 = vld [vmem:[%s12232_s1 + $0x298] sm:$0xff]  ;;  %v2864_v20 = vld [vmem:[#allocation3 + $0x1a0] sm:$0xff]  ;;  %v3503_v17 = vsel %vm225_vm0, %v3455_v1, 0.0 }
 0x291   :  { %6324 = vmatmul.msk.f32.gmra.mxu2 %vm225_vm0, %v3593_v2 }
 0x292   :  { %v3323_v16 = vmax.f32 %v3307_v24, 0.0  ;;  %v3324_v61 = vmax.f32 %v3308_v62, 0.0  ;;  %v9979_v0 = vpop.f32.mrf.mxu2  ;;  %v9981_v36 = vpop.f32.mrf.mxu3  ;;  %v1407_v24 = vld [vmem:[#allocation3 + $0xa8] sm:$0xff] }
 0x293   :  { %6357 = vmatmul.msk.f32.gmra.mxu3 %vm225_vm0, %v3593_v2  ;;  %v3152_v31 = vpop.xlane.xlu0 %3151  ;;  %v10026_v2 = vld [vmem:[%s12232_s1 + $0x2a0] sm:$0xff] }
 0x294   :  { %v3341_v32 = vmin.f32 %v3323_v16, %v3324_v61  ;;  %v9990_v54 = vmin.f32 %v3319_v22, %v3323_v16  ;;  %v9994_v15 = vmin.f32 %v3320_v30, %v3324_v61  ;;  %v3293_v43 = vadd.f32 %v3152_v31, %v9880_v3  ;;  %3507 = vadd.xlane.f32.xlu2 %v3506_v21 }
 0x295   :  { %v3294_v19 = vadd.f32 %v3152_v31, %v9882_v11  ;;  %v2728_v48 = vpop.xlane.xlu2 %2727  ;;  %v2725_v40 = vpop.xlane.xlu1 %2724  ;;  %v3594_v22 = vmul.f32 -2.0, %v9986_v59  ;;  %6386 = vmatmul.msk.f32.gmra.mxu0 %vm225_vm0, %v4629_v8  ;;  %6395 = vmatmul.msk.f32.gmra.mxu1 %vm225_vm0, %v4629_v8  ;;  %v3459_v31 = vmul.f32 %v9774_v5, %v9774_v5 }
 0x296   :  { %v2895_v34 = vmin.f32 %v2863_v35, %v2728_v48  ;;  %3342 = vmin.xlane.f32.xlu1 %v3341_v32  ;;  %v10002_v56 = vadd.f32 %v3293_v43, %v9767_v38  ;;  %v2894_v12 = vmin.f32 %v2862_v4, %v2725_v40  ;;  %v3595_v35 = vmul.f32 -2.0, %v10026_v2  ;;  %v6378_v43 = vld [vmem:[%s12231_s0 + $0xf0] sm:$0xff]  ;;  %v1409_v48 = vld [vmem:[#allocation3 + $0xb8] sm:$0xff] }
 0x297   :  { %v10005_v30 = vadd.f32 %v3294_v19, %v9769_v13  ;;  %v1408_v13 = vld [vmem:[#allocation3 + $0xb0] sm:$0xff]  ;;  %v3458_v4 = vmul.f32 %v9739_v25, %v9739_v25  ;;  %v4630_v19 = vmul.f32 -2.0, %v6378_v43  ;;  %v3515_v5 = vsel %vm225_vm0, %v3459_v31, 0.0 }
 0x298   :  { %2927 = vst.msk [vmem:[#allocation3 + $0x198] sm:$0xff] %vm19_vm2, %v2895_v34  ;;  %v12386_v33 = vmax.f32 %v10002_v56, 0.0  ;;  %v10051_v34 = vld [vmem:[%s12232_s1 + $0x2a8] sm:$0xff] }
 0x299   :  { %2926 = vst.msk [vmem:[#allocation3 + $0x190] sm:$0xff] %vm19_vm2, %v2894_v12  ;;  %v12384_v38 = vmax.f32 %v10005_v30, 0.0  ;;  %6325 = vmatmul.msk.f32.gmra.mxu2 %vm225_vm0, %v3594_v22  ;;  %v3512_v25 = vsel %vm225_vm0, %v3458_v4, 0.0 }
 0x29a   :  { %v10028_v62 = vpop.f32.mrf.mxu2  ;;  %v10032_v16 = vpop.f32.mrf.mxu3 }
 0x29b   :  { %6358 = vmatmul.msk.f32.gmra.mxu3 %vm225_vm0, %v3594_v22  ;;  %v3344_v37 = vmin.f32 %v12386_v33, %v12384_v38  ;;  %v2731_v44 = vpop.xlane.xlu0 %2730 }
 0x29c   :  { %v2896_v45 = vmin.f32 %v2864_v20, %v2731_v44 }
 0x29d   :  { %v1280_v23 = vpop.xlane.xlu2 %1279  ;;  %3345 = vmin.xlane.f32.xlu2 %v3344_v37  ;;  %v1277_v21 = vpop.xlane.xlu1 %1276  ;;  %6387 = vmatmul.msk.f32.gmra.mxu0 %vm225_vm0, %v4630_v19  ;;  %v3462_v37 = vmul.f32 %v9860_v49, %v9860_v49 }
 0x29e   :  { %v1440_v61 = vmin.f32 %v1408_v13, %v1280_v23  ;;  %3504 = vadd.xlane.f32.xlu1 %v3503_v17  ;;  %2928 = vst.msk [vmem:[#allocation3 + $0x1a0] sm:$0xff] %vm19_vm2, %v2896_v45  ;;  %v1439_v32 = vmin.f32 %v1407_v24, %v1277_v21  ;;  %6396 = vmatmul.msk.f32.gmra.mxu1 %vm225_vm0, %v4630_v19  ;;  %v3596_v17 = vmul.f32 -2.0, %v10051_v34  ;;  %v2865_v19 = vld [vmem:[#allocation3 + $0x1a8] sm:$0xff] }
 0x29f   :  { %v3524_v31 = vsel %vm225_vm0, %v3462_v37, 0.0 }
 0x2a0   :  { %1472 = vst.msk [vmem:[#allocation3 + $0xb0] sm:$0xff] %vm19_vm2, %v1440_v61  ;;  %v6379_v61 = vld [vmem:[%s12231_s0 + $0xf8] sm:$0xff] }
 0x2a1   :  { %1471 = vst.msk [vmem:[#allocation3 + $0xa8] sm:$0xff] %vm19_vm2, %v1439_v32  ;;  %6326 = vmatmul.msk.f32.gmra.mxu2 %vm225_vm0, %v3595_v35  ;;  %v2866_v32 = vld [vmem:[#allocation3 + $0x1b0] sm:$0xff] }
 0x2a3   :  { %6359 = vmatmul.msk.f32.gmra.mxu3 %vm225_vm0, %v3595_v35  ;;  %v1283_v40 = vpop.xlane.xlu0 %1282  ;;  %v4631_v35 = vmul.f32 -2.0, %v6379_v61  ;;  %v6549_v61 = vld [vmem:[%s12232_s1 + $0x238] sm:$0xff] }
 0x2a4   :  { %v1441_v22 = vmin.f32 %v1409_v48, %v1283_v40  ;;  %v10056_v1 = vpop.f32.mrf.mxu2  ;;  %v10060_v13 = vpop.f32.mrf.mxu3 }
 0x2a5   :  { %v3158_v12 = vpop.xlane.xlu2 %3157  ;;  %3516 = vadd.xlane.f32.xlu2 %v3515_v5  ;;  %v3146_v20 = vpop.xlane.xlu1 %3145  ;;  %6388 = vmatmul.msk.f32.gmra.mxu0 %vm225_vm0, %v4631_v35 }
 0x2a6   :  { %v3297_v50 = vadd.f32 %v3158_v12, %v9880_v3  ;;  %v3298_v8 = vadd.f32 %v3158_v12, %v9882_v11  ;;  %3513 = vadd.xlane.f32.xlu1 %v3512_v25  ;;  %1473 = vst.msk [vmem:[#allocation3 + $0xb8] sm:$0xff] %vm19_vm2, %v1441_v22  ;;  %v3289_v44 = vadd.f32 %v3146_v20, %v9880_v3 }
 0x2a7   :  { %v3290_v24 = vadd.f32 %v3146_v20, %v9882_v11  ;;  %6397 = vmatmul.msk.f32.gmra.mxu1 %vm225_vm0, %v4631_v35  ;;  %v3454_v35 = vmul.f32 %v6549_v61, %v6549_v61 }
 0x2a8   :  { %v10069_v45 = vadd.f32 %v3297_v50, %v9824_v46  ;;  %v10072_v23 = vadd.f32 %v3298_v8, %v9826_v9  ;;  %v10078_v21 = vadd.f32 %v3289_v44, %v9695_v63  ;;  %v10093_v63 = vld [vmem:[%s12232_s1 + $0x2b0] sm:$0xff] }
 0x2a9   :  { %v10081_v49 = vadd.f32 %v3290_v24, %v9697_v52  ;;  %6327 = vmatmul.msk.f32.gmra.mxu2 %vm225_vm0, %v3596_v17 }
 0x2aa   :  { %v12382_v46 = vmax.f32 %v10069_v45, 0.0  ;;  %v12380_v9 = vmax.f32 %v10072_v23, 0.0  ;;  %v12385_v4 = vmax.f32 %v10078_v21, 0.0 }
 0x2ab   :  { %v12383_v43 = vmax.f32 %v10081_v49, 0.0  ;;  %6360 = vmatmul.msk.f32.gmra.mxu3 %vm225_vm0, %v3596_v17  ;;  %v3161_v52 = vpop.xlane.xlu0 %3160  ;;  %v3597_v17 = vmul.f32 -2.0, %v10093_v63 }
 0x2ac   :  { %v3350_v48 = vmin.f32 %v12382_v46, %v12380_v9  ;;  %v3299_v5 = vadd.f32 %v3161_v52, %v9880_v3  ;;  %v3300_v25 = vadd.f32 %v3161_v52, %v9882_v11  ;;  %v10107_v12 = vpop.f32.mrf.mxu2  ;;  %v2867_v52 = vld [vmem:[#allocation3 + $0x1b8] sm:$0xff]  ;;  %v3465_v9 = vmul.f32 %v9958_v18, %v9958_v18 }
 0x2ad   :  { %v2737_v40 = vpop.xlane.xlu2 %2736  ;;  %v3338_v22 = vmin.f32 %v12385_v4, %v12383_v43  ;;  %3525 = vadd.xlane.f32.xlu2 %v3524_v31  ;;  %v6398_v31 = vld [vmem:[%s12232_s1 + $0x300] sm:$0xff] }
 0x2ae   :  { %v2898_v50 = vmin.f32 %v2866_v32, %v2737_v40  ;;  %v10109_v20 = vpop.f32.mrf.mxu3  ;;  %3351 = vmin.xlane.f32.xlu1 %v3350_v48  ;;  %v10113_v37 = vadd.f32 %v3299_v5, %v9853_v55  ;;  %v10116_v44 = vadd.f32 %v3300_v25, %v9855_v6  ;;  %v5034_v32 = vmul.f32 -2.0, %v6398_v31  ;;  %v10137_v5 = vld [vmem:[%s12232_s1 + $0x2b8] sm:$0xff]  ;;  %v1410_v40 = vld [vmem:[#allocation3 + $0xc0] sm:$0xff] }
 0x2af   :  { %v2734_v8 = vpop.xlane.xlu1 %2733  ;;  %3339 = vmin.xlane.f32.xlu0 %v3338_v22  ;;  %v3500_v22 = vsel %vm225_vm0, %v3454_v35, 0.0  ;;  %v3533_v18 = vsel %vm225_vm0, %v3465_v9, 0.0  ;;  %v1526_v9 = vld [vmem:[#allocation3 + $0x8] sm:$0xff] }
 0x2b0   :  { %v2897_v24 = vmin.f32 %v2865_v19, %v2734_v8  ;;  %2930 = vst.msk [vmem:[#allocation3 + $0x1b0] sm:$0xff] %vm19_vm2, %v2898_v50  ;;  %v12381_v55 = vmax.f32 %v10113_v37, 0.0  ;;  %v12379_v6 = vmax.f32 %v10116_v44, 0.0  ;;  %v1411_v19 = vld [vmem:[#allocation3 + $0xc8] sm:$0xff]  ;;  %6431 = vmatmul.msk.f32.vlgmr.msrb.gmra.mxu0 %vm225_vm0, %v5034_v32  ;;  %6464 = vmatmul.msk.f32.vlgmr.msrb.gmra.mxu1 %vm225_vm0, %v5034_v32  ;;  %v3461_v32 = vmul.f32 %v9831_v28, %v9831_v28  ;;  %v6297_v28 = vld [vmem:[%s12232_s1 + $0x2c0] sm:$0xff] }
 0x2b1   :  { %6328 = vmatmul.msk.f32.gmra.mxu2 %vm225_vm0, %v3597_v17 }
 0x2b2   :  { %2929 = vst.msk [vmem:[#allocation3 + $0x1a8] sm:$0xff] %vm19_vm2, %v2897_v24  ;;  %v3353_v48 = vmin.f32 %v12381_v55, %v12379_v6  ;;  %v3598_v6 = vmul.f32 -2.0, %v10137_v5  ;;  %v2869_v55 = vld [vmem:[#allocation3 + $0x1c8] sm:$0xff] }
 0x2b3   :  { %6361 = vmatmul.msk.f32.gmra.mxu3 %vm225_vm0, %v3597_v17  ;;  %v2740_v25 = vpop.xlane.xlu0 %2739 }
 0x2b4   :  { %v2899_v50 = vmin.f32 %v2867_v52, %v2740_v25  ;;  %v10142_v17 = vpop.f32.mrf.mxu2  ;;  %v6399_v52 = vld [vmem:[%s12232_s1 + $0x308] sm:$0xff]  ;;  %v3521_v25 = vsel %vm225_vm0, %v3461_v32, 0.0 }
 0x2b5   :  { %v1289_v8 = vpop.xlane.xlu2 %1288  ;;  %3354 = vmin.xlane.f32.xlu2 %v3353_v48  ;;  %v1412_v48 = vld [vmem:[#allocation3 + $0xd0] sm:$0xff] }
 0x2b6   :  { %v1443_v24 = vmin.f32 %v1411_v19, %v1289_v8  ;;  %v10144_v31 = vpop.f32.mrf.mxu3  ;;  %2931 = vst.msk [vmem:[#allocation3 + $0x1b8] sm:$0xff] %vm19_vm2, %v2899_v50  ;;  %v5035_v19 = vmul.f32 -2.0, %v6399_v52  ;;  %3522 = vadd.xlane.f32.xlu1 %v3521_v25  ;;  %v1558_v25 = vsel %vm19_vm2, %v1526_v9, 0.0 }
 0x2b7   :  { %v1286_v61 = vpop.xlane.xlu1 %1285  ;;  %3501 = vadd.xlane.f32.xlu0 %v3500_v22 }
 0x2b8   :  { %v1442_v35 = vmin.f32 %v1410_v40, %v1286_v61  ;;  %1475 = vst.msk [vmem:[#allocation3 + $0xc8] sm:$0xff] %vm19_vm2, %v1443_v24  ;;  %6432 = vmatmul.msk.f32.gmra.mxu0 %vm225_vm0, %v5035_v19  ;;  %6465 = vmatmul.msk.f32.gmra.mxu1 %vm225_vm0, %v5035_v19  ;;  %v1525_v19 = vld [vmem:[#allocation3] sm:$0xff] }
 0x2b9   :  { %6329 = vmatmul.msk.f32.gmra.mxu2 %vm225_vm0, %v3598_v6 }
 0x2ba   :  { %1474 = vst.msk [vmem:[#allocation3 + $0xc0] sm:$0xff] %vm19_vm2, %v1442_v35  ;;  %v3468_v35 = vmul.f32 %v10051_v34, %v10051_v34 }
 0x2bb   :  { %6362 = vmatmul.msk.f32.gmra.mxu3 %vm225_vm0, %v3598_v6  ;;  %v1292_v40 = vpop.xlane.xlu0 %1291  ;;  %v3599_v6 = vmul.f32 -2.0, %v6297_v28 }
 0x2bc   :  { %v1444_v22 = vmin.f32 %v1412_v48, %v1292_v40  ;;  %v10168_v8 = vpop.f32.mrf.mxu2  ;;  %v3464_v48 = vmul.f32 %v9929_v42, %v9929_v42  ;;  %v1557_v42 = vsel %vm19_vm2, %v1525_v19, 0.0 }
 0x2bd   :  { %v10166_v50 = vpop.xlane.xlu2 %3480  ;;  %12714 = vst [vmem:[#allocation23_spill] sm:$0xff] %v10168_v8  ;;  %3534 = vadd.xlane.f32.xlu2 %v3533_v18  ;;  %v6400_v18 = vld [vmem:[%s12232_s1 + $0x310] sm:$0xff] }
 0x2be   :  { %v10170_v61 = vpop.f32.mrf.mxu3  ;;  %1476 = vst.msk [vmem:[#allocation3 + $0xd0] sm:$0xff] %vm19_vm2, %v1444_v22  ;;  %v5036_v22 = vmul.f32 -2.0, %v6400_v18 }
 0x2bf   :  { %v3155_v24 = vpop.xlane.xlu1 %3154  ;;  %12715 = vst [vmem:[#allocation25_spill] sm:$0xff] %v10170_v61  ;;  %2840 = vadd.xlane.f32.xlu0 %v9808_v10  ;;  %v3542_v10 = vsel %vm225_vm0, %v3468_v35, 0.0 }
 0x2c0   :  { %v3295_v32 = vadd.f32 %v3155_v24, %v9880_v3  ;;  %v3296_v52 = vadd.f32 %v3155_v24, %v9882_v11  ;;  %v3530_v24 = vsel %vm225_vm0, %v3464_v48, 0.0  ;;  %6433 = vmatmul.msk.f32.gmra.mxu0 %vm225_vm0, %v5036_v22  ;;  %6466 = vmatmul.msk.f32.gmra.mxu1 %vm225_vm0, %v5036_v22  ;;  %v1528_v22 = vld [vmem:[#allocation3 + $0x18] sm:$0xff] }
 0x2c1   :  { %6330 = vmatmul.msk.f32.gmra.mxu2 %vm225_vm0, %v3599_v6  ;;  %3531 = vadd.xlane.f32.xlu1 %v3530_v24 }
 0x2c2   :  { %v10185_v34 = vadd.f32 %v3295_v32, %v9799_v41  ;;  %v10188_v40 = vadd.f32 %v3296_v52, %v9801_v53  ;;  %v10200_v41 = vld [vmem:[%s12232_s1 + $0x2c8] sm:$0xff]  ;;  %v1527_v53 = vld [vmem:[#allocation3 + $0x10] sm:$0xff]  ;;  %v1559_v32 = vadd.f32 %v1558_v25, %v1557_v42  ;;  %v3471_v42 = vmul.f32 %v6297_v28, %v6297_v28 }
 0x2c3   :  { %6363 = vmatmul.msk.f32.gmra.mxu3 %vm225_vm0, %v3599_v6  ;;  %v10202_v35 = vpop.xlane.xlu0 %3483  ;;  %v2868_v52 = vld [vmem:[#allocation3 + $0x1c0] sm:$0xff]  ;;  %v3600_v25 = vmul.f32 -2.0, %v10200_v41  ;;  %v1560_v38 = vsel %vm19_vm2, %v1527_v53, 0.0  ;;  %v3467_v28 = vmul.f32 %v10026_v2, %v10026_v2  ;;  %v2870_v53 = vld [vmem:[#allocation3 + $0x1d0] sm:$0xff] }
 0x2c4   :  { %v12389_v46 = vmax.f32 %v10185_v34, 0.0  ;;  %v12388_v9 = vmax.f32 %v10188_v40, 0.0  ;;  %v10210_v48 = vpop.f32.mrf.mxu2  ;;  %v1561_v33 = vadd.f32 %v1560_v38, %v1559_v32  ;;  %v3551_v38 = vsel %vm225_vm0, %v3471_v42, 0.0  ;;  %v6300_v2 = vld [vmem:[%s12232_s1 + $0x2d8] sm:$0xff] }
 0x2c5   :  { %v2746_v19 = vpop.xlane.xlu2 %2745  ;;  %3543 = vadd.xlane.f32.xlu2 %v3542_v10  ;;  %v1562_v32 = vsel %vm19_vm2, %v1528_v22, 0.0 }
 0x2c6   :  { %v3347_v6 = vmin.f32 %v12389_v46, %v12388_v9  ;;  %v2901_v18 = vmin.f32 %v2869_v55, %v2746_v19  ;;  %v10212_v43 = vpop.f32.mrf.mxu3  ;;  %v3457_v9 = vmul.f32 %v9688_v51, %v9688_v51  ;;  %v6401_v55 = vld [vmem:[%s12232_s1 + $0x318] sm:$0xff]  ;;  %v1414_v51 = vld [vmem:[#allocation3 + $0xe0] sm:$0xff]  ;;  %v3539_v19 = vsel %vm225_vm0, %v3467_v28, 0.0 }
 0x2c7   :  { %v2743_v24 = vpop.xlane.xlu1 %2742  ;;  %v5037_v10 = vmul.f32 -2.0, %v6401_v55  ;;  %v1530_v55 = vld [vmem:[#allocation3 + $0x28] sm:$0xff] }
 0x2c8   :  { %v2900_v4 = vmin.f32 %v2868_v52, %v2743_v24  ;;  %3348 = vmin.xlane.f32.xlu0 %v3347_v6  ;;  %2933 = vst.msk [vmem:[#allocation3 + $0x1c8] sm:$0xff] %vm19_vm2, %v2901_v18  ;;  %v1564_v52 = vsel %vm19_vm2, %v1529_v29, 0.0  ;;  %v1563_v6 = vadd.f32 %v1562_v32, %v1561_v33  ;;  %v1413_v24 = vld [vmem:[#allocation3 + $0xd8] sm:$0xff]  ;;  %v3509_v42 = vsel %vm225_vm0, %v3457_v9, 0.0 }
 0x2c9   :  { %6331 = vmatmul.msk.f32.gmra.mxu2 %vm225_vm0, %v3600_v25  ;;  %6434 = vmatmul.msk.f32.gmra.mxu0 %vm225_vm0, %v5037_v10  ;;  %v3474_v32 = vmul.f32 %v6300_v2, %v6300_v2 }
 0x2ca   :  { %2932 = vst.msk [vmem:[#allocation3 + $0x1c0] sm:$0xff] %vm19_vm2, %v2900_v4  ;;  %v10233_v4 = vld [vmem:[%s12232_s1 + $0x2d0] sm:$0xff]  ;;  %6467 = vmatmul.msk.f32.gmra.mxu1 %vm225_vm0, %v5037_v10  ;;  %3540 = vadd.xlane.f32.xlu1 %v3539_v19  ;;  %v1565_v46 = vadd.f32 %v1564_v52, %v1563_v6  ;;  %v1566_v52 = vsel %vm19_vm2, %v1530_v55, 0.0 }
 0x2cb   :  { %6364 = vmatmul.msk.f32.gmra.mxu3 %vm225_vm0, %v3600_v25  ;;  %v2749_v18 = vpop.xlane.xlu0 %2748  ;;  %v3601_v33 = vmul.f32 -2.0, %v10233_v4  ;;  %v2984_v10 = vld [vmem:[#allocation3 + $0x108] sm:$0xff] }
 0x2cc   :  { %v2902_v29 = vmin.f32 %v2870_v53, %v2749_v18  ;;  %v10242_v22 = vpop.f32.mrf.mxu2  ;;  %v3460_v53 = vmul.f32 %v9806_v58, %v9806_v58  ;;  %v1567_v6 = vadd.f32 %v1566_v52, %v1565_v46  ;;  %v2983_v18 = vld [vmem:[#allocation3 + $0x100] sm:$0xff]  ;;  %v10263_v58 = vld [vmem:[%s12232_s1 + $0x2f0] sm:$0xff] }
 0x2cd   :  { %v1298_v25 = vpop.xlane.xlu2 %1297  ;;  %12716 = vst [vmem:[#allocation26_spill] sm:$0xff] %v10242_v22  ;;  %3552 = vadd.xlane.f32.xlu2 %v3551_v38  ;;  %v6402_v38 = vld [vmem:[%s12232_s1 + $0x320] sm:$0xff]  ;;  %v3015_v55 = vsel %vm19_vm2, %v2983_v18, 0.0  ;;  %v3477_v22 = vmul.f32 %v10263_v58, %v10263_v58 }
 0x2ce   :  { %v1446_v61 = vmin.f32 %v1414_v51, %v1298_v25  ;;  %v10244_v28 = vpop.f32.mrf.mxu3  ;;  %2934 = vst.msk [vmem:[#allocation3 + $0x1d0] sm:$0xff] %vm19_vm2, %v2902_v29  ;;  %v1531_v51 = vld [vmem:[#allocation3 + $0x30] sm:$0xff]  ;;  %v5038_v19 = vmul.f32 -2.0, %v6402_v38  ;;  %v1532_v29 = vld [vmem:[#allocation3 + $0x38] sm:$0xff]  ;;  %v3518_v46 = vsel %vm225_vm0, %v3460_v53, 0.0  ;;  %v6403_v53 = vld [vmem:[%s12232_s1 + $0x328] sm:$0xff] }
 0x2cf   :  { %v1295_v8 = vpop.xlane.xlu1 %1294  ;;  %12717 = vst [vmem:[#allocation27_spill] sm:$0xff] %v10244_v28  ;;  %v3602_v28 = vmul.f32 -2.0, %v6300_v2  ;;  %v1517_v2 = vrot.slane %v9820_v14, 4 }
 0x2d0   :  { %v1445_v9 = vmin.f32 %v1413_v24, %v1295_v8  ;;  %3510 = vadd.xlane.f32.xlu0 %v3509_v42  ;;  %1478 = vst.msk [vmem:[#allocation3 + $0xe0] sm:$0xff] %vm19_vm2, %v1446_v61  ;;  %v1415_v8 = vld [vmem:[#allocation3 + $0xe8] sm:$0xff]  ;;  %v3560_v61 = vsel %vm225_vm0, %v3474_v32, 0.0  ;;  %v3016_v24 = vsel %vm19_vm2, %v2984_v10, 0.0  ;;  %v1568_v42 = vsel %vm19_vm2, %v1531_v51, 0.0 }
 0x2d1   :  { %6332 = vmatmul.msk.f32.gmra.mxu2 %vm225_vm0, %v3601_v33  ;;  %6435 = vmatmul.msk.f32.gmra.mxu0 %vm225_vm0, %v5038_v19  ;;  %v3939_v32 = vadd.f32 %v10202_v35, %v9882_v11  ;;  %v1569_v52 = vadd.f32 %v1568_v42, %v1567_v6  ;;  %v3017_v51 = vadd.f32 %v3016_v24, %v3015_v55  ;;  %v12722_v42 = vmax.f32 %v10005_v30, 0.0 }
 0x2d2   :  { %1477 = vst.msk [vmem:[#allocation3 + $0xd8] sm:$0xff] %vm19_vm2, %v1445_v9  ;;  %6468 = vmatmul.msk.f32.gmra.mxu1 %vm225_vm0, %v5038_v19  ;;  %v12723_v55 = vmax.f32 %v10081_v49, 0.0  ;;  %v12725_v49 = vmax.f32 %v10188_v40, 0.0  ;;  %v12727_v40 = vmax.f32 %v10113_v37, 0.0 }
 0x2d3   :  { %6365 = vmatmul.msk.f32.gmra.mxu3 %vm225_vm0, %v3601_v33  ;;  %v1301_v25 = vpop.xlane.xlu0 %1300  ;;  %v3938_v33 = vadd.f32 %v10202_v35, %v9880_v3  ;;  %v1570_v35 = vsel %vm19_vm2, %v1532_v29, 0.0 }
 0x2d4   :  { %v1447_v9 = vmin.f32 %v1415_v8, %v1301_v25  ;;  %v10276_v38 = vpop.f32.mrf.mxu2  ;;  %v2985_v8 = vld [vmem:[#allocation3 + $0x110] sm:$0xff]  ;;  %v12720_v25 = vmax.f32 %v10002_v56, 0.0  ;;  %v3373_v29 = vmin.f32 %v12723_v55, %v12722_v42 }
 0x2d5   :  { %v10274_v10 = vpop.xlane.xlu2 %3489  ;;  %12718 = vst [vmem:[#allocation28_spill] sm:$0xff] %v10276_v38  ;;  %3561 = vadd.xlane.f32.xlu2 %v3560_v61  ;;  %v12721_v61 = vmax.f32 %v10078_v21, 0.0  ;;  %v5039_v21 = vmul.f32 -2.0, %v6403_v53  ;;  %v3018_v30 = vsel %vm19_vm2, %v2985_v8, 0.0 }
 0x2d6   :  { %v10281_v18 = vpop.f32.mrf.mxu3  ;;  %1479 = vst.msk [vmem:[#allocation3 + $0xe8] sm:$0xff] %vm19_vm2, %v1447_v9  ;;  %v10305_v9 = vadd.f32 %v3939_v32, %v9953_v26  ;;  %v12726_v26 = vmax.f32 %v10069_v45, 0.0  ;;  %v2871_v45 = vld [vmem:[#allocation3 + $0x1d8] sm:$0xff] }
 0x2d7   :  { %v3164_v19 = vpop.xlane.xlu1 %3163  ;;  %12719 = vst [vmem:[#allocation29_spill] sm:$0xff] %v10281_v18  ;;  %v3360_v38 = vmin.f32 %v12721_v61, %v12720_v25  ;;  %v12724_v18 = vmax.f32 %v10185_v34, 0.0  ;;  %v10302_v25 = vadd.f32 %v3938_v33, %v9951_v39  ;;  %v1571_v61 = vadd.f32 %v1570_v35, %v1569_v52  ;;  %v2986_v39 = vld [vmem:[#allocation3 + $0x118] sm:$0xff] }
 0x2d8   :  { %v3301_v6 = vadd.f32 %v3164_v19, %v9880_v3  ;;  %v3302_v24 = vadd.f32 %v3164_v19, %v9882_v11  ;;  %3519 = vadd.xlane.f32.xlu0 %v3518_v46  ;;  %v3374_v34 = vmin.f32 %v9994_v15, %v12725_v49  ;;  %v3019_v33 = vadd.f32 %v3018_v30, %v3017_v51 }
 0x2d9   :  { %v3361_v56 = vmin.f32 %v9990_v54, %v12724_v18  ;;  %6333 = vmatmul.msk.f32.gmra.mxu2 %vm225_vm0, %v3602_v28  ;;  %v3569_v54 = vsel %vm225_vm0, %v3477_v22, 0.0  ;;  %v3362_v32 = vmin.f32 %v3360_v38, %v12726_v26  ;;  %v1518_v15 = vadd.f32 %v1517_v2, %v9820_v14  ;;  %6436 = vmatmul.msk.f32.gmra.mxu0 %vm225_vm0, %v5039_v21 }
 0x2da   :  { %v3317_v46 = vadd.f32 %v3301_v6, %v9886_v7  ;;  %v3318_v19 = vadd.f32 %v3302_v24, %v9888_v57  ;;  %v10321_v57 = vld [vmem:[%s12232_s1 + $0x2e0] sm:$0xff]  ;;  %v12728_v22 = vmax.f32 %v10072_v23, 0.0  ;;  %6469 = vmatmul.msk.f32.gmra.mxu1 %vm225_vm0, %v5039_v21  ;;  %v4066_v14 = vmax.f32 %v10302_v25, 0.0  ;;  %v6404_v23 = vld [vmem:[%s12232_s1 + $0x330] sm:$0xff]  ;;  %v2987_v24 = vld [vmem:[#allocation3 + $0x120] sm:$0xff] }
 0x2db   :  { %6366 = vmatmul.msk.f32.gmra.mxu3 %vm225_vm0, %v3602_v28  ;;  %v3363_v52 = vmin.f32 %v3361_v56, %v12727_v40  ;;  %v3493_v18 = vpop.xlane.xlu0 %3492  ;;  %v4067_v37 = vmax.f32 %v10305_v9, 0.0  ;;  %v3020_v6 = vsel %vm19_vm2, %v2986_v39, 0.0  ;;  %v12729_v2 = vmax.f32 %v10116_v44, 0.0 }
 0x2dc   :  { %v3333_v53 = vmax.f32 %v3317_v46, 0.0  ;;  %v3334_v7 = vmax.f32 %v3318_v19, 0.0  ;;  %v3375_v51 = vmin.f32 %v3373_v29, %v12728_v22  ;;  %v10332_v8 = vpop.f32.mrf.mxu2  ;;  %v3603_v21 = vmul.f32 -2.0, %v10321_v57  ;;  %v1533_v46 = vld [vmem:[#allocation3 + $0x40] sm:$0xff] }
 0x2dd   :  { %v10330_v28 = vpop.xlane.xlu2 %3498  ;;  %3570 = vadd.xlane.f32.xlu2 %v3569_v54  ;;  %v3376_v42 = vmin.f32 %v3374_v34, %v12729_v2  ;;  %v3944_v19 = vadd.f32 %v3493_v18, %v9880_v3  ;;  %v3945_v30 = vadd.f32 %v3493_v18, %v9882_v11  ;;  %v3463_v39 = vmul.f32 %v9893_v47, %v9893_v47  ;;  %v2873_v18 = vld [vmem:[#allocation3 + $0x1e8] sm:$0xff] }
 0x2de   :  { %v3356_v38 = vmin.f32 %v3333_v53, %v3334_v7  ;;  %v3364_v35 = vmin.f32 %v3362_v32, %v3333_v53  ;;  %v3377_v29 = vmin.f32 %v3375_v51, %v3334_v7  ;;  %v10342_v56 = vpop.f32.mrf.mxu3  ;;  %v1519_v44 = vrot.slane %v1518_v15, 2  ;;  %v2988_v51 = vld [vmem:[#allocation3 + $0x128] sm:$0xff] }
 0x2df   :  { %v2752_v55 = vpop.xlane.xlu1 %2751  ;;  %v5040_v34 = vmul.f32 -2.0, %v6404_v23  ;;  %v3022_v32 = vsel %vm19_vm2, %v2987_v24, 0.0  ;;  %v3936_v53 = vadd.f32 %v10166_v50, %v9880_v3  ;;  %v4131_v7 = vmin.f32 %v4066_v14, %v4067_v37  ;;  %v2872_v24 = vld [vmem:[#allocation3 + $0x1e0] sm:$0xff] }
 0x2e0   :  { %v2903_v49 = vmin.f32 %v2871_v45, %v2752_v55  ;;  %v3365_v54 = vmin.f32 %v3363_v52, %v3364_v35  ;;  %3357 = vmin.xlane.f32.xlu0 %v3356_v38  ;;  %v3378_v26 = vmin.f32 %v3376_v42, %v3377_v29  ;;  %v1572_v52 = vsel %vm19_vm2, %v1533_v46, 0.0  ;;  %v1416_v42 = vld [vmem:[#allocation3 + $0xf0] sm:$0xff] }
 0x2e1   :  { %v3021_v22 = vadd.f32 %v3020_v6, %v3019_v33  ;;  %v3937_v47 = vadd.f32 %v10166_v50, %v9882_v11  ;;  %6334 = vmatmul.msk.f32.gmra.mxu2 %vm225_vm0, %v3603_v21  ;;  %v1573_v38 = vadd.f32 %v1572_v52, %v1571_v61  ;;  %v10362_v35 = vadd.f32 %v3944_v19, %v10056_v1  ;;  %v10371_v33 = vld [vmem:[%s12232_s1 + $0x2e8] sm:$0xff] }
 0x2e2   :  { %2935 = vst.msk [vmem:[#allocation3 + $0x1d8] sm:$0xff] %vm19_vm2, %v2903_v49  ;;  %v3366_v40 = vrot.slane %v3365_v54, 4  ;;  %v3379_v45 = vrot.slane %v3378_v26, 4  ;;  %v10365_v23 = vadd.f32 %v3945_v30, %v10060_v13  ;;  %v3527_v61 = vsel %vm225_vm0, %v3463_v39, 0.0  ;;  %6437 = vmatmul.msk.f32.gmra.mxu0 %vm225_vm0, %v5040_v34  ;;  %6470 = vmatmul.msk.f32.gmra.mxu1 %vm225_vm0, %v5040_v34  ;;  %v1534_v49 = vld [vmem:[#allocation3 + $0x48] sm:$0xff] }
 0x2e3   :  { %6367 = vmatmul.msk.f32.gmra.mxu3 %vm225_vm0, %v3603_v21  ;;  %v3023_v50 = vadd.f32 %v3022_v32, %v3021_v22  ;;  %v2758_v6 = vpop.xlane.xlu0 %2757  ;;  %v1520_v55 = vadd.f32 %v1519_v44, %v1518_v15  ;;  %v3024_v13 = vsel %vm19_vm2, %v2988_v51, 0.0  ;;  %v10378_v29 = vadd.f32 %v3936_v53, %v9922_v60  ;;  %v10385_v15 = vld [vmem:[%s12232_s1 + $0x338] sm:$0xff] }
 0x2e4   :  { %v3367_v2 = vmin.f32 %v3365_v54, %v3366_v40  ;;  %v3380_v1 = vmin.f32 %v3378_v26, %v3379_v45  ;;  %v2905_v21 = vmin.f32 %v2873_v18, %v2758_v6  ;;  %v10380_v19 = vpop.f32.mrf.mxu2  ;;  %v10388_v54 = vadd.f32 %v3937_v47, %v9924_v27  ;;  %v1535_v32 = vld [vmem:[#allocation3 + $0x50] sm:$0xff] }
 0x2e5   :  { %v2755_v46 = vpop.xlane.xlu2 %2754  ;;  %4132 = vmin.xlane.f32.xlu2 %v4131_v7  ;;  %v3604_v34 = vmul.f32 -2.0, %v10371_v33  ;;  %v4072_v40 = vmax.f32 %v10362_v35, 0.0  ;;  %v4073_v52 = vmax.f32 %v10365_v23, 0.0  ;;  %v1521_v27 = vrot.slane %v1520_v55, 1 }
 0x2e6   :  { %v3368_v30 = vrot.slane %v3367_v2, 2  ;;  %v2904_v26 = vmin.f32 %v2872_v24, %v2755_v46  ;;  %v10390_v44 = vpop.f32.mrf.mxu3  ;;  %v3381_v60 = vrot.slane %v3380_v1, 2  ;;  %2937 = vst.msk [vmem:[#allocation3 + $0x1e8] sm:$0xff] %vm19_vm2, %v2905_v21  ;;  %v3466_v51 = vmul.f32 %v9986_v59, %v9986_v59  ;;  %v1417_v21 = vld [vmem:[#allocation3 + $0xf8] sm:$0xff] }
 0x2e7   :  { %v1304_v39 = vpop.xlane.xlu1 %1303  ;;  %v5041_v47 = vmul.f32 -2.0, %v10385_v15  ;;  %v1574_v18 = vsel %vm19_vm2, %v1534_v49, 0.0  ;;  %v4140_v24 = vmin.f32 %v4072_v40, %v4073_v52  ;;  %v3025_v6 = vadd.f32 %v3024_v13, %v3023_v50  ;;  %v2990_v13 = vld [vmem:[#allocation3 + $0x138] sm:$0xff] }
 0x2e8   :  { %v1448_v53 = vmin.f32 %v1416_v42, %v1304_v39  ;;  %3528 = vadd.xlane.f32.xlu0 %v3527_v61  ;;  %v3369_v7 = vmin.f32 %v3367_v2, %v3368_v30  ;;  %2936 = vst.msk [vmem:[#allocation3 + $0x1e0] sm:$0xff] %vm19_vm2, %v2904_v26  ;;  %v3382_v22 = vmin.f32 %v3380_v1, %v3381_v60  ;;  %v2989_v2 = vld [vmem:[#allocation3 + $0x130] sm:$0xff]  ;;  %v1576_v42 = vsel %vm19_vm2, %v1535_v32, 0.0 }
 0x2e9   :  { %v3942_v61 = vadd.f32 %v10274_v10, %v9880_v3  ;;  %6335 = vmatmul.msk.f32.gmra.mxu2 %vm225_vm0, %v3604_v34  ;;  %v3943_v1 = vadd.f32 %v10274_v10, %v9882_v11  ;;  %v4064_v30 = vmax.f32 %v10378_v29, 0.0  ;;  %v4065_v49 = vmax.f32 %v10388_v54, 0.0  ;;  %v2874_v29 = vld [vmem:[#allocation3 + $0x1f0] sm:$0xff] }
 0x2ea   :  { %1480 = vst.msk [vmem:[#allocation3 + $0xf0] sm:$0xff] %vm19_vm2, %v1448_v53  ;;  %v3370_v45 = vrot.slane %v3369_v7, 1  ;;  %v3383_v59 = vrot.slane %v3382_v22, 1  ;;  %v1575_v50 = vadd.f32 %v1574_v18, %v1573_v38  ;;  %v1522_v39 = vadd.f32 %v1521_v27, %v1520_v55  ;;  %6438 = vmatmul.msk.f32.gmra.mxu0 %vm225_vm0, %v5041_v47  ;;  %6471 = vmatmul.msk.f32.gmra.mxu1 %vm225_vm0, %v5041_v47  ;;  %v6406_v38 = vld [vmem:[%s12232_s1 + $0x340] sm:$0xff]  ;;  %v2993_v54 = vld [vmem:[#allocation3 + $0x150] sm:$0xff] }
 0x2eb   :  { %6368 = vmatmul.msk.f32.gmra.mxu3 %vm225_vm0, %v3604_v34  ;;  %v1384_v26 = vpop.xlane.xlu0 %1383  ;;  %v3536_v32 = vsel %vm225_vm0, %v3466_v51, 0.0  ;;  %v3026_v10 = vsel %vm19_vm2, %v2989_v2, 0.0  ;;  %v10428_v55 = vmin.f32 %v4064_v30, %v4065_v49  ;;  %v3605_v27 = vmul.f32 -2.0, %v10263_v58 }
 0x2ec   :  { %v3371_v46 = vmin.f32 %v3369_v7, %v3370_v45  ;;  %v3384_v60 = vmin.f32 %v3382_v22, %v3383_v59  ;;  %6498 = vpush %v1384_v26  ;;  %v10419_v34 = vpop.f32.mrf.mxu2  ;;  %v1577_v7 = vadd.f32 %v1576_v42, %v1575_v50  ;;  %v1536_v45 = vld [vmem:[#allocation3 + $0x58] sm:$0xff]  ;;  %v3028_v2 = vsel %vm19_vm2, %v2990_v13, 0.0  ;;  %v1537_v13 = vld [vmem:[#allocation3 + $0x60] sm:$0xff] }
 0x2ed   :  { %v1307_v53 = vpop.xlane.xlu2 %1306  ;;  %4141 = vmin.xlane.f32.xlu2 %v4140_v24  ;;  %6500 = vpush %v1522_v39  ;;  %v3027_v24 = vadd.f32 %v3026_v10, %v3025_v6  ;;  %v10435_v59 = vadd.f32 %v3942_v61, %v10028_v62  ;;  %v10438_v26 = vadd.f32 %v3943_v1, %v10032_v16  ;;  %v5042_v6 = vmul.f32 -2.0, %v6406_v38  ;;  %v10447_v62 = vpop.f32.mrf.mxu0  ;;  %v2991_v1 = vld [vmem:[#allocation3 + $0x140] sm:$0xff] }
 0x2ee   :  { %v1449_v22 = vmin.f32 %v1417_v21, %v1307_v53  ;;  %v3385_v47 = vadd.f32 %v3384_v60, %v3371_v46  ;;  %v10431_v18 = vpop.f32.mrf.mxu3  ;;  %v3469_v21 = vmul.f32 %v10093_v63, %v10093_v63  ;;  %v3470_v46 = vmul.f32 %v10137_v5, %v10137_v5  ;;  %12730 = vst [vmem:[#allocation30_spill] sm:$0xff] %v10447_v62  ;;  %v10449_v61 = vpop.f32.mrf.mxu1  ;;  %v1538_v60 = vld [vmem:[#allocation3 + $0x68] sm:$0xff]  ;;  %v10457_v63 = vld [vmem:[%s12232_s1 + $0x2f8] sm:$0xff] }
 0x2ef   :  { %v3487_v51 = vpop.xlane.xlu1 %3486  ;;  %12731 = vst [vmem:[#allocation32_spill] sm:$0xff] %v10449_v61  ;;  %v1578_v16 = vsel %vm19_vm2, %v1536_v45, 0.0  ;;  %v3029_v50 = vadd.f32 %v3028_v2, %v3027_v24  ;;  %v12390_v5 = vmax.f32 %v10435_v59, 0.0  ;;  %v1582_v24 = vsel %vm19_vm2, %v1538_v60, 0.0  ;;  %v12752_v61 = vld [vmem:[#allocation26_spill] sm:$0xff] }
 0x2f0   :  { %3537 = vadd.xlane.f32.xlu0 %v3536_v32  ;;  %1481 = vst.msk [vmem:[#allocation3 + $0xf8] sm:$0xff] %vm19_vm2, %v1449_v22  ;;  %v3940_v58 = vadd.f32 %v3487_v51, %v9880_v3  ;;  %v3941_v42 = vadd.f32 %v3487_v51, %v9882_v11  ;;  %3386 = vadd.xlane.f32.xlu1 %v3385_v47  ;;  %v12391_v32 = vmax.f32 %v10438_v26, 0.0  ;;  %v3545_v38 = vsel %vm225_vm0, %v3469_v21, 0.0 }
 0x2f1   :  { %6336 = vmatmul.msk.f32.gmra.mxu2 %vm225_vm0, %v3605_v27  ;;  %v1579_v39 = vadd.f32 %v1578_v16, %v1577_v7  ;;  %v3030_v7 = vsel %vm19_vm2, %v2991_v1, 0.0  ;;  %v1580_v47 = vsel %vm19_vm2, %v1537_v13, 0.0  ;;  %v3606_v21 = vmul.f32 -2.0, %v10457_v63 }
 0x2f2   :  { %v10462_v10 = vadd.f32 %v3940_v58, %v9979_v0  ;;  %v10465_v53 = vadd.f32 %v3941_v42, %v9981_v36  ;;  %6439 = vmatmul.msk.f32.gmra.mxu0 %vm225_vm0, %v5042_v6  ;;  %6472 = vmatmul.msk.f32.gmra.mxu1 %vm225_vm0, %v5042_v6  ;;  %v10477_v0 = vld [vmem:[%s12232_s1 + $0x348] sm:$0xff]  ;;  %v10483_v36 = vmin.f32 %v4066_v14, %v12390_v5 }
 0x2f3   :  { %6369 = vmatmul.msk.f32.gmra.mxu3 %vm225_vm0, %v3605_v27  ;;  %v3548_v27 = vsel %vm225_vm0, %v3470_v46, 0.0  ;;  %v10489_v51 = vmin.f32 %v4067_v37, %v12391_v32  ;;  %v3031_v45 = vadd.f32 %v3030_v7, %v3029_v50  ;;  %v3390_v58 = vld [vmem:[#allocation2 + $0x80] sm:$0xff]  ;;  %v3948_v25 = vadd.f32 %v10330_v28, %v9880_v3  ;;  %v2992_v50 = vld [vmem:[#allocation3 + $0x148] sm:$0xff] }
 0x2f4   :  { %v10472_v22 = vpop.f32.mrf.mxu2  ;;  %v3949_v14 = vadd.f32 %v10330_v28, %v9882_v11  ;;  %v3472_v9 = vmul.f32 %v10200_v41, %v10200_v41  ;;  %v1581_v37 = vadd.f32 %v1580_v47, %v1579_v39  ;;  %v5043_v46 = vmul.f32 -2.0, %v10477_v0 }
 0x2f5   :  { %v12396_v16 = vmax.f32 %v10462_v10, 0.0  ;;  %v12397_v1 = vmax.f32 %v10465_v53, 0.0  ;;  %v3473_v28 = vmul.f32 %v10233_v4, %v10233_v4  ;;  %v6593_v41 = vmov 0.0  }
 0x2f6   :  { %v10493_v42 = vpop.f32.mrf.mxu3  ;;  %v10510_v7 = vpop.f32.mrf.mxu1  ;;  %180 = vst [vmem:[#allocation4] sm:$0x3] %v6593_v41  ;;  %v1583_v39 = vadd.f32 %v1582_v24, %v1581_v37  ;;  %v10526_v24 = vadd.f32 %v3949_v14, %v10144_v31  ;;  %v1540_v31 = vld [vmem:[#allocation3 + $0x78] sm:$0xff]  ;;  %v3476_v35 = vmul.f32 %v10371_v33, %v10371_v33  ;;  %v10577_v33 = vld [vmem:[%s12232_s1 + $0x350] sm:$0xff] }
 0x2f7   :  { %v3496_v2 = vpop.xlane.xlu1 %3495  ;;  %v3337_v6 = vpop.xlane.xlu2 %3336  ;;  %12733 = vst [vmem:[#allocation16_spill] sm:$0xff] %v10510_v7  ;;  %v4261_v4 = vmin.f32 %v4065_v49, %v12397_v1 }
 0x2f8   :  { %3546 = vadd.xlane.f32.xlu0 %v3545_v38  ;;  %3549 = vadd.xlane.f32.xlu1 %v3548_v27  ;;  %v3946_v13 = vadd.f32 %v3496_v2, %v9880_v3  ;;  %v3398_v60 = vmin.f32 %v3390_v58, %v3337_v6  ;;  %v10508_v38 = vpop.f32.mrf.mxu0  ;;  %v1539_v27 = vld [vmem:[#allocation3 + $0x70] sm:$0xff]  ;;  %v3947_v47 = vadd.f32 %v3496_v2, %v9882_v11  ;;  %v3032_v2 = vsel %vm19_vm2, %v2992_v50, 0.0  ;;  %v2875_v50 = vld [vmem:[#allocation3 + $0x1f8] sm:$0xff] }
 0x2f9   :  { %12732 = vst [vmem:[#allocation33_spill] sm:$0xff] %v10508_v38  ;;  %6337 = vmatmul.msk.f32.gmra.mxu2 %vm225_vm0, %v3606_v21  ;;  %v4224_v58 = vmin.f32 %v4064_v30, %v12396_v16  ;;  %v10523_v6 = vadd.f32 %v3948_v25, %v10142_v17  ;;  %v3554_v30 = vsel %vm225_vm0, %v3472_v9, 0.0  ;;  %v3557_v17 = vsel %vm225_vm0, %v3473_v28, 0.0  ;;  %v2994_v28 = vld [vmem:[#allocation3 + $0x158] sm:$0xff] }
 0x2fa   :  { %181 = vst [vmem:[#allocation4 + $0x2] sm:$0x3] %v6593_v41  ;;  %6440 = vmatmul.msk.f32.gmra.mxu0 %vm225_vm0, %v5043_v46  ;;  %6473 = vmatmul.msk.f32.gmra.mxu1 %vm225_vm0, %v5043_v46  ;;  %v1584_v25 = vsel %vm19_vm2, %v1539_v27, 0.0  ;;  %v10539_v14 = vadd.f32 %v3946_v13, %v10107_v12  ;;  %v10542_v9 = vadd.f32 %v3947_v47, %v10109_v20  ;;  %v12393_v27 = vmax.f32 %v10526_v24, 0.0 }
 0x2fb   :  { %3406 = vst.msk [vmem:[#allocation2 + $0x80] sm:$0xff] %vm19_vm2, %v3398_v60  ;;  %6370 = vmatmul.msk.f32.gmra.mxu3 %vm225_vm0, %v3606_v21  ;;  %v3033_v21 = vadd.f32 %v3032_v2, %v3031_v45  ;;  %v1541_v60 = vld [vmem:[#allocation3 + $0x80] sm:$0xff]  ;;  %v1585_v5 = vadd.f32 %v1584_v25, %v1583_v39  ;;  %v4226_v12 = vmin.f32 %v4224_v58, %v4072_v40  ;;  %v3034_v45 = vsel %vm19_vm2, %v2993_v54, 0.0 }
 0x2fc   :  { %182 = vst [vmem:[#allocation4 + $0x4] sm:$0x3] %v6593_v41  ;;  %v10535_v49 = vpop.f32.mrf.mxu2  ;;  %v3475_v13 = vmul.f32 %v10321_v57, %v10321_v57  ;;  %v4263_v39 = vmin.f32 %v4261_v4, %v4073_v52  ;;  %v1586_v47 = vsel %vm19_vm2, %v1540_v31, 0.0  ;;  %v2995_v2 = vld [vmem:[#allocation3 + $0x160] sm:$0xff]  ;;  %v1588_v57 = vsel %vm19_vm2, %v1541_v60, 0.0 }
 0x2fd   :  { %183 = vst [vmem:[#allocation4 + $0x6] sm:$0x3] %v6593_v41  ;;  %v12392_v41 = vmax.f32 %v10523_v6, 0.0  ;;  %v3036_v23 = vsel %vm19_vm2, %v2994_v28, 0.0  ;;  %v3035_v4 = vadd.f32 %v3034_v45, %v3033_v21  ;;  %v12394_v54 = vmax.f32 %v10539_v14, 0.0 }
 0x2fe   :  { %v10544_v46 = vpop.f32.mrf.mxu3  ;;  %v10561_v58 = vpop.f32.mrf.mxu1  ;;  %v10571_v52 = vmin.f32 %v4263_v39, %v12393_v27  ;;  %v3038_v31 = vsel %vm19_vm2, %v2995_v2, 0.0  ;;  %v3563_v25 = vsel %vm225_vm0, %v3475_v13, 0.0  ;;  %v3566_v28 = vsel %vm225_vm0, %v3476_v35, 0.0  ;;  %v2996_v39 = vld [vmem:[#allocation3 + $0x168] sm:$0xff]  ;;  %v3392_v2 = vld [vmem:[#allocation2 + $0x90] sm:$0xff] }
 0x2ff   :  { %v2761_v37 = vpop.xlane.xlu1 %2760  ;;  %v2764_v20 = vpop.xlane.xlu2 %2763  ;;  %12735 = vst [vmem:[#allocation20_spill] sm:$0xff] %v10561_v58  ;;  %v3037_v60 = vadd.f32 %v3036_v23, %v3035_v4  ;;  %v10590_v45 = vmin.f32 %v10483_v36, %v12394_v54  ;;  %v10604_v36 = vld [vmem:[%s12232_s1 + $0x358] sm:$0xff]  ;;  %v3478_v35 = vmul.f32 %v10457_v63, %v10457_v63 }
 0x300   :  { %v2906_v32 = vmin.f32 %v2874_v29, %v2761_v37  ;;  %3555 = vadd.xlane.f32.xlu0 %v3554_v30  ;;  %3558 = vadd.xlane.f32.xlu1 %v3557_v17  ;;  %v2907_v29 = vmin.f32 %v2875_v50, %v2764_v20  ;;  %v10559_v40 = vpop.f32.mrf.mxu0  ;;  %v10565_v30 = vmin.f32 %v4226_v12, %v12392_v41  ;;  %v12395_v17 = vmax.f32 %v10542_v9, 0.0  ;;  %v1542_v50 = vld [vmem:[#allocation3 + $0x88] sm:$0xff] }
 0x301   :  { %12734 = vst [vmem:[#allocation19_spill] sm:$0xff] %v10559_v40  ;;  %v5044_v37 = vmul.f32 -2.0, %v10577_v33  ;;  %v3572_v63 = vsel %vm225_vm0, %v3478_v35, 0.0  ;;  %v10632_v35 = vld [vmem:[%s12232_s1 + $0x360] sm:$0xff] }
 0x302   :  { %2938 = vst.msk [vmem:[#allocation3 + $0x1f0] sm:$0xff] %vm19_vm2, %v2906_v32  ;;  %v1587_v32 = vadd.f32 %v1586_v47, %v1585_v5  ;;  %v1543_v5 = vld [vmem:[#allocation3 + $0x90] sm:$0xff]  ;;  %v10595_v20 = vmin.f32 %v10489_v51, %v12395_v17  ;;  %v3039_v47 = vadd.f32 %v3038_v31, %v3037_v60  ;;  %v3040_v31 = vsel %vm19_vm2, %v2996_v39, 0.0 }
 0x303   :  { %2939 = vst.msk [vmem:[#allocation3 + $0x1f8] sm:$0xff] %vm19_vm2, %v2907_v29  ;;  %6441 = vmatmul.msk.f32.gmra.mxu0 %vm225_vm0, %v5044_v37  ;;  %6474 = vmatmul.msk.f32.gmra.mxu1 %vm225_vm0, %v5044_v37  ;;  %v1590_v29 = vsel %vm19_vm2, %v1542_v50, 0.0  ;;  %v1592_v51 = vsel %vm19_vm2, %v1543_v5, 0.0  ;;  %v5045_v60 = vmul.f32 -2.0, %v10604_v36  ;;  %v1544_v50 = vld [vmem:[#allocation3 + $0x98] sm:$0xff]  ;;  %v2997_v5 = vld [vmem:[#allocation3 + $0x170] sm:$0xff] }
 0x304   :  { %v1589_v21 = vadd.f32 %v1588_v57, %v1587_v32  ;;  %v10585_v12 = vpop.f32.mrf.mxu2  ;;  %v3041_v27 = vadd.f32 %v3040_v31, %v3039_v47  ;;  %v1594_v54 = vsel %vm19_vm2, %v1544_v50, 0.0  ;;  %v3042_v47 = vsel %vm19_vm2, %v2997_v5, 0.0 }
 0x306   :  { %v10597_v13 = vpop.f32.mrf.mxu3  ;;  %v1591_v23 = vadd.f32 %v1590_v29, %v1589_v21  ;;  %v10615_v37 = vpop.f32.mrf.mxu1  ;;  %v1545_v21 = vld [vmem:[#allocation3 + $0xa0] sm:$0xff]  ;;  %v3043_v50 = vadd.f32 %v3042_v47, %v3041_v27  ;;  %v5046_v27 = vmul.f32 -2.0, %v10632_v35  ;;  %v12740_v47 = vmax.f32 %v10465_v53, 0.0 }
 0x307   :  { %v10610_v57 = vpop.xlane.xlu2 %3507  ;;  %12737 = vst [vmem:[#allocation14_spill] sm:$0xff] %v10615_v37 }
 0x308   :  { %3564 = vadd.xlane.f32.xlu0 %v3563_v25  ;;  %3567 = vadd.xlane.f32.xlu1 %v3566_v28  ;;  %v10612_v4 = vpop.f32.mrf.mxu0  ;;  %v1593_v41 = vadd.f32 %v1592_v51, %v1591_v23  ;;  %v2998_v28 = vld [vmem:[#allocation3 + $0x178] sm:$0xff]  ;;  %v1546_v51 = vld [vmem:[#allocation3 + $0xa8] sm:$0xff] }
 0x309   :  { %v3343_v32 = vpop.xlane.xlu1 %3342  ;;  %12736 = vst [vmem:[#allocation24_spill] sm:$0xff] %v10612_v4  ;;  %v3044_v31 = vsel %vm19_vm2, %v2998_v28, 0.0 }
 0x30a   :  { %v3400_v25 = vmin.f32 %v3392_v2, %v3343_v32  ;;  %v3393_v2 = vld [vmem:[#allocation2 + $0x98] sm:$0xff]  ;;  %v1595_v23 = vadd.f32 %v1594_v54, %v1593_v41  ;;  %v2999_v32 = vld [vmem:[#allocation3 + $0x180] sm:$0xff]  ;;  %v1598_v54 = vsel %vm19_vm2, %v1546_v51, 0.0  ;;  %v3045_v5 = vadd.f32 %v3044_v31, %v3043_v50  ;;  %v1547_v51 = vld [vmem:[#allocation3 + $0xb0] sm:$0xff] }
 0x30b   :  { %6442 = vmatmul.msk.f32.gmra.mxu0 %vm225_vm0, %v5045_v60  ;;  %6475 = vmatmul.msk.f32.gmra.mxu1 %vm225_vm0, %v5045_v60  ;;  %v3046_v28 = vsel %vm19_vm2, %v2999_v32, 0.0  ;;  %v12741_v31 = vmax.f32 %v10462_v10, 0.0  ;;  %v1548_v10 = vld [vmem:[#allocation3 + $0xb8] sm:$0xff] }
 0x30c   :  { %3408 = vst.msk [vmem:[#allocation2 + $0x90] sm:$0xff] %vm19_vm2, %v3400_v25  ;;  %v10620_v29 = vpop.f32.mrf.mxu2  ;;  %v1596_v25 = vsel %vm19_vm2, %v1545_v21, 0.0 }
 0x30d   :  { %v1597_v21 = vadd.f32 %v1596_v25, %v1595_v23  ;;  %v4134_v50 = vmin.f32 %v12741_v31, %v12740_v47  ;;  %v3001_v23 = vld [vmem:[#allocation3 + $0x190] sm:$0xff]  ;;  %v3047_v25 = vadd.f32 %v3046_v28, %v3045_v5  ;;  %v1602_v31 = vsel %vm19_vm2, %v1548_v10, 0.0  ;;  %v3004_v10 = vld [vmem:[#allocation3 + $0x1a8] sm:$0xff] }
 0x30e   :  { %v10623_v39 = vpop.f32.mrf.mxu3  ;;  %v10642_v58 = vpop.f32.mrf.mxu1 }
 0x30f   :  { %12739 = vst [vmem:[#allocation45_spill] sm:$0xff] %v10642_v58  ;;  %v1599_v32 = vadd.f32 %v1598_v54, %v1597_v21  ;;  %v184_v58 = vlaneseq  ;;  %v3050_v21 = vsel %vm19_vm2, %v3001_v23, 0.0  ;;  %v1549_v23 = vld [vmem:[#allocation3 + $0xc0] sm:$0xff] }
 0x310   :  { %3573 = vadd.xlane.f32.xlu0 %v3572_v63  ;;  %4129 = vmin.xlane.f32.xlu1 %v10428_v55  ;;  %v3346_v17 = vpop.xlane.xlu2 %3345  ;;  %v10636_v41 = vpop.f32.mrf.mxu0  ;;  %v3000_v55 = vld [vmem:[#allocation3 + $0x188] sm:$0xff] }
 0x311   :  { %v3505_v60 = vpop.xlane.xlu1 %3504  ;;  %v3401_v16 = vmin.f32 %v3393_v2, %v3346_v17  ;;  %12738 = vst [vmem:[#allocation35_spill] sm:$0xff] %v10636_v41  ;;  %v3048_v53 = vsel %vm19_vm2, %v3000_v55, 0.0  ;;  %v10688_v55 = vshrl.u32 %v184_v58, 7 }
 0x312   :  { %v3952_v63 = vadd.f32 %v3505_v60, %v9880_v3  ;;  %v3953_v1 = vadd.f32 %v3505_v60, %v9882_v11 }
 0x313   :  { %3409 = vst.msk [vmem:[#allocation2 + $0x98] sm:$0xff] %vm19_vm2, %v3401_v16  ;;  %v12742_v16 = vmax.f32 %v10438_v26, 0.0  ;;  %6443 = vmatmul.msk.f32.gmra.mxu0 %vm225_vm0, %v5046_v27  ;;  %6476 = vmatmul.msk.f32.gmra.mxu1 %vm225_vm0, %v5046_v27  ;;  %v10672_v26 = vld [vmem:[%s12232_s1 + $0x368] sm:$0xff]  ;;  %vm1483_vm3 = vcmp.eq.s32.totalorder %v10688_v55, 0 }
 0x314   :  { %v10647_v17 = vadd.f32 %v3952_v63, %v10210_v48  ;;  %v10650_v2 = vadd.f32 %v3953_v1, %v10212_v43  ;;  %v10656_v60 = vpop.f32.mrf.mxu2  ;;  %v12743_v48 = vmax.f32 %v10435_v59, 0.0  ;;  %v1600_v59 = vsel %vm19_vm2, %v1547_v51, 0.0  ;;  %12744 = vst [vmem:[#allocation38_spill] sm:$0xff] %v10688_v55 }
 0x315   :  { %v1601_v27 = vadd.f32 %v1600_v59, %v1599_v32  ;;  %v5047_v32 = vmul.f32 -2.0, %v10672_v26 }
 0x316   :  { %v4137_v63 = vmin.f32 %v12743_v48, %v12742_v16  ;;  %v10662_v41 = vpop.f32.mrf.mxu3  ;;  %v12398_v43 = vmax.f32 %v10647_v17, 0.0  ;;  %v12399_v1 = vmax.f32 %v10650_v2, 0.0  ;;  %v3049_v16 = vadd.f32 %v3048_v53, %v3047_v25 }
 0x317   :  { %v1603_v59 = vadd.f32 %v1602_v31, %v1601_v27  ;;  %v12747_v53 = vmax.f32 %v10542_v9, 0.0  ;;  %v12748_v48 = vmax.f32 %v10539_v14, 0.0  ;;  %v3954_v27 = vadd.f32 %v10610_v57, %v9880_v3 }
 0x318   :  { %4135 = vmin.xlane.f32.xlu0 %v4134_v50  ;;  %4138 = vmin.xlane.f32.xlu1 %v4137_v63  ;;  %v10675_v54 = vpop.xlane.xlu2 %3516  ;;  %v10680_v5 = vmin.f32 %v10565_v30, %v12398_v43  ;;  %v10685_v28 = vmin.f32 %v10571_v52, %v12399_v1  ;;  %v10690_v51 = vpop.f32.mrf.mxu0  ;;  %v3002_v50 = vld [vmem:[#allocation3 + $0x198] sm:$0xff]  ;;  %v3051_v58 = vadd.f32 %v3050_v21, %v3049_v16  ;;  %v3003_v43 = vld [vmem:[#allocation3 + $0x1a0] sm:$0xff]  ;;  %v1604_v21 = vsel %vm19_vm2, %v1549_v23, 0.0  ;;  %v3395_v23 = vld [vmem:[#allocation2 + $0xa8] sm:$0xff] }
 0x319   :  { %v3514_v47 = vpop.xlane.xlu1 %3513  ;;  %12745 = vst [vmem:[#allocation40_spill] sm:$0xff] %v10690_v51  ;;  %v10697_v52 = vpop.f32.mrf.mxu1  ;;  %v3052_v25 = vsel %vm19_vm2, %v3002_v50, 0.0  ;;  %v4143_v30 = vmin.f32 %v12748_v48, %v12747_v53  ;;  %v1484_v16 = vstv %s6497_s6  ;;  %v3955_v31 = vadd.f32 %v10610_v57, %v9882_v11  ;;  %v1482_v50 = vld [vmem:[#allocation4] sm:$0x3]  ;;  %v10726_v57 = vld [vmem:[%s12232_s1 + $0x370] sm:$0xff] }
 0x31a   :  { %12746 = vst [vmem:[#allocation42_spill] sm:$0xff] %v10697_v52  ;;  %v3958_v63 = vadd.f32 %v3514_v47, %v9880_v3  ;;  %v3959_v52 = vadd.f32 %v3514_v47, %v9882_v11  ;;  %v12749_v9 = vmax.f32 %v10526_v24, 0.0  ;;  %v12750_v14 = vmax.f32 %v10523_v6, 0.0 }
 0x31b   :  { %6444 = vmatmul.msk.f32.gmra.mxu0 %vm225_vm0, %v5047_v32  ;;  %6477 = vmatmul.msk.f32.gmra.mxu1 %vm225_vm0, %v5047_v32  ;;  %v3053_v51 = vadd.f32 %v3052_v25, %v3051_v58  ;;  %v3054_v24 = vsel %vm19_vm2, %v3003_v43, 0.0  ;;  %v3056_v6 = vsel %vm19_vm2, %v3004_v10, 0.0  ;;  %v1605_v4 = vadd.f32 %v1604_v21, %v1603_v59 }
 0x31c   :  { %v10707_v1 = vpop.f32.mrf.mxu2  ;;  %v4146_v48 = vmin.f32 %v12750_v14, %v12749_v9  ;;  %v3391_v14 = vld [vmem:[#allocation2 + $0x88] sm:$0xff]  ;;  %v10736_v37 = vadd.f32 %v3958_v63, %v10332_v8  ;;  %v10741_v25 = vadd.f32 %v3959_v52, %v10342_v56  ;;  %v4018_v62 = vadd.f32 %v3954_v27, %v12752_v61  ;;  %v1551_v27 = vld [vmem:[#allocation3 + $0xd0] sm:$0xff] }
 0x31d   :  { %s6499_s7 = spop %6498  ;;  %v5048_v59 = vmul.f32 -2.0, %v10726_v57  ;;  %v12756_v56 = vmax.f32 %v10647_v17, 0.0 }
 0x31e   :  { %v10719_v53 = vpop.f32.mrf.mxu3  ;;  %v1485_v47 = vstv %s6499_s7 }
 0x31f   :  { %v1486_v9 = vsel %vm1483_vm3, %v1484_v16, %v1485_v47 }
 0x320   :  { %4144 = vmin.xlane.f32.xlu0 %v4143_v30  ;;  %4147 = vmin.xlane.f32.xlu1 %v4146_v48  ;;  %v6550_v30 = vld [vmem:[%s12232_s1 + $0x308] sm:$0xff]  ;;  %v3526_v40 = vpop.xlane.xlu2 %3525  ;;  %v1487_v58 = vadd.f32 %v1486_v9, %v1482_v50  ;;  %v10743_v16 = vpop.f32.mrf.mxu0  ;;  %v1550_v48 = vld [vmem:[#allocation3 + $0xc8] sm:$0xff] }
 0x321   :  { %v4907_v32 = vmul.f32 %v6550_v30, %v6550_v30  ;;  %v3966_v43 = vadd.f32 %v3526_v40, %v9880_v3  ;;  %v3967_v10 = vadd.f32 %v3526_v40, %v9882_v11  ;;  %12751 = vst [vmem:[#allocation41_spill] sm:$0xff] %v10743_v16  ;;  %v3352_v47 = vpop.xlane.xlu1 %3351  ;;  %v12753_v30 = vld [vmem:[#allocation27_spill] sm:$0xff]  ;;  %v10747_v8 = vpop.f32.mrf.mxu1  ;;  %v12755_v40 = vmax.f32 %v10650_v2, 0.0 }
 0x322   :  { %v4019_v7 = vadd.f32 %v3955_v31, %v12753_v30  ;;  %v3340_v38 = vpop.xlane.xlu0 %3339  ;;  %12754 = vst [vmem:[#allocation44_spill] sm:$0xff] %v10747_v8  ;;  %v3403_v63 = vmin.f32 %v3395_v23, %v3352_v47  ;;  %v3005_v31 = vld [vmem:[#allocation3 + $0x1b0] sm:$0xff]  ;;  %v1606_v23 = vsel %vm19_vm2, %v1550_v48, 0.0  ;;  %v1608_v48 = vsel %vm19_vm2, %v1551_v27, 0.0  ;;  %v3011_v8 = vld [vmem:[#allocation3 + $0x1e0] sm:$0xff] }
 0x323   :  { %1488 = vst [vmem:[#allocation4] sm:$0x3] %v1487_v58  ;;  %v3399_v21 = vmin.f32 %v3391_v14, %v3340_v38  ;;  %v4152_v52 = vmin.f32 %v12756_v56, %v12755_v40  ;;  %v10755_v50 = vadd.f32 %v3966_v43, %v10535_v49  ;;  %v10758_v61 = vadd.f32 %v3967_v10, %v10544_v46  ;;  %v1552_v43 = vld [vmem:[#allocation3 + $0xd8] sm:$0xff] }
 0x324   :  { %v4941_v9 = vsel %vm225_vm0, %v4907_v32, 0.0  ;;  %3411 = vst.msk [vmem:[#allocation2 + $0xa8] sm:$0xff] %vm19_vm2, %v3403_v63  ;;  %v3055_v38 = vadd.f32 %v3054_v24, %v3053_v51  ;;  %v10766_v49 = vpop.f32.mrf.mxu2  ;;  %v12402_v46 = vmax.f32 %v10736_v37, 0.0  ;;  %v12403_v14 = vmax.f32 %v10741_v25, 0.0  ;;  %v3396_v32 = vld [vmem:[#allocation2 + $0xb0] sm:$0xff]  ;;  %6445 = vmatmul.msk.f32.gmra.mxu0 %vm225_vm0, %v5048_v59  ;;  %6478 = vmatmul.msk.f32.gmra.mxu1 %vm225_vm0, %v5048_v59 }
 0x325   :  { %3407 = vst.msk [vmem:[#allocation2 + $0x88] sm:$0xff] %vm19_vm2, %v3399_v21  ;;  %v12400_v17 = vmax.f32 %v10755_v50, 0.0  ;;  %v12401_v2 = vmax.f32 %v10758_v61, 0.0  ;;  %v1607_v10 = vadd.f32 %v1606_v23, %v1605_v4  ;;  %v3058_v24 = vsel %vm19_vm2, %v3005_v31, 0.0 }
 0x326   :  { %v10770_v58 = vpop.f32.mrf.mxu3  ;;  %v3057_v51 = vadd.f32 %v3056_v6, %v3055_v38  ;;  %v12757_v47 = vmin.f32 %v10590_v45, %v10680_v5  ;;  %v12758_v4 = vmin.f32 %v10595_v20, %v10685_v28  ;;  %v4082_v21 = vmax.f32 %v4018_v62, 0.0  ;;  %v6551_v6 = vld [vmem:[%s12232_s1 + $0x300] sm:$0xff]  ;;  %v10799_v62 = vld [vmem:[%s12232_s1 + $0x378] sm:$0xff] }
 0x327   :  { %v4083_v40 = vmax.f32 %v4019_v7, 0.0  ;;  %v4906_v59 = vmul.f32 %v6551_v6, %v6551_v6  ;;  %v1610_v27 = vsel %vm19_vm2, %v1552_v43, 0.0  ;;  %v3006_v7 = vld [vmem:[#allocation3 + $0x1b8] sm:$0xff]  ;;  %v1609_v31 = vadd.f32 %v1608_v48, %v1607_v10  ;;  %v1553_v6 = vld [vmem:[#allocation3 + $0xe0] sm:$0xff]  ;;  %v12761_v48 = vld [vmem:[#allocation23_spill] sm:$0xff] }
 0x328   :  { %4153 = vmin.xlane.f32.xlu0 %v4152_v52  ;;  %v4231_v30 = vmin.f32 %v12757_v47, %v12400_v17  ;;  %v4268_v63 = vmin.f32 %v12758_v4, %v12401_v2  ;;  %4942 = vadd.xlane.f32.xlu1 %v4941_v9  ;;  %v3355_v56 = vpop.xlane.xlu2 %3354  ;;  %v10794_v20 = vpop.f32.mrf.mxu0  ;;  %v5049_v23 = vmul.f32 -2.0, %v10799_v62  ;;  %v3059_v38 = vadd.f32 %v3058_v24, %v3057_v51  ;;  %v12762_v2 = vld [vmem:[#allocation25_spill] sm:$0xff] }
 0x329   :  { %v3404_v5 = vmin.f32 %v3396_v32, %v3355_v56  ;;  %12759 = vst [vmem:[#allocation43_spill] sm:$0xff] %v10794_v20  ;;  %v10801_v9 = vpop.f32.mrf.mxu1  ;;  %v4155_v4 = vmin.f32 %v4082_v21, %v4083_v40  ;;  %v1611_v56 = vadd.f32 %v1610_v27, %v1609_v31  ;;  %v3060_v10 = vsel %vm19_vm2, %v3006_v7, 0.0  ;;  %v3007_v24 = vld [vmem:[#allocation3 + $0x1c0] sm:$0xff]  ;;  %v6553_v27 = vld [vmem:[%s12232_s1 + $0x318] sm:$0xff] }
 0x32a   :  { %v4232_v52 = vmin.f32 %v12402_v46, %v4231_v30  ;;  %v4269_v45 = vmin.f32 %v12403_v14, %v4268_v63  ;;  %v3502_v28 = vpop.xlane.xlu0 %3501  ;;  %12760 = vst [vmem:[#allocation17_spill] sm:$0xff] %v10801_v9  ;;  %v4938_v63 = vsel %vm225_vm0, %v4906_v59, 0.0  ;;  %v1554_v59 = vld [vmem:[#allocation3 + $0xe8] sm:$0xff]  ;;  %v4909_v7 = vmul.f32 %v6553_v27, %v6553_v27 }
 0x32b   :  { %v3950_v47 = vadd.f32 %v3502_v28, %v9880_v3  ;;  %v3951_v32 = vadd.f32 %v3502_v28, %v9882_v11  ;;  %3412 = vst.msk [vmem:[#allocation2 + $0xb0] sm:$0xff] %vm19_vm2, %v3404_v5 }
 0x32c   :  { %v4234_v43 = vmin.f32 %v4232_v52, %v4082_v21  ;;  %v4271_v30 = vmin.f32 %v4269_v45, %v4083_v40  ;;  %v10811_v51 = vpop.f32.mrf.mxu2  ;;  %6446 = vmatmul.msk.f32.gmra.mxu0 %vm225_vm0, %v5049_v23  ;;  %6479 = vmatmul.msk.f32.gmra.mxu1 %vm225_vm0, %v5049_v23  ;;  %v1612_v52 = vsel %vm19_vm2, %v1553_v6, 0.0  ;;  %v3061_v45 = vadd.f32 %v3060_v10, %v3059_v38 }
 0x32d   :  { %v4014_v17 = vadd.f32 %v3950_v47, %v12761_v48  ;;  %v4015_v46 = vadd.f32 %v3951_v32, %v12762_v2  ;;  %v6552_v2 = vld [vmem:[%s12232_s1 + $0x320] sm:$0xff]  ;;  %v1613_v31 = vadd.f32 %v1612_v52, %v1611_v56  ;;  %v1555_v32 = vld [vmem:[#allocation3 + $0xf0] sm:$0xff]  ;;  %v1614_v10 = vsel %vm19_vm2, %v1554_v59, 0.0 }
 0x32e   :  { %v10813_v14 = vpop.f32.mrf.mxu3  ;;  %v4910_v5 = vmul.f32 %v6552_v2, %v6552_v2  ;;  %v1616_v59 = vsel %vm19_vm2, %v1555_v32, 0.0 }
 0x32f   :  { %v4078_v21 = vmax.f32 %v4014_v17, 0.0  ;;  %v4079_v40 = vmax.f32 %v4015_v46, 0.0  ;;  %v3062_v17 = vsel %vm19_vm2, %v3007_v24, 0.0  ;;  %v3008_v24 = vld [vmem:[#allocation3 + $0x1c8] sm:$0xff]  ;;  %v1615_v27 = vadd.f32 %v1614_v10, %v1613_v31  ;;  %v3010_v31 = vld [vmem:[#allocation3 + $0x1d8] sm:$0xff] }
 0x330   :  { %4939 = vadd.xlane.f32.xlu0 %v4938_v63  ;;  %4156 = vmin.xlane.f32.xlu1 %v4155_v4  ;;  %v3535_v28 = vpop.xlane.xlu2 %3534  ;;  %v10826_v4 = vpop.f32.mrf.mxu0  ;;  %v4950_v2 = vsel %vm225_vm0, %v4910_v5, 0.0  ;;  %v3961_v10 = vadd.f32 %v10675_v54, %v9882_v11  ;;  %v3068_v20 = vsel %vm19_vm2, %v3010_v31, 0.0  ;;  %v6554_v31 = vld [vmem:[%s12232_s1 + $0x310] sm:$0xff] }
 0x331   :  { %v4233_v46 = vmin.f32 %v4078_v21, %v4234_v43  ;;  %v4270_v23 = vmin.f32 %v4079_v40, %v4271_v30  ;;  %v4149_v47 = vmin.f32 %v4078_v21, %v4079_v40  ;;  %v3972_v38 = vadd.f32 %v3535_v28, %v9880_v3  ;;  %12763 = vst [vmem:[#allocation36_spill] sm:$0xff] %v10826_v4  ;;  %v10832_v48 = vpop.f32.mrf.mxu1  ;;  %v1556_v43 = vld [vmem:[#allocation3 + $0xf8] sm:$0xff] }
 0x332   :  { %v10828_v63 = vpop.xlane.xlu0 %2840  ;;  %v3973_v6 = vadd.f32 %v3535_v28, %v9882_v11  ;;  %12765 = vst [vmem:[#allocation15_spill] sm:$0xff] %v10832_v48  ;;  %v10840_v30 = vld [vmem:[%s12232_s1 + $0x380] sm:$0xff]  ;;  %v3063_v21 = vadd.f32 %v3062_v17, %v3061_v45  ;;  %v4947_v40 = vsel %vm225_vm0, %v4909_v7, 0.0  ;;  %v1618_v45 = vsel %vm19_vm2, %v1556_v43, 0.0 }
 0x333   :  { %12764 = vst [vmem:[#allocation31_spill] sm:$0xff] %v10828_v63  ;;  %4150 = vmin.xlane.f32.xlu2 %v4149_v47  ;;  %v10835_v56 = vadd.f32 %v3972_v38, %v10656_v60  ;;  %v5050_v47 = vmul.f32 -2.0, %v10840_v30  ;;  %v3009_v38 = vld [vmem:[#allocation3 + $0x1d0] sm:$0xff]  ;;  %v1617_v17 = vadd.f32 %v1616_v59, %v1615_v27  ;;  %v4913_v27 = vmul.f32 %v10385_v15, %v10385_v15 }
 0x334   :  { %v10844_v52 = vadd.f32 %v3973_v6, %v10662_v41  ;;  %v10849_v28 = vpop.f32.mrf.mxu2  ;;  %v3064_v41 = vsel %vm19_vm2, %v3008_v24, 0.0  ;;  %v3960_v6 = vadd.f32 %v10675_v54, %v9880_v3  ;;  %v3394_v24 = vld [vmem:[#allocation2 + $0xa0] sm:$0xff] }
 0x335   :  { %v12404_v60 = vmax.f32 %v10835_v56, 0.0  ;;  %6447 = vmatmul.msk.f32.gmra.mxu0 %vm225_vm0, %v5050_v47  ;;  %v3065_v32 = vadd.f32 %v3064_v41, %v3063_v21  ;;  %6480 = vmatmul.msk.f32.gmra.mxu1 %vm225_vm0, %v5050_v47  ;;  %v10871_v21 = vld [vmem:[%s12232_s1 + $0x388] sm:$0xff]  ;;  %v1619_v59 = vadd.f32 %v1618_v45, %v1617_v17  ;;  %v12767_v47 = vmax.f32 %v10741_v25, 0.0 }
 0x336   :  { %v12405_v9 = vmax.f32 %v10844_v52, 0.0  ;;  %v10854_v7 = vpop.f32.mrf.mxu3  ;;  %v5051_v16 = vmul.f32 -2.0, %v10871_v21  ;;  %v10894_v25 = vadd.f32 %v3960_v6, %v10380_v19 }
 0x337   :  { %v4235_v5 = vmin.f32 %v4233_v46, %v12404_v60  ;;  %v3066_v46 = vsel %vm19_vm2, %v3009_v38, 0.0  ;;  %v12768_v38 = vmax.f32 %v10736_v37, 0.0  ;;  %v10897_v37 = vadd.f32 %v3961_v10, %v10390_v44 }
 0x338   :  { %4948 = vadd.xlane.f32.xlu0 %v4947_v40  ;;  %4951 = vadd.xlane.f32.xlu1 %v4950_v2  ;;  %v4272_v43 = vmin.f32 %v4270_v23, %v12405_v9  ;;  %v3544_v40 = vpop.xlane.xlu2 %3543  ;;  %v10877_v23 = vpop.f32.mrf.mxu0  ;;  %v3070_v10 = vsel %vm19_vm2, %v3011_v8, 0.0  ;;  %v6555_v8 = vld [vmem:[%s12232_s1 + $0x330] sm:$0xff] }
 0x339   :  { %v3978_v54 = vadd.f32 %v3544_v40, %v9880_v3  ;;  %v3979_v2 = vadd.f32 %v3544_v40, %v9882_v11  ;;  %12766 = vst [vmem:[#allocation18_spill] sm:$0xff] %v10877_v23  ;;  %v4161_v60 = vmin.f32 %v12768_v38, %v12767_v47  ;;  %v10883_v9 = vpop.f32.mrf.mxu1  ;;  %v3523_v40 = vpop.xlane.xlu1 %3522  ;;  %v12411_v47 = vmax.f32 %v10894_v25, 0.0  ;;  %v3012_v38 = vld [vmem:[#allocation3 + $0x1e8] sm:$0xff] }
 0x33a   :  { %12769 = vst [vmem:[#allocation39_spill] sm:$0xff] %v10883_v9  ;;  %v3964_v44 = vadd.f32 %v3523_v40, %v9880_v3 }
 0x33b   :  { %v3349_v41 = vpop.xlane.xlu0 %3348  ;;  %1620 = vadd.xlane.f32.xlu2 %v1619_v59  ;;  %v10887_v15 = vadd.f32 %v3978_v54, %v10811_v51  ;;  %v10890_v17 = vadd.f32 %v3979_v2, %v10813_v14  ;;  %v3067_v51 = vadd.f32 %v3066_v46, %v3065_v32  ;;  %v4959_v14 = vsel %vm225_vm0, %v4913_v27, 0.0 }
 0x33c   :  { %v3402_v45 = vmin.f32 %v3394_v24, %v3349_v41  ;;  %v4908_v24 = vmul.f32 %v6554_v31, %v6554_v31  ;;  %v10906_v2 = vpop.f32.mrf.mxu2  ;;  %v3965_v27 = vadd.f32 %v3523_v40, %v9882_v11  ;;  %v10928_v31 = vadd.f32 %v3964_v44, %v10472_v22 }
 0x33d   :  { %12770 = vst [vmem:[#allocation11_spill] sm:$0xff] %v10887_v15  ;;  %v12406_v59 = vmax.f32 %v10887_v15, 0.0  ;;  %v12407_v54 = vmax.f32 %v10890_v17, 0.0  ;;  %v3069_v6 = vadd.f32 %v3068_v20, %v3067_v51  ;;  %6448 = vmatmul.msk.f32.gmra.mxu0 %vm225_vm0, %v5051_v16  ;;  %v12410_v20 = vmax.f32 %v10897_v37, 0.0  ;;  %6481 = vmatmul.msk.f32.gmra.mxu1 %vm225_vm0, %v5051_v16 }
 0x33e   :  { %3410 = vst.msk [vmem:[#allocation2 + $0xa0] sm:$0xff] %vm19_vm2, %v3402_v45  ;;  %v10908_v19 = vpop.f32.mrf.mxu3  ;;  %v4944_v41 = vsel %vm225_vm0, %v4908_v24, 0.0  ;;  %v3072_v16 = vsel %vm19_vm2, %v3012_v38, 0.0 }
 0x33f   :  { %v4237_v32 = vmin.f32 %v4235_v5, %v12406_v59  ;;  %v4274_v46 = vmin.f32 %v4272_v43, %v12407_v54  ;;  %v3071_v43 = vadd.f32 %v3070_v10, %v3069_v6  ;;  %v3013_v59 = vld [vmem:[#allocation3 + $0x1f0] sm:$0xff]  ;;  %v10941_v6 = vld [vmem:[%s12232_s1 + $0x390] sm:$0xff]  ;;  %v4164_v22 = vmin.f32 %v12411_v47, %v12410_v20 }
 0x340   :  { %4162 = vmin.xlane.f32.xlu0 %v4161_v60  ;;  %4960 = vadd.xlane.f32.xlu1 %v4959_v14  ;;  %v4912_v60 = vmul.f32 %v6555_v8, %v6555_v8  ;;  %v3553_v5 = vpop.xlane.xlu2 %3552  ;;  %v10925_v45 = vpop.f32.mrf.mxu0  ;;  %v10935_v8 = vadd.f32 %v3965_v27, %v10493_v42  ;;  %v6556_v42 = vld [vmem:[%s12232_s1 + $0x328] sm:$0xff]  ;;  %v5052_v27 = vmul.f32 -2.0, %v10941_v6 }
 0x341   :  { %12771 = vst [vmem:[#allocation34_spill] sm:$0xff] %v10925_v45  ;;  %v10930_v24 = vpop.f32.mrf.mxu1  ;;  %v4911_v10 = vmul.f32 %v6556_v42, %v6556_v42  ;;  %v3532_v63 = vpop.xlane.xlu1 %3531  ;;  %v3985_v47 = vadd.f32 %v3553_v5, %v9882_v11  ;;  %v3074_v42 = vsel %vm19_vm2, %v3013_v59, 0.0 }
 0x342   :  { %12772 = vst [vmem:[#allocation37_spill] sm:$0xff] %v10930_v24  ;;  %v4956_v44 = vsel %vm225_vm0, %v4912_v60, 0.0  ;;  %v3073_v24 = vadd.f32 %v3072_v16, %v3071_v43  ;;  %v3984_v60 = vadd.f32 %v3553_v5, %v9880_v3  ;;  %v3014_v43 = vld [vmem:[#allocation3 + $0x1f8] sm:$0xff]  ;;  %v3970_v5 = vadd.f32 %v3532_v63, %v9880_v3 }
 0x343   :  { %v3511_v40 = vpop.xlane.xlu0 %3510  ;;  %4945 = vadd.xlane.f32.xlu2 %v4944_v41  ;;  %v12773_v41 = vld [vmem:[#allocation28_spill] sm:$0xff]  ;;  %v4953_v16 = vsel %vm225_vm0, %v4911_v10, 0.0  ;;  %v3971_v59 = vadd.f32 %v3532_v63, %v9882_v11 }
 0x344   :  { %v3956_v51 = vadd.f32 %v3511_v40, %v9880_v3  ;;  %v3957_v14 = vadd.f32 %v3511_v40, %v9882_v11  ;;  %v12774_v40 = vld [vmem:[#allocation29_spill] sm:$0xff]  ;;  %v3799_v55 = vpop.f32.mrf.mxu2  ;;  %v3075_v63 = vadd.f32 %v3074_v42, %v3073_v24  ;;  %v11004_v24 = vld [vmem:[%s12232_s1 + $0x398] sm:$0xff] }
 0x345   :  { %6449 = vmatmul.msk.f32.gmra.mxu0 %vm225_vm0, %v5052_v27  ;;  %6482 = vmatmul.msk.f32.gmra.mxu1 %vm225_vm0, %v5052_v27  ;;  %v10982_v10 = vadd.f32 %v3984_v60, %v3799_v55  ;;  %v12775_v27 = vmax.f32 %v10928_v31, 0.0  ;;  %v10997_v55 = vadd.f32 %v3971_v59, %v10623_v39  ;;  %v12776_v60 = vmax.f32 %v10894_v25, 0.0 }
 0x346   :  { %v10953_v38 = vadd.f32 %v3956_v51, %v12773_v41  ;;  %v10956_v54 = vadd.f32 %v3957_v14, %v12774_v40  ;;  %v3912_v45 = vpop.f32.mrf.mxu3  ;;  %v4093_v41 = vmax.f32 %v10935_v8, 0.0  ;;  %v4916_v14 = vmul.f32 %v10577_v33, %v10577_v33 }
 0x347   :  { %v4915_v40 = vmul.f32 %v10477_v0, %v10477_v0  ;;  %v10984_v23 = vadd.f32 %v3985_v47, %v3912_v45  ;;  %v3076_v0 = vsel %vm19_vm2, %v3014_v43, 0.0  ;;  %v12777_v43 = vmax.f32 %v10897_v37, 0.0 }
 0x348   :  { %v12413_v9 = vmax.f32 %v10953_v38, 0.0  ;;  %v4085_v51 = vmax.f32 %v10956_v54, 0.0  ;;  %4957 = vadd.xlane.f32.xlu0 %v4956_v44  ;;  %4165 = vmin.xlane.f32.xlu1 %v4164_v22  ;;  %v10973_v20 = vpop.xlane.xlu2 %3561  ;;  %v10980_v22 = vpop.f32.mrf.mxu0  ;;  %v4968_v47 = vsel %vm225_vm0, %v4916_v14, 0.0  ;;  %v5053_v59 = vmul.f32 -2.0, %v11004_v24 }
 0x349   :  { %v10987_v48 = vpop.f32.mrf.mxu1  ;;  %v4965_v45 = vsel %vm225_vm0, %v4915_v40, 0.0  ;;  %v3077_v37 = vadd.f32 %v3076_v0, %v3075_v63 }
 0x34a   :  { %v4239_v33 = vmin.f32 %v4237_v32, %v12413_v9  ;;  %v4276_v8 = vmin.f32 %v4274_v46, %v4085_v51  ;;  %v10994_v9 = vadd.f32 %v3970_v5, %v10620_v29 }
 0x34b   :  { %v3520_v44 = vpop.xlane.xlu0 %3519  ;;  %4954 = vadd.xlane.f32.xlu2 %v4953_v16 }
 0x34c   :  { %v4236_v4 = vmin.f32 %v4239_v33, %v12775_v27  ;;  %v4273_v15 = vmin.f32 %v4276_v8, %v4093_v41  ;;  %v3962_v32 = vadd.f32 %v3520_v44, %v9880_v3  ;;  %v3963_v46 = vadd.f32 %v3520_v44, %v9882_v11  ;;  %v11016_v14 = vpop.f32.mrf.mxu2 }
 0x34d   :  { %6450 = vmatmul.msk.f32.gmra.mxu0 %vm225_vm0, %v5053_v59  ;;  %v12418_v27 = vmax.f32 %v10994_v9, 0.0  ;;  %6483 = vmatmul.msk.f32.gmra.mxu1 %vm225_vm0, %v5053_v59 }
 0x34e   :  { %v4238_v42 = vmin.f32 %v4236_v4, %v12776_v60  ;;  %v4275_v16 = vmin.f32 %v4273_v15, %v12777_v43  ;;  %v11011_v29 = vadd.f32 %v3962_v32, %v10419_v34  ;;  %v11014_v39 = vadd.f32 %v3963_v46, %v10431_v18  ;;  %v11018_v5 = vpop.f32.mrf.mxu3  ;;  %v3397_v34 = vld [vmem:[#allocation2 + $0xb8] sm:$0xff] }
 0x34f   :  { %v12414_v4 = vmax.f32 %v10982_v10, 0.0  ;;  %v12415_v15 = vmax.f32 %v10984_v23, 0.0  ;;  %v4919_v18 = vmul.f32 %v10672_v26, %v10672_v26  ;;  %v12419_v32 = vmax.f32 %v10997_v55, 0.0  ;;  %v11050_v43 = vld [vmem:[%s12232_s1 + $0x3a0] sm:$0xff] }
 0x350   :  { %v12416_v40 = vmax.f32 %v11011_v29, 0.0  ;;  %v12417_v25 = vmax.f32 %v11014_v39, 0.0  ;;  %4966 = vadd.xlane.f32.xlu0 %v4965_v45  ;;  %4969 = vadd.xlane.f32.xlu1 %v4968_v47  ;;  %v11027_v33 = vpop.xlane.xlu2 %3570  ;;  %v11037_v63 = vpop.f32.mrf.mxu0  ;;  %v12778_v60 = vmax.f32 %v10928_v31, 0.0 }
 0x351   :  { %v11039_v26 = vpop.f32.mrf.mxu1 }
 0x352   :  { %v4240_v8 = vmin.f32 %v4238_v42, %v12416_v40  ;;  %v4277_v44 = vmin.f32 %v4275_v16, %v12417_v25  ;;  %v4170_v42 = vmin.f32 %v12778_v60, %v4093_v41  ;;  %v5054_v16 = vmul.f32 -2.0, %v11050_v43 }
 0x353   :  { %v3358_v0 = vpop.xlane.xlu0 %3357  ;;  %3078 = vadd.xlane.f32.xlu2 %v3077_v37  ;;  %v3541_v37 = vpop.xlane.xlu1 %3540 }
 0x354   :  { %v4242_v46 = vmin.f32 %v4240_v8, %v12414_v4  ;;  %v4279_v47 = vmin.f32 %v4277_v44, %v12415_v15  ;;  %v3405_v45 = vmin.f32 %v3397_v34, %v3358_v0  ;;  %v4977_v34 = vsel %vm225_vm0, %v4919_v18, 0.0  ;;  %v11059_v31 = vpop.f32.mrf.mxu2  ;;  %v4304_v0 = vld [vmem:[#allocation3 + $0x208] sm:$0xff] }
 0x355   :  { %v3976_v41 = vadd.f32 %v3541_v37, %v9880_v3  ;;  %v3977_v60 = vadd.f32 %v3541_v37, %v9882_v11  ;;  %6451 = vmatmul.msk.f32.gmra.mxu0 %vm225_vm0, %v5054_v16  ;;  %v12779_v18 = vmax.f32 %v10953_v38, 0.0  ;;  %6484 = vmatmul.msk.f32.gmra.mxu1 %vm225_vm0, %v5054_v16  ;;  %v11089_v38 = vld [vmem:[%s12232_s1 + $0x3a8] sm:$0xff] }
 0x356   :  { %v4241_v59 = vmin.f32 %v12418_v27, %v4242_v46  ;;  %v4278_v8 = vmin.f32 %v12419_v32, %v4279_v47  ;;  %3413 = vst.msk [vmem:[#allocation2 + $0xb8] sm:$0xff] %vm19_vm2, %v3405_v45  ;;  %v11062_v44 = vpop.f32.mrf.mxu3  ;;  %v4918_v46 = vmul.f32 %v10632_v35, %v10632_v35 }
 0x357   :  { %v4158_v45 = vmin.f32 %v12779_v18, %v4085_v51  ;;  %v11076_v37 = vadd.f32 %v3976_v41, %v10766_v49  ;;  %v11083_v54 = vadd.f32 %v3977_v60, %v10770_v58  ;;  %v12780_v49 = vmax.f32 %v10758_v61, 0.0  ;;  %v6557_v58 = vld [vmem:[%s12232_s1 + $0x340] sm:$0xff] }
 0x358   :  { %4171 = vmin.xlane.f32.xlu0 %v4170_v42  ;;  %4978 = vadd.xlane.f32.xlu1 %v4977_v34  ;;  %v4133_v47 = vpop.xlane.xlu2 %4132  ;;  %v11073_v15 = vpop.f32.mrf.mxu0  ;;  %v12781_v51 = vmax.f32 %v10755_v50, 0.0  ;;  %v4974_v41 = vsel %vm225_vm0, %v4918_v46, 0.0  ;;  %v5055_v60 = vmul.f32 -2.0, %v11089_v38  ;;  %v3990_v50 = vadd.f32 %v10973_v20, %v9880_v3 }
 0x359   :  { %v4336_v4 = vmin.f32 %v4304_v0, %v4133_v47  ;;  %v11078_v34 = vpop.f32.mrf.mxu1  ;;  %v4914_v0 = vmul.f32 %v6557_v58, %v6557_v58 }
 0x35a   :  { %v4173_v16 = vmin.f32 %v12781_v51, %v12780_v49  ;;  %v12423_v49 = vmax.f32 %v11076_v37, 0.0  ;;  %v12425_v51 = vmax.f32 %v11083_v54, 0.0 }
 0x35b   :  { %v3529_v42 = vpop.xlane.xlu0 %3528  ;;  %4159 = vmin.xlane.f32.xlu2 %v4158_v45  ;;  %4368 = vst.msk [vmem:[#allocation3 + $0x208] sm:$0xff] %vm19_vm2, %v4336_v4  ;;  %v4307_v45 = vld [vmem:[#allocation3 + $0x220] sm:$0xff] }
 0x35c   :  { %v3968_v35 = vadd.f32 %v3529_v42, %v9880_v3  ;;  %v3969_v40 = vadd.f32 %v3529_v42, %v9882_v11  ;;  %v3808_v18 = vpop.f32.mrf.mxu2 }
 0x35d   :  { %6452 = vmatmul.msk.f32.gmra.mxu0 %vm225_vm0, %v5055_v60  ;;  %6485 = vmatmul.msk.f32.gmra.mxu1 %vm225_vm0, %v5055_v60  ;;  %v11127_v27 = vadd.f32 %v3990_v50, %v3808_v18  ;;  %v4917_v50 = vmul.f32 %v10604_v36, %v10604_v36 }
 0x35e   :  { %v11101_v4 = vadd.f32 %v3968_v35, %v10585_v12  ;;  %v11104_v47 = vadd.f32 %v3969_v40, %v10597_v13  ;;  %v3921_v61 = vpop.f32.mrf.mxu3  ;;  %v3991_v12 = vadd.f32 %v10973_v20, %v9882_v11  ;;  %v4962_v13 = vsel %vm225_vm0, %v4914_v0, 0.0 }
 0x35f   :  { %v4921_v40 = vmul.f32 %v10799_v62, %v10799_v62 }
 0x360   :  { %v12420_v46 = vmax.f32 %v11101_v4, 0.0  ;;  %v12421_v42 = vmax.f32 %v11104_v47, 0.0  ;;  %4975 = vadd.xlane.f32.xlu0 %v4974_v41  ;;  %4174 = vmin.xlane.f32.xlu1 %v4173_v16  ;;  %v4142_v35 = vpop.xlane.xlu2 %4141  ;;  %v4922_v41 = vmul.f32 %v10840_v30, %v10840_v30  ;;  %v11125_v20 = vpop.f32.mrf.mxu0  ;;  %v11140_v60 = vadd.f32 %v3991_v12, %v3921_v61 }
 0x361   :  { %v4339_v16 = vmin.f32 %v4307_v45, %v4142_v35  ;;  %v11129_v62 = vpop.f32.mrf.mxu1  ;;  %v4983_v18 = vsel %vm225_vm0, %v4921_v40, 0.0 }
 0x362   :  { %v4244_v58 = vmin.f32 %v12420_v46, %v4241_v59  ;;  %v4281_v25 = vmin.f32 %v12421_v42, %v4278_v8 }
 0x363   :  { %v3538_v0 = vpop.xlane.xlu0 %3537  ;;  %v11136_v46 = vpop.xlane.xlu1 %3386  ;;  %4963 = vadd.xlane.f32.xlu2 %v4962_v13  ;;  %4371 = vst.msk [vmem:[#allocation3 + $0x220] sm:$0xff] %vm19_vm2, %v4339_v16  ;;  %v11154_v13 = vld [vmem:[%s12232_s1 + $0x3b0] sm:$0xff]  ;;  %v4971_v16 = vsel %vm225_vm0, %v4917_v50, 0.0 }
 0x364   :  { %v4243_v32 = vmin.f32 %v12423_v49, %v4244_v58  ;;  %v4280_v59 = vmin.f32 %v12425_v51, %v4281_v25  ;;  %v3974_v8 = vadd.f32 %v3538_v0, %v9880_v3  ;;  %v3975_v30 = vadd.f32 %v3538_v0, %v9882_v11  ;;  %v11149_v35 = vpop.f32.mrf.mxu2 }
 0x365   :  { %v4986_v25 = vsel %vm225_vm0, %v4922_v41, 0.0  ;;  %v5056_v40 = vmul.f32 -2.0, %v11154_v13  ;;  %v12427_v41 = vmax.f32 %v11140_v60, 0.0  ;;  %v4925_v0 = vmul.f32 %v11004_v24, %v11004_v24 }
 0x366   :  { %v11146_v45 = vadd.f32 %v3974_v8, %v10707_v1  ;;  %v11157_v61 = vadd.f32 %v3975_v30, %v10719_v53  ;;  %v11159_v12 = vpop.f32.mrf.mxu3  ;;  %v12426_v1 = vmax.f32 %v11127_v27, 0.0  ;;  %v12782_v24 = vmax.f32 %v10997_v55, 0.0 }
 0x367   :  { %6453 = vmatmul.msk.f32.gmra.mxu0 %vm225_vm0, %v5056_v40  ;;  %6486 = vmatmul.msk.f32.gmra.mxu1 %vm225_vm0, %v5056_v40  ;;  %v12783_v40 = vmax.f32 %v10994_v9, 0.0 }
 0x368   :  { %v12422_v36 = vmax.f32 %v11146_v45, 0.0  ;;  %4984 = vadd.xlane.f32.xlu0 %v4983_v18  ;;  %v12424_v58 = vmax.f32 %v11157_v61, 0.0  ;;  %4987 = vadd.xlane.f32.xlu1 %v4986_v25  ;;  %v11173_v8 = vpop.f32.mrf.mxu0 }
 0x369   :  { %v11177_v42 = vpop.f32.mrf.mxu1  ;;  %v4179_v49 = vmin.f32 %v12783_v40, %v12782_v24 }
 0x36a   :  { %v4245_v53 = vmin.f32 %v4243_v32, %v12422_v36  ;;  %v4282_v30 = vmin.f32 %v4280_v59, %v12424_v58 }
 0x36b   :  { %v3547_v18 = vpop.xlane.xlu0 %3546  ;;  %v3550_v36 = vpop.xlane.xlu1 %3549  ;;  %4972 = vadd.xlane.f32.xlu2 %v4971_v16  ;;  %v4995_v16 = vsel %vm225_vm0, %v4925_v0, 0.0 }
 0x36c   :  { %v4247_v50 = vmin.f32 %v4245_v53, %v12426_v1  ;;  %v3980_v25 = vadd.f32 %v3547_v18, %v9880_v3  ;;  %v3981_v32 = vadd.f32 %v3547_v18, %v9882_v11  ;;  %v4284_v59 = vmin.f32 %v4282_v30, %v12427_v41  ;;  %v11198_v18 = vpop.f32.mrf.mxu2 }
 0x36d   :  { %v3982_v58 = vadd.f32 %v3550_v36, %v9880_v3  ;;  %v3983_v51 = vadd.f32 %v3550_v36, %v9882_v11 }
 0x36e   :  { %v11192_v53 = vadd.f32 %v3980_v25, %v10849_v28  ;;  %v11195_v1 = vadd.f32 %v3981_v32, %v10854_v7  ;;  %v11206_v30 = vpop.f32.mrf.mxu3  ;;  %v11213_v7 = vld [vmem:[%s12232_s1 + $0x3b8] sm:$0xff]  ;;  %v12784_v25 = vmax.f32 %v11014_v39, 0.0  ;;  %v12785_v32 = vmax.f32 %v11011_v29, 0.0 }
 0x36f   :  { %v11201_v9 = vadd.f32 %v3982_v58, %v10906_v2  ;;  %v11204_v55 = vadd.f32 %v3983_v51, %v10908_v19  ;;  %v4924_v19 = vmul.f32 %v10941_v6, %v10941_v6  ;;  %v5057_v51 = vmul.f32 -2.0, %v11213_v7 }
 0x370   :  { %v12428_v36 = vmax.f32 %v11192_v53, 0.0  ;;  %v12429_v28 = vmax.f32 %v11195_v1, 0.0  ;;  %4180 = vmin.xlane.f32.xlu0 %v4179_v49  ;;  %4996 = vadd.xlane.f32.xlu1 %v4995_v16  ;;  %v4167_v24 = vmin.f32 %v12785_v32, %v12784_v25  ;;  %v11228_v40 = vpop.f32.mrf.mxu0  ;;  %v12787_v16 = vmax.f32 %v10844_v52, 0.0 }
 0x371   :  { %v12430_v0 = vmax.f32 %v11201_v9, 0.0  ;;  %12786 = vst [vmem:[#allocation21_spill] sm:$0xff] %v11228_v40  ;;  %v12788_v6 = vmax.f32 %v10835_v56, 0.0  ;;  %6454 = vmatmul.msk.f32.gmra.mxu0 %vm225_vm0, %v5057_v51  ;;  %6487 = vmatmul.msk.f32.gmra.mxu1 %vm225_vm0, %v5057_v51  ;;  %v12790_v29 = vmax.f32 %v11204_v55, 0.0  ;;  %v4992_v51 = vsel %vm225_vm0, %v4924_v19, 0.0 }
 0x372   :  { %v4246_v58 = vmin.f32 %v12428_v36, %v4247_v50  ;;  %v4283_v49 = vmin.f32 %v12429_v28, %v4284_v59  ;;  %v11236_v50 = vpop.f32.mrf.mxu1  ;;  %v3997_v19 = vadd.f32 %v11027_v33, %v9882_v11 }
 0x373   :  { %v3556_v41 = vpop.xlane.xlu0 %3555  ;;  %v4182_v2 = vmin.f32 %v12788_v6, %v12787_v16  ;;  %12789 = vst [vmem:[#allocation8_spill] sm:$0xff] %v11236_v50  ;;  %v3559_v52 = vpop.xlane.xlu1 %3558  ;;  %4168 = vmin.xlane.f32.xlu2 %v4167_v24  ;;  %v4920_v6 = vmul.f32 %v10726_v57, %v10726_v57  ;;  %v3996_v24 = vadd.f32 %v11027_v33, %v9880_v3  ;;  %v11275_v33 = vld [vmem:[%s12232_s1 + $0x3c0] sm:$0xff] }
 0x374   :  { %v4248_v39 = vmin.f32 %v4246_v58, %v12430_v0  ;;  %v4285_v59 = vmin.f32 %v4283_v49, %v12790_v29  ;;  %v3986_v25 = vadd.f32 %v3556_v41, %v9880_v3  ;;  %v3987_v32 = vadd.f32 %v3556_v41, %v9882_v11 }
 0x375   :  { %v3988_v56 = vadd.f32 %v3559_v52, %v9880_v3  ;;  %v3989_v16 = vadd.f32 %v3559_v52, %v9882_v11  ;;  %v4927_v52 = vmul.f32 %v11089_v38, %v11089_v38  ;;  %v4923_v38 = vmul.f32 %v10871_v21, %v10871_v21 }
 0x376   :  { %v11250_v58 = vadd.f32 %v3986_v25, %v11016_v14  ;;  %v11253_v49 = vadd.f32 %v3987_v32, %v11018_v5  ;;  %v3817_v25 = vpop.f32.mrf.mxu2  ;;  %v3930_v32 = vpop.f32.mrf.mxu3 }
 0x377   :  { %v11256_v29 = vadd.f32 %v3988_v56, %v11059_v31  ;;  %v11259_v41 = vadd.f32 %v3989_v16, %v11062_v44  ;;  %v4980_v44 = vsel %vm225_vm0, %v4920_v6, 0.0  ;;  %v11298_v40 = vadd.f32 %v3996_v24, %v3817_v25 }
 0x378   :  { %v12431_v57 = vmax.f32 %v11250_v58, 0.0  ;;  %v12432_v14 = vmax.f32 %v11253_v49, 0.0  ;;  %4993 = vadd.xlane.f32.xlu0 %v4992_v51  ;;  %4183 = vmin.xlane.f32.xlu1 %v4182_v2  ;;  %v4928_v2 = vmul.f32 %v11154_v13, %v11154_v13  ;;  %v5058_v51 = vmul.f32 -2.0, %v11275_v33  ;;  %v11284_v6 = vpop.f32.mrf.mxu0 }
 0x379   :  { %v12433_v5 = vmax.f32 %v11256_v29, 0.0  ;;  %v12434_v31 = vmax.f32 %v11259_v41, 0.0  ;;  %12791 = vst [vmem:[#allocation9_spill] sm:$0xff] %v11298_v40  ;;  %v5001_v21 = vsel %vm225_vm0, %v4927_v52, 0.0 }
 0x37a   :  { %v4250_v56 = vmin.f32 %v4248_v39, %v12431_v57  ;;  %v4287_v16 = vmin.f32 %v4285_v59, %v12432_v14  ;;  %v11288_v28 = vpop.f32.mrf.mxu1  ;;  %6455 = vmatmul.msk.f32.gmra.mxu0 %vm225_vm0, %v5058_v51  ;;  %6488 = vmatmul.msk.f32.gmra.mxu1 %vm225_vm0, %v5058_v51 }
 0x37b   :  { %v3565_v36 = vpop.xlane.xlu0 %3564  ;;  %v3568_v57 = vpop.xlane.xlu1 %3567  ;;  %4981 = vadd.xlane.f32.xlu2 %v4980_v44  ;;  %v5004_v44 = vsel %vm225_vm0, %v4928_v2, 0.0 }
 0x37c   :  { %v4252_v0 = vmin.f32 %v4250_v56, %v12433_v5  ;;  %v4289_v39 = vmin.f32 %v4287_v16, %v12434_v31  ;;  %v3992_v59 = vadd.f32 %v3565_v36, %v9880_v3  ;;  %v3993_v13 = vadd.f32 %v3565_v36, %v9882_v11 }
 0x37d   :  { %v3994_v14 = vadd.f32 %v3568_v57, %v9880_v3  ;;  %v3995_v50 = vadd.f32 %v3568_v57, %v9882_v11  ;;  %v11309_v36 = vadd.f32 %v3997_v19, %v3930_v32 }
 0x37e   :  { %v11304_v56 = vadd.f32 %v3992_v59, %v11149_v35  ;;  %v11307_v16 = vadd.f32 %v3993_v13, %v11159_v12  ;;  %v6558_v35 = vld [vmem:[%s12231_s0 + $0xc0] sm:$0xff]  ;;  %v4303_v59 = vld [vmem:[#allocation3 + $0x200] sm:$0xff]  ;;  %v3820_v13 = vpop.f32.mrf.mxu2  ;;  %v3933_v5 = vpop.f32.mrf.mxu3 }
 0x37f   :  { %12793 = vst [vmem:[#allocation27_spill] sm:$0xff] %v11309_v36  ;;  %v11313_v57 = vadd.f32 %v3994_v14, %v11198_v18  ;;  %v11316_v24 = vadd.f32 %v3995_v50, %v11206_v30  ;;  %v4592_v12 = vmul.f32 %v6558_v35, %v6558_v35  ;;  %v4989_v30 = vsel %vm225_vm0, %v4923_v38, 0.0  ;;  %v6423_v50 = vld [vmem:[%s12232_s1 + $0x3c8] sm:$0xff] }
 0x380   :  { %12792 = vst [vmem:[#allocation26_spill] sm:$0xff] %v11304_v56  ;;  %v12435_v25 = vmax.f32 %v11304_v56, 0.0  ;;  %v12436_v52 = vmax.f32 %v11307_v16, 0.0  ;;  %5002 = vadd.xlane.f32.xlu0 %v5001_v21  ;;  %5005 = vadd.xlane.f32.xlu1 %v5004_v44  ;;  %v5059_v21 = vmul.f32 -2.0, %v6423_v50  ;;  %v12796_v18 = vmax.f32 %v11083_v54, 0.0 }
 0x381   :  { %12794 = vst [vmem:[#allocation23_spill] sm:$0xff] %v11313_v57  ;;  %v12441_v19 = vmax.f32 %v11313_v57, 0.0  ;;  %v12442_v32 = vmax.f32 %v11316_v24, 0.0  ;;  %v4600_v51 = vsel %vm225_vm0, %v4592_v12, 0.0  ;;  %v12797_v56 = vmax.f32 %v11076_v37, 0.0 }
 0x382   :  { %12795 = vst [vmem:[#allocation25_spill] sm:$0xff] %v11316_v24  ;;  %v4249_v14 = vmin.f32 %v12435_v25, %v4252_v0  ;;  %v4286_v2 = vmin.f32 %v12436_v52, %v4289_v39  ;;  %v11341_v39 = vpop.f32.mrf.mxu0  ;;  %6456 = vmatmul.msk.f32.gmra.mxu0 %vm225_vm0, %v5059_v21  ;;  %6489 = vmatmul.msk.f32.gmra.mxu1 %vm225_vm0, %v5059_v21 }
 0x383   :  { %v3574_v35 = vpop.xlane.xlu0 %3573  ;;  %v4130_v25 = vpop.xlane.xlu1 %4129  ;;  %4990 = vadd.xlane.f32.xlu2 %v4989_v30  ;;  %v4188_v57 = vmin.f32 %v12797_v56, %v12796_v18  ;;  %v12799_v30 = vmax.f32 %v11309_v36, 0.0  ;;  %v12802_v56 = vld [vmem:[#allocation12_spill] sm:$0xff] }
 0x384   :  { %v4251_v38 = vmin.f32 %v4249_v14, %v12441_v19  ;;  %v4288_v44 = vmin.f32 %v4286_v2, %v12442_v32  ;;  %v3998_v31 = vadd.f32 %v3574_v35, %v9880_v3  ;;  %v3999_v0 = vadd.f32 %v3574_v35, %v9882_v11  ;;  %v11350_v14 = vpop.f32.mrf.mxu1  ;;  %v4305_v35 = vld [vmem:[#allocation3 + $0x210] sm:$0xff] }
 0x385   :  { %v4335_v52 = vmin.f32 %v4303_v59, %v4130_v25  ;;  %v12798_v3 = vmax.f32 %v11298_v40, 0.0  ;;  %v4569_v18 = vsel %vm194_vm1, %v12802_v56, 0.0  ;;  %v12803_v59 = vld [vmem:[#allocation13_spill] sm:$0xff] }
 0x386   :  { %v4290_v2 = vmin.f32 %v4288_v44, %v12799_v30  ;;  %v11356_v25 = vadd.f32 %v3998_v31, %v3820_v13  ;;  %v11358_v12 = vadd.f32 %v3999_v0, %v3933_v5  ;;  %v4576_v21 = vsel %vm194_vm1, %v12803_v59, 0.0  ;;  %v4306_v13 = vld [vmem:[#allocation3 + $0x218] sm:$0xff] }
 0x387   :  { %v4253_v11 = vmin.f32 %v4251_v38, %v12798_v3  ;;  %4367 = vst.msk [vmem:[#allocation3 + $0x200] sm:$0xff] %vm19_vm2, %v4335_v52  ;;  %v4930_v31 = vmul.f32 %v11275_v33, %v11275_v33  ;;  %v12805_v38 = vmax.f32 %v11101_v4, 0.0  ;;  %v4570_v3 = vrot.slane %v4569_v18, 4 }
 0x388   :  { %12800 = vst [vmem:[#allocation28_spill] sm:$0xff] %v11356_v25  ;;  %v12439_v37 = vmax.f32 %v11356_v25, 0.0  ;;  %v12440_v54 = vmax.f32 %v11358_v12, 0.0  ;;  %4189 = vmin.xlane.f32.xlu0 %v4188_v57  ;;  %4601 = vadd.xlane.f32.xlu1 %v4600_v51  ;;  %v12804_v57 = vmax.f32 %v11104_v47, 0.0  ;;  %v4577_v30 = vrot.slane %v4576_v21, 4 }
 0x389   :  { %12801 = vst [vmem:[#allocation29_spill] sm:$0xff] %v11358_v12  ;;  %v4926_v4 = vmul.f32 %v11050_v43, %v11050_v43 }
 0x38a   :  { %v4254_v5 = vmin.f32 %v12439_v37, %v4253_v11  ;;  %v4291_v52 = vmin.f32 %v12440_v54, %v4290_v2  ;;  %v4176_v44 = vmin.f32 %v12805_v38, %v12804_v57  ;;  %v11377_v59 = vpop.f32.mrf.mxu0  ;;  %v5010_v11 = vsel %vm225_vm0, %v4930_v31, 0.0  ;;  %v12807_v2 = vld [vmem:[#allocation11_spill] sm:$0xff]  ;;  %v4308_v31 = vld [vmem:[#allocation3 + $0x228] sm:$0xff] }
 0x38b   :  { %v4136_v0 = vpop.xlane.xlu0 %4135  ;;  %v4139_v56 = vpop.xlane.xlu1 %4138  ;;  %v12806_v37 = vmax.f32 %v10890_v17, 0.0  ;;  %v12808_v54 = vmax.f32 %v12807_v2, 0.0  ;;  %v4998_v17 = vsel %vm225_vm0, %v4926_v4, 0.0 }
 0x38c   :  { %v4337_v51 = vmin.f32 %v4305_v35, %v4136_v0  ;;  %4177 = vmin.xlane.f32.xlu2 %v4176_v44  ;;  %v4338_v33 = vmin.f32 %v4306_v13, %v4139_v56  ;;  %v11386_v47 = vpop.f32.mrf.mxu1  ;;  %v4255_v57 = vrot.slane %v4254_v5, 4  ;;  %v4292_v38 = vrot.slane %v4291_v52, 4  ;;  %v4309_v0 = vld [vmem:[#allocation3 + $0x230] sm:$0xff] }
 0x38d   :  { %v4191_v19 = vmin.f32 %v12808_v54, %v12806_v37  ;;  %v4571_v35 = vadd.f32 %v4570_v3, %v4569_v18  ;;  %v4578_v13 = vadd.f32 %v4577_v30, %v4576_v21  ;;  %v4931_v44 = vmul.f32 %v6423_v50, %v6423_v50  ;;  %v4311_v30 = vld [vmem:[#allocation3 + $0x240] sm:$0xff] }
 0x38e   :  { %4369 = vst.msk [vmem:[#allocation3 + $0x210] sm:$0xff] %vm19_vm2, %v4337_v51  ;;  %v4256_v37 = vmin.f32 %v4254_v5, %v4255_v57  ;;  %v4293_v54 = vmin.f32 %v4291_v52, %v4292_v38  ;;  %v4929_v18 = vmul.f32 %v11213_v7, %v11213_v7  ;;  %v11402_v52 = vld [vmem:[%s12232_s1 + $0x3d0] sm:$0xff] }
 0x38f   :  { %4370 = vst.msk [vmem:[#allocation3 + $0x218] sm:$0xff] %vm19_vm2, %v4338_v33  ;;  %v4572_v56 = vrot.slane %v4571_v35, 2  ;;  %v4579_v40 = vrot.slane %v4578_v13, 2  ;;  %v5013_v33 = vsel %vm225_vm0, %v4931_v44, 0.0 }
 0x390   :  { %5011 = vadd.xlane.f32.xlu0 %v5010_v11  ;;  %4192 = vmin.xlane.f32.xlu1 %v4191_v19  ;;  %v4257_v50 = vrot.slane %v4256_v37, 2  ;;  %v4294_v5 = vrot.slane %v4293_v54, 2  ;;  %v5007_v11 = vsel %vm225_vm0, %v4929_v18, 0.0 }
 0x391   :  { %v4573_v3 = vadd.f32 %v4572_v56, %v4571_v35  ;;  %v4580_v7 = vadd.f32 %v4579_v40, %v4578_v13  ;;  %v12809_v35 = vmax.f32 %v11204_v55, 0.0  ;;  %v12810_v13 = vmax.f32 %v11201_v9, 0.0 }
 0x392   :  { %v11394_v19 = vpop.f32.mrf.mxu0  ;;  %v4258_v4 = vmin.f32 %v4256_v37, %v4257_v50  ;;  %v4295_v57 = vmin.f32 %v4293_v54, %v4294_v5  ;;  %v6559_v50 = vld [vmem:[%s12231_s0 + $0xd0] sm:$0xff]  ;;  %v12812_v55 = vmax.f32 %v11146_v45, 0.0 }
 0x393   :  { %v4145_v43 = vpop.xlane.xlu0 %4144  ;;  %v4148_v32 = vpop.xlane.xlu1 %4147  ;;  %v4197_v37 = vmin.f32 %v12810_v13, %v12809_v35  ;;  %v4594_v5 = vmul.f32 %v6559_v50, %v6559_v50  ;;  %v12816_v13 = vld [vmem:[#allocation36_spill] sm:$0xff]  ;;  %v12818_v50 = vld [vmem:[#allocation22_spill] sm:$0xff] }
 0x394   :  { %v4340_v2 = vmin.f32 %v4308_v31, %v4145_v43  ;;  %4999 = vadd.xlane.f32.xlu2 %v4998_v17  ;;  %v4341_v51 = vmin.f32 %v4309_v0, %v4148_v32  ;;  %v11396_v21 = vpop.f32.mrf.mxu1  ;;  %v5060_v32 = vmul.f32 -2.0, %v11402_v52  ;;  %v4259_v44 = vrot.slane %v4258_v4, 1 }
 0x395   :  { %v4296_v0 = vrot.slane %v4295_v57, 1  ;;  %v4574_v43 = vrot.slane %v4573_v3, 1 }
 0x396   :  { %4372 = vst.msk [vmem:[#allocation3 + $0x228] sm:$0xff] %vm19_vm2, %v4340_v2  ;;  %6457 = vmatmul.msk.f32.gmra.mxu0 %vm225_vm0, %v5060_v32  ;;  %6490 = vmatmul.msk.f32.gmra.mxu1 %vm225_vm0, %v5060_v32  ;;  %v4581_v2 = vrot.slane %v4580_v7, 1  ;;  %v4260_v54 = vmin.f32 %v4258_v4, %v4259_v44  ;;  %v4312_v32 = vld [vmem:[#allocation3 + $0x248] sm:$0xff] }
 0x397   :  { %4373 = vst.msk [vmem:[#allocation3 + $0x230] sm:$0xff] %vm19_vm2, %v4341_v51  ;;  %v4297_v56 = vmin.f32 %v4295_v57, %v4296_v0  ;;  %v4310_v0 = vld [vmem:[#allocation3 + $0x238] sm:$0xff] }
 0x398   :  { %5014 = vadd.xlane.f32.xlu0 %v5013_v33  ;;  %v11418_v33 = vadd.f32 %v4574_v43, %v4573_v3  ;;  %v11420_v18 = vadd.f32 %v4581_v2, %v4580_v7  ;;  %v4606_v43 = vsel %vm225_vm0, %v4594_v5, 0.0  ;;  %v11453_v5 = vld [vmem:[%s12232_s1 + $0x3d8] sm:$0xff] }
 0x399   :  { %v11429_v9 = vadd.f32 %v4297_v56, %v4260_v54  ;;  %v12817_v54 = vld [vmem:[#allocation15_spill] sm:$0xff] }
 0x39a   :  { %v11409_v51 = vpop.f32.mrf.mxu0 }
 0x39b   :  { %v4154_v38 = vpop.xlane.xlu0 %4153  ;;  %v4943_v17 = vpop.xlane.xlu1 %4942  ;;  %12813 = vst [vmem:[#allocation12_spill] sm:$0xff] %v11429_v9 }
 0x39c   :  { %v4343_v31 = vmin.f32 %v4311_v30, %v4154_v38  ;;  %5008 = vadd.xlane.f32.xlu2 %v5007_v11  ;;  %v11411_v40 = vpop.f32.mrf.mxu1  ;;  %v12811_v30 = vmax.f32 %v11157_v61, 0.0  ;;  %v6560_v38 = vld [vmem:[%s12231_s0 + $0xc8] sm:$0xff]  ;;  %v5397_v44 = vadd.f32 %v4943_v17, %v11418_v33  ;;  %v5398_v61 = vadd.f32 %v4943_v17, %v11420_v18  ;;  %v6561_v17 = vld [vmem:[%s12231_s0 + $0xd8] sm:$0xff] }
 0x39e   :  { %4375 = vst.msk [vmem:[#allocation3 + $0x240] sm:$0xff] %vm19_vm2, %v4343_v31  ;;  %v4185_v11 = vmin.f32 %v12812_v55, %v12811_v30  ;;  %v4593_v31 = vmul.f32 %v6560_v38, %v6560_v38  ;;  %v2975_v30 = vrot.slane %v12818_v50, 4 }
 0x3a0   :  { %4198 = vmin.xlane.f32.xlu0 %v4197_v37 }
 0x3a2   :  { %v11439_v2 = vpop.f32.mrf.mxu0 }
 0x3a3   :  { %v4940_v4 = vpop.xlane.xlu0 %4939  ;;  %v4157_v7 = vpop.xlane.xlu1 %4156  ;;  %12814 = vst [vmem:[#allocation13_spill] sm:$0xff] %v11439_v2 }
 0x3a4   :  { %v5395_v57 = vadd.f32 %v4940_v4, %v11418_v33  ;;  %v5396_v3 = vadd.f32 %v4940_v4, %v11420_v18  ;;  %4186 = vmin.xlane.f32.xlu2 %v4185_v11  ;;  %v4344_v45 = vmin.f32 %v4312_v32, %v4157_v7  ;;  %v11441_v35 = vpop.f32.mrf.mxu1  ;;  %v4595_v32 = vmul.f32 %v6561_v17, %v6561_v17  ;;  %v12819_v7 = vld [vmem:[#allocation18_spill] sm:$0xff] }
 0x3a5   :  { %12815 = vst [vmem:[#allocation11_spill] sm:$0xff] %v11441_v35  ;;  %v5461_v38 = vadd.f32 %v5397_v44, %v12819_v7 }
 0x3a6   :  { %v5459_v37 = vadd.f32 %v5395_v57, %v12816_v13  ;;  %v5460_v56 = vadd.f32 %v5396_v3, %v12817_v54  ;;  %4376 = vst.msk [vmem:[#allocation3 + $0x248] sm:$0xff] %vm19_vm2, %v4344_v45  ;;  %v4151_v55 = vpop.xlane.xlu2 %4150  ;;  %v5061_v3 = vmul.f32 -2.0, %v11453_v5  ;;  %v12820_v45 = vld [vmem:[#allocation39_spill] sm:$0xff]  ;;  %v4603_v54 = vsel %vm225_vm0, %v4593_v31, 0.0 }
 0x3a7   :  { %v4342_v57 = vmin.f32 %v4310_v0, %v4151_v55  ;;  %v5462_v13 = vadd.f32 %v5398_v61, %v12820_v45  ;;  %v4609_v44 = vsel %vm225_vm0, %v4595_v32, 0.0  ;;  %v4932_v31 = vmul.f32 %v11402_v52, %v11402_v52  ;;  %v11471_v61 = vld [vmem:[%s12232_s1 + $0x3e0] sm:$0xff] }
 0x3a8   :  { %v5523_v11 = vmax.f32 %v5459_v37, 0.0  ;;  %v5524_v4 = vmax.f32 %v5460_v56, 0.0  ;;  %4607 = vadd.xlane.f32.xlu0 %v4606_v43  ;;  %6458 = vmatmul.msk.f32.gmra.mxu0 %vm225_vm0, %v5061_v3  ;;  %v2976_v37 = vadd.f32 %v2975_v30, %v12818_v50 }
 0x3a9   :  { %4374 = vst.msk [vmem:[#allocation3 + $0x238] sm:$0xff] %vm19_vm2, %v4342_v57  ;;  %6491 = vmatmul.msk.f32.gmra.mxu1 %vm225_vm0, %v5061_v3  ;;  %v5525_v57 = vmax.f32 %v5461_v38, 0.0  ;;  %v5526_v50 = vmax.f32 %v5462_v13, 0.0 }
 0x3aa   :  { %v5587_v17 = vmin.f32 %v5523_v11, %v5524_v4  ;;  %v11475_v7 = vpop.f32.mrf.mxu0 }
 0x3ab   :  { %v4949_v56 = vpop.xlane.xlu0 %4948  ;;  %v4952_v55 = vpop.xlane.xlu1 %4951 }
 0x3ac   :  { %v5401_v0 = vadd.f32 %v4949_v56, %v11418_v33  ;;  %v5402_v43 = vadd.f32 %v4949_v56, %v11420_v18  ;;  %4604 = vadd.xlane.f32.xlu2 %v4603_v54  ;;  %5588 = vmin.xlane.f32.xlu1 %v5587_v17  ;;  %v5403_v30 = vadd.f32 %v4952_v55, %v11418_v33  ;;  %v11477_v45 = vpop.f32.mrf.mxu1  ;;  %v5062_v54 = vmul.f32 -2.0, %v11471_v61 }
 0x3ad   :  { %v5404_v3 = vadd.f32 %v4952_v55, %v11420_v18  ;;  %v2977_v56 = vrot.slane %v2976_v37, 2 }
 0x3ae   :  { %v11480_v32 = vadd.f32 %v5401_v0, %v10980_v22  ;;  %v11483_v52 = vadd.f32 %v5402_v43, %v10987_v48  ;;  %v11487_v17 = vadd.f32 %v5403_v30, %v11037_v63  ;;  %v1621_v13 = vpop.xlane.xlu2 %1620  ;;  %v4314_v22 = vld [vmem:[#allocation3 + $0x258] sm:$0xff]  ;;  %v5016_v48 = vsel %vm225_vm0, %v4932_v31, 0.0 }
 0x3af   :  { %v11490_v38 = vadd.f32 %v5404_v3, %v11039_v26  ;;  %v1622_v36 = vrot.slane %v1621_v13, 4  ;;  %v5590_v0 = vmin.f32 %v5525_v57, %v5526_v50  ;;  %v2978_v25 = vadd.f32 %v2977_v56, %v2976_v37 }
 0x3b0   :  { %v5529_v55 = vmax.f32 %v11480_v32, 0.0  ;;  %v5530_v9 = vmax.f32 %v11483_v52, 0.0  ;;  %4610 = vadd.xlane.f32.xlu0 %v4609_v44  ;;  %6459 = vmatmul.msk.f32.gmra.mxu0 %vm225_vm0, %v5062_v54  ;;  %v12448_v30 = vmax.f32 %v11487_v17, 0.0 }
 0x3b1   :  { %v1623_v26 = vadd.f32 %v1622_v36, %v1621_v13  ;;  %6492 = vmatmul.msk.f32.gmra.mxu1 %vm225_vm0, %v5062_v54  ;;  %v12449_v3 = vmax.f32 %v11490_v38, 0.0 }
 0x3b2   :  { %v5684_v43 = vmin.f32 %v5525_v57, %v5529_v55  ;;  %v5721_v63 = vmin.f32 %v5526_v50, %v5530_v9  ;;  %v11505_v50 = vpop.f32.mrf.mxu0 }
 0x3b3   :  { %v4163_v44 = vpop.xlane.xlu0 %4162  ;;  %v1624_v24 = vrot.slane %v1623_v26, 2  ;;  %v4961_v2 = vpop.xlane.xlu1 %4960 }
 0x3b4   :  { %v5683_v12 = vmin.f32 %v5523_v11, %v5684_v43  ;;  %v5720_v31 = vmin.f32 %v5524_v4, %v5721_v63  ;;  %v4346_v35 = vmin.f32 %v4314_v22, %v4163_v44  ;;  %5017 = vadd.xlane.f32.xlu1 %v5016_v48  ;;  %5591 = vmin.xlane.f32.xlu2 %v5590_v0  ;;  %v12821_v11 = vmax.f32 %v11259_v41, 0.0  ;;  %v11516_v22 = vpop.f32.mrf.mxu1 }
 0x3b5   :  { %v5409_v57 = vadd.f32 %v4961_v2, %v11418_v33  ;;  %v5410_v36 = vadd.f32 %v4961_v2, %v11420_v18  ;;  %v12822_v4 = vmax.f32 %v11256_v29, 0.0  ;;  %v1625_v56 = vadd.f32 %v1624_v24, %v1623_v26 }
 0x3b6   :  { %v5685_v54 = vmin.f32 %v5683_v12, %v12448_v30  ;;  %v5722_v13 = vmin.f32 %v5720_v31, %v12449_v3  ;;  %4378 = vst.msk [vmem:[#allocation3 + $0x258] sm:$0xff] %vm19_vm2, %v4346_v35  ;;  %v4946_v12 = vpop.xlane.xlu2 %4945  ;;  %v2979_v41 = vrot.slane %v2978_v25, 1  ;;  %v12823_v29 = vmax.f32 %v10984_v23, 0.0  ;;  %v12825_v31 = vld [vmem:[#allocation34_spill] sm:$0xff] }
 0x3b7   :  { %v4206_v37 = vmin.f32 %v12822_v4, %v12821_v11  ;;  %v11519_v2 = vadd.f32 %v5409_v57, %v11173_v8  ;;  %v11522_v48 = vadd.f32 %v5410_v36, %v11177_v42  ;;  %v5399_v0 = vadd.f32 %v4946_v12, %v11418_v33  ;;  %v6562_v42 = vld [vmem:[%s12231_s0 + $0xe0] sm:$0xff]  ;;  %v12826_v36 = vld [vmem:[#allocation37_spill] sm:$0xff] }
 0x3b8   :  { %v5400_v43 = vadd.f32 %v4946_v12, %v11420_v18  ;;  %v1626_v35 = vrot.slane %v1625_v56, 1  ;;  %v12824_v24 = vmax.f32 %v10982_v10, 0.0  ;;  %v4596_v44 = vmul.f32 %v6562_v42, %v6562_v42  ;;  %v4315_v4 = vld [vmem:[#allocation3 + $0x260] sm:$0xff] }
 0x3b9   :  { %4207 = vmin.xlane.f32.xlu0 %v4206_v37  ;;  %v12450_v26 = vmax.f32 %v11519_v2, 0.0  ;;  %v12451_v8 = vmax.f32 %v11522_v48, 0.0  ;;  %v5463_v57 = vadd.f32 %v5399_v0, %v12825_v31  ;;  %v12827_v23 = vmax.f32 %v11195_v1, 0.0 }
 0x3ba   :  { %v4200_v63 = vmin.f32 %v12824_v24, %v12823_v29  ;;  %v5464_v11 = vadd.f32 %v5400_v43, %v12826_v36  ;;  %v1627_v37 = vadd.f32 %v1626_v35, %v1625_v56  ;;  %v12828_v10 = vmax.f32 %v11192_v53, 0.0  ;;  %v12829_v53 = vld [vmem:[#allocation10_spill] sm:$0xff] }
 0x3bb   :  { %v5687_v29 = vmin.f32 %v5685_v54, %v12450_v26  ;;  %v5724_v24 = vmin.f32 %v5722_v13, %v12451_v8  ;;  %v4958_v30 = vpop.xlane.xlu0 %4957  ;;  %v5527_v3 = vmax.f32 %v5463_v57, 0.0  ;;  %v4166_v31 = vpop.xlane.xlu1 %4165  ;;  %v4612_v56 = vsel %vm225_vm0, %v4596_v44, 0.0  ;;  %v4317_v26 = vld [vmem:[#allocation3 + $0x270] sm:$0xff] }
 0x3bc   :  { %v4194_v12 = vmin.f32 %v12828_v10, %v12827_v23  ;;  %v5528_v42 = vmax.f32 %v5464_v11, 0.0  ;;  %v5407_v0 = vadd.f32 %v4958_v30, %v11418_v33  ;;  %v5408_v43 = vadd.f32 %v4958_v30, %v11420_v18  ;;  %6502 = vpush %v1627_v37  ;;  %4201 = vmin.xlane.f32.xlu1 %v4200_v63  ;;  %v11551_v13 = vpop.f32.mrf.mxu0  ;;  %v12830_v30 = vld [vmem:[#allocation31_spill] sm:$0xff]  ;;  %v11557_v63 = vpop.f32.mrf.mxu1 }
 0x3bd   :  { %v4347_v1 = vmin.f32 %v4315_v4, %v4166_v31  ;;  %6504 = vpush %v12829_v53  ;;  %v4933_v54 = vmul.f32 %v11453_v5, %v11453_v5  ;;  %v5686_v35 = vmin.f32 %v5527_v3, %v5687_v29  ;;  %v2980_v11 = vadd.f32 %v2979_v41, %v2978_v25  ;;  %v11562_v4 = vld [vmem:[%s12232_s1 + $0x3e8] sm:$0xff] }
 0x3be   :  { %4195 = vmin.xlane.f32.xlu2 %v4194_v12  ;;  %v5723_v57 = vmin.f32 %v5528_v42, %v5724_v24  ;;  %v11554_v36 = vadd.f32 %v5407_v0, %v11125_v20  ;;  %6506 = vpush %v12830_v30  ;;  %v11565_v44 = vadd.f32 %v5408_v43, %v11129_v62  ;;  %v4955_v5 = vpop.xlane.xlu2 %4954  ;;  %v6563_v20 = vld [vmem:[%s12231_s0 + $0xe8] sm:$0xff]  ;;  %v5063_v25 = vmul.f32 -2.0, %v11562_v4 }
 0x3bf   :  { %4379 = vst.msk [vmem:[#allocation3 + $0x260] sm:$0xff] %vm19_vm2, %v4347_v1  ;;  %v4597_v37 = vmul.f32 %v6563_v20, %v6563_v20  ;;  %v5405_v23 = vadd.f32 %v4955_v5, %v11418_v33  ;;  %v5406_v10 = vadd.f32 %v4955_v5, %v11420_v18  ;;  %v5019_v12 = vsel %vm225_vm0, %v4933_v54, 0.0 }
 0x3c0   :  { %v5535_v41 = vmax.f32 %v11554_v36, 0.0  ;;  %6508 = vpush %v2980_v11  ;;  %v5536_v62 = vmax.f32 %v11565_v44, 0.0  ;;  %6460 = vmatmul.msk.f32.gmra.mxu0 %vm225_vm0, %v5063_v25  ;;  %6493 = vmatmul.msk.f32.gmra.mxu1 %vm225_vm0, %v5063_v25  ;;  %v5593_v43 = vmin.f32 %v5527_v3, %v5528_v42 }
 0x3c1   :  { %4613 = vadd.xlane.f32.xlu0 %v4612_v56  ;;  %v11582_v24 = vadd.f32 %v5405_v23, %v11073_v15  ;;  %v11585_v0 = vadd.f32 %v5406_v10, %v11078_v34  ;;  %v4615_v53 = vsel %vm225_vm0, %v4597_v37, 0.0  ;;  %v11597_v34 = vld [vmem:[%s12232_s1 + $0x3f0] sm:$0xff] }
 0x3c2   :  { %v5688_v29 = vmin.f32 %v5686_v35, %v5535_v41  ;;  %v5725_v31 = vmin.f32 %v5723_v57, %v5536_v62  ;;  %v4934_v57 = vmul.f32 %v11471_v61, %v11471_v61  ;;  %v5064_v5 = vmul.f32 -2.0, %v11597_v34 }
 0x3c3   :  { %v4967_v1 = vpop.xlane.xlu0 %4966  ;;  %v5533_v56 = vmax.f32 %v11582_v24, 0.0  ;;  %v5534_v54 = vmax.f32 %v11585_v0, 0.0  ;;  %v4970_v15 = vpop.xlane.xlu1 %4969 }
 0x3c4   :  { %v5413_v30 = vadd.f32 %v4967_v1, %v11418_v33  ;;  %v5414_v35 = vadd.f32 %v4967_v1, %v11420_v18  ;;  %5020 = vadd.xlane.f32.xlu1 %v5019_v12  ;;  %v5415_v3 = vadd.f32 %v4970_v15, %v11418_v33  ;;  %v5416_v42 = vadd.f32 %v4970_v15, %v11420_v18  ;;  %v11603_v11 = vpop.f32.mrf.mxu0  ;;  %v11616_v10 = vpop.f32.mrf.mxu1 }
 0x3c5   :  { %v5690_v20 = vmin.f32 %v5688_v29, %v5533_v56  ;;  %v5727_v37 = vmin.f32 %v5725_v31, %v5534_v54 }
 0x3c6   :  { %5594 = vmin.xlane.f32.xlu2 %v5593_v43  ;;  %v11611_v25 = vadd.f32 %v5413_v30, %v11284_v6  ;;  %v11614_v23 = vadd.f32 %v5414_v35, %v11288_v28  ;;  %v5479_v61 = vadd.f32 %v5415_v3, %v11341_v39  ;;  %v5480_v12 = vadd.f32 %v5416_v42, %v11350_v14  ;;  %v3079_v43 = vpop.xlane.xlu2 %3078  ;;  %v6564_v39 = vld [vmem:[%s12231_s0 + $0xf0] sm:$0xff] }
 0x3c7   :  { %v3080_v15 = vrot.slane %v3079_v43, 4  ;;  %v5022_v6 = vsel %vm225_vm0, %v4934_v57, 0.0  ;;  %v5596_v28 = vmin.f32 %v5529_v55, %v5530_v9  ;;  %v4598_v14 = vmul.f32 %v6564_v39, %v6564_v39  ;;  %v11639_v9 = vld [vmem:[%s12232_s1 + $0x3f8] sm:$0xff] }
 0x3c8   :  { %v5541_v1 = vmax.f32 %v11611_v25, 0.0  ;;  %v5542_v29 = vmax.f32 %v11614_v23, 0.0  ;;  %v5543_v31 = vmax.f32 %v5479_v61, 0.0  ;;  %6461 = vmatmul.msk.f32.gmra.mxu0 %vm225_vm0, %v5064_v5  ;;  %6494 = vmatmul.msk.f32.gmra.mxu1 %vm225_vm0, %v5064_v5  ;;  %v5544_v35 = vmax.f32 %v5480_v12, 0.0 }
 0x3c9   :  { %4616 = vadd.xlane.f32.xlu0 %v4615_v53  ;;  %v3081_v52 = vadd.f32 %v3080_v15, %v3079_v43  ;;  %v4618_v12 = vsel %vm225_vm0, %v4598_v14, 0.0  ;;  %v5065_v43 = vmul.f32 -2.0, %v11639_v9 }
 0x3ca   :  { %v5689_v53 = vmin.f32 %v5541_v1, %v5690_v20  ;;  %v5726_v30 = vmin.f32 %v5542_v29, %v5727_v37  ;;  %v4313_v37 = vld [vmem:[#allocation3 + $0x250] sm:$0xff] }
 0x3cb   :  { %v4172_v3 = vpop.xlane.xlu0 %4171  ;;  %v3082_v42 = vrot.slane %v3081_v52, 2  ;;  %v4979_v61 = vpop.xlane.xlu1 %4978 }
 0x3cc   :  { %v5691_v32 = vmin.f32 %v5689_v53, %v5543_v31  ;;  %v5728_v55 = vmin.f32 %v5726_v30, %v5544_v35  ;;  %v4349_v57 = vmin.f32 %v4317_v26, %v4172_v3  ;;  %5023 = vadd.xlane.f32.xlu1 %v5022_v6  ;;  %v5421_v5 = vadd.f32 %v4979_v61, %v11418_v33  ;;  %v11654_v3 = vpop.f32.mrf.mxu1 }
 0x3cd   :  { %v5422_v20 = vadd.f32 %v4979_v61, %v11420_v18  ;;  %v3083_v15 = vadd.f32 %v3082_v42, %v3081_v52  ;;  %v12832_v42 = vmax.f32 %v11127_v27, 0.0 }
 0x3ce   :  { %5597 = vmin.xlane.f32.xlu2 %v5596_v28  ;;  %4381 = vst.msk [vmem:[#allocation3 + $0x270] sm:$0xff] %vm19_vm2, %v4349_v57  ;;  %v11647_v39 = vadd.f32 %v5421_v5, %v11409_v51  ;;  %v4160_v6 = vpop.xlane.xlu2 %4159  ;;  %v11652_v28 = vpop.f32.mrf.mxu0  ;;  %v6565_v51 = vld [vmem:[%s12231_s0 + $0xf8] sm:$0xff]  ;;  %v4318_v5 = vld [vmem:[#allocation3 + $0x278] sm:$0xff]  ;;  %s6501_s0 = spop %6500 }
 0x3cf   :  { %v11650_v26 = vadd.f32 %v5422_v20, %v11411_v40  ;;  %v4345_v53 = vmin.f32 %v4313_v37, %v4160_v6  ;;  %v3084_v30 = vrot.slane %v3083_v15, 1  ;;  %v4599_v52 = vmul.f32 %v6565_v51, %v6565_v51  ;;  %s1524_s19 = smul.f32 0.015625, %s6501_s0 }
 0x3d0   :  { %v5549_v14 = vmax.f32 %v11647_v39, 0.0  ;;  %6462 = vmatmul.msk.f32.gmra.mxu0 %vm225_vm0, %v5065_v43  ;;  %6495 = vmatmul.msk.f32.gmra.mxu1 %vm225_vm0, %v5065_v43  ;;  %v12831_v40 = vmax.f32 %v11140_v60, 0.0  ;;  %v12833_v37 = vmax.f32 %v11253_v49, 0.0 }
 0x3d1   :  { %4619 = vadd.xlane.f32.xlu0 %v4618_v12  ;;  %v5550_v61 = vmax.f32 %v11650_v26, 0.0  ;;  %4377 = vst.msk [vmem:[#allocation3 + $0x250] sm:$0xff] %vm19_vm2, %v4345_v53  ;;  %v3085_v20 = vadd.f32 %v3084_v30, %v3083_v15  ;;  %v12834_v12 = vmax.f32 %v11250_v58, 0.0  ;;  %v11672_v26 = vmin.f32 %v5543_v31, %v5544_v35 }
 0x3d2   :  { %v4209_v57 = vmin.f32 %v12832_v42, %v12831_v40  ;;  %v5692_v6 = vmin.f32 %v5549_v14, %v5691_v32  ;;  %v4621_v49 = vsel %vm225_vm0, %v4599_v52, 0.0  ;;  %v4935_v58 = vmul.f32 %v11562_v4, %v11562_v4  ;;  %v12835_v52 = vld [vmem:[#allocation21_spill] sm:$0xff] }
 0x3d3   :  { %v4203_v39 = vmin.f32 %v12834_v12, %v12833_v37  ;;  %v5729_v51 = vmin.f32 %v5550_v61, %v5728_v55  ;;  %v4976_v8 = vpop.xlane.xlu0 %4975  ;;  %v4175_v27 = vpop.xlane.xlu1 %4174  ;;  %6510 = vpush %v3085_v20  ;;  %v12836_v42 = vmax.f32 %v11490_v38, 0.0  ;;  %v12838_v37 = vld [vmem:[#allocation8_spill] sm:$0xff] }
 0x3d4   :  { %v5419_v43 = vadd.f32 %v4976_v8, %v11418_v33  ;;  %v5420_v60 = vadd.f32 %v4976_v8, %v11420_v18  ;;  %4210 = vmin.xlane.f32.xlu1 %v4209_v57  ;;  %v4350_v53 = vmin.f32 %v4318_v5, %v4175_v27  ;;  %6512 = vpush %v11136_v46  ;;  %v5025_v4 = vsel %vm225_vm0, %v4935_v58, 0.0  ;;  %v11703_v20 = vpop.f32.mrf.mxu1 }
 0x3d5   :  { %v12837_v57 = vmax.f32 %v11487_v17, 0.0  ;;  %v4936_v17 = vmul.f32 %v11597_v34, %v11597_v34 }
 0x3d6   :  { %4204 = vmin.xlane.f32.xlu2 %v4203_v39  ;;  %v11681_v31 = vadd.f32 %v5419_v43, %v11394_v19  ;;  %v11684_v35 = vadd.f32 %v5420_v60, %v11396_v21  ;;  %4382 = vst.msk [vmem:[#allocation3 + $0x278] sm:$0xff] %vm19_vm2, %v4350_v53  ;;  %v4964_v8 = vpop.xlane.xlu2 %4963  ;;  %v11692_v30 = vpop.f32.mrf.mxu0 }
 0x3d7   :  { %v5411_v46 = vadd.f32 %v4964_v8, %v11418_v33  ;;  %v5412_v15 = vadd.f32 %v4964_v8, %v11420_v18  ;;  %v5599_v5 = vmin.f32 %v12837_v57, %v12836_v42 }
 0x3d8   :  { %v5547_v32 = vmax.f32 %v11681_v31, 0.0  ;;  %v5548_v55 = vmax.f32 %v11684_v35, 0.0  ;;  %v4319_v35 = vld [vmem:[#allocation3 + $0x280] sm:$0xff] }
 0x3d9   :  { %4622 = vadd.xlane.f32.xlu0 %v4621_v49  ;;  %v5475_v40 = vadd.f32 %v5411_v46, %v12835_v52  ;;  %v5476_v12 = vadd.f32 %v5412_v15, %v12838_v37  ;;  %v11718_v46 = vmin.f32 %v5549_v14, %v5550_v61 }
 0x3da   :  { %v5694_v19 = vmin.f32 %v5692_v6, %v5547_v32  ;;  %v5731_v21 = vmin.f32 %v5729_v51, %v5548_v55 }
 0x3db   :  { %v4985_v39 = vpop.xlane.xlu0 %4984  ;;  %v5539_v43 = vmax.f32 %v5475_v40, 0.0  ;;  %v4988_v27 = vpop.xlane.xlu1 %4987  ;;  %v5540_v51 = vmax.f32 %v5476_v12, 0.0  ;;  %v4320_v12 = vld [vmem:[#allocation3 + $0x288] sm:$0xff] }
 0x3dc   :  { %v5425_v60 = vadd.f32 %v4985_v39, %v11418_v33  ;;  %v5426_v6 = vadd.f32 %v4985_v39, %v11420_v18  ;;  %5026 = vadd.xlane.f32.xlu1 %v5025_v4  ;;  %v5427_v53 = vadd.f32 %v4988_v27, %v11418_v33  ;;  %v5428_v38 = vadd.f32 %v4988_v27, %v11420_v18 }
 0x3dd   :  { %v5693_v49 = vmin.f32 %v5539_v43, %v5694_v19  ;;  %v5730_v15 = vmin.f32 %v5540_v51, %v5731_v21  ;;  %v5611_v42 = vmin.f32 %v5539_v43, %v5540_v51  ;;  %v4316_v51 = vld [vmem:[#allocation3 + $0x268] sm:$0xff] }
 0x3de   :  { %5600 = vmin.xlane.f32.xlu2 %v5599_v5  ;;  %v11713_v58 = vadd.f32 %v5425_v60, %v11475_v7  ;;  %v11716_v8 = vadd.f32 %v5426_v6, %v11477_v45  ;;  %v11721_v4 = vadd.f32 %v5427_v53, %v11505_v50  ;;  %v11724_v52 = vadd.f32 %v5428_v38, %v11516_v22  ;;  %v4973_v40 = vpop.xlane.xlu2 %4972  ;;  %v11743_v43 = vpop.f32.mrf.mxu0 }
 0x3df   :  { %v5417_v7 = vadd.f32 %v4973_v40, %v11418_v33  ;;  %v5418_v45 = vadd.f32 %v4973_v40, %v11420_v18  ;;  %v5028_v50 = vsel %vm225_vm0, %v4936_v17, 0.0  ;;  %v5602_v22 = vmin.f32 %v5533_v56, %v5534_v54  ;;  %v11749_v6 = vpop.f32.mrf.mxu1 }
 0x3e0   :  { %v5553_v34 = vmax.f32 %v11713_v58, 0.0  ;;  %v5554_v19 = vmax.f32 %v11716_v8, 0.0  ;;  %v5555_v14 = vmax.f32 %v11721_v4, 0.0  ;;  %v5556_v61 = vmax.f32 %v11724_v52, 0.0 }
 0x3e1   :  { %5612 = vmin.xlane.f32.xlu0 %v5611_v42  ;;  %v5481_v5 = vadd.f32 %v5417_v7, %v11377_v59  ;;  %v5482_v37 = vadd.f32 %v5418_v45, %v11386_v47  ;;  %v4937_v53 = vmul.f32 %v11639_v9, %v11639_v9  ;;  %v1630_v45 = vld [vmem:[#allocation4] sm:$0x3] }
 0x3e2   :  { %v5695_v21 = vmin.f32 %v5693_v49, %v5553_v34  ;;  %v5732_v57 = vmin.f32 %v5730_v15, %v5554_v19 }
 0x3e3   :  { %v4181_v39 = vpop.xlane.xlu0 %4180  ;;  %v5545_v56 = vmax.f32 %v5481_v5, 0.0  ;;  %v5546_v54 = vmax.f32 %v5482_v37, 0.0  ;;  %v4997_v60 = vpop.xlane.xlu1 %4996  ;;  %v5031_v9 = vsel %vm225_vm0, %v4937_v53, 0.0 }
 0x3e4   :  { %v5697_v0 = vmin.f32 %v5695_v21, %v5555_v14  ;;  %v5734_v24 = vmin.f32 %v5732_v57, %v5556_v61  ;;  %5029 = vadd.xlane.f32.xlu1 %v5028_v50  ;;  %v4352_v59 = vmin.f32 %v4320_v12, %v4181_v39  ;;  %v5433_v47 = vadd.f32 %v4997_v60, %v11418_v33  ;;  %v4321_v21 = vld [vmem:[#allocation3 + $0x290] sm:$0xff]  ;;  %v12840_v57 = vld [vmem:[#allocation26_spill] sm:$0xff] }
 0x3e5   :  { %v5434_v27 = vadd.f32 %v4997_v60, %v11420_v18  ;;  %v5620_v49 = vmin.f32 %v5545_v56, %v5546_v54  ;;  %v12841_v5 = vmax.f32 %v12840_v57, 0.0 }
 0x3e6   :  { %5603 = vmin.xlane.f32.xlu2 %v5602_v22  ;;  %v5696_v38 = vmin.f32 %v5545_v56, %v5697_v0  ;;  %v5733_v17 = vmin.f32 %v5546_v54, %v5734_v24  ;;  %4384 = vst.msk [vmem:[#allocation3 + $0x288] sm:$0xff] %vm19_vm2, %v4352_v59  ;;  %v11757_v15 = vadd.f32 %v5433_v47, %v11652_v28  ;;  %v4169_v42 = vpop.xlane.xlu2 %4168  ;;  %v12839_v28 = vmax.f32 %v11307_v16, 0.0 }
 0x3e7   :  { %v11760_v40 = vadd.f32 %v5434_v27, %v11654_v3  ;;  %v4348_v7 = vmin.f32 %v4316_v51, %v4169_v42  ;;  %v1631_v0 = vmul.f32 0.00390625, %v1630_v45  ;;  %v1639_v16 = vstv %s1524_s19  ;;  %v12842_v27 = vld [vmem:[#allocation38_spill] sm:$0xff]  ;;  %v5252_v51 = vpop.f32.mrf.mxu0  ;;  %v5365_v53 = vpop.f32.mrf.mxu1  ;;  %v2941_v45 = vld [vmem:[#allocation4 + $0x2] sm:$0x3] }
 0x3e8   :  { %v5561_v50 = vmax.f32 %v11757_v15, 0.0  ;;  %v4212_v3 = vmin.f32 %v12841_v5, %v12839_v28  ;;  %vm1633_vm4 = vcmp.eq.s32.totalorder %v12842_v27, 2  ;;  %vm1632_vm5 = vcmp.eq.s32.totalorder %v12842_v27, 1 }
 0x3e9   :  { %v5562_v22 = vmax.f32 %v11760_v40, 0.0  ;;  %5621 = vmin.xlane.f32.xlu0 %v5620_v49  ;;  %4380 = vst.msk [vmem:[#allocation3 + $0x268] sm:$0xff] %vm19_vm2, %v4348_v7 }
 0x3ea   :  { %v5698_v37 = vmin.f32 %v5696_v38, %v5561_v50  ;;  %v1635_v38 = vperm.slane %v1631_v0, 1 }
 0x3eb   :  { %v5735_v12 = vmin.f32 %v5733_v17, %v5562_v22  ;;  %v4994_v39 = vpop.xlane.xlu0 %4993  ;;  %v4184_v54 = vpop.xlane.xlu1 %4183  ;;  %v1637_v17 = vperm.slane %v1631_v0, 0 }
 0x3ec   :  { %v5431_v24 = vadd.f32 %v4994_v39, %v11418_v33  ;;  %v5432_v56 = vadd.f32 %v4994_v39, %v11420_v18  ;;  %5032 = vadd.xlane.f32.xlu1 %v5031_v9  ;;  %v4353_v60 = vmin.f32 %v4321_v21, %v4184_v54 }
 0x3ed   :  { %s6503_s20 = spop %6502 }
 0x3ee   :  { %4213 = vmin.xlane.f32.xlu2 %v4212_v3  ;;  %v11777_v59 = vadd.f32 %v5431_v24, %v11603_v11  ;;  %v11780_v47 = vadd.f32 %v5432_v56, %v11616_v10  ;;  %s1629_s21 = smul.f32 0.00390625, %s6503_s20  ;;  %s6505_s2 = spop %6504  ;;  %4385 = vst.msk [vmem:[#allocation3 + $0x290] sm:$0xff] %vm19_vm2, %v4353_v60  ;;  %v4982_v42 = vpop.xlane.xlu2 %4981  ;;  %v5614_v24 = vmin.f32 %v5541_v1, %v5542_v29  ;;  %v12843_v60 = vld [vmem:[#allocation13_spill] sm:$0xff] }
 0x3ef   :  { %v2942_v49 = vstv %s6505_s2  ;;  %s6507_s22 = spop %6506  ;;  %v5423_v57 = vadd.f32 %v4982_v42, %v11418_v33  ;;  %v5424_v5 = vadd.f32 %v4982_v42, %v11420_v18 }
 0x3f0   :  { %v5559_v11 = vmax.f32 %v11777_v59, 0.0  ;;  %v5560_v10 = vmax.f32 %v11780_v47, 0.0  ;;  %v1634_v7 = vstv %s1629_s21  ;;  %v2943_v9 = vstv %s6507_s22 }
 0x3f1   :  { %v1636_v21 = vsel %vm1633_vm4, %v1634_v7, %v1635_v38  ;;  %v2944_v28 = vsel %vm1483_vm3, %v2942_v49, %v2943_v9  ;;  %v5487_v38 = vadd.f32 %v5423_v57, %v12843_v60  ;;  %s6509_s23 = spop %6508 }
 0x3f2   :  { %v5700_v3 = vmin.f32 %v5698_v37, %v5559_v11  ;;  %v5737_v39 = vmin.f32 %v5735_v12, %v5560_v10  ;;  %v1638_v0 = vsel %vm1632_vm5, %v1637_v17, %v1636_v21  ;;  %v2945_v54 = vadd.f32 %v2944_v28, %v2941_v45  ;;  %v12844_v12 = vld [vmem:[#allocation11_spill] sm:$0xff]  ;;  %s2982_s24 = smul.f32 0.015625, %s6509_s23 }
 0x3f3   :  { %v1640_v56 = vsel %vm1483_vm3, %v1639_v16, %v1638_v0  ;;  %v5003_v49 = vpop.xlane.xlu0 %5002  ;;  %v5605_v37 = vmin.f32 %v5535_v41, %v5536_v62  ;;  %v5488_v17 = vadd.f32 %v5424_v5, %v12844_v12  ;;  %v5006_v1 = vpop.xlane.xlu1 %5005  ;;  %v5551_v29 = vmax.f32 %v5487_v38, 0.0 }
 0x3f4   :  { %1641 = vst [vmem:[#allocation5] sm:$0xf] %v1640_v56  ;;  %v5437_v23 = vadd.f32 %v5003_v49, %v11418_v33  ;;  %v5438_v25 = vadd.f32 %v5003_v49, %v11420_v18  ;;  %5615 = vmin.xlane.f32.xlu1 %v5614_v24  ;;  %v5439_v16 = vadd.f32 %v5006_v1, %v11418_v33  ;;  %v11826_v5 = vpop.f32.mrf.mxu0  ;;  %v11828_v0 = vpop.f32.mrf.mxu1  ;;  %v12846_v49 = vmax.f32 %v11519_v2, 0.0 }
 0x3f5   :  { %2946 = vst [vmem:[#allocation4 + $0x2] sm:$0x3] %v2945_v54  ;;  %v5440_v42 = vadd.f32 %v5006_v1, %v11420_v18  ;;  %v5552_v44 = vmax.f32 %v5488_v17, 0.0  ;;  %v5699_v62 = vmin.f32 %v5551_v29, %v5700_v3  ;;  %v4323_v3 = vld [vmem:[#allocation3 + $0x2a0] sm:$0xff]  ;;  %v5623_v54 = vmin.f32 %v5547_v32, %v5548_v55 }
 0x3f6   :  { %5606 = vmin.xlane.f32.xlu2 %v5605_v37  ;;  %v11816_v36 = vadd.f32 %v5437_v23, %v11743_v43  ;;  %v11819_v41 = vadd.f32 %v5438_v25, %v11749_v6  ;;  %v4991_v7 = vpop.xlane.xlu2 %4990  ;;  %v11821_v45 = vadd.f32 %v5439_v16, %v5252_v51 }
 0x3f7   :  { %v5736_v9 = vmin.f32 %v5552_v44, %v5737_v39  ;;  %v5429_v57 = vadd.f32 %v4991_v7, %v11418_v33  ;;  %v5430_v43 = vadd.f32 %v4991_v7, %v11420_v18  ;;  %v5629_v24 = vmin.f32 %v5551_v29, %v5552_v44  ;;  %v4324_v44 = vld [vmem:[#allocation3 + $0x2a8] sm:$0xff] }
 0x3f8   :  { %v5565_v21 = vmax.f32 %v11816_v36, 0.0  ;;  %v5566_v28 = vmax.f32 %v11819_v41, 0.0  ;;  %v11831_v6 = vadd.f32 %v5440_v42, %v5365_v53  ;;  %v12845_v53 = vmax.f32 %v11522_v48, 0.0  ;;  %v12847_v36 = vld [vmem:[#allocation25_spill] sm:$0xff] }
 0x3f9   :  { %v5493_v56 = vadd.f32 %v5429_v57, %v11551_v13  ;;  %v5494_v60 = vadd.f32 %v5430_v43, %v11557_v63  ;;  %5630 = vmin.xlane.f32.xlu0 %v5629_v24  ;;  %v5567_v17 = vmax.f32 %v11821_v45, 0.0  ;;  %v5632_v42 = vmin.f32 %v5553_v34, %v5554_v19 }
 0x3fa   :  { %v5701_v51 = vmin.f32 %v5699_v62, %v5565_v21  ;;  %v5738_v39 = vmin.f32 %v5736_v9, %v5566_v28  ;;  %v5608_v37 = vmin.f32 %v12846_v49, %v12845_v53  ;;  %v5568_v31 = vmax.f32 %v11831_v6, 0.0 }
 0x3fb   :  { %v4190_v38 = vpop.xlane.xlu0 %4189  ;;  %v5557_v12 = vmax.f32 %v5493_v56, 0.0  ;;  %v11848_v25 = vpop.xlane.xlu1 %4601  ;;  %v5558_v13 = vmax.f32 %v5494_v60, 0.0 }
 0x3fc   :  { %v4355_v23 = vmin.f32 %v4323_v3, %v4190_v38  ;;  %5624 = vmin.xlane.f32.xlu1 %v5623_v54  ;;  %v3088_v29 = vld [vmem:[#allocation4 + $0x2] sm:$0x3]  ;;  %v5258_v62 = vpop.f32.mrf.mxu0  ;;  %v5371_v7 = vpop.f32.mrf.mxu1  ;;  %v3097_v38 = vstv %s2982_s24 }
 0x3fd   :  { %v5703_v63 = vmin.f32 %v5701_v51, %v5557_v12  ;;  %v5740_v32 = vmin.f32 %v5738_v39, %v5558_v13  ;;  %v5638_v55 = vmin.f32 %v5557_v12, %v5558_v13  ;;  %v3089_v57 = vmul.f32 0.00390625, %v3088_v29 }
 0x3fe   :  { %5609 = vmin.xlane.f32.xlu2 %v5608_v37  ;;  %4387 = vst.msk [vmem:[#allocation3 + $0x2a0] sm:$0xff] %vm19_vm2, %v4355_v23  ;;  %v5641_v12 = vmin.f32 %v5559_v11, %v5560_v10 }
 0x3ff   :  { %v4178_v48 = vpop.xlane.xlu2 %4177  ;;  %v5705_v2 = vmin.f32 %v5703_v63, %v5567_v17  ;;  %v5742_v16 = vmin.f32 %v5740_v32, %v5568_v31  ;;  %v3093_v58 = vperm.slane %v3089_v57, 1  ;;  %v3095_v56 = vperm.slane %v3089_v57, 0  ;;  %v4326_v57 = vld [vmem:[#allocation3 + $0x2b8] sm:$0xff] }
 0x400   :  { %v4351_v1 = vmin.f32 %v4319_v35, %v4178_v48 }
 0x401   :  { %5639 = vmin.xlane.f32.xlu0 %v5638_v55 }
 0x402   :  { %4383 = vst.msk [vmem:[#allocation3 + $0x280] sm:$0xff] %vm19_vm2, %v4351_v1 }
 0x403   :  { %v5012_v9 = vpop.xlane.xlu0 %5011  ;;  %v4193_v3 = vpop.xlane.xlu1 %4192 }
 0x404   :  { %v5443_v43 = vadd.f32 %v5012_v9, %v11418_v33  ;;  %v5444_v24 = vadd.f32 %v5012_v9, %v11420_v18  ;;  %5633 = vmin.xlane.f32.xlu1 %v5632_v42  ;;  %s6511_s25 = spop %6510  ;;  %v4356_v8 = vmin.f32 %v4324_v44, %v4193_v3  ;;  %v5261_v47 = vpop.f32.mrf.mxu0  ;;  %v5374_v55 = vpop.f32.mrf.mxu1  ;;  %v5635_v3 = vmin.f32 %v5555_v14, %v5556_v61 }
 0x405   :  { %s3087_s26 = smul.f32 0.00390625, %s6511_s25  ;;  %s6513_s27 = spop %6512 }
 0x406   :  { %5618 = vmin.xlane.f32.xlu2 %v11672_v26  ;;  %4388 = vst.msk [vmem:[#allocation3 + $0x2a8] sm:$0xff] %vm19_vm2, %v4356_v8  ;;  %v11865_v19 = vadd.f32 %v5443_v43, %v5258_v62  ;;  %v11867_v51 = vadd.f32 %v5444_v24, %v5371_v7 }
 0x407   :  { %v5000_v34 = vpop.xlane.xlu2 %4999  ;;  %v3092_v39 = vstv %s3087_s26 }
 0x408   :  { %v5435_v54 = vadd.f32 %v5000_v34, %v11418_v33  ;;  %v5436_v60 = vadd.f32 %v5000_v34, %v11420_v18  ;;  %v3094_v26 = vsel %vm1633_vm4, %v3092_v39, %v3093_v58  ;;  %v5571_v13 = vmax.f32 %v11865_v19, 0.0 }
 0x409   :  { %v3096_v53 = vsel %vm1632_vm5, %v3095_v56, %v3094_v26  ;;  %v5572_v35 = vmax.f32 %v11867_v51, 0.0  ;;  %v5762_v26 = vld [vmem:[#allocation3 + $0x300] sm:$0xff] }
 0x40a   :  { %v5499_v49 = vadd.f32 %v5435_v54, %v11692_v30  ;;  %v5500_v37 = vadd.f32 %v5436_v60, %v11703_v20  ;;  %v3098_v23 = vsel %vm1483_vm3, %v3097_v38, %v3096_v53  ;;  %v5644_v60 = vmin.f32 %v5561_v50, %v5562_v22  ;;  %v12856_v50 = vld [vmem:[#allocation16_spill] sm:$0xff] }
 0x40b   :  { %v5015_v63 = vpop.xlane.xlu0 %5014  ;;  %3100 = vst [vmem:[#allocation5 + $0x4] sm:$0xf] %v3098_v23  ;;  %v5659_v38 = vmin.f32 %v5571_v13, %v5572_v35 }
 0x40c   :  { %v5563_v32 = vmax.f32 %v5499_v49, 0.0  ;;  %v5564_v48 = vmax.f32 %v5500_v37, 0.0  ;;  %v5445_v30 = vadd.f32 %v5015_v63, %v11418_v33  ;;  %v5446_v20 = vadd.f32 %v5015_v63, %v11420_v18  ;;  %5642 = vmin.xlane.f32.xlu1 %v5641_v12  ;;  %v12851_v63 = vld [vmem:[#allocation29_spill] sm:$0xff] }
 0x40e   :  { %5627 = vmin.xlane.f32.xlu2 %v11718_v46  ;;  %v5702_v59 = vmin.f32 %v5563_v32, %v5705_v2  ;;  %v5739_v11 = vmin.f32 %v5564_v48, %v5742_v16  ;;  %v5647_v10 = vmin.f32 %v5563_v32, %v5564_v48  ;;  %v11888_v29 = vadd.f32 %v5445_v30, %v5261_v47  ;;  %v12853_v48 = vld [vmem:[#allocation28_spill] sm:$0xff] }
 0x40f   :  { %v5009_v1 = vpop.xlane.xlu2 %5008  ;;  %v11890_v42 = vadd.f32 %v5446_v20, %v5374_v55  ;;  %v5650_v2 = vmin.f32 %v5565_v21, %v5566_v28  ;;  %v12848_v21 = vmax.f32 %v12847_v36, 0.0  ;;  %v12849_v28 = vld [vmem:[#allocation23_spill] sm:$0xff]  ;;  %v12852_v32 = vmax.f32 %v12851_v63, 0.0  ;;  %v12855_v20 = vld [vmem:[#allocation33_spill] sm:$0xff] }
 0x410   :  { %v5704_v44 = vmin.f32 %v5702_v59, %v5571_v13  ;;  %v5741_v62 = vmin.f32 %v5739_v11, %v5572_v35  ;;  %v5441_v7 = vadd.f32 %v5009_v1, %v11418_v33  ;;  %v5442_v9 = vadd.f32 %v5009_v1, %v11420_v18  ;;  %5648 = vmin.xlane.f32.xlu0 %v5647_v10  ;;  %v5763_v10 = vld [vmem:[#allocation3 + $0x308] sm:$0xff] }
 0x411   :  { %v5573_v16 = vmax.f32 %v11888_v29, 0.0  ;;  %v5574_v34 = vmax.f32 %v11890_v42, 0.0  ;;  %v12850_v51 = vmax.f32 %v12849_v28, 0.0  ;;  %v12854_v30 = vmax.f32 %v12853_v48, 0.0 }
 0x412   :  { %v5505_v43 = vadd.f32 %v5441_v7, %v11826_v5  ;;  %v5506_v46 = vadd.f32 %v5442_v9, %v11828_v0  ;;  %v4322_v0 = vld [vmem:[#allocation3 + $0x298] sm:$0xff]  ;;  %v5653_v13 = vmin.f32 %v5567_v17, %v5568_v31  ;;  %v4746_v59 = vadd.f32 %v11848_v25, %v11418_v33 }
 0x413   :  { %v4199_v24 = vpop.xlane.xlu0 %4198  ;;  %v4215_v52 = vmin.f32 %v12850_v51, %v12848_v21  ;;  %v4221_v40 = vmin.f32 %v12854_v30, %v12852_v32  ;;  %v4747_v11 = vadd.f32 %v11848_v25, %v11420_v18  ;;  %v5264_v31 = vpop.f32.mrf.mxu0  ;;  %v12857_v25 = vld [vmem:[#allocation30_spill] sm:$0xff]  ;;  %v12858_v9 = vld [vmem:[#allocation32_spill] sm:$0xff] }
 0x414   :  { %v5569_v8 = vmax.f32 %v5505_v43, 0.0  ;;  %v5570_v58 = vmax.f32 %v5506_v46, 0.0  ;;  %v4358_v5 = vmin.f32 %v4326_v57, %v4199_v24  ;;  %5651 = vmin.xlane.f32.xlu1 %v5650_v2  ;;  %v11951_v7 = vadd.f32 %v4746_v59, %v12857_v25  ;;  %v4329_v46 = vld [vmem:[#allocation3 + $0x2d0] sm:$0xff]  ;;  %v12859_v24 = vld [vmem:[#allocation24_spill] sm:$0xff] }
 0x415   :  { %v11954_v57 = vadd.f32 %v4747_v11, %v12858_v9  ;;  %v5662_v2 = vmin.f32 %v5573_v16, %v5574_v34 }
 0x416   :  { %5636 = vmin.xlane.f32.xlu2 %v5635_v3  ;;  %v5706_v41 = vmin.f32 %v5704_v44, %v5569_v8  ;;  %v5743_v19 = vmin.f32 %v5741_v62, %v5570_v58  ;;  %4390 = vst.msk [vmem:[#allocation3 + $0x2b8] sm:$0xff] %vm19_vm2, %v4358_v5  ;;  %v5656_v56 = vmin.f32 %v5569_v8, %v5570_v58  ;;  %v5377_v62 = vpop.f32.mrf.mxu1  ;;  %v12860_v8 = vld [vmem:[#allocation14_spill] sm:$0xff] }
 0x417   :  { %v4187_v39 = vpop.xlane.xlu2 %4186 }
 0x418   :  { %v11911_v4 = vmin.f32 %v5573_v16, %v5706_v41  ;;  %v11913_v14 = vmin.f32 %v5574_v34, %v5743_v19  ;;  %v4354_v61 = vmin.f32 %v4322_v0, %v4187_v39  ;;  %4216 = vmin.xlane.f32.xlu0 %v4215_v52  ;;  %v12861_v0 = vld [vmem:[#allocation27_spill] sm:$0xff]  ;;  %v12863_v19 = vld [vmem:[#allocation9_spill] sm:$0xff]  ;;  %v4778_v16 = vmax.f32 %v11951_v7, 0.0  ;;  %v4445_v7 = vld [vmem:[#allocation3 + $0x218] sm:$0xff] }
 0x419   :  { %v12862_v41 = vmax.f32 %v12861_v0, 0.0  ;;  %v12864_v36 = vmax.f32 %v12863_v19, 0.0 }
 0x41a   :  { %4386 = vst.msk [vmem:[#allocation3 + $0x298] sm:$0xff] %vm19_vm2, %v4354_v61  ;;  %v4325_v61 = vld [vmem:[#allocation3 + $0x2b0] sm:$0xff] }
 0x41b   :  { %v4608_v54 = vpop.xlane.xlu0 %4607  ;;  %v4218_v21 = vmin.f32 %v12864_v36, %v12862_v41 }
 0x41c   :  { %5657 = vmin.xlane.f32.xlu1 %v5656_v56  ;;  %v4327_v56 = vld [vmem:[#allocation3 + $0x2c0] sm:$0xff] }
 0x41e   :  { %5645 = vmin.xlane.f32.xlu2 %v5644_v60  ;;  %v4779_v60 = vmax.f32 %v11954_v57, 0.0 }
 0x41f   :  { %v4605_v53 = vpop.xlane.xlu2 %4604  ;;  %v5589_v49 = vpop.xlane.xlu1 %5588 }
 0x420   :  { %v4748_v37 = vadd.f32 %v4605_v53, %v11418_v33  ;;  %v4749_v12 = vadd.f32 %v4605_v53, %v11420_v18  ;;  %5660 = vmin.xlane.f32.xlu0 %v5659_v38  ;;  %v5794_v23 = vmin.f32 %v5762_v26, %v5589_v49  ;;  %v4750_v49 = vadd.f32 %v4608_v54, %v11418_v33 }
 0x422   :  { %v11927_v15 = vadd.f32 %v4748_v37, %v12855_v20  ;;  %v11930_v22 = vadd.f32 %v4749_v12, %v12856_v50  ;;  %5826 = vst.msk [vmem:[#allocation3 + $0x300] sm:$0xff] %vm19_vm2, %v5794_v23  ;;  %v4751_v37 = vadd.f32 %v4608_v54, %v11420_v18  ;;  %v12866_v50 = vld [vmem:[#allocation20_spill] sm:$0xff] }
 0x423   :  { %v4611_v35 = vpop.xlane.xlu0 %4610 }
 0x424   :  { %v4780_v47 = vmax.f32 %v11927_v15, 0.0  ;;  %v4781_v55 = vmax.f32 %v11930_v22, 0.0  ;;  %4222 = vmin.xlane.f32.xlu1 %v4221_v40  ;;  %v4752_v6 = vadd.f32 %v4611_v35, %v11418_v33  ;;  %v4753_v45 = vadd.f32 %v4611_v35, %v11420_v18  ;;  %v12865_v40 = vld [vmem:[#allocation19_spill] sm:$0xff] }
 0x425   :  { %v11983_v20 = vadd.f32 %v4750_v49, %v12865_v40  ;;  %v11986_v54 = vadd.f32 %v4751_v37, %v12866_v50  ;;  %v5267_v11 = vpop.f32.mrf.mxu0 }
 0x426   :  { %5654 = vmin.xlane.f32.xlu2 %v5653_v13  ;;  %v4797_v17 = vmin.f32 %v4780_v47, %v4781_v55  ;;  %v11958_v3 = vadd.f32 %v4752_v6, %v12859_v24  ;;  %v11961_v58 = vadd.f32 %v4753_v45, %v12860_v8  ;;  %v4794_v13 = vmin.f32 %v4778_v16, %v4779_v60  ;;  %v12867_v6 = vld [vmem:[#allocation35_spill] sm:$0xff] }
 0x427   :  { %v5592_v1 = vpop.xlane.xlu2 %5591  ;;  %v5018_v29 = vpop.xlane.xlu1 %5017 }
 0x428   :  { %v5795_v42 = vmin.f32 %v5763_v10, %v5592_v1  ;;  %v5447_v44 = vadd.f32 %v5018_v29, %v11418_v33  ;;  %4798 = vmin.xlane.f32.xlu0 %v4797_v17  ;;  %v5448_v43 = vadd.f32 %v5018_v29, %v11420_v18  ;;  %v4784_v38 = vmax.f32 %v11958_v3, 0.0  ;;  %v5764_v10 = vld [vmem:[#allocation3 + $0x310] sm:$0xff]  ;;  %v12868_v17 = vld [vmem:[#allocation45_spill] sm:$0xff]  ;;  %v5380_v1 = vpop.f32.mrf.mxu1 }
 0x429   :  { %v4785_v26 = vmax.f32 %v11961_v58, 0.0  ;;  %v4782_v29 = vmax.f32 %v11983_v20, 0.0  ;;  %v4412_v20 = vld [vmem:[#allocation2 + $0x98] sm:$0xff] }
 0x42a   :  { %5827 = vst.msk [vmem:[#allocation3 + $0x308] sm:$0xff] %vm19_vm2, %v5795_v42  ;;  %v5511_v5 = vadd.f32 %v5447_v44, %v5264_v31  ;;  %v5512_v28 = vadd.f32 %v5448_v43, %v5377_v62  ;;  %v4783_v42 = vmax.f32 %v11986_v54, 0.0 }
 0x42b   :  { %v4818_v15 = vmin.f32 %v4778_v16, %v4782_v29 }
 0x42c   :  { %v4208_v51 = vpop.xlane.xlu0 %4207  ;;  %v5575_v52 = vmax.f32 %v5511_v5, 0.0  ;;  %5663 = vmin.xlane.f32.xlu1 %v5662_v2  ;;  %v5576_v34 = vmax.f32 %v5512_v28, 0.0  ;;  %v4800_v41 = vmin.f32 %v4782_v29, %v4783_v42  ;;  %v4831_v22 = vmin.f32 %v4779_v60, %v4783_v42 }
 0x42d   :  { %v4361_v39 = vmin.f32 %v4329_v46, %v4208_v51 }
 0x42e   :  { %4219 = vmin.xlane.f32.xlu2 %v4218_v21  ;;  %v5708_v53 = vmin.f32 %v5575_v52, %v11911_v4  ;;  %v5745_v12 = vmin.f32 %v5576_v34, %v11913_v14  ;;  %v5665_v23 = vmin.f32 %v5575_v52, %v5576_v34  ;;  %v4803_v4 = vmin.f32 %v4784_v38, %v4785_v26  ;;  %v5765_v21 = vld [vmem:[#allocation3 + $0x318] sm:$0xff] }
 0x42f   :  { %4393 = vst.msk [vmem:[#allocation3 + $0x2d0] sm:$0xff] %vm19_vm2, %v4361_v39  ;;  %v4202_v32 = vpop.xlane.xlu1 %4201  ;;  %v5270_v39 = vpop.f32.mrf.mxu0 }
 0x430   :  { %v4359_v30 = vmin.f32 %v4327_v56, %v4202_v32  ;;  %5666 = vmin.xlane.f32.xlu0 %v5665_v23  ;;  %v5383_v23 = vpop.f32.mrf.mxu1  ;;  %v12869_v32 = vld [vmem:[#allocation40_spill] sm:$0xff] }
 0x431   :  { %v4196_v63 = vpop.xlane.xlu2 %4195 }
 0x432   :  { %v4357_v48 = vmin.f32 %v4325_v61, %v4196_v63  ;;  %4391 = vst.msk [vmem:[#allocation3 + $0x2c0] sm:$0xff] %vm19_vm2, %v4359_v30  ;;  %v12870_v30 = vld [vmem:[#allocation42_spill] sm:$0xff] }
 0x434   :  { %4389 = vst.msk [vmem:[#allocation3 + $0x2b0] sm:$0xff] %vm19_vm2, %v4357_v48  ;;  %v4614_v14 = vpop.xlane.xlu0 %4613  ;;  %4804 = vmin.xlane.f32.xlu1 %v4803_v4 }
 0x435   :  { %v4754_v35 = vadd.f32 %v4614_v14, %v11418_v33  ;;  %v4755_v59 = vadd.f32 %v4614_v14, %v11420_v18 }
 0x436   :  { %4795 = vmin.xlane.f32.xlu2 %v4794_v13 }
 0x437   :  { %v11996_v45 = vadd.f32 %v4754_v35, %v12867_v6  ;;  %v11999_v31 = vadd.f32 %v4755_v59, %v12868_v17  ;;  %v5021_v62 = vpop.xlane.xlu1 %5020 }
 0x438   :  { %v5449_v46 = vadd.f32 %v5021_v62, %v11418_v33  ;;  %v5450_v2 = vadd.f32 %v5021_v62, %v11420_v18 }
 0x439   :  { %v5595_v44 = vpop.xlane.xlu2 %5594  ;;  %v4786_v25 = vmax.f32 %v11996_v45, 0.0  ;;  %v4787_v9 = vmax.f32 %v11999_v31, 0.0  ;;  %v4422_v45 = vsel %vm19_vm2, %v4412_v20, 0.0 }
 0x43a   :  { %v5796_v43 = vmin.f32 %v5764_v10, %v5595_v44  ;;  %v5513_v24 = vadd.f32 %v5449_v46, %v5267_v11  ;;  %v5514_v5 = vadd.f32 %v5450_v2, %v5380_v1  ;;  %v4328_v11 = vld [vmem:[#allocation3 + $0x2c8] sm:$0xff]  ;;  %v4330_v10 = vld [vmem:[#allocation3 + $0x2d8] sm:$0xff] }
 0x43b   :  { %v4806_v8 = vmin.f32 %v4786_v25, %v4787_v9  ;;  %v12872_v2 = vld [vmem:[#allocation44_spill] sm:$0xff]  ;;  %v4820_v16 = vmin.f32 %v4818_v15, %v4786_v25  ;;  %v4833_v54 = vmin.f32 %v4831_v22, %v4787_v9  ;;  %v4446_v25 = vld [vmem:[#allocation3 + $0x220] sm:$0xff] }
 0x43c   :  { %5828 = vst.msk [vmem:[#allocation3 + $0x310] sm:$0xff] %vm19_vm2, %v5796_v43  ;;  %v4617_v0 = vpop.xlane.xlu0 %4616  ;;  %v5577_v19 = vmax.f32 %v5513_v24, 0.0  ;;  %v5578_v36 = vmax.f32 %v5514_v5, 0.0  ;;  %v12871_v43 = vld [vmem:[#allocation41_spill] sm:$0xff] }
 0x43d   :  { %4807 = vmin.xlane.f32.xlu0 %v4806_v8  ;;  %v4756_v51 = vadd.f32 %v4617_v0, %v11418_v33  ;;  %v4757_v52 = vadd.f32 %v4617_v0, %v11420_v18  ;;  %v4410_v0 = vld [vmem:[#allocation2 + $0x88] sm:$0xff] }
 0x43e   :  { %4801 = vmin.xlane.f32.xlu2 %v4800_v41  ;;  %v5709_v28 = vmin.f32 %v5577_v19, %v5708_v53  ;;  %v5746_v34 = vmin.f32 %v5578_v36, %v5745_v12  ;;  %v5668_v40 = vmin.f32 %v5577_v19, %v5578_v36  ;;  %v4442_v41 = vld [vmem:[#allocation3 + $0x200] sm:$0xff] }
 0x43f   :  { %v5024_v56 = vpop.xlane.xlu1 %5023  ;;  %v4772_v48 = vadd.f32 %v4756_v51, %v12869_v32  ;;  %v12022_v4 = vadd.f32 %v4757_v52, %v12870_v30  ;;  %v4409_v51 = vld [vmem:[#allocation2 + $0x80] sm:$0xff]  ;;  %v5386_v52 = vpop.f32.mrf.mxu1 }
 0x440   :  { %v5451_v37 = vadd.f32 %v5024_v56, %v11418_v33  ;;  %v5452_v63 = vadd.f32 %v5024_v56, %v11420_v18  ;;  %v4444_v56 = vld [vmem:[#allocation3 + $0x210] sm:$0xff]  ;;  %v4417_v30 = vsel %vm19_vm2, %v4409_v51, 0.0 }
 0x441   :  { %v5598_v61 = vpop.xlane.xlu2 %5597  ;;  %v4788_v6 = vmax.f32 %v4772_v48, 0.0  ;;  %v4789_v17 = vmax.f32 %v12022_v4, 0.0 }
 0x442   :  { %v5797_v49 = vmin.f32 %v5765_v21, %v5598_v61  ;;  %v5515_v53 = vadd.f32 %v5451_v37, %v5270_v39  ;;  %v5516_v50 = vadd.f32 %v5452_v63, %v5383_v23  ;;  %v5273_v21 = vpop.f32.mrf.mxu0  ;;  %v4411_v39 = vld [vmem:[#allocation2 + $0x90] sm:$0xff]  ;;  %v4474_v61 = vsel %vm19_vm2, %v4442_v41, 0.0 }
 0x443   :  { %v4809_v63 = vmin.f32 %v4788_v6, %v4789_v17  ;;  %v4479_v41 = vsel %vm19_vm2, %v4445_v7, 0.0 }
 0x444   :  { %5829 = vst.msk [vmem:[#allocation3 + $0x318] sm:$0xff] %vm19_vm2, %v5797_v49  ;;  %v4620_v14 = vpop.xlane.xlu0 %4619  ;;  %v5579_v12 = vmax.f32 %v5515_v53, 0.0  ;;  %v5580_v59 = vmax.f32 %v5516_v50, 0.0  ;;  %v4819_v53 = vmin.f32 %v4780_v47, %v4784_v38  ;;  %v4832_v47 = vmin.f32 %v4781_v55, %v4785_v26 }
 0x445   :  { %v4758_v13 = vadd.f32 %v4620_v14, %v11418_v33  ;;  %v4759_v35 = vadd.f32 %v4620_v14, %v11420_v18  ;;  %v4420_v14 = vsel %vm19_vm2, %v4411_v39, 0.0  ;;  %v4447_v39 = vld [vmem:[#allocation3 + $0x228] sm:$0xff] }
 0x446   :  { %5669 = vmin.xlane.f32.xlu2 %v5668_v40  ;;  %v12028_v1 = vmin.f32 %v5579_v12, %v5709_v28  ;;  %v12030_v44 = vmin.f32 %v5580_v59, %v5746_v34  ;;  %v5671_v62 = vmin.f32 %v5579_v12, %v5580_v59  ;;  %v4443_v28 = vld [vmem:[#allocation3 + $0x208] sm:$0xff]  ;;  %v4418_v34 = vsel %vm19_vm2, %v4410_v0, 0.0  ;;  %v5766_v40 = vld [vmem:[#allocation3 + $0x320] sm:$0xff] }
 0x447   :  { %v12033_v46 = vadd.f32 %v4758_v13, %v12871_v43  ;;  %v12036_v24 = vadd.f32 %v4759_v35, %v12872_v2  ;;  %v4211_v5 = vpop.xlane.xlu1 %4210  ;;  %v4475_v4 = vsel %vm19_vm2, %v4443_v28, 0.0  ;;  %v4419_v50 = vadd.f32 %v4418_v34, %v4417_v30  ;;  %v12873_v35 = vld [vmem:[#allocation43_spill] sm:$0xff] }
 0x448   :  { %v4362_v36 = vmin.f32 %v4330_v10, %v4211_v5  ;;  %5672 = vmin.xlane.f32.xlu1 %v5671_v62  ;;  %v4476_v12 = vadd.f32 %v4475_v4, %v4474_v61  ;;  %v4477_v13 = vsel %vm19_vm2, %v4444_v56, 0.0  ;;  %v4821_v3 = vmin.f32 %v4819_v53, %v4788_v6  ;;  %v5770_v6 = vld [vmem:[#allocation3 + $0x340] sm:$0xff]  ;;  %v5767_v61 = vld [vmem:[#allocation3 + $0x328] sm:$0xff] }
 0x449   :  { %v4205_v8 = vpop.xlane.xlu2 %4204  ;;  %v4790_v49 = vmax.f32 %v12033_v46, 0.0  ;;  %v4791_v37 = vmax.f32 %v12036_v24, 0.0  ;;  %v4834_v55 = vmin.f32 %v4832_v47, %v4789_v17  ;;  %v4421_v0 = vadd.f32 %v4420_v14, %v4419_v50  ;;  %v4413_v17 = vld [vmem:[#allocation2 + $0xa0] sm:$0xff] }
 0x44a   :  { %v4360_v19 = vmin.f32 %v4328_v11, %v4205_v8  ;;  %4394 = vst.msk [vmem:[#allocation3 + $0x2d8] sm:$0xff] %vm19_vm2, %v4362_v36  ;;  %v12874_v11 = vld [vmem:[#allocation17_spill] sm:$0xff]  ;;  %v4478_v5 = vadd.f32 %v4477_v13, %v4476_v12  ;;  %v5276_v42 = vpop.f32.mrf.mxu0 }
 0x44b   :  { %v4812_v43 = vmin.f32 %v4790_v49, %v4791_v37  ;;  %v4835_v34 = vmin.f32 %v4833_v54, %v4791_v37  ;;  %v4414_v37 = vld [vmem:[#allocation2 + $0xa8] sm:$0xff] }
 0x44c   :  { %4392 = vst.msk [vmem:[#allocation3 + $0x2c8] sm:$0xff] %vm19_vm2, %v4360_v19  ;;  %v4623_v23 = vpop.xlane.xlu0 %4622  ;;  %v4822_v19 = vmin.f32 %v4820_v16, %v4790_v49  ;;  %v4480_v28 = vadd.f32 %v4479_v41, %v4478_v5  ;;  %v4415_v5 = vld [vmem:[#allocation2 + $0xb0] sm:$0xff] }
 0x44d   :  { %v4760_v32 = vadd.f32 %v4623_v23, %v11418_v33  ;;  %v4761_v48 = vadd.f32 %v4623_v23, %v11420_v18  ;;  %v4423_v23 = vadd.f32 %v4422_v45, %v4421_v0  ;;  %v4428_v41 = vsel %vm19_vm2, %v4415_v5, 0.0 }
 0x44e   :  { %4810 = vmin.xlane.f32.xlu2 %v4809_v63  ;;  %v4424_v63 = vsel %vm19_vm2, %v4413_v17, 0.0 }
 0x44f   :  { %v12055_v59 = vadd.f32 %v4760_v32, %v12873_v35  ;;  %v12058_v10 = vadd.f32 %v4761_v48, %v12874_v11  ;;  %v5027_v62 = vpop.xlane.xlu1 %5026  ;;  %v4481_v32 = vsel %vm19_vm2, %v4446_v25, 0.0  ;;  %v4425_v13 = vadd.f32 %v4424_v63, %v4423_v23  ;;  %v4448_v35 = vld [vmem:[#allocation3 + $0x230] sm:$0xff]  ;;  %v4449_v11 = vld [vmem:[#allocation3 + $0x238] sm:$0xff] }
 0x450   :  { %v5453_v8 = vadd.f32 %v5027_v62, %v11418_v33  ;;  %v5454_v58 = vadd.f32 %v5027_v62, %v11420_v18  ;;  %4813 = vmin.xlane.f32.xlu1 %v4812_v43  ;;  %v4482_v12 = vadd.f32 %v4481_v32, %v4480_v28  ;;  %v4485_v7 = vsel %vm19_vm2, %v4448_v35, 0.0  ;;  %v4416_v25 = vld [vmem:[#allocation2 + $0xb8] sm:$0xff]  ;;  %v5771_v32 = vld [vmem:[#allocation3 + $0x348] sm:$0xff] }
 0x451   :  { %v5601_v38 = vpop.xlane.xlu2 %5600  ;;  %v4792_v46 = vmax.f32 %v12055_v59, 0.0  ;;  %v4793_v2 = vmax.f32 %v12058_v10, 0.0  ;;  %v4487_v22 = vsel %vm19_vm2, %v4449_v11, 0.0 }
 0x452   :  { %v5798_v24 = vmin.f32 %v5766_v40, %v5601_v38  ;;  %v5517_v29 = vadd.f32 %v5453_v8, %v5273_v21  ;;  %v5518_v60 = vadd.f32 %v5454_v58, %v5386_v52  ;;  %v5389_v21 = vpop.f32.mrf.mxu1  ;;  %v4483_v40 = vsel %vm19_vm2, %v4447_v39, 0.0  ;;  %v4331_v58 = vld [vmem:[#allocation3 + $0x2e0] sm:$0xff]  ;;  %v5279_v0 = vpop.f32.mrf.mxu0 }
 0x453   :  { %v4823_v26 = vmin.f32 %v4821_v3, %v4792_v46  ;;  %v4836_v57 = vmin.f32 %v4834_v55, %v4793_v2  ;;  %v5773_v3 = vld [vmem:[#allocation3 + $0x358] sm:$0xff]  ;;  %v4426_v38 = vsel %vm19_vm2, %v4414_v37, 0.0  ;;  %v4484_v62 = vadd.f32 %v4483_v40, %v4482_v12  ;;  %v4450_v39 = vld [vmem:[#allocation3 + $0x240] sm:$0xff]  ;;  %v5768_v40 = vld [vmem:[#allocation3 + $0x330] sm:$0xff] }
 0x454   :  { %5830 = vst.msk [vmem:[#allocation3 + $0x320] sm:$0xff] %vm19_vm2, %v5798_v24  ;;  %v5581_v36 = vmax.f32 %v5517_v29, 0.0  ;;  %v5613_v51 = vpop.xlane.xlu0 %5612  ;;  %v5582_v31 = vmax.f32 %v5518_v60, 0.0  ;;  %v4427_v16 = vadd.f32 %v4426_v38, %v4425_v13  ;;  %v4815_v45 = vmin.f32 %v4792_v46, %v4793_v2  ;;  %v4453_v38 = vld [vmem:[#allocation3 + $0x258] sm:$0xff] }
 0x455   :  { %v5802_v9 = vmin.f32 %v5770_v6, %v5613_v51  ;;  %v4824_v56 = vmin.f32 %v4822_v19, %v4823_v26  ;;  %v4837_v48 = vmin.f32 %v4835_v34, %v4836_v57  ;;  %v4486_v60 = vadd.f32 %v4485_v7, %v4484_v62  ;;  %v5769_v7 = vld [vmem:[#allocation3 + $0x338] sm:$0xff] }
 0x456   :  { %v5711_v52 = vmin.f32 %v5581_v36, %v12028_v1  ;;  %v5748_v49 = vmin.f32 %v5582_v31, %v12030_v44  ;;  %v5674_v30 = vmin.f32 %v5581_v36, %v5582_v31  ;;  %v4430_v46 = vsel %vm19_vm2, %v4416_v25, 0.0 }
 0x457   :  { %5834 = vst.msk [vmem:[#allocation3 + $0x340] sm:$0xff] %vm19_vm2, %v5802_v9  ;;  %v5030_v53 = vpop.xlane.xlu1 %5029  ;;  %v4825_v15 = vrot.slane %v4824_v56, 4  ;;  %v4838_v43 = vrot.slane %v4837_v48, 4  ;;  %v4488_v34 = vadd.f32 %v4487_v22, %v4486_v60  ;;  %v4451_v9 = vld [vmem:[#allocation3 + $0x248] sm:$0xff] }
 0x458   :  { %v5455_v14 = vadd.f32 %v5030_v53, %v11418_v33  ;;  %v5456_v1 = vadd.f32 %v5030_v53, %v11420_v18  ;;  %5675 = vmin.xlane.f32.xlu0 %v5674_v30  ;;  %v4491_v23 = vsel %vm19_vm2, %v4451_v9, 0.0  ;;  %v4452_v30 = vld [vmem:[#allocation3 + $0x250] sm:$0xff] }
 0x459   :  { %v5604_v4 = vpop.xlane.xlu2 %5603  ;;  %v4826_v57 = vmin.f32 %v4824_v56, %v4825_v15  ;;  %v4839_v19 = vmin.f32 %v4837_v48, %v4838_v43  ;;  %v4493_v35 = vsel %vm19_vm2, %v4452_v30, 0.0  ;;  %v5776_v43 = vld [vmem:[#allocation3 + $0x370] sm:$0xff] }
 0x45a   :  { %v5799_v50 = vmin.f32 %v5767_v61, %v5604_v4  ;;  %v5519_v44 = vadd.f32 %v5455_v14, %v5276_v42  ;;  %v5520_v47 = vadd.f32 %v5456_v1, %v5389_v21  ;;  %v5392_v54 = vpop.f32.mrf.mxu1  ;;  %v4429_v61 = vadd.f32 %v4428_v41, %v4427_v16 }
 0x45b   :  { %v4827_v28 = vrot.slane %v4826_v57, 2  ;;  %v4840_v31 = vrot.slane %v4839_v19, 2 }
 0x45c   :  { %5831 = vst.msk [vmem:[#allocation3 + $0x328] sm:$0xff] %vm19_vm2, %v5799_v50  ;;  %v5583_v24 = vmax.f32 %v5519_v44, 0.0  ;;  %v5584_v8 = vmax.f32 %v5520_v47, 0.0  ;;  %v5622_v20 = vpop.xlane.xlu0 %5621  ;;  %v4431_v48 = vadd.f32 %v4430_v46, %v4429_v61 }
 0x45d   :  { %v5805_v55 = vmin.f32 %v5773_v3, %v5622_v20  ;;  %v4828_v2 = vmin.f32 %v4826_v57, %v4827_v28  ;;  %v4841_v56 = vmin.f32 %v4839_v19, %v4840_v31  ;;  %v12875_v57 = vld [vmem:[#allocation12_spill] sm:$0xff]  ;;  %v5779_v19 = vld [vmem:[#allocation3 + $0x388] sm:$0xff] }
 0x45e   :  { %v5712_v26 = vmin.f32 %v5583_v24, %v5711_v52  ;;  %v5749_v29 = vmin.f32 %v5584_v8, %v5748_v49  ;;  %v5677_v6 = vmin.f32 %v5583_v24, %v5584_v8  ;;  %v5774_v24 = vld [vmem:[#allocation3 + $0x360] sm:$0xff] }
 0x45f   :  { %5837 = vst.msk [vmem:[#allocation3 + $0x358] sm:$0xff] %vm19_vm2, %v5805_v55  ;;  %v5033_v17 = vpop.xlane.xlu1 %5032  ;;  %v4829_v49 = vrot.slane %v4828_v2, 1  ;;  %v4842_v50 = vrot.slane %v4841_v56, 1  ;;  %v4495_v55 = vsel %vm19_vm2, %v4453_v38, 0.0 }
 0x460   :  { %v5457_v51 = vadd.f32 %v5033_v17, %v11418_v33  ;;  %v5458_v21 = vadd.f32 %v5033_v17, %v11420_v18  ;;  %5678 = vmin.xlane.f32.xlu2 %v5677_v6  ;;  %4816 = vmin.xlane.f32.xlu0 %v4815_v45  ;;  %v4489_v33 = vsel %vm19_vm2, %v4450_v39, 0.0  ;;  %v4455_v6 = vld [vmem:[#allocation3 + $0x268] sm:$0xff]  ;;  %v5772_v39 = vld [vmem:[#allocation3 + $0x350] sm:$0xff] }
 0x461   :  { %v4214_v42 = vpop.xlane.xlu2 %4213  ;;  %v4490_v63 = vadd.f32 %v4489_v33, %v4488_v34  ;;  %v4830_v47 = vmin.f32 %v4828_v2, %v4829_v49  ;;  %v4843_v3 = vmin.f32 %v4841_v56, %v4842_v50  ;;  %v4499_v25 = vsel %vm19_vm2, %v4455_v6, 0.0  ;;  %v5780_v49 = vld [vmem:[#allocation3 + $0x390] sm:$0xff] }
 0x462   :  { %v4363_v36 = vmin.f32 %v4331_v58, %v4214_v42  ;;  %v5521_v59 = vadd.f32 %v5457_v51, %v5279_v0  ;;  %v5522_v10 = vadd.f32 %v5458_v21, %v5392_v54  ;;  %v4456_v51 = vld [vmem:[#allocation3 + $0x270] sm:$0xff] }
 0x463   :  { %v4492_v13 = vadd.f32 %v4491_v23, %v4490_v63  ;;  %v4844_v22 = vadd.f32 %v4843_v3, %v4830_v47  ;;  %v4501_v56 = vsel %vm19_vm2, %v4456_v51, 0.0  ;;  %v4460_v47 = vld [vmem:[#allocation3 + $0x290] sm:$0xff]  ;;  %v4461_v3 = vld [vmem:[#allocation3 + $0x298] sm:$0xff] }
 0x464   :  { %4395 = vst.msk [vmem:[#allocation3 + $0x2e0] sm:$0xff] %vm19_vm2, %v4363_v36  ;;  %v5585_v52 = vmax.f32 %v5521_v59, 0.0  ;;  %v5586_v18 = vmax.f32 %v5522_v10, 0.0  ;;  %v5777_v36 = vld [vmem:[#allocation3 + $0x378] sm:$0xff] }
 0x465   :  { %v4494_v62 = vadd.f32 %v4493_v35, %v4492_v13  ;;  %v5782_v35 = vld [vmem:[#allocation3 + $0x3a0] sm:$0xff] }
 0x466   :  { %v5713_v4 = vmin.f32 %v5585_v52, %v5712_v26  ;;  %v5750_v53 = vmin.f32 %v5586_v18, %v5749_v29  ;;  %v5680_v37 = vmin.f32 %v5585_v52, %v5586_v18  ;;  %v4454_v26 = vld [vmem:[#allocation3 + $0x260] sm:$0xff]  ;;  %v4457_v52 = vld [vmem:[#allocation3 + $0x278] sm:$0xff] }
 0x467   :  { %v5616_v14 = vpop.xlane.xlu1 %5615  ;;  %v4496_v29 = vadd.f32 %v4495_v55, %v4494_v62  ;;  %v4497_v45 = vsel %vm19_vm2, %v4454_v26, 0.0  ;;  %v4458_v18 = vld [vmem:[#allocation3 + $0x280] sm:$0xff]  ;;  %v4503_v30 = vsel %vm19_vm2, %v4457_v52, 0.0  ;;  %v5783_v62 = vld [vmem:[#allocation3 + $0x3a8] sm:$0xff] }
 0x468   :  { %v5803_v12 = vmin.f32 %v5771_v32, %v5616_v14  ;;  %4432 = vadd.xlane.f32.xlu2 %v4431_v48  ;;  %5681 = vmin.xlane.f32.xlu1 %v5680_v37  ;;  %v5714_v15 = vrot.slane %v5713_v4, 4  ;;  %v5751_v44 = vrot.slane %v5750_v53, 4 }
 0x469   :  { %v5607_v1 = vpop.xlane.xlu2 %5606  ;;  %v4498_v41 = vadd.f32 %v4497_v45, %v4496_v29 }
 0x46a   :  { %v5800_v11 = vmin.f32 %v5768_v40, %v5607_v1  ;;  %5835 = vst.msk [vmem:[#allocation3 + $0x348] sm:$0xff] %vm19_vm2, %v5803_v12  ;;  %v5715_v8 = vmin.f32 %v5713_v4, %v5714_v15  ;;  %v5752_v20 = vmin.f32 %v5750_v53, %v5751_v44  ;;  %v4505_v4 = vsel %vm19_vm2, %v4458_v18, 0.0  ;;  %v5775_v53 = vld [vmem:[#allocation3 + $0x368] sm:$0xff]  ;;  %v4465_v18 = vld [vmem:[#allocation3 + $0x2b8] sm:$0xff] }
 0x46b   :  { %v4500_v21 = vadd.f32 %v4499_v25, %v4498_v41  ;;  %v4459_v1 = vld [vmem:[#allocation3 + $0x288] sm:$0xff]  ;;  %v5901_v25 = vld [vmem:[#allocation3 + $0x300] sm:$0xff]  ;;  %v5903_v41 = vld [vmem:[#allocation3 + $0x310] sm:$0xff] }
 0x46c   :  { %5832 = vst.msk [vmem:[#allocation3 + $0x330] sm:$0xff] %vm19_vm2, %v5800_v11  ;;  %v5631_v5 = vpop.xlane.xlu0 %5630  ;;  %v5716_v42 = vrot.slane %v5715_v8, 2  ;;  %v5753_v17 = vrot.slane %v5752_v20, 2  ;;  %v4507_v15 = vsel %vm19_vm2, %v4459_v1, 0.0 }
 0x46d   :  { %v5808_v58 = vmin.f32 %v5776_v43, %v5631_v5  ;;  %v4502_v23 = vadd.f32 %v4501_v56, %v4500_v21  ;;  %v5778_v43 = vld [vmem:[#allocation3 + $0x380] sm:$0xff] }
 0x46e   :  { %v5717_v34 = vmin.f32 %v5715_v8, %v5716_v42  ;;  %v5754_v31 = vmin.f32 %v5752_v20, %v5753_v17  ;;  %v4509_v8 = vsel %vm19_vm2, %v4460_v47, 0.0  ;;  %v4511_v20 = vsel %vm19_vm2, %v4461_v3, 0.0  ;;  %v4463_v42 = vld [vmem:[#allocation3 + $0x2a8] sm:$0xff]  ;;  %v4464_v17 = vld [vmem:[#allocation3 + $0x2b0] sm:$0xff] }
 0x46f   :  { %v5625_v16 = vpop.xlane.xlu1 %5624  ;;  %5840 = vst.msk [vmem:[#allocation3 + $0x370] sm:$0xff] %vm19_vm2, %v5808_v58  ;;  %v4504_v37 = vadd.f32 %v4503_v30, %v4502_v23  ;;  %v4332_v58 = vld [vmem:[#allocation3 + $0x2e8] sm:$0xff] }
 0x470   :  { %v5806_v54 = vmin.f32 %v5774_v24, %v5625_v16  ;;  %4845 = vadd.xlane.f32.xlu2 %v4844_v22  ;;  %4299 = vadd.xlane.f32.xlu1 %v12875_v57  ;;  %v5718_v2 = vrot.slane %v5717_v34, 1  ;;  %v5755_v61 = vrot.slane %v5754_v31, 1  ;;  %v4462_v16 = vld [vmem:[#allocation3 + $0x2a0] sm:$0xff]  ;;  %v4850_v3 = vld [vmem:[#allocation2 + $0xc8] sm:$0xff] }
 0x471   :  { %v5610_v0 = vpop.xlane.xlu2 %5609  ;;  %v4506_v12 = vadd.f32 %v4505_v4, %v4504_v37  ;;  %v4513_v57 = vsel %vm19_vm2, %v4462_v16, 0.0  ;;  %v5784_v4 = vld [vmem:[#allocation3 + $0x3b0] sm:$0xff] }
 0x472   :  { %v5801_v60 = vmin.f32 %v5769_v7, %v5610_v0  ;;  %5838 = vst.msk [vmem:[#allocation3 + $0x360] sm:$0xff] %vm19_vm2, %v5806_v54  ;;  %v5719_v63 = vmin.f32 %v5717_v34, %v5718_v2  ;;  %v5756_v32 = vmin.f32 %v5754_v31, %v5755_v61  ;;  %v5902_v0 = vld [vmem:[#allocation3 + $0x308] sm:$0xff]  ;;  %v5785_v54 = vld [vmem:[#allocation3 + $0x3b8] sm:$0xff]  ;;  %v5786_v34 = vld [vmem:[#allocation3 + $0x3c0] sm:$0xff]  ;;  %v4515_v31 = vsel %vm19_vm2, %v4463_v42, 0.0 }
 0x473   :  { %v4508_v38 = vadd.f32 %v4507_v15, %v4506_v12  ;;  %v5905_v61 = vld [vmem:[#allocation3 + $0x320] sm:$0xff]  ;;  %v5907_v37 = vld [vmem:[#allocation3 + $0x330] sm:$0xff] }
 0x474   :  { %5833 = vst.msk [vmem:[#allocation3 + $0x338] sm:$0xff] %vm19_vm2, %v5801_v60  ;;  %v5640_v28 = vpop.xlane.xlu0 %5639  ;;  %v12125_v48 = vadd.f32 %v5756_v32, %v5719_v63  ;;  %v5781_v60 = vld [vmem:[#allocation3 + $0x398] sm:$0xff]  ;;  %v5906_v32 = vld [vmem:[#allocation3 + $0x328] sm:$0xff]  ;;  %v5940_v30 = vsel %vm19_vm2, %v5905_v61, 0.0  ;;  %v4468_v16 = vld [vmem:[#allocation3 + $0x2d0] sm:$0xff] }
 0x475   :  { %v5811_v9 = vmin.f32 %v5779_v19, %v5640_v28  ;;  %v4510_v22 = vadd.f32 %v4509_v8, %v4508_v38  ;;  %v5904_v28 = vld [vmem:[#allocation3 + $0x318] sm:$0xff]  ;;  %v5944_v38 = vsel %vm19_vm2, %v5907_v37, 0.0  ;;  %v4525_v42 = vsel %vm19_vm2, %v4468_v16, 0.0 }
 0x477   :  { %v5634_v59 = vpop.xlane.xlu1 %5633  ;;  %5843 = vst.msk [vmem:[#allocation3 + $0x388] sm:$0xff] %vm19_vm2, %v5811_v9  ;;  %v4512_v26 = vadd.f32 %v4511_v20, %v4510_v22  ;;  %v4517_v9 = vsel %vm19_vm2, %v4464_v17, 0.0 }
 0x478   :  { %v5809_v46 = vmin.f32 %v5777_v36, %v5634_v59  ;;  %v5934_v36 = vsel %vm19_vm2, %v5902_v0, 0.0  ;;  %v5933_v59 = vsel %vm19_vm2, %v5901_v25, 0.0  ;;  %v4469_v25 = vld [vmem:[#allocation3 + $0x2d8] sm:$0xff] }
 0x479   :  { %v5619_v10 = vpop.xlane.xlu2 %5618  ;;  %v4514_v45 = vadd.f32 %v4513_v57, %v4512_v26  ;;  %v5935_v2 = vadd.f32 %v5934_v36, %v5933_v59  ;;  %v5910_v36 = vld [vmem:[#allocation3 + $0x348] sm:$0xff] }
 0x47a   :  { %v5804_v33 = vmin.f32 %v5772_v39, %v5619_v10  ;;  %5841 = vst.msk [vmem:[#allocation3 + $0x378] sm:$0xff] %vm19_vm2, %v5809_v46  ;;  %v5936_v10 = vsel %vm19_vm2, %v5903_v41, 0.0  ;;  %v4470_v41 = vld [vmem:[#allocation3 + $0x2e0] sm:$0xff] }
 0x47b   :  { %v4516_v46 = vadd.f32 %v4515_v31, %v4514_v45  ;;  %v5937_v63 = vadd.f32 %v5936_v10, %v5935_v2  ;;  %v5788_v45 = vld [vmem:[#allocation3 + $0x3d0] sm:$0xff]  ;;  %v4852_v31 = vld [vmem:[#allocation2 + $0xd8] sm:$0xff]  ;;  %v4529_v59 = vsel %vm19_vm2, %v4470_v41, 0.0  ;;  %v5950_v10 = vsel %vm19_vm2, %v5910_v36, 0.0  ;;  %v4849_v2 = vld [vmem:[#allocation2 + $0xc0] sm:$0xff] }
 0x47c   :  { %5836 = vst.msk [vmem:[#allocation3 + $0x350] sm:$0xff] %vm19_vm2, %v5804_v33  ;;  %v5938_v33 = vsel %vm19_vm2, %v5904_v28, 0.0 }
 0x47d   :  { %v4518_v23 = vadd.f32 %v4517_v9, %v4516_v46  ;;  %v4527_v9 = vsel %vm19_vm2, %v4469_v25, 0.0  ;;  %v4854_v25 = vld [vmem:[#allocation2 + $0xe8] sm:$0xff] }
 0x47f   :  { %v5643_v40 = vpop.xlane.xlu1 %5642 }
 0x480   :  { %v5812_v14 = vmin.f32 %v5780_v49, %v5643_v40  ;;  %v4334_v49 = vld [vmem:[#allocation3 + $0x2f8] sm:$0xff] }
 0x481   :  { %v5628_v50 = vpop.xlane.xlu2 %5627 }
 0x482   :  { %v5807_v13 = vmin.f32 %v5775_v53, %v5628_v50  ;;  %5844 = vst.msk [vmem:[#allocation3 + $0x390] sm:$0xff] %vm19_vm2, %v5812_v14  ;;  %v5939_v53 = vadd.f32 %v5938_v33, %v5937_v63  ;;  %v4519_v50 = vsel %vm19_vm2, %v4465_v18, 0.0  ;;  %v5942_v14 = vsel %vm19_vm2, %v5906_v32, 0.0  ;;  %v5912_v32 = vld [vmem:[#allocation3 + $0x358] sm:$0xff] }
 0x483   :  { %v5649_v11 = vpop.xlane.xlu0 %5648 }
 0x484   :  { %5839 = vst.msk [vmem:[#allocation3 + $0x368] sm:$0xff] %vm19_vm2, %v5807_v13  ;;  %v5814_v44 = vmin.f32 %v5782_v35, %v5649_v11  ;;  %v4466_v13 = vld [vmem:[#allocation3 + $0x2c0] sm:$0xff]  ;;  %v4467_v35 = vld [vmem:[#allocation3 + $0x2c8] sm:$0xff]  ;;  %v4520_v11 = vadd.f32 %v4519_v50, %v4518_v23  ;;  %v5941_v15 = vadd.f32 %v5940_v30, %v5939_v53  ;;  %v5954_v50 = vsel %vm19_vm2, %v5912_v32, 0.0 }
 0x485   :  { %v4523_v8 = vsel %vm19_vm2, %v4467_v35, 0.0  ;;  %v4853_v35 = vld [vmem:[#allocation2 + $0xe0] sm:$0xff] }
 0x486   :  { %5846 = vst.msk [vmem:[#allocation3 + $0x3a0] sm:$0xff] %vm19_vm2, %v5814_v44  ;;  %v5908_v44 = vld [vmem:[#allocation3 + $0x338] sm:$0xff] }
 0x487   :  { %v5652_v24 = vpop.xlane.xlu1 %5651  ;;  %v5946_v20 = vsel %vm19_vm2, %v5908_v44, 0.0 }
 0x488   :  { %v5815_v7 = vmin.f32 %v5783_v62, %v5652_v24  ;;  %v5943_v62 = vadd.f32 %v5942_v14, %v5941_v15  ;;  %v4521_v24 = vsel %vm19_vm2, %v4466_v13, 0.0  ;;  %v4851_v15 = vld [vmem:[#allocation2 + $0xd0] sm:$0xff] }
 0x489   :  { %v5637_v5 = vpop.xlane.xlu2 %5636  ;;  %v5919_v36 = vld [vmem:[#allocation3 + $0x390] sm:$0xff] }
 0x48a   :  { %v5810_v55 = vmin.f32 %v5778_v43, %v5637_v5  ;;  %5847 = vst.msk [vmem:[#allocation3 + $0x3a8] sm:$0xff] %vm19_vm2, %v5815_v7  ;;  %v4522_v7 = vadd.f32 %v4521_v24, %v4520_v11  ;;  %v5945_v22 = vadd.f32 %v5944_v38, %v5943_v62 }
 0x48b   :  { %v4217_v29 = vpop.xlane.xlu0 %4216  ;;  %v5914_v13 = vld [vmem:[#allocation3 + $0x368] sm:$0xff] }
 0x48c   :  { %5842 = vst.msk [vmem:[#allocation3 + $0x380] sm:$0xff] %vm19_vm2, %v5810_v55  ;;  %v4364_v6 = vmin.f32 %v4332_v58, %v4217_v29  ;;  %v5787_v55 = vld [vmem:[#allocation3 + $0x3c8] sm:$0xff]  ;;  %v4333_v58 = vld [vmem:[#allocation3 + $0x2f0] sm:$0xff]  ;;  %v4524_v26 = vadd.f32 %v4523_v8, %v4522_v7  ;;  %v5909_v29 = vld [vmem:[#allocation3 + $0x340] sm:$0xff]  ;;  %v5958_v38 = vsel %vm19_vm2, %v5914_v13, 0.0 }
 0x48d   :  { %v5948_v17 = vsel %vm19_vm2, %v5909_v29, 0.0 }
 0x48e   :  { %4396 = vst.msk [vmem:[#allocation3 + $0x2e8] sm:$0xff] %vm19_vm2, %v4364_v6  ;;  %v5947_v6 = vadd.f32 %v5946_v20, %v5945_v22  ;;  %v5915_v20 = vld [vmem:[#allocation3 + $0x370] sm:$0xff]  ;;  %v5789_v22 = vld [vmem:[#allocation3 + $0x3d8] sm:$0xff] }
 0x48f   :  { %v5658_v19 = vpop.xlane.xlu1 %5657  ;;  %v5960_v7 = vsel %vm19_vm2, %v5915_v20, 0.0 }
 0x490   :  { %v5817_v21 = vmin.f32 %v5785_v54, %v5658_v19  ;;  %v4526_v19 = vadd.f32 %v4525_v42, %v4524_v26 }
 0x491   :  { %v5646_v51 = vpop.xlane.xlu2 %5645 }
 0x492   :  { %v5813_v39 = vmin.f32 %v5781_v60, %v5646_v51  ;;  %5849 = vst.msk [vmem:[#allocation3 + $0x3b8] sm:$0xff] %vm19_vm2, %v5817_v21  ;;  %v5949_v51 = vadd.f32 %v5948_v17, %v5947_v6  ;;  %v5911_v21 = vld [vmem:[#allocation3 + $0x350] sm:$0xff]  ;;  %v4528_v61 = vadd.f32 %v4527_v9, %v4526_v19  ;;  %v5790_v6 = vld [vmem:[#allocation3 + $0x3e0] sm:$0xff]  ;;  %v5918_v17 = vld [vmem:[#allocation3 + $0x388] sm:$0xff] }
 0x493   :  { %v5661_v56 = vpop.xlane.xlu0 %5660  ;;  %v5952_v46 = vsel %vm19_vm2, %v5911_v21, 0.0  ;;  %v5966_v19 = vsel %vm19_vm2, %v5918_v17, 0.0 }
 0x494   :  { %5845 = vst.msk [vmem:[#allocation3 + $0x398] sm:$0xff] %vm19_vm2, %v5813_v39  ;;  %v5818_v52 = vmin.f32 %v5786_v34, %v5661_v56  ;;  %v5951_v56 = vadd.f32 %v5950_v10, %v5949_v51  ;;  %v4530_v63 = vadd.f32 %v4529_v59, %v4528_v61  ;;  %v5921_v10 = vld [vmem:[#allocation3 + $0x3a0] sm:$0xff] }
 0x495   :  { %v4471_v39 = vld [vmem:[#allocation3 + $0x2e8] sm:$0xff] }
 0x496   :  { %5850 = vst.msk [vmem:[#allocation3 + $0x3c0] sm:$0xff] %vm19_vm2, %v5818_v52  ;;  %v4531_v52 = vsel %vm19_vm2, %v4471_v39, 0.0 }
 0x497   :  { %v4223_v40 = vpop.xlane.xlu1 %4222  ;;  %v4532_v37 = vadd.f32 %v4531_v52, %v4530_v63 }
 0x498   :  { %v4366_v12 = vmin.f32 %v4334_v49, %v4223_v40  ;;  %v5953_v49 = vadd.f32 %v5952_v46, %v5951_v56  ;;  %v5972_v56 = vsel %vm19_vm2, %v5921_v10, 0.0 }
 0x499   :  { %v5655_v1 = vpop.xlane.xlu2 %5654 }
 0x49a   :  { %v5816_v47 = vmin.f32 %v5784_v4, %v5655_v1  ;;  %4398 = vst.msk [vmem:[#allocation3 + $0x2f8] sm:$0xff] %vm19_vm2, %v4366_v12  ;;  %v5913_v1 = vld [vmem:[#allocation3 + $0x360] sm:$0xff]  ;;  %v5955_v12 = vadd.f32 %v5954_v50, %v5953_v49  ;;  %v5924_v50 = vld [vmem:[#allocation3 + $0x3b8] sm:$0xff] }
 0x49b   :  { %v4799_v43 = vpop.xlane.xlu0 %4798  ;;  %v5920_v51 = vld [vmem:[#allocation3 + $0x398] sm:$0xff] }
 0x49c   :  { %5848 = vst.msk [vmem:[#allocation3 + $0x3b0] sm:$0xff] %vm19_vm2, %v5816_v47  ;;  %v4858_v5 = vmin.f32 %v4850_v3, %v4799_v43  ;;  %v5956_v3 = vsel %vm19_vm2, %v5913_v1, 0.0 }
 0x49d   :  { %v5957_v24 = vadd.f32 %v5956_v3, %v5955_v12  ;;  %v5792_v12 = vld [vmem:[#allocation3 + $0x3f0] sm:$0xff] }
 0x49e   :  { %4866 = vst.msk [vmem:[#allocation2 + $0xc8] sm:$0xff] %vm19_vm2, %v4858_v5 }
 0x49f   :  { %v5664_v0 = vpop.xlane.xlu1 %5663  ;;  %v5959_v5 = vadd.f32 %v5958_v38, %v5957_v24  ;;  %v5925_v24 = vld [vmem:[#allocation3 + $0x3c0] sm:$0xff] }
 0x4a0   :  { %v5819_v57 = vmin.f32 %v5787_v55, %v5664_v0  ;;  %v5916_v55 = vld [vmem:[#allocation3 + $0x378] sm:$0xff] }
 0x4a1   :  { %v4220_v54 = vpop.xlane.xlu2 %4219  ;;  %v4473_v53 = vld [vmem:[#allocation3 + $0x2f8] sm:$0xff]  ;;  %v5961_v16 = vadd.f32 %v5960_v7, %v5959_v5  ;;  %v5962_v0 = vsel %vm19_vm2, %v5916_v55, 0.0 }
 0x4a2   :  { %v4365_v60 = vmin.f32 %v4333_v58, %v4220_v54  ;;  %5851 = vst.msk [vmem:[#allocation3 + $0x3c8] sm:$0xff] %vm19_vm2, %v5819_v57  ;;  %v4535_v11 = vsel %vm19_vm2, %v4473_v53, 0.0  ;;  %v5917_v58 = vld [vmem:[#allocation3 + $0x380] sm:$0xff] }
 0x4a3   :  { %v5667_v28 = vpop.xlane.xlu0 %5666  ;;  %v5964_v54 = vsel %vm19_vm2, %v5917_v58, 0.0  ;;  %v5963_v57 = vadd.f32 %v5962_v0, %v5961_v16  ;;  %v5923_v52 = vld [vmem:[#allocation3 + $0x3b0] sm:$0xff]  ;;  %v5980_v16 = vsel %vm19_vm2, %v5925_v24, 0.0 }
 0x4a4   :  { %4397 = vst.msk [vmem:[#allocation3 + $0x2f0] sm:$0xff] %vm19_vm2, %v4365_v60  ;;  %v5820_v34 = vmin.f32 %v5788_v45, %v5667_v28  ;;  %v4855_v28 = vld [vmem:[#allocation2 + $0xf0] sm:$0xff]  ;;  %v5976_v53 = vsel %vm19_vm2, %v5923_v52, 0.0 }
 0x4a5   :  { %v5965_v45 = vadd.f32 %v5964_v54, %v5963_v57  ;;  %v5869_v63 = vld [vmem:[#allocation2 + $0xc8] sm:$0xff] }
 0x4a6   :  { %5852 = vst.msk [vmem:[#allocation3 + $0x3d0] sm:$0xff] %vm19_vm2, %v5820_v34  ;;  %v5968_v34 = vsel %vm19_vm2, %v5919_v36, 0.0 }
 0x4a7   :  { %v4805_v33 = vpop.xlane.xlu1 %4804  ;;  %v5967_v21 = vadd.f32 %v5966_v19, %v5965_v45 }
 0x4a8   :  { %v4860_v23 = vmin.f32 %v4852_v31, %v4805_v33  ;;  %v5970_v31 = vsel %vm19_vm2, %v5920_v51, 0.0  ;;  %v5922_v33 = vld [vmem:[#allocation3 + $0x3a8] sm:$0xff] }
 0x4a9   :  { %v4796_v18 = vpop.xlane.xlu2 %4795  ;;  %v5969_v59 = vadd.f32 %v5968_v34, %v5967_v21 }
 0x4aa   :  { %v4857_v30 = vmin.f32 %v4849_v2, %v4796_v18  ;;  %4868 = vst.msk [vmem:[#allocation2 + $0xd8] sm:$0xff] %vm19_vm2, %v4860_v23  ;;  %v5791_v2 = vld [vmem:[#allocation3 + $0x3e8] sm:$0xff] }
 0x4ab   :  { %v4472_v4 = vld [vmem:[#allocation3 + $0x2f0] sm:$0xff]  ;;  %v5971_v46 = vadd.f32 %v5970_v31, %v5969_v59 }
 0x4ac   :  { %4865 = vst.msk [vmem:[#allocation2 + $0xc0] sm:$0xff] %vm19_vm2, %v4857_v30  ;;  %v4533_v40 = vsel %vm19_vm2, %v4472_v4, 0.0  ;;  %v5974_v4 = vsel %vm19_vm2, %v5922_v33, 0.0 }
 0x4ad   :  { %v4534_v14 = vadd.f32 %v4533_v40, %v4532_v37  ;;  %v5973_v18 = vadd.f32 %v5972_v56, %v5971_v46  ;;  %v5877_v37 = vsel %vm19_vm2, %v5869_v63, 0.0  ;;  %v5927_v55 = vld [vmem:[#allocation3 + $0x3d0] sm:$0xff] }
 0x4af   :  { %v4536_v44 = vadd.f32 %v4535_v11, %v4534_v14  ;;  %v5975_v14 = vadd.f32 %v5974_v4, %v5973_v18 }
 0x4b0   :  { %v4808_v47 = vpop.xlane.xlu0 %4807 }
 0x4b1   :  { %v4802_v62 = vpop.xlane.xlu2 %4801  ;;  %v4861_v43 = vmin.f32 %v4853_v35, %v4808_v47  ;;  %4537 = vadd.xlane.f32.xlu0 %v4536_v44  ;;  %v5977_v13 = vadd.f32 %v5976_v53, %v5975_v14  ;;  %v4856_v35 = vld [vmem:[#allocation2 + $0xf8] sm:$0xff]  ;;  %v5978_v44 = vsel %vm19_vm2, %v5924_v50, 0.0  ;;  %v4400_v50 = vld [vmem:[#allocation4 + $0x4] sm:$0x3]  ;;  %v4401_v14 = vstv %s6513_s27 }
 0x4b2   :  { %v4859_v8 = vmin.f32 %v4851_v15, %v4802_v62  ;;  %v5871_v11 = vld [vmem:[#allocation2 + $0xd8] sm:$0xff] }
 0x4b3   :  { %4869 = vst.msk [vmem:[#allocation2 + $0xe0] sm:$0xff] %vm19_vm2, %v4861_v43  ;;  %v5868_v61 = vld [vmem:[#allocation2 + $0xc0] sm:$0xff]  ;;  %v5881_v43 = vsel %vm19_vm2, %v5871_v11, 0.0  ;;  %v5979_v20 = vadd.f32 %v5978_v44, %v5977_v13 }
 0x4b4   :  { %4867 = vst.msk [vmem:[#allocation2 + $0xd0] sm:$0xff] %vm19_vm2, %v4859_v8  ;;  %v5876_v30 = vsel %vm19_vm2, %v5868_v61, 0.0  ;;  %v5926_v8 = vld [vmem:[#allocation3 + $0x3c8] sm:$0xff] }
 0x4b5   :  { %v5878_v1 = vadd.f32 %v5877_v37, %v5876_v30  ;;  %v5981_v57 = vadd.f32 %v5980_v16, %v5979_v20 }
 0x4b9   :  { %v5670_v26 = vpop.xlane.xlu2 %5669  ;;  %5758 = vadd.xlane.f32.xlu0 %v12125_v48 }
 0x4ba   :  { %v5821_v29 = vmin.f32 %v5789_v22, %v5670_v26  ;;  %v5872_v5 = vld [vmem:[#allocation2 + $0xe0] sm:$0xff]  ;;  %v5982_v26 = vsel %vm19_vm2, %v5926_v8, 0.0 }
 0x4bb   :  { %v5673_v60 = vpop.xlane.xlu1 %5672  ;;  %v5870_v32 = vld [vmem:[#allocation2 + $0xd0] sm:$0xff]  ;;  %v5983_v19 = vadd.f32 %v5982_v26, %v5981_v57 }
 0x4bc   :  { %5853 = vst.msk [vmem:[#allocation3 + $0x3d8] sm:$0xff] %vm19_vm2, %v5821_v29  ;;  %v5822_v42 = vmin.f32 %v5790_v6, %v5673_v60  ;;  %v5879_v40 = vsel %vm19_vm2, %v5870_v32, 0.0  ;;  %v5793_v29 = vld [vmem:[#allocation3 + $0x3f8] sm:$0xff]  ;;  %v5883_v6 = vsel %vm19_vm2, %v5872_v5, 0.0 }
 0x4bd   :  { %v5880_v15 = vadd.f32 %v5879_v40, %v5878_v1 }
 0x4be   :  { %5854 = vst.msk [vmem:[#allocation3 + $0x3e0] sm:$0xff] %vm19_vm2, %v5822_v42  ;;  %v5984_v42 = vsel %vm19_vm2, %v5927_v55, 0.0 }
 0x4bf   :  { %v5882_v22 = vadd.f32 %v5881_v43, %v5880_v15 }
 0x4c1   :  { %v4811_v41 = vpop.xlane.xlu2 %4810  ;;  %v5884_v60 = vadd.f32 %v5883_v6, %v5882_v22 }
 0x4c2   :  { %v4862_v48 = vmin.f32 %v4854_v25, %v4811_v41 }
 0x4c3   :  { %v4814_v39 = vpop.xlane.xlu1 %4813  ;;  %v5928_v54 = vld [vmem:[#allocation3 + $0x3d8] sm:$0xff] }
 0x4c4   :  { %4870 = vst.msk [vmem:[#allocation2 + $0xe8] sm:$0xff] %vm19_vm2, %v4862_v48  ;;  %v4863_v9 = vmin.f32 %v4855_v28, %v4814_v39  ;;  %v5986_v21 = vsel %vm19_vm2, %v5928_v54, 0.0  ;;  %v5985_v39 = vadd.f32 %v5984_v42, %v5983_v19  ;;  %v5859_v42 = vld [vmem:[#allocation4 + $0x6] sm:$0x3] }
 0x4c5   :  { %v5929_v41 = vld [vmem:[#allocation3 + $0x3e0] sm:$0xff] }
 0x4c6   :  { %4871 = vst.msk [vmem:[#allocation2 + $0xf0] sm:$0xff] %vm19_vm2, %v4863_v9  ;;  %v5988_v59 = vsel %vm19_vm2, %v5929_v41, 0.0 }
 0x4cb   :  { %v5676_v23 = vpop.xlane.xlu0 %5675  ;;  %v5873_v7 = vld [vmem:[#allocation2 + $0xe8] sm:$0xff] }
 0x4cc   :  { %v5823_v49 = vmin.f32 %v5791_v2, %v5676_v23  ;;  %v5885_v0 = vsel %vm19_vm2, %v5873_v7, 0.0  ;;  %v5987_v2 = vadd.f32 %v5986_v21, %v5985_v39 }
 0x4cd   :  { %v5874_v58 = vld [vmem:[#allocation2 + $0xf0] sm:$0xff]  ;;  %v5886_v51 = vadd.f32 %v5885_v0, %v5884_v60 }
 0x4ce   :  { %5855 = vst.msk [vmem:[#allocation3 + $0x3e8] sm:$0xff] %vm19_vm2, %v5823_v49  ;;  %v5887_v25 = vsel %vm19_vm2, %v5874_v58, 0.0  ;;  %v5989_v52 = vadd.f32 %v5988_v59, %v5987_v2 }
 0x4cf   :  { %v5888_v9 = vadd.f32 %v5887_v25, %v5886_v51 }
 0x4d3   :  { %v5679_v47 = vpop.xlane.xlu2 %5678  ;;  %v4817_v3 = vpop.xlane.xlu0 %4816 }
 0x4d4   :  { %v5824_v38 = vmin.f32 %v5792_v12, %v5679_v47  ;;  %v4864_v62 = vmin.f32 %v4856_v35, %v4817_v3 }
 0x4d5   :  { %v5930_v28 = vld [vmem:[#allocation3 + $0x3e8] sm:$0xff] }
 0x4d6   :  { %5856 = vst.msk [vmem:[#allocation3 + $0x3f0] sm:$0xff] %vm19_vm2, %v5824_v38  ;;  %v5990_v33 = vsel %vm19_vm2, %v5930_v28, 0.0 }
 0x4d7   :  { %4872 = vst.msk [vmem:[#allocation2 + $0xf8] sm:$0xff] %vm19_vm2, %v4864_v62  ;;  %v5991_v32 = vadd.f32 %v5990_v33, %v5989_v52 }
 0x4db   :  { %v4433_v17 = vpop.xlane.xlu2 %4432  ;;  %v5682_v45 = vpop.xlane.xlu1 %5681 }
 0x4dc   :  { %v4434_v48 = vrot.slane %v4433_v17, 4  ;;  %v5825_v36 = vmin.f32 %v5793_v29, %v5682_v45 }
 0x4dd   :  { %v5931_v46 = vld [vmem:[#allocation3 + $0x3f0] sm:$0xff] }
 0x4de   :  { %v4435_v34 = vadd.f32 %v4434_v48, %v4433_v17  ;;  %5857 = vst.msk [vmem:[#allocation3 + $0x3f8] sm:$0xff] %vm19_vm2, %v5825_v36  ;;  %v5875_v31 = vld [vmem:[#allocation2 + $0xf8] sm:$0xff]  ;;  %v5992_v23 = vsel %vm19_vm2, %v5931_v46, 0.0 }
 0x4df   :  { %v5889_v10 = vsel %vm19_vm2, %v5875_v31, 0.0  ;;  %v5993_v4 = vadd.f32 %v5992_v23, %v5991_v32 }
 0x4e0   :  { %v4436_v61 = vrot.slane %v4435_v34, 2  ;;  %v5890_v56 = vadd.f32 %v5889_v10, %v5888_v9 }
 0x4e2   :  { %5891 = vadd.xlane.f32.xlu1 %v5890_v56  ;;  %v4437_v18 = vadd.f32 %v4436_v61, %v4435_v34 }
 0x4e3   :  { %v4300_v63 = vpop.xlane.xlu1 %4299  ;;  %v4846_v62 = vpop.xlane.xlu2 %4845 }
 0x4e4   :  { %6514 = vpush %v4300_v63  ;;  %v4438_v49 = vrot.slane %v4437_v18, 1 }
 0x4e5   :  { %v5932_v30 = vld [vmem:[#allocation3 + $0x3f8] sm:$0xff] }
 0x4e6   :  { %v4439_v53 = vadd.f32 %v4438_v49, %v4437_v18  ;;  %v5994_v37 = vsel %vm19_vm2, %v5932_v30, 0.0 }
 0x4e7   :  { %v5995_v40 = vadd.f32 %v5994_v37, %v5993_v4 }
 0x4e8   :  { %6516 = vpush %v4439_v53 }
 0x4e9   :  { %5996 = vadd.xlane.f32.xlu2 %v5995_v40 }
 0x515   :  { %s6515_s28 = spop %6514 }
 0x516   :  { %v4402_v1 = vstv %s6515_s28 }
 0x517   :  { %v4403_v12 = vsel %vm1483_vm3, %v4401_v14, %v4402_v1 }
 0x518   :  { %v4404_v13 = vadd.f32 %v4403_v12, %v4400_v50 }
 0x519   :  { %s6517_s29 = spop %6516 }
 0x51a   :  { %4405 = vst [vmem:[#allocation4 + $0x4] sm:$0x3] %v4404_v13  ;;  %s4441_s30 = smul.f32 0.015625, %s6517_s29 }
 0x51c   :  { %v4556_v36 = vstv %s4441_s30 }
 0x521   :  { %v4547_v55 = vld [vmem:[#allocation4 + $0x4] sm:$0x3] }
 0x522   :  { %v4548_v29 = vmul.f32 0.00390625, %v4547_v55 }
 0x524   :  { %v4538_v35 = vpop.xlane.xlu0 %4537  ;;  %v4552_v57 = vperm.slane %v4548_v29, 1  ;;  %v4554_v45 = vperm.slane %v4548_v29, 0 }
 0x525   :  { %v4539_v11 = vrot.slane %v4538_v35, 4 }
 0x527   :  { %v4540_v15 = vadd.f32 %v4539_v11, %v4538_v35 }
 0x529   :  { %v4541_v44 = vrot.slane %v4540_v15, 2 }
 0x52b   :  { %v4542_v47 = vadd.f32 %v4541_v44, %v4540_v15 }
 0x52c   :  { %v5759_v43 = vpop.xlane.xlu0 %5758 }
 0x52d   :  { %v4543_v3 = vrot.slane %v4542_v47, 1 }
 0x52f   :  { %v4544_v38 = vadd.f32 %v4543_v3, %v4542_v47 }
 0x531   :  { %6518 = vpush %v4544_v38 }
 0x532   :  { %6520 = vpush %v4846_v62 }
 0x533   :  { %6522 = vpush %v5759_v43 }
 0x555   :  { %v5892_v24 = vpop.xlane.xlu1 %5891 }
 0x556   :  { %v5893_v8 = vrot.slane %v5892_v24, 4 }
 0x558   :  { %v5894_v20 = vadd.f32 %v5893_v8, %v5892_v24 }
 0x55a   :  { %v5895_v5 = vrot.slane %v5894_v20, 2 }
 0x55c   :  { %v5896_v7 = vadd.f32 %v5895_v5, %v5894_v20  ;;  %v5997_v22 = vpop.xlane.xlu2 %5996 }
 0x55d   :  { %v5998_v58 = vrot.slane %v5997_v22, 4 }
 0x55e   :  { %v5897_v16 = vrot.slane %v5896_v7, 1 }
 0x55f   :  { %v5999_v26 = vadd.f32 %v5998_v58, %v5997_v22 }
 0x560   :  { %v5898_v6 = vadd.f32 %v5897_v16, %v5896_v7 }
 0x561   :  { %v6000_v0 = vrot.slane %v5999_v26, 2 }
 0x562   :  { %s6519_s4 = spop %6518  ;;  %6524 = vpush %v5898_v6 }
 0x563   :  { %s4546_s5 = smul.f32 0.00390625, %s6519_s4  ;;  %s6521_s6 = spop %6520  ;;  %v6001_v54 = vadd.f32 %v6000_v0, %v5999_v26 }
 0x564   :  { %v5860_v60 = vstv %s6521_s6  ;;  %s6523_s7 = spop %6522 }
 0x565   :  { %v4551_v17 = vstv %s4546_s5  ;;  %v5861_v25 = vstv %s6523_s7  ;;  %v6002_v48 = vrot.slane %v6001_v54, 1 }
 0x566   :  { %v4553_v41 = vsel %vm1633_vm4, %v4551_v17, %v4552_v57  ;;  %v5862_v19 = vsel %vm1483_vm3, %v5860_v60, %v5861_v25 }
 0x567   :  { %v4555_v51 = vsel %vm1632_vm5, %v4554_v45, %v4553_v41  ;;  %v5863_v21 = vadd.f32 %v5862_v19, %v5859_v42  ;;  %v6003_v39 = vadd.f32 %v6002_v48, %v6001_v54 }
 0x568   :  { %v4557_v28 = vsel %vm1483_vm3, %v4556_v36, %v4555_v51 }
 0x569   :  { %4559 = vst [vmem:[#allocation5 + $0x8] sm:$0xf] %v4557_v28 }
 0x56a   :  { %5864 = vst [vmem:[#allocation4 + $0x6] sm:$0x3] %v5863_v21 }
 0x56b   :  { %6526 = vpush %v6003_v39 }
 0x571   :  { %v6006_v34 = vld [vmem:[#allocation4 + $0x6] sm:$0x3] }
 0x572   :  { %v6007_v31 = vmul.f32 0.00390625, %v6006_v34 }
 0x574   :  { %v6011_v9 = vperm.slane %v6007_v31, 1  ;;  %v6013_v10 = vperm.slane %v6007_v31, 0 }
 0x593   :  { %s6525_s8 = spop %6524 }
 0x594   :  { %s5900_s12 = smul.f32 0.015625, %s6525_s8 }
 0x596   :  { %v6015_v2 = vstv %s5900_s12 }
 0x59c   :  { %s6527_s13 = spop %6526 }
 0x59d   :  { %s6005_s14 = smul.f32 0.00390625, %s6527_s13 }
 0x59f   :  { %v6010_v59 = vstv %s6005_s14 }
 0x5a0   :  { %v6012_v46 = vsel %vm1633_vm4, %v6010_v59, %v6011_v9 }
 0x5a1   :  { %v6014_v61 = vsel %vm1632_vm5, %v6013_v10, %v6012_v46 }
 0x5a2   :  { %v6016_v56 = vsel %vm1483_vm3, %v6015_v2, %v6014_v61 }
 0x5a3   :  { %6018 = vst [vmem:[#allocation5 + $0xc] sm:$0xf] %v6016_v56 }
 0x5a4   :  { %6031 = dma.vmem_to_hbm [thread:$0]  %s6024_s16, 256, %s6026_s11, [#allocation6], %s6595_s3, %s6595_s3, %s6596_s17  }
 0x5a5   :  { %6590 = dma.done.wait [#allocation6], 256  }
 0x5a6   :  { %6591 = vsyncadd [#allocation6], 4294967040 }
 0x5a7   :  { %6036 = vsyncpa [#allocation6], 1 }

</bundles_post_ra>
